<compile_context>
chip_gen: v5e
topology: v5e:2x2
jax: 0.10.0
libtpu: 0.0.40
codegen_flags: <defaults>
</compile_context>

<pallas_src>
import functools

import jax
import jax.numpy as jnp
from jax import lax
from jax.experimental import pallas as pl
from jax.experimental.pallas import tpu as pltpu

# ---- problem sizes (small, consistent with the module) ----------------------
T = 8             # sequence length
B = 2             # batch
D_IN = 768        # bert_model.config.hidden_size
HIDDEN_DIM = 256  # BiLSTM_CRF hidden_dim
H = HIDDEN_DIM // 2   # per-direction LSTM hidden size = 128
TAGSET_SIZE = 7       # len(tag_to_id)
TAG_PAD = 128         # lane-dense padded tag dimension inside the kernel


def _bilstm_tag_kernel(
    # inputs (all resident in VMEM)
    x_ref,      # (T*B, D_IN)   bf16 time-major features, rows grouped by t
    wih_ref,    # (D_IN, 8H)    bf16 fused [W_ih_f^T | W_ih_b^T], gates (i,f,g,o)
    whh_ref,    # (H, 8H)       bf16 dense [W_hh_f^T | W_hh_b^T]
    b_ref,      # (1, 8H)       f32  [b_ih_f+b_hh_f | b_ih_b+b_hh_b]
    wtag_ref,   # (2H, TAG_PAD) bf16 zero-padded hidden2tag weight^T
    btag_ref,   # (1, TAG_PAD)  f32  zero-padded hidden2tag bias
    # output
    out_ref,    # (T*B, TAG_PAD) f32 emission logits (padded)
    # scratch
    xg_ref,     # (T*B, 8H) f32  precomputed input-gate contributions (both dirs)
    h_ref,      # (T*B, 2H) bf16 hidden states, columns [fwd H | bwd H]
    *, seq_len, batch, hidden,
):
  Tn, Bn, Hn = seq_len, batch, hidden
  G = 4 * Hn

  # --- single fused input projection for both directions (one MXU pass) -----
  xg_ref[...] = (
      jnp.dot(x_ref[...], wih_ref[...], preferred_element_type=jnp.float32)
      + b_ref[...])

  whh = whh_ref[...]  # (H, 8H) bf16; loaded once, reused every unrolled step

  # Hoisted direction-row mask for the stacked (2B, .) layout (constant).
  fwd_rows = lax.broadcasted_iota(jnp.int32, (2 * Bn, G), 0) < Bn

  # --- fused forward+backward recurrence: one loop of T steps ----------------
  # Carry layout: rows 0:B = forward direction, rows B:2B = backward direction.
  def body(s, carry):
    h_bf, c = carry          # h_bf: (2B, H) bf16 stacked; c: (2B, H) f32 stacked
    t_f = s                  # forward direction time index
    t_b = Tn - 1 - s         # backward direction time index

    # One dense (2B,H)x(H,8H) matmul drives both directions (K=128).
    hg = jnp.dot(h_bf, whh, preferred_element_type=jnp.float32)     # (2B, 8H)
    # fwd rows take cols 0:4H (W_hh_f), bwd rows take cols 4H:8H (W_hh_b).
    gates_h = jnp.where(fwd_rows, hg[:, 0:G], hg[:, G:2 * G])       # (2B, 4H)

    # Precomputed x contributions (+bias); no dependence on h, so this load +
    # sublane stack sits off the serial critical path under full unroll.
    gx = jnp.concatenate(
        [xg_ref[pl.ds(t_f * Bn, Bn), 0:G],
         xg_ref[pl.ds(t_b * Bn, Bn), G:2 * G]], axis=0)             # (2B, 4H)

    g = gates_h + gx
    # PyTorch LSTM gate order: i, f, g, o — single act() on the stacked gates.
    i_g = jax.nn.sigmoid(g[:, 0 * Hn:1 * Hn])
    f_g = jax.nn.sigmoid(g[:, 1 * Hn:2 * Hn])
    g_g = jnp.tanh(g[:, 2 * Hn:3 * Hn])
    o_g = jax.nn.sigmoid(g[:, 3 * Hn:4 * Hn])
    c_new = f_g * c + i_g * g_g
    h_new = o_g * jnp.tanh(c_new)

    # Cast once; the same bf16 value feeds both the scratch store and the
    # next-step recurrence matmul.
    h_new_bf = h_new.astype(jnp.bfloat16)
    h_ref[pl.ds(t_f * Bn, Bn), 0:Hn] = h_new_bf[0:Bn, :]
    h_ref[pl.ds(t_b * Bn, Bn), Hn:2 * Hn] = h_new_bf[Bn:2 * Bn, :]
    return h_new_bf, c_new

  h0 = jnp.zeros((2 * Bn, Hn), jnp.bfloat16)
  c0 = jnp.zeros((2 * Bn, Hn), jnp.float32)
  lax.fori_loop(0, Tn, body, (h0, c0), unroll=True)

  # --- hidden2tag linear on [fwd | bwd] hidden states (lane-dense output) ----
  out_ref[...] = (
      jnp.dot(h_ref[...], wtag_ref[...], preferred_element_type=jnp.float32)
      + btag_ref[...])


def bilstm_crf_forward(x, packed):
  """x: (T, B, D_IN) float32 BERT features -> (T, B, TAGSET_SIZE) f32 logits."""
  Tn, Bn, Dn = x.shape
  x2d = x.reshape(Tn * Bn, Dn).astype(jnp.bfloat16)

  kernel = functools.partial(
      _bilstm_tag_kernel, seq_len=Tn, batch=Bn, hidden=H)

  vmem = pl.BlockSpec(memory_space=pltpu.MemorySpace.VMEM)
  out = pl.pallas_call(
      kernel,
      out_shape=jax.ShapeDtypeStruct((Tn * Bn, TAG_PAD), jnp.float32),
      in_specs=[vmem] * 6,
      out_specs=vmem,
      scratch_shapes=[
          pltpu.VMEM((Tn * Bn, 8 * H), jnp.float32),   # xg (both directions)
          pltpu.VMEM((Tn * Bn, 2 * H), jnp.bfloat16),  # hidden [fwd | bwd]
      ],
  )(
      x2d,
      packed["wih"], packed["whh"], packed["b"],
      packed["wtag"], packed["btag"],
  )
  return out[:, :TAGSET_SIZE].reshape(Tn, Bn, TAGSET_SIZE)


def init_torch_params(key):
  """Random params in torch's native layout (uniform +-1/sqrt(fan))."""
  ks = jax.random.split(key, 10)
  s_lstm = 1.0 / jnp.sqrt(jnp.float32(H))
  s_lin = 1.0 / jnp.sqrt(jnp.float32(HIDDEN_DIM))

  def u(k, shape, scale):
    return jax.random.uniform(k, shape, jnp.float32, -scale, scale)

  return {
      # nn.LSTM(bidirectional=True) parameters, gate order (i, f, g, o)
      "weight_ih_l0": u(ks[0], (4 * H, D_IN), s_lstm),
      "weight_hh_l0": u(ks[1], (4 * H, H), s_lstm),
      "bias_ih_l0": u(ks[2], (4 * H,), s_lstm),
      "bias_hh_l0": u(ks[3], (4 * H,), s_lstm),
      "weight_ih_l0_reverse": u(ks[4], (4 * H, D_IN), s_lstm),
      "weight_hh_l0_reverse": u(ks[5], (4 * H, H), s_lstm),
      "bias_ih_l0_reverse": u(ks[6], (4 * H,), s_lstm),
      "bias_hh_l0_reverse": u(ks[7], (4 * H,), s_lstm),
      # hidden2tag Linear(HIDDEN_DIM, TAGSET_SIZE)
      "tag_weight": u(ks[8], (TAGSET_SIZE, HIDDEN_DIM), s_lin),
      "tag_bias": u(ks[9], (TAGSET_SIZE,), s_lin),
  }


def pack_params(p):
  """Fuse/transpose/pad torch-layout params into the kernel's layout."""
  # Fused input-projection weight: (D_IN, 8H) = [W_ih_f^T | W_ih_b^T].
  wih = jnp.concatenate(
      [p["weight_ih_l0"].T, p["weight_ih_l0_reverse"].T], axis=1)
  # Dense recurrence weight: (H, 8H) = [W_hh_f^T | W_hh_b^T] (no zero blocks).
  whh = jnp.concatenate(
      [p["weight_hh_l0"].T, p["weight_hh_l0_reverse"].T], axis=1)
  # Pre-summed biases (exact): [b_ih_f + b_hh_f | b_ih_b + b_hh_b].
  b = jnp.concatenate([
      p["bias_ih_l0"] + p["bias_hh_l0"],
      p["bias_ih_l0_reverse"] + p["bias_hh_l0_reverse"],
  ])[None, :]
  # hidden2tag, zero-padded to a lane-dense 128-wide tag dimension.
  wtag = jnp.zeros((2 * H, TAG_PAD), jnp.float32)
  wtag = wtag.at[:, :TAGSET_SIZE].set(p["tag_weight"].T)
  btag = jnp.zeros((1, TAG_PAD), jnp.float32)
  btag = btag.at[:, :TAGSET_SIZE].set(p["tag_bias"][None, :])
  return {
      "wih": wih.astype(jnp.bfloat16),
      "whh": whh.astype(jnp.bfloat16),
      "b": b,                                 # f32
      "wtag": wtag.astype(jnp.bfloat16),
      "btag": btag,                           # f32
  }


def reference_forward(x, p):
  """Pure-JAX reference that mirrors the kernel's bf16-matmul-input numerics."""
  Tn, Bn, _ = x.shape

  def run_dir(wih, whh, bias, reverse):
    wih_b = wih.T.astype(jnp.bfloat16)   # (D_IN, 4H)
    whh_b = whh.T.astype(jnp.bfloat16)   # (H, 4H)
    h = jnp.zeros((Bn, H), jnp.float32)
    c = jnp.zeros((Bn, H), jnp.float32)
    outs = [None] * Tn
    order = range(Tn - 1, -1, -1) if reverse else range(Tn)
    for t in order:
      gx = jnp.dot(x[t].astype(jnp.bfloat16), wih_b,
                   preferred_element_type=jnp.float32) + bias[None, :]
      gh = jnp.dot(h.astype(jnp.bfloat16), whh_b,
                   preferred_element_type=jnp.float32)
      g = gh + gx
      i_g = jax.nn.sigmoid(g[:, 0 * H:1 * H])
      f_g = jax.nn.sigmoid(g[:, 1 * H:2 * H])
      g_g = jnp.tanh(g[:, 2 * H:3 * H])
      o_g = jax.nn.sigmoid(g[:, 3 * H:4 * H])
      c = f_g * c + i_g * g_g
      h = o_g * jnp.tanh(c)
      outs[t] = h
    return jnp.stack(outs, axis=0)           # (T, B, H)

  h_f = run_dir(p["weight_ih_l0"], p["weight_hh_l0"],
                p["bias_ih_l0"] + p["bias_hh_l0"], reverse=False)
  h_b = run_dir(p["weight_ih_l0_reverse"], p["weight_hh_l0_reverse"],
                p["bias_ih_l0_reverse"] + p["bias_hh_l0_reverse"], reverse=True)
  hcat = jnp.concatenate([h_f, h_b], axis=-1).astype(jnp.bfloat16)
  logits = (jnp.dot(hcat.reshape(Tn * Bn, HIDDEN_DIM),
                    p["tag_weight"].T.astype(jnp.bfloat16),
                    preferred_element_type=jnp.float32)
            + p["tag_bias"][None, :])
  return logits.reshape(Tn, Bn, TAGSET_SIZE)


if __name__ == "__main__":
  key = jax.random.PRNGKey(0)
  k_x, k_p = jax.random.split(key)

  # TODO(synk): the frozen bert_model(x)[0] encoder is not re-implemented; its
  # output embeddings are synthesized here as the kernel's input features.
  # TODO(synk): the CRF is only used by loss()/predict(), not forward(), so it
  # is not part of this kernel.
  x = jax.random.normal(k_x, (T, B, D_IN), jnp.float32)
  params = init_torch_params(k_p)
  packed = pack_params(params)

  logits = bilstm_crf_forward(x, packed)
  logits = jax.block_until_ready(logits)

  assert logits.shape == (T, B, TAGSET_SIZE)
  assert logits.dtype == jnp.float32
  assert bool(jnp.all(jnp.isfinite(logits)))

  # Tolerance-based check against a pure-JAX reference with matching bf16
  # matmul-operand precision (covers the stacked-direction restructuring).
  ref = reference_forward(x, params)
  max_diff = float(jnp.max(jnp.abs(logits - ref)))
  assert max_diff < 5e-2, max_diff

  print("KERNEL_OK")
</pallas_src>

<mosaic_0001>
module attributes {stable_mosaic.version = 11 : i64} {
  func.func @_bilstm_tag_kernel(%arg0: memref<16x768xbf16, #tpu.memory_space<vmem>>, %arg1: memref<768x1024xbf16, #tpu.memory_space<vmem>>, %arg2: memref<128x1024xbf16, #tpu.memory_space<vmem>>, %arg3: memref<1x1024xf32, #tpu.memory_space<vmem>>, %arg4: memref<256x128xbf16, #tpu.memory_space<vmem>>, %arg5: memref<1x128xf32, #tpu.memory_space<vmem>>, %arg6: memref<16x128xf32, #tpu.memory_space<vmem>>, %arg7: memref<16x1024xf32, #tpu.memory_space<vmem>>, %arg8: memref<16x256xbf16, #tpu.memory_space<vmem>>) attributes {dimension_semantics = [], scalar_prefetch = 0 : i64, scratch_operands = 2 : i64, tpu.core_type = #tpu.core_type<tc>} {
    %c0 = arith.constant 0 : index
    %c0_0 = arith.constant 0 : index
    %0 = vector.load %arg0[%c0, %c0_0] : memref<16x768xbf16, #tpu.memory_space<vmem>>, vector<16x768xbf16>
    %c0_1 = arith.constant 0 : index
    %c0_2 = arith.constant 0 : index
    %1 = vector.load %arg1[%c0_1, %c0_2] : memref<768x1024xbf16, #tpu.memory_space<vmem>>, vector<768x1024xbf16>
    %cst = arith.constant dense<0.000000e+00> : vector<16x1024xf32>
    %2 = tpu.matmul %0, %1, %cst {dimension_numbers = #tpu.dot_dimension_numbers<[1], [0], [0], [1], [0, 0, 1, 1], [], []>} : vector<16x768xbf16>, vector<768x1024xbf16>, vector<16x1024xf32> -> vector<16x1024xf32>
    %c0_3 = arith.constant 0 : index
    %c0_4 = arith.constant 0 : index
    %3 = vector.load %arg3[%c0_3, %c0_4] : memref<1x1024xf32, #tpu.memory_space<vmem>>, vector<1x1024xf32>
    %4 = vector.broadcast %3 : vector<1x1024xf32> to vector<16x1024xf32>
    %5 = arith.addf %2, %4 : vector<16x1024xf32>
    %c0_5 = arith.constant 0 : index
    %c0_6 = arith.constant 0 : index
    %6 = vector.load %arg7[%c0_5, %c0_6] : memref<16x1024xf32, #tpu.memory_space<vmem>>, vector<16x1024xf32>
    tpu.vector_store %arg7[%c0_5, %c0_6], %5 {strides = array<i32>} : memref<16x1024xf32, #tpu.memory_space<vmem>>, vector<16x1024xf32>,
    %c0_7 = arith.constant 0 : index
    %c0_8 = arith.constant 0 : index
    %7 = vector.load %arg2[%c0_7, %c0_8] : memref<128x1024xbf16, #tpu.memory_space<vmem>>, vector<128x1024xbf16>
    %8 = tpu.iota {dimensions = array<i32: 0>} : vector<4x512xi32>
    %c2_i32 = arith.constant 2 : i32
    %9 = vector.broadcast %c2_i32 : i32 to vector<4x512xi32>
    %10 = arith.cmpi slt, %8, %9 : vector<4x512xi32>
    %cst_9 = arith.constant 0.000000e+00 : bf16
    %11 = vector.broadcast %cst_9 : bf16 to vector<4x128xbf16>
    %cst_10 = arith.constant 0.000000e+00 : f32
    %12 = vector.broadcast %cst_10 : f32 to vector<4x128xf32>
    %c0_i32 = arith.constant 0 : i32
    %c7_i32 = arith.constant 7 : i32
    %13 = arith.subi %c7_i32, %c0_i32 : i32
    %cst_11 = arith.constant dense<0.000000e+00> : vector<4x1024xf32>
    %14 = tpu.matmul %11, %7, %cst_11 {dimension_numbers = #tpu.dot_dimension_numbers<[1], [0], [0], [1], [0, 0, 1, 1], [], []>} : vector<4x128xbf16>, vector<128x1024xbf16>, vector<4x1024xf32> -> vector<4x1024xf32>
    %15 = vector.extract_strided_slice %14 {offsets = [0, 0], sizes = [4, 512], strides = [1, 1]} : vector<4x1024xf32> to vector<4x512xf32>
    %16 = vector.extract_strided_slice %14 {offsets = [0, 512], sizes = [4, 512], strides = [1, 1]} : vector<4x1024xf32> to vector<4x512xf32>
    %17 = arith.select %10, %15, %16 : vector<4x512xi1>, vector<4x512xf32>
    %c2_i32_12 = arith.constant 2 : i32
    %18 = arith.muli %c0_i32, %c2_i32_12 : i32
    %19 = arith.index_cast %18 : i32 to index
    %c0_13 = arith.constant 0 : index
    %20 = vector.load %arg7[%19, %c0_13] : memref<16x1024xf32, #tpu.memory_space<vmem>>, vector<2x512xf32>
    %c2_i32_14 = arith.constant 2 : i32
    %21 = arith.muli %13, %c2_i32_14 : i32
    %22 = arith.index_cast %21 : i32 to index
    %c512 = arith.constant 512 : index
    %23 = vector.load %arg7[%22, %c512] : memref<16x1024xf32, #tpu.memory_space<vmem>>, vector<2x512xf32>
    %24 = tpu.concatenate %20, %23 in 0 : vector<2x512xf32>, vector<2x512xf32> -> vector<4x512xf32>
    %25 = arith.addf %17, %24 : vector<4x512xf32>
    %26 = vector.extract_strided_slice %25 {offsets = [0, 0], sizes = [4, 128], strides = [1, 1]} : vector<4x512xf32> to vector<4x128xf32>
    %27 = arith.negf %26 : vector<4x128xf32>
    %28 = math.exp %27 : vector<4x128xf32>
    %cst_15 = arith.constant 1.000000e+00 : f32
    %29 = vector.broadcast %cst_15 : f32 to vector<4x128xf32>
    %30 = arith.addf %29, %28 : vector<4x128xf32>
    %31 = arith.divf %29, %30 : vector<4x128xf32>
    %32 = vector.extract_strided_slice %25 {offsets = [0, 128], sizes = [4, 128], strides = [1, 1]} : vector<4x512xf32> to vector<4x128xf32>
    %33 = arith.negf %32 : vector<4x128xf32>
    %34 = math.exp %33 : vector<4x128xf32>
    %cst_16 = arith.constant 1.000000e+00 : f32
    %35 = vector.broadcast %cst_16 : f32 to vector<4x128xf32>
    %36 = arith.addf %35, %34 : vector<4x128xf32>
    %37 = arith.divf %35, %36 : vector<4x128xf32>
    %38 = vector.extract_strided_slice %25 {offsets = [0, 256], sizes = [4, 128], strides = [1, 1]} : vector<4x512xf32> to vector<4x128xf32>
    %39 = math.tanh %38 : vector<4x128xf32>
    %40 = vector.extract_strided_slice %25 {offsets = [0, 384], sizes = [4, 128], strides = [1, 1]} : vector<4x512xf32> to vector<4x128xf32>
    %41 = arith.negf %40 : vector<4x128xf32>
    %42 = math.exp %41 : vector<4x128xf32>
    %cst_17 = arith.constant 1.000000e+00 : f32
    %43 = vector.broadcast %cst_17 : f32 to vector<4x128xf32>
    %44 = arith.addf %43, %42 : vector<4x128xf32>
    %45 = arith.divf %43, %44 : vector<4x128xf32>
    %46 = arith.mulf %37, %12 : vector<4x128xf32>
    %47 = arith.mulf %31, %39 : vector<4x128xf32>
    %48 = arith.addf %46, %47 : vector<4x128xf32>
    %49 = math.tanh %48 : vector<4x128xf32>
    %50 = arith.mulf %45, %49 : vector<4x128xf32>
    %51 = arith.truncf %50 : vector<4x128xf32> to vector<4x128xbf16>
    %52 = vector.extract_strided_slice %51 {offsets = [0, 0], sizes = [2, 128], strides = [1, 1]} : vector<4x128xbf16> to vector<2x128xbf16>
    %c2_i32_18 = arith.constant 2 : i32
    %53 = arith.muli %c0_i32, %c2_i32_18 : i32
    %54 = arith.index_cast %53 : i32 to index
    %c0_19 = arith.constant 0 : index
    %55 = vector.load %arg8[%54, %c0_19] : memref<16x256xbf16, #tpu.memory_space<vmem>>, vector<2x128xbf16>
    tpu.vector_store %arg8[%54, %c0_19], %52 {strides = array<i32>} : memref<16x256xbf16, #tpu.memory_space<vmem>>, vector<2x128xbf16>,
    %56 = vector.extract_strided_slice %51 {offsets = [2, 0], sizes = [2, 128], strides = [1, 1]} : vector<4x128xbf16> to vector<2x128xbf16>
    %c2_i32_20 = arith.constant 2 : i32
    %57 = arith.muli %13, %c2_i32_20 : i32
    %58 = arith.index_cast %57 : i32 to index
    %c128 = arith.constant 128 : index
    %59 = vector.load %arg8[%58, %c128] : memref<16x256xbf16, #tpu.memory_space<vmem>>, vector<2x128xbf16>
    tpu.vector_store %arg8[%58, %c128], %56 {strides = array<i32>} : memref<16x256xbf16, #tpu.memory_space<vmem>>, vector<2x128xbf16>,
    %c1_i32 = arith.constant 1 : i32
    %c7_i32_21 = arith.constant 7 : i32
    %60 = arith.subi %c7_i32_21, %c1_i32 : i32
    %cst_22 = arith.constant dense<0.000000e+00> : vector<4x1024xf32>
    %61 = tpu.matmul %51, %7, %cst_22 {dimension_numbers = #tpu.dot_dimension_numbers<[1], [0], [0], [1], [0, 0, 1, 1], [], []>} : vector<4x128xbf16>, vector<128x1024xbf16>, vector<4x1024xf32> -> vector<4x1024xf32>
    %62 = vector.extract_strided_slice %61 {offsets = [0, 0], sizes = [4, 512], strides = [1, 1]} : vector<4x1024xf32> to vector<4x512xf32>
    %63 = vector.extract_strided_slice %61 {offsets = [0, 512], sizes = [4, 512], strides = [1, 1]} : vector<4x1024xf32> to vector<4x512xf32>
    %64 = arith.select %10, %62, %63 : vector<4x512xi1>, vector<4x512xf32>
    %c2_i32_23 = arith.constant 2 : i32
    %65 = arith.muli %c1_i32, %c2_i32_23 : i32
    %66 = arith.index_cast %65 : i32 to index
    %c0_24 = arith.constant 0 : index
    %67 = vector.load %arg7[%66, %c0_24] : memref<16x1024xf32, #tpu.memory_space<vmem>>, vector<2x512xf32>
    %c2_i32_25 = arith.constant 2 : i32
    %68 = arith.muli %60, %c2_i32_25 : i32
    %69 = arith.index_cast %68 : i32 to index
    %c512_26 = arith.constant 512 : index
    %70 = vector.load %arg7[%69, %c512_26] : memref<16x1024xf32, #tpu.memory_space<vmem>>, vector<2x512xf32>
    %71 = tpu.concatenate %67, %70 in 0 : vector<2x512xf32>, vector<2x512xf32> -> vector<4x512xf32>
    %72 = arith.addf %64, %71 : vector<4x512xf32>
    %73 = vector.extract_strided_slice %72 {offsets = [0, 0], sizes = [4, 128], strides = [1, 1]} : vector<4x512xf32> to vector<4x128xf32>
    %74 = arith.negf %73 : vector<4x128xf32>
    %75 = math.exp %74 : vector<4x128xf32>
    %cst_27 = arith.constant 1.000000e+00 : f32
    %76 = vector.broadcast %cst_27 : f32 to vector<4x128xf32>
    %77 = arith.addf %76, %75 : vector<4x128xf32>
    %78 = arith.divf %76, %77 : vector<4x128xf32>
    %79 = vector.extract_strided_slice %72 {offsets = [0, 128], sizes = [4, 128], strides = [1, 1]} : vector<4x512xf32> to vector<4x128xf32>
    %80 = arith.negf %79 : vector<4x128xf32>
    %81 = math.exp %80 : vector<4x128xf32>
    %cst_28 = arith.constant 1.000000e+00 : f32
    %82 = vector.broadcast %cst_28 : f32 to vector<4x128xf32>
    %83 = arith.addf %82, %81 : vector<4x128xf32>
    %84 = arith.divf %82, %83 : vector<4x128xf32>
    %85 = vector.extract_strided_slice %72 {offsets = [0, 256], sizes = [4, 128], strides = [1, 1]} : vector<4x512xf32> to vector<4x128xf32>
    %86 = math.tanh %85 : vector<4x128xf32>
    %87 = vector.extract_strided_slice %72 {offsets = [0, 384], sizes = [4, 128], strides = [1, 1]} : vector<4x512xf32> to vector<4x128xf32>
    %88 = arith.negf %87 : vector<4x128xf32>
    %89 = math.exp %88 : vector<4x128xf32>
    %cst_29 = arith.constant 1.000000e+00 : f32
    %90 = vector.broadcast %cst_29 : f32 to vector<4x128xf32>
    %91 = arith.addf %90, %89 : vector<4x128xf32>
    %92 = arith.divf %90, %91 : vector<4x128xf32>
    %93 = arith.mulf %84, %48 : vector<4x128xf32>
    %94 = arith.mulf %78, %86 : vector<4x128xf32>
    %95 = arith.addf %93, %94 : vector<4x128xf32>
    %96 = math.tanh %95 : vector<4x128xf32>
    %97 = arith.mulf %92, %96 : vector<4x128xf32>
    %98 = arith.truncf %97 : vector<4x128xf32> to vector<4x128xbf16>
    %99 = vector.extract_strided_slice %98 {offsets = [0, 0], sizes = [2, 128], strides = [1, 1]} : vector<4x128xbf16> to vector<2x128xbf16>
    %c2_i32_30 = arith.constant 2 : i32
    %100 = arith.muli %c1_i32, %c2_i32_30 : i32
    %101 = arith.index_cast %100 : i32 to index
    %c0_31 = arith.constant 0 : index
    %102 = vector.load %arg8[%101, %c0_31] : memref<16x256xbf16, #tpu.memory_space<vmem>>, vector<2x128xbf16>
    tpu.vector_store %arg8[%101, %c0_31], %99 {strides = array<i32>} : memref<16x256xbf16, #tpu.memory_space<vmem>>, vector<2x128xbf16>,
    %103 = vector.extract_strided_slice %98 {offsets = [2, 0], sizes = [2, 128], strides = [1, 1]} : vector<4x128xbf16> to vector<2x128xbf16>
    %c2_i32_32 = arith.constant 2 : i32
    %104 = arith.muli %60, %c2_i32_32 : i32
    %105 = arith.index_cast %104 : i32 to index
    %c128_33 = arith.constant 128 : index
    %106 = vector.load %arg8[%105, %c128_33] : memref<16x256xbf16, #tpu.memory_space<vmem>>, vector<2x128xbf16>
    tpu.vector_store %arg8[%105, %c128_33], %103 {strides = array<i32>} : memref<16x256xbf16, #tpu.memory_space<vmem>>, vector<2x128xbf16>,
    %c2_i32_34 = arith.constant 2 : i32
    %c7_i32_35 = arith.constant 7 : i32
    %107 = arith.subi %c7_i32_35, %c2_i32_34 : i32
    %cst_36 = arith.constant dense<0.000000e+00> : vector<4x1024xf32>
    %108 = tpu.matmul %98, %7, %cst_36 {dimension_numbers = #tpu.dot_dimension_numbers<[1], [0], [0], [1], [0, 0, 1, 1], [], []>} : vector<4x128xbf16>, vector<128x1024xbf16>, vector<4x1024xf32> -> vector<4x1024xf32>
    %109 = vector.extract_strided_slice %108 {offsets = [0, 0], sizes = [4, 512], strides = [1, 1]} : vector<4x1024xf32> to vector<4x512xf32>
    %110 = vector.extract_strided_slice %108 {offsets = [0, 512], sizes = [4, 512], strides = [1, 1]} : vector<4x1024xf32> to vector<4x512xf32>
    %111 = arith.select %10, %109, %110 : vector<4x512xi1>, vector<4x512xf32>
    %c2_i32_37 = arith.constant 2 : i32
    %112 = arith.muli %c2_i32_34, %c2_i32_37 : i32
    %113 = arith.index_cast %112 : i32 to index
    %c0_38 = arith.constant 0 : index
    %114 = vector.load %arg7[%113, %c0_38] : memref<16x1024xf32, #tpu.memory_space<vmem>>, vector<2x512xf32>
    %c2_i32_39 = arith.constant 2 : i32
    %115 = arith.muli %107, %c2_i32_39 : i32
    %116 = arith.index_cast %115 : i32 to index
    %c512_40 = arith.constant 512 : index
    %117 = vector.load %arg7[%116, %c512_40] : memref<16x1024xf32, #tpu.memory_space<vmem>>, vector<2x512xf32>
    %118 = tpu.concatenate %114, %117 in 0 : vector<2x512xf32>, vector<2x512xf32> -> vector<4x512xf32>
    %119 = arith.addf %111, %118 : vector<4x512xf32>
    %120 = vector.extract_strided_slice %119 {offsets = [0, 0], sizes = [4, 128], strides = [1, 1]} : vector<4x512xf32> to vector<4x128xf32>
    %121 = arith.negf %120 : vector<4x128xf32>
    %122 = math.exp %121 : vector<4x128xf32>
    %cst_41 = arith.constant 1.000000e+00 : f32
    %123 = vector.broadcast %cst_41 : f32 to vector<4x128xf32>
    %124 = arith.addf %123, %122 : vector<4x128xf32>
    %125 = arith.divf %123, %124 : vector<4x128xf32>
    %126 = vector.extract_strided_slice %119 {offsets = [0, 128], sizes = [4, 128], strides = [1, 1]} : vector<4x512xf32> to vector<4x128xf32>
    %127 = arith.negf %126 : vector<4x128xf32>
    %128 = math.exp %127 : vector<4x128xf32>
    %cst_42 = arith.constant 1.000000e+00 : f32
    %129 = vector.broadcast %cst_42 : f32 to vector<4x128xf32>
    %130 = arith.addf %129, %128 : vector<4x128xf32>
    %131 = arith.divf %129, %130 : vector<4x128xf32>
    %132 = vector.extract_strided_slice %119 {offsets = [0, 256], sizes = [4, 128], strides = [1, 1]} : vector<4x512xf32> to vector<4x128xf32>
    %133 = math.tanh %132 : vector<4x128xf32>
    %134 = vector.extract_strided_slice %119 {offsets = [0, 384], sizes = [4, 128], strides = [1, 1]} : vector<4x512xf32> to vector<4x128xf32>
    %135 = arith.negf %134 : vector<4x128xf32>
    %136 = math.exp %135 : vector<4x128xf32>
    %cst_43 = arith.constant 1.000000e+00 : f32
    %137 = vector.broadcast %cst_43 : f32 to vector<4x128xf32>
    %138 = arith.addf %137, %136 : vector<4x128xf32>
    %139 = arith.divf %137, %138 : vector<4x128xf32>
    %140 = arith.mulf %131, %95 : vector<4x128xf32>
    %141 = arith.mulf %125, %133 : vector<4x128xf32>
    %142 = arith.addf %140, %141 : vector<4x128xf32>
    %143 = math.tanh %142 : vector<4x128xf32>
    %144 = arith.mulf %139, %143 : vector<4x128xf32>
    %145 = arith.truncf %144 : vector<4x128xf32> to vector<4x128xbf16>
    %146 = vector.extract_strided_slice %145 {offsets = [0, 0], sizes = [2, 128], strides = [1, 1]} : vector<4x128xbf16> to vector<2x128xbf16>
    %c2_i32_44 = arith.constant 2 : i32
    %147 = arith.muli %c2_i32_34, %c2_i32_44 : i32
    %148 = arith.index_cast %147 : i32 to index
    %c0_45 = arith.constant 0 : index
    %149 = vector.load %arg8[%148, %c0_45] : memref<16x256xbf16, #tpu.memory_space<vmem>>, vector<2x128xbf16>
    tpu.vector_store %arg8[%148, %c0_45], %146 {strides = array<i32>} : memref<16x256xbf16, #tpu.memory_space<vmem>>, vector<2x128xbf16>,
    %150 = vector.extract_strided_slice %145 {offsets = [2, 0], sizes = [2, 128], strides = [1, 1]} : vector<4x128xbf16> to vector<2x128xbf16>
    %c2_i32_46 = arith.constant 2 : i32
    %151 = arith.muli %107, %c2_i32_46 : i32
    %152 = arith.index_cast %151 : i32 to index
    %c128_47 = arith.constant 128 : index
    %153 = vector.load %arg8[%152, %c128_47] : memref<16x256xbf16, #tpu.memory_space<vmem>>, vector<2x128xbf16>
    tpu.vector_store %arg8[%152, %c128_47], %150 {strides = array<i32>} : memref<16x256xbf16, #tpu.memory_space<vmem>>, vector<2x128xbf16>,
    %c3_i32 = arith.constant 3 : i32
    %c7_i32_48 = arith.constant 7 : i32
    %154 = arith.subi %c7_i32_48, %c3_i32 : i32
    %cst_49 = arith.constant dense<0.000000e+00> : vector<4x1024xf32>
    %155 = tpu.matmul %145, %7, %cst_49 {dimension_numbers = #tpu.dot_dimension_numbers<[1], [0], [0], [1], [0, 0, 1, 1], [], []>} : vector<4x128xbf16>, vector<128x1024xbf16>, vector<4x1024xf32> -> vector<4x1024xf32>
    %156 = vector.extract_strided_slice %155 {offsets = [0, 0], sizes = [4, 512], strides = [1, 1]} : vector<4x1024xf32> to vector<4x512xf32>
    %157 = vector.extract_strided_slice %155 {offsets = [0, 512], sizes = [4, 512], strides = [1, 1]} : vector<4x1024xf32> to vector<4x512xf32>
    %158 = arith.select %10, %156, %157 : vector<4x512xi1>, vector<4x512xf32>
    %c2_i32_50 = arith.constant 2 : i32
    %159 = arith.muli %c3_i32, %c2_i32_50 : i32
    %160 = arith.index_cast %159 : i32 to index
    %c0_51 = arith.constant 0 : index
    %161 = vector.load %arg7[%160, %c0_51] : memref<16x1024xf32, #tpu.memory_space<vmem>>, vector<2x512xf32>
    %c2_i32_52 = arith.constant 2 : i32
    %162 = arith.muli %154, %c2_i32_52 : i32
    %163 = arith.index_cast %162 : i32 to index
    %c512_53 = arith.constant 512 : index
    %164 = vector.load %arg7[%163, %c512_53] : memref<16x1024xf32, #tpu.memory_space<vmem>>, vector<2x512xf32>
    %165 = tpu.concatenate %161, %164 in 0 : vector<2x512xf32>, vector<2x512xf32> -> vector<4x512xf32>
    %166 = arith.addf %158, %165 : vector<4x512xf32>
    %167 = vector.extract_strided_slice %166 {offsets = [0, 0], sizes = [4, 128], strides = [1, 1]} : vector<4x512xf32> to vector<4x128xf32>
    %168 = arith.negf %167 : vector<4x128xf32>
    %169 = math.exp %168 : vector<4x128xf32>
    %cst_54 = arith.constant 1.000000e+00 : f32
    %170 = vector.broadcast %cst_54 : f32 to vector<4x128xf32>
    %171 = arith.addf %170, %169 : vector<4x128xf32>
    %172 = arith.divf %170, %171 : vector<4x128xf32>
    %173 = vector.extract_strided_slice %166 {offsets = [0, 128], sizes = [4, 128], strides = [1, 1]} : vector<4x512xf32> to vector<4x128xf32>
    %174 = arith.negf %173 : vector<4x128xf32>
    %175 = math.exp %174 : vector<4x128xf32>
    %cst_55 = arith.constant 1.000000e+00 : f32
    %176 = vector.broadcast %cst_55 : f32 to vector<4x128xf32>
    %177 = arith.addf %176, %175 : vector<4x128xf32>
    %178 = arith.divf %176, %177 : vector<4x128xf32>
    %179 = vector.extract_strided_slice %166 {offsets = [0, 256], sizes = [4, 128], strides = [1, 1]} : vector<4x512xf32> to vector<4x128xf32>
    %180 = math.tanh %179 : vector<4x128xf32>
    %181 = vector.extract_strided_slice %166 {offsets = [0, 384], sizes = [4, 128], strides = [1, 1]} : vector<4x512xf32> to vector<4x128xf32>
    %182 = arith.negf %181 : vector<4x128xf32>
    %183 = math.exp %182 : vector<4x128xf32>
    %cst_56 = arith.constant 1.000000e+00 : f32
    %184 = vector.broadcast %cst_56 : f32 to vector<4x128xf32>
    %185 = arith.addf %184, %183 : vector<4x128xf32>
    %186 = arith.divf %184, %185 : vector<4x128xf32>
    %187 = arith.mulf %178, %142 : vector<4x128xf32>
    %188 = arith.mulf %172, %180 : vector<4x128xf32>
    %189 = arith.addf %187, %188 : vector<4x128xf32>
    %190 = math.tanh %189 : vector<4x128xf32>
    %191 = arith.mulf %186, %190 : vector<4x128xf32>
    %192 = arith.truncf %191 : vector<4x128xf32> to vector<4x128xbf16>
    %193 = vector.extract_strided_slice %192 {offsets = [0, 0], sizes = [2, 128], strides = [1, 1]} : vector<4x128xbf16> to vector<2x128xbf16>
    %c2_i32_57 = arith.constant 2 : i32
    %194 = arith.muli %c3_i32, %c2_i32_57 : i32
    %195 = arith.index_cast %194 : i32 to index
    %c0_58 = arith.constant 0 : index
    %196 = vector.load %arg8[%195, %c0_58] : memref<16x256xbf16, #tpu.memory_space<vmem>>, vector<2x128xbf16>
    tpu.vector_store %arg8[%195, %c0_58], %193 {strides = array<i32>} : memref<16x256xbf16, #tpu.memory_space<vmem>>, vector<2x128xbf16>,
    %197 = vector.extract_strided_slice %192 {offsets = [2, 0], sizes = [2, 128], strides = [1, 1]} : vector<4x128xbf16> to vector<2x128xbf16>
    %c2_i32_59 = arith.constant 2 : i32
    %198 = arith.muli %154, %c2_i32_59 : i32
    %199 = arith.index_cast %198 : i32 to index
    %c128_60 = arith.constant 128 : index
    %200 = vector.load %arg8[%199, %c128_60] : memref<16x256xbf16, #tpu.memory_space<vmem>>, vector<2x128xbf16>
    tpu.vector_store %arg8[%199, %c128_60], %197 {strides = array<i32>} : memref<16x256xbf16, #tpu.memory_space<vmem>>, vector<2x128xbf16>,
    %c4_i32 = arith.constant 4 : i32
    %c7_i32_61 = arith.constant 7 : i32
    %201 = arith.subi %c7_i32_61, %c4_i32 : i32
    %cst_62 = arith.constant dense<0.000000e+00> : vector<4x1024xf32>
    %202 = tpu.matmul %192, %7, %cst_62 {dimension_numbers = #tpu.dot_dimension_numbers<[1], [0], [0], [1], [0, 0, 1, 1], [], []>} : vector<4x128xbf16>, vector<128x1024xbf16>, vector<4x1024xf32> -> vector<4x1024xf32>
    %203 = vector.extract_strided_slice %202 {offsets = [0, 0], sizes = [4, 512], strides = [1, 1]} : vector<4x1024xf32> to vector<4x512xf32>
    %204 = vector.extract_strided_slice %202 {offsets = [0, 512], sizes = [4, 512], strides = [1, 1]} : vector<4x1024xf32> to vector<4x512xf32>
    %205 = arith.select %10, %203, %204 : vector<4x512xi1>, vector<4x512xf32>
    %c2_i32_63 = arith.constant 2 : i32
    %206 = arith.muli %c4_i32, %c2_i32_63 : i32
    %207 = arith.index_cast %206 : i32 to index
    %c0_64 = arith.constant 0 : index
    %208 = vector.load %arg7[%207, %c0_64] : memref<16x1024xf32, #tpu.memory_space<vmem>>, vector<2x512xf32>
    %c2_i32_65 = arith.constant 2 : i32
    %209 = arith.muli %201, %c2_i32_65 : i32
    %210 = arith.index_cast %209 : i32 to index
    %c512_66 = arith.constant 512 : index
    %211 = vector.load %arg7[%210, %c512_66] : memref<16x1024xf32, #tpu.memory_space<vmem>>, vector<2x512xf32>
    %212 = tpu.concatenate %208, %211 in 0 : vector<2x512xf32>, vector<2x512xf32> -> vector<4x512xf32>
    %213 = arith.addf %205, %212 : vector<4x512xf32>
    %214 = vector.extract_strided_slice %213 {offsets = [0, 0], sizes = [4, 128], strides = [1, 1]} : vector<4x512xf32> to vector<4x128xf32>
    %215 = arith.negf %214 : vector<4x128xf32>
    %216 = math.exp %215 : vector<4x128xf32>
    %cst_67 = arith.constant 1.000000e+00 : f32
    %217 = vector.broadcast %cst_67 : f32 to vector<4x128xf32>
    %218 = arith.addf %217, %216 : vector<4x128xf32>
    %219 = arith.divf %217, %218 : vector<4x128xf32>
    %220 = vector.extract_strided_slice %213 {offsets = [0, 128], sizes = [4, 128], strides = [1, 1]} : vector<4x512xf32> to vector<4x128xf32>
    %221 = arith.negf %220 : vector<4x128xf32>
    %222 = math.exp %221 : vector<4x128xf32>
    %cst_68 = arith.constant 1.000000e+00 : f32
    %223 = vector.broadcast %cst_68 : f32 to vector<4x128xf32>
    %224 = arith.addf %223, %222 : vector<4x128xf32>
    %225 = arith.divf %223, %224 : vector<4x128xf32>
    %226 = vector.extract_strided_slice %213 {offsets = [0, 256], sizes = [4, 128], strides = [1, 1]} : vector<4x512xf32> to vector<4x128xf32>
    %227 = math.tanh %226 : vector<4x128xf32>
    %228 = vector.extract_strided_slice %213 {offsets = [0, 384], sizes = [4, 128], strides = [1, 1]} : vector<4x512xf32> to vector<4x128xf32>
    %229 = arith.negf %228 : vector<4x128xf32>
    %230 = math.exp %229 : vector<4x128xf32>
    %cst_69 = arith.constant 1.000000e+00 : f32
    %231 = vector.broadcast %cst_69 : f32 to vector<4x128xf32>
    %232 = arith.addf %231, %230 : vector<4x128xf32>
    %233 = arith.divf %231, %232 : vector<4x128xf32>
    %234 = arith.mulf %225, %189 : vector<4x128xf32>
    %235 = arith.mulf %219, %227 : vector<4x128xf32>
    %236 = arith.addf %234, %235 : vector<4x128xf32>
    %237 = math.tanh %236 : vector<4x128xf32>
    %238 = arith.mulf %233, %237 : vector<4x128xf32>
    %239 = arith.truncf %238 : vector<4x128xf32> to vector<4x128xbf16>
    %240 = vector.extract_strided_slice %239 {offsets = [0, 0], sizes = [2, 128], strides = [1, 1]} : vector<4x128xbf16> to vector<2x128xbf16>
    %c2_i32_70 = arith.constant 2 : i32
    %241 = arith.muli %c4_i32, %c2_i32_70 : i32
    %242 = arith.index_cast %241 : i32 to index
    %c0_71 = arith.constant 0 : index
    %243 = vector.load %arg8[%242, %c0_71] : memref<16x256xbf16, #tpu.memory_space<vmem>>, vector<2x128xbf16>
    tpu.vector_store %arg8[%242, %c0_71], %240 {strides = array<i32>} : memref<16x256xbf16, #tpu.memory_space<vmem>>, vector<2x128xbf16>,
    %244 = vector.extract_strided_slice %239 {offsets = [2, 0], sizes = [2, 128], strides = [1, 1]} : vector<4x128xbf16> to vector<2x128xbf16>
    %c2_i32_72 = arith.constant 2 : i32
    %245 = arith.muli %201, %c2_i32_72 : i32
    %246 = arith.index_cast %245 : i32 to index
    %c128_73 = arith.constant 128 : index
    %247 = vector.load %arg8[%246, %c128_73] : memref<16x256xbf16, #tpu.memory_space<vmem>>, vector<2x128xbf16>
    tpu.vector_store %arg8[%246, %c128_73], %244 {strides = array<i32>} : memref<16x256xbf16, #tpu.memory_space<vmem>>, vector<2x128xbf16>,
    %c5_i32 = arith.constant 5 : i32
    %c7_i32_74 = arith.constant 7 : i32
    %248 = arith.subi %c7_i32_74, %c5_i32 : i32
    %cst_75 = arith.constant dense<0.000000e+00> : vector<4x1024xf32>
    %249 = tpu.matmul %239, %7, %cst_75 {dimension_numbers = #tpu.dot_dimension_numbers<[1], [0], [0], [1], [0, 0, 1, 1], [], []>} : vector<4x128xbf16>, vector<128x1024xbf16>, vector<4x1024xf32> -> vector<4x1024xf32>
    %250 = vector.extract_strided_slice %249 {offsets = [0, 0], sizes = [4, 512], strides = [1, 1]} : vector<4x1024xf32> to vector<4x512xf32>
    %251 = vector.extract_strided_slice %249 {offsets = [0, 512], sizes = [4, 512], strides = [1, 1]} : vector<4x1024xf32> to vector<4x512xf32>
    %252 = arith.select %10, %250, %251 : vector<4x512xi1>, vector<4x512xf32>
    %c2_i32_76 = arith.constant 2 : i32
    %253 = arith.muli %c5_i32, %c2_i32_76 : i32
    %254 = arith.index_cast %253 : i32 to index
    %c0_77 = arith.constant 0 : index
    %255 = vector.load %arg7[%254, %c0_77] : memref<16x1024xf32, #tpu.memory_space<vmem>>, vector<2x512xf32>
    %c2_i32_78 = arith.constant 2 : i32
    %256 = arith.muli %248, %c2_i32_78 : i32
    %257 = arith.index_cast %256 : i32 to index
    %c512_79 = arith.constant 512 : index
    %258 = vector.load %arg7[%257, %c512_79] : memref<16x1024xf32, #tpu.memory_space<vmem>>, vector<2x512xf32>
    %259 = tpu.concatenate %255, %258 in 0 : vector<2x512xf32>, vector<2x512xf32> -> vector<4x512xf32>
    %260 = arith.addf %252, %259 : vector<4x512xf32>
    %261 = vector.extract_strided_slice %260 {offsets = [0, 0], sizes = [4, 128], strides = [1, 1]} : vector<4x512xf32> to vector<4x128xf32>
    %262 = arith.negf %261 : vector<4x128xf32>
    %263 = math.exp %262 : vector<4x128xf32>
    %cst_80 = arith.constant 1.000000e+00 : f32
    %264 = vector.broadcast %cst_80 : f32 to vector<4x128xf32>
    %265 = arith.addf %264, %263 : vector<4x128xf32>
    %266 = arith.divf %264, %265 : vector<4x128xf32>
    %267 = vector.extract_strided_slice %260 {offsets = [0, 128], sizes = [4, 128], strides = [1, 1]} : vector<4x512xf32> to vector<4x128xf32>
    %268 = arith.negf %267 : vector<4x128xf32>
    %269 = math.exp %268 : vector<4x128xf32>
    %cst_81 = arith.constant 1.000000e+00 : f32
    %270 = vector.broadcast %cst_81 : f32 to vector<4x128xf32>
    %271 = arith.addf %270, %269 : vector<4x128xf32>
    %272 = arith.divf %270, %271 : vector<4x128xf32>
    %273 = vector.extract_strided_slice %260 {offsets = [0, 256], sizes = [4, 128], strides = [1, 1]} : vector<4x512xf32> to vector<4x128xf32>
    %274 = math.tanh %273 : vector<4x128xf32>
    %275 = vector.extract_strided_slice %260 {offsets = [0, 384], sizes = [4, 128], strides = [1, 1]} : vector<4x512xf32> to vector<4x128xf32>
    %276 = arith.negf %275 : vector<4x128xf32>
    %277 = math.exp %276 : vector<4x128xf32>
    %cst_82 = arith.constant 1.000000e+00 : f32
    %278 = vector.broadcast %cst_82 : f32 to vector<4x128xf32>
    %279 = arith.addf %278, %277 : vector<4x128xf32>
    %280 = arith.divf %278, %279 : vector<4x128xf32>
    %281 = arith.mulf %272, %236 : vector<4x128xf32>
    %282 = arith.mulf %266, %274 : vector<4x128xf32>
    %283 = arith.addf %281, %282 : vector<4x128xf32>
    %284 = math.tanh %283 : vector<4x128xf32>
    %285 = arith.mulf %280, %284 : vector<4x128xf32>
    %286 = arith.truncf %285 : vector<4x128xf32> to vector<4x128xbf16>
    %287 = vector.extract_strided_slice %286 {offsets = [0, 0], sizes = [2, 128], strides = [1, 1]} : vector<4x128xbf16> to vector<2x128xbf16>
    %c2_i32_83 = arith.constant 2 : i32
    %288 = arith.muli %c5_i32, %c2_i32_83 : i32
    %289 = arith.index_cast %288 : i32 to index
    %c0_84 = arith.constant 0 : index
    %290 = vector.load %arg8[%289, %c0_84] : memref<16x256xbf16, #tpu.memory_space<vmem>>, vector<2x128xbf16>
    tpu.vector_store %arg8[%289, %c0_84], %287 {strides = array<i32>} : memref<16x256xbf16, #tpu.memory_space<vmem>>, vector<2x128xbf16>,
    %291 = vector.extract_strided_slice %286 {offsets = [2, 0], sizes = [2, 128], strides = [1, 1]} : vector<4x128xbf16> to vector<2x128xbf16>
    %c2_i32_85 = arith.constant 2 : i32
    %292 = arith.muli %248, %c2_i32_85 : i32
    %293 = arith.index_cast %292 : i32 to index
    %c128_86 = arith.constant 128 : index
    %294 = vector.load %arg8[%293, %c128_86] : memref<16x256xbf16, #tpu.memory_space<vmem>>, vector<2x128xbf16>
    tpu.vector_store %arg8[%293, %c128_86], %291 {strides = array<i32>} : memref<16x256xbf16, #tpu.memory_space<vmem>>, vector<2x128xbf16>,
    %c6_i32 = arith.constant 6 : i32
    %c7_i32_87 = arith.constant 7 : i32
    %295 = arith.subi %c7_i32_87, %c6_i32 : i32
    %cst_88 = arith.constant dense<0.000000e+00> : vector<4x1024xf32>
    %296 = tpu.matmul %286, %7, %cst_88 {dimension_numbers = #tpu.dot_dimension_numbers<[1], [0], [0], [1], [0, 0, 1, 1], [], []>} : vector<4x128xbf16>, vector<128x1024xbf16>, vector<4x1024xf32> -> vector<4x1024xf32>
    %297 = vector.extract_strided_slice %296 {offsets = [0, 0], sizes = [4, 512], strides = [1, 1]} : vector<4x1024xf32> to vector<4x512xf32>
    %298 = vector.extract_strided_slice %296 {offsets = [0, 512], sizes = [4, 512], strides = [1, 1]} : vector<4x1024xf32> to vector<4x512xf32>
    %299 = arith.select %10, %297, %298 : vector<4x512xi1>, vector<4x512xf32>
    %c2_i32_89 = arith.constant 2 : i32
    %300 = arith.muli %c6_i32, %c2_i32_89 : i32
    %301 = arith.index_cast %300 : i32 to index
    %c0_90 = arith.constant 0 : index
    %302 = vector.load %arg7[%301, %c0_90] : memref<16x1024xf32, #tpu.memory_space<vmem>>, vector<2x512xf32>
    %c2_i32_91 = arith.constant 2 : i32
    %303 = arith.muli %295, %c2_i32_91 : i32
    %304 = arith.index_cast %303 : i32 to index
    %c512_92 = arith.constant 512 : index
    %305 = vector.load %arg7[%304, %c512_92] : memref<16x1024xf32, #tpu.memory_space<vmem>>, vector<2x512xf32>
    %306 = tpu.concatenate %302, %305 in 0 : vector<2x512xf32>, vector<2x512xf32> -> vector<4x512xf32>
    %307 = arith.addf %299, %306 : vector<4x512xf32>
    %308 = vector.extract_strided_slice %307 {offsets = [0, 0], sizes = [4, 128], strides = [1, 1]} : vector<4x512xf32> to vector<4x128xf32>
    %309 = arith.negf %308 : vector<4x128xf32>
    %310 = math.exp %309 : vector<4x128xf32>
    %cst_93 = arith.constant 1.000000e+00 : f32
    %311 = vector.broadcast %cst_93 : f32 to vector<4x128xf32>
    %312 = arith.addf %311, %310 : vector<4x128xf32>
    %313 = arith.divf %311, %312 : vector<4x128xf32>
    %314 = vector.extract_strided_slice %307 {offsets = [0, 128], sizes = [4, 128], strides = [1, 1]} : vector<4x512xf32> to vector<4x128xf32>
    %315 = arith.negf %314 : vector<4x128xf32>
    %316 = math.exp %315 : vector<4x128xf32>
    %cst_94 = arith.constant 1.000000e+00 : f32
    %317 = vector.broadcast %cst_94 : f32 to vector<4x128xf32>
    %318 = arith.addf %317, %316 : vector<4x128xf32>
    %319 = arith.divf %317, %318 : vector<4x128xf32>
    %320 = vector.extract_strided_slice %307 {offsets = [0, 256], sizes = [4, 128], strides = [1, 1]} : vector<4x512xf32> to vector<4x128xf32>
    %321 = math.tanh %320 : vector<4x128xf32>
    %322 = vector.extract_strided_slice %307 {offsets = [0, 384], sizes = [4, 128], strides = [1, 1]} : vector<4x512xf32> to vector<4x128xf32>
    %323 = arith.negf %322 : vector<4x128xf32>
    %324 = math.exp %323 : vector<4x128xf32>
    %cst_95 = arith.constant 1.000000e+00 : f32
    %325 = vector.broadcast %cst_95 : f32 to vector<4x128xf32>
    %326 = arith.addf %325, %324 : vector<4x128xf32>
    %327 = arith.divf %325, %326 : vector<4x128xf32>
    %328 = arith.mulf %319, %283 : vector<4x128xf32>
    %329 = arith.mulf %313, %321 : vector<4x128xf32>
    %330 = arith.addf %328, %329 : vector<4x128xf32>
    %331 = math.tanh %330 : vector<4x128xf32>
    %332 = arith.mulf %327, %331 : vector<4x128xf32>
    %333 = arith.truncf %332 : vector<4x128xf32> to vector<4x128xbf16>
    %334 = vector.extract_strided_slice %333 {offsets = [0, 0], sizes = [2, 128], strides = [1, 1]} : vector<4x128xbf16> to vector<2x128xbf16>
    %c2_i32_96 = arith.constant 2 : i32
    %335 = arith.muli %c6_i32, %c2_i32_96 : i32
    %336 = arith.index_cast %335 : i32 to index
    %c0_97 = arith.constant 0 : index
    %337 = vector.load %arg8[%336, %c0_97] : memref<16x256xbf16, #tpu.memory_space<vmem>>, vector<2x128xbf16>
    tpu.vector_store %arg8[%336, %c0_97], %334 {strides = array<i32>} : memref<16x256xbf16, #tpu.memory_space<vmem>>, vector<2x128xbf16>,
    %338 = vector.extract_strided_slice %333 {offsets = [2, 0], sizes = [2, 128], strides = [1, 1]} : vector<4x128xbf16> to vector<2x128xbf16>
    %c2_i32_98 = arith.constant 2 : i32
    %339 = arith.muli %295, %c2_i32_98 : i32
    %340 = arith.index_cast %339 : i32 to index
    %c128_99 = arith.constant 128 : index
    %341 = vector.load %arg8[%340, %c128_99] : memref<16x256xbf16, #tpu.memory_space<vmem>>, vector<2x128xbf16>
    tpu.vector_store %arg8[%340, %c128_99], %338 {strides = array<i32>} : memref<16x256xbf16, #tpu.memory_space<vmem>>, vector<2x128xbf16>,
    %c7_i32_100 = arith.constant 7 : i32
    %c7_i32_101 = arith.constant 7 : i32
    %342 = arith.subi %c7_i32_101, %c7_i32_100 : i32
    %cst_102 = arith.constant dense<0.000000e+00> : vector<4x1024xf32>
    %343 = tpu.matmul %333, %7, %cst_102 {dimension_numbers = #tpu.dot_dimension_numbers<[1], [0], [0], [1], [0, 0, 1, 1], [], []>} : vector<4x128xbf16>, vector<128x1024xbf16>, vector<4x1024xf32> -> vector<4x1024xf32>
    %344 = vector.extract_strided_slice %343 {offsets = [0, 0], sizes = [4, 512], strides = [1, 1]} : vector<4x1024xf32> to vector<4x512xf32>
    %345 = vector.extract_strided_slice %343 {offsets = [0, 512], sizes = [4, 512], strides = [1, 1]} : vector<4x1024xf32> to vector<4x512xf32>
    %346 = arith.select %10, %344, %345 : vector<4x512xi1>, vector<4x512xf32>
    %c2_i32_103 = arith.constant 2 : i32
    %347 = arith.muli %c7_i32_100, %c2_i32_103 : i32
    %348 = arith.index_cast %347 : i32 to index
    %c0_104 = arith.constant 0 : index
    %349 = vector.load %arg7[%348, %c0_104] : memref<16x1024xf32, #tpu.memory_space<vmem>>, vector<2x512xf32>
    %c2_i32_105 = arith.constant 2 : i32
    %350 = arith.muli %342, %c2_i32_105 : i32
    %351 = arith.index_cast %350 : i32 to index
    %c512_106 = arith.constant 512 : index
    %352 = vector.load %arg7[%351, %c512_106] : memref<16x1024xf32, #tpu.memory_space<vmem>>, vector<2x512xf32>
    %353 = tpu.concatenate %349, %352 in 0 : vector<2x512xf32>, vector<2x512xf32> -> vector<4x512xf32>
    %354 = arith.addf %346, %353 : vector<4x512xf32>
    %355 = vector.extract_strided_slice %354 {offsets = [0, 0], sizes = [4, 128], strides = [1, 1]} : vector<4x512xf32> to vector<4x128xf32>
    %356 = arith.negf %355 : vector<4x128xf32>
    %357 = math.exp %356 : vector<4x128xf32>
    %cst_107 = arith.constant 1.000000e+00 : f32
    %358 = vector.broadcast %cst_107 : f32 to vector<4x128xf32>
    %359 = arith.addf %358, %357 : vector<4x128xf32>
    %360 = arith.divf %358, %359 : vector<4x128xf32>
    %361 = vector.extract_strided_slice %354 {offsets = [0, 128], sizes = [4, 128], strides = [1, 1]} : vector<4x512xf32> to vector<4x128xf32>
    %362 = arith.negf %361 : vector<4x128xf32>
    %363 = math.exp %362 : vector<4x128xf32>
    %cst_108 = arith.constant 1.000000e+00 : f32
    %364 = vector.broadcast %cst_108 : f32 to vector<4x128xf32>
    %365 = arith.addf %364, %363 : vector<4x128xf32>
    %366 = arith.divf %364, %365 : vector<4x128xf32>
    %367 = vector.extract_strided_slice %354 {offsets = [0, 256], sizes = [4, 128], strides = [1, 1]} : vector<4x512xf32> to vector<4x128xf32>
    %368 = math.tanh %367 : vector<4x128xf32>
    %369 = vector.extract_strided_slice %354 {offsets = [0, 384], sizes = [4, 128], strides = [1, 1]} : vector<4x512xf32> to vector<4x128xf32>
    %370 = arith.negf %369 : vector<4x128xf32>
    %371 = math.exp %370 : vector<4x128xf32>
    %cst_109 = arith.constant 1.000000e+00 : f32
    %372 = vector.broadcast %cst_109 : f32 to vector<4x128xf32>
    %373 = arith.addf %372, %371 : vector<4x128xf32>
    %374 = arith.divf %372, %373 : vector<4x128xf32>
    %375 = arith.mulf %366, %330 : vector<4x128xf32>
    %376 = arith.mulf %360, %368 : vector<4x128xf32>
    %377 = arith.addf %375, %376 : vector<4x128xf32>
    %378 = math.tanh %377 : vector<4x128xf32>
    %379 = arith.mulf %374, %378 : vector<4x128xf32>
    %380 = arith.truncf %379 : vector<4x128xf32> to vector<4x128xbf16>
    %381 = vector.extract_strided_slice %380 {offsets = [0, 0], sizes = [2, 128], strides = [1, 1]} : vector<4x128xbf16> to vector<2x128xbf16>
    %c2_i32_110 = arith.constant 2 : i32
    %382 = arith.muli %c7_i32_100, %c2_i32_110 : i32
    %383 = arith.index_cast %382 : i32 to index
    %c0_111 = arith.constant 0 : index
    %384 = vector.load %arg8[%383, %c0_111] : memref<16x256xbf16, #tpu.memory_space<vmem>>, vector<2x128xbf16>
    tpu.vector_store %arg8[%383, %c0_111], %381 {strides = array<i32>} : memref<16x256xbf16, #tpu.memory_space<vmem>>, vector<2x128xbf16>,
    %385 = vector.extract_strided_slice %380 {offsets = [2, 0], sizes = [2, 128], strides = [1, 1]} : vector<4x128xbf16> to vector<2x128xbf16>
    %c2_i32_112 = arith.constant 2 : i32
    %386 = arith.muli %342, %c2_i32_112 : i32
    %387 = arith.index_cast %386 : i32 to index
    %c128_113 = arith.constant 128 : index
    %388 = vector.load %arg8[%387, %c128_113] : memref<16x256xbf16, #tpu.memory_space<vmem>>, vector<2x128xbf16>
    tpu.vector_store %arg8[%387, %c128_113], %385 {strides = array<i32>} : memref<16x256xbf16, #tpu.memory_space<vmem>>, vector<2x128xbf16>,
    %c8_i32 = arith.constant 8 : i32
    %c0_114 = arith.constant 0 : index
    %c0_115 = arith.constant 0 : index
    %389 = vector.load %arg8[%c0_114, %c0_115] : memref<16x256xbf16, #tpu.memory_space<vmem>>, vector<16x256xbf16>
    %c0_116 = arith.constant 0 : index
    %c0_117 = arith.constant 0 : index
    %390 = vector.load %arg4[%c0_116, %c0_117] : memref<256x128xbf16, #tpu.memory_space<vmem>>, vector<256x128xbf16>
    %cst_118 = arith.constant dense<0.000000e+00> : vector<16x128xf32>
    %391 = tpu.matmul %389, %390, %cst_118 {dimension_numbers = #tpu.dot_dimension_numbers<[1], [0], [0], [1], [0, 0, 1, 1], [], []>} : vector<16x256xbf16>, vector<256x128xbf16>, vector<16x128xf32> -> vector<16x128xf32>
    %c0_119 = arith.constant 0 : index
    %c0_120 = arith.constant 0 : index
    %392 = vector.load %arg5[%c0_119, %c0_120] : memref<1x128xf32, #tpu.memory_space<vmem>>, vector<1x128xf32>
    %393 = vector.broadcast %392 : vector<1x128xf32> to vector<16x128xf32>
    %394 = arith.addf %391, %393 : vector<16x128xf32>
    %c0_121 = arith.constant 0 : index
    %c0_122 = arith.constant 0 : index
    %395 = vector.load %arg6[%c0_121, %c0_122] : memref<16x128xf32, #tpu.memory_space<vmem>>, vector<16x128xf32>
    tpu.vector_store %arg6[%c0_121, %c0_122], %394 {strides = array<i32>} : memref<16x128xf32, #tpu.memory_space<vmem>>, vector<16x128xf32>,
    return
  }
}

</mosaic_0001>

<bundles_post_ra>
// kernel: tpu_custom_call.1
= control target key start
LH: loop header
LB: loop body
LE: loop exit
PB: predicated region body
PF: predicated region fallthrough
CT: control target
= control target key end

     0   :  { %11 = vsyncpa [#allocation5], 0  ;;  %s9086_s0 = inlined_call_operand.hbm [shape: bf16[16,768], index: 0, kind: input, shape index: {}]   ;;  %s9087_s1 = inlined_call_operand.hbm [shape: bf16[768,1024], index: 1, kind: input, shape index: {}]   ;;  %s9088_s2 = inlined_call_operand.hbm [shape: bf16[128,1024], index: 2, kind: input, shape index: {}]   ;;  %s9089_s3 = inlined_call_operand.hbm [shape: f32[1,1024], index: 3, kind: input, shape index: {}]   ;;  %s9090_s4 = inlined_call_operand.hbm [shape: bf16[256,128], index: 4, kind: input, shape index: {}]   ;;  %s9091_s5 = inlined_call_operand.hbm [shape: f32[1,128], index: 5, kind: input, shape index: {}]   ;;  %s9092_s6 = inlined_call_operand.hbm [shape: f32[16,128], index: 6, kind: output, shape index: {}]  }
   0x1   :  { %12 = vsyncpa [#allocation8], 0 }
   0x2   :  { %13 = vsyncpa [#allocation11], 0 }
   0x3   :  { %14 = vsyncpa [#allocation14], 0  ;;  %s33_s23 = sshll.u32 %s9087_s1, 4  ;;  %s34_s23 = int_to_ptr.hbm [resolvable:$true] %s33_s23 }
   0x4   :  { %15 = vsyncpa [#allocation6], 0  ;;  %s8146_s24 = smov [#allocation7]   ;;  %s60_s28 = sshll.u32 %s9089_s3, 4  ;;  %s61_s28 = int_to_ptr.hbm [resolvable:$true] %s60_s28 }
   0x5   :  { %s35_s25 = sshll.u32 %s8146_s24, 4  ;;  %s8147_s29 = smov 512   ;;  %s36_s25 = int_to_ptr.vmem [resolvable:$true] %s35_s25 }
   0x6   :  { %s8148_s30 = smov 32   ;;  %s8149_s7 = smov [#allocation10]  }
   0x7   :  { %41 = dma.hbm_to_vmem [thread:$0]  %s34_s23, 49152, %s36_s25, [#allocation8], %s8147_s29, %s8147_s29, %s8148_s30  }
   0x8   :  { %s62_s8 = sshll.u32 %s8149_s7, 4  ;;  %s20_s11 = sshll.u32 %s9086_s0, 4  ;;  %s63_s8 = int_to_ptr.vmem [resolvable:$true] %s62_s8  ;;  %s21_s11 = int_to_ptr.hbm [resolvable:$true] %s20_s11 }
   0x9   :  { %65 = dma.hbm_to_vmem [thread:$0]  %s61_s28, 128, %s63_s8, [#allocation11]  }
   0xa   :  { %s8150_s1 = smov [#allocation4]   ;;  %s46_s3 = sshll.u32 %s9088_s2, 4  ;;  %s47_s3 = int_to_ptr.hbm [resolvable:$true] %s46_s3 }
   0xb   :  { %s22_s12 = sshll.u32 %s8150_s1, 4  ;;  %s8151_s15 = smov 384   ;;  %s23_s12 = int_to_ptr.vmem [resolvable:$true] %s22_s12 }
   0xc   :  { %s8152_s16 = smov 24   ;;  %s8153_s17 = smov [#allocation9]  }
   0xd   :  { %28 = dma.hbm_to_vmem [thread:$0]  %s21_s11, 768, %s23_s12, [#allocation5], %s8151_s15, %s8151_s15, %s8152_s16  }
   0xe   :  { %s48_s18 = sshll.u32 %s8153_s17, 4  ;;  %s70_s0 = sshll.u32 %s9090_s4, 4  ;;  %s49_s18 = int_to_ptr.vmem [resolvable:$true] %s48_s18  ;;  %s71_s0 = int_to_ptr.hbm [resolvable:$true] %s70_s0 }
   0xf   :  { %54 = dma.hbm_to_vmem [thread:$0]  %s47_s3, 8192, %s49_s18, [#allocation8], %s8147_s29, %s8147_s29, %s8148_s30  }
  0x10   :  { %s8154_s21 = smov [#allocation12]   ;;  %s84_s2 = sshll.u32 %s9091_s5, 4  ;;  %s85_s2 = int_to_ptr.hbm [resolvable:$true] %s84_s2 }
  0x11   :  { %s72_s22 = sshll.u32 %s8154_s21, 4  ;;  %s8155_s25 = smov 64   ;;  %s73_s22 = int_to_ptr.vmem [resolvable:$true] %s72_s22 }
  0x12   :  { %s8156_s26 = smov 4   ;;  %s8157_s27 = smov [#allocation13]  }
  0x13   :  { %78 = dma.hbm_to_vmem [thread:$0]  %s71_s0, 2048, %s73_s22, [#allocation11], %s8155_s25, %s8155_s25, %s8156_s26  }
  0x14   :  { %s86_s28 = sshll.u32 %s8157_s27, 4  ;;  %s87_s28 = int_to_ptr.vmem [resolvable:$true] %s86_s28 }
  0x15   :  { %89 = dma.hbm_to_vmem [thread:$0]  %s85_s2, 16, %s87_s28, [#allocation14]  }
  0x16   :  { %8136 = dma.done.wait [#allocation5], 768  }
  0x17   :  { %8137 = vsyncadd [#allocation5], 4294966528 }
  0x18   :  { %8138 = dma.done.wait [#allocation8], 57344  }
  0x19   :  { %8139 = vsyncadd [#allocation8], 4294909952 }
  0x1a   :  { %8140 = dma.done.wait [#allocation11], 2176  }
  0x1b   :  { %8141 = vsyncadd [#allocation11], 4294965120 }
  0x1c   :  { %8142 = dma.done.wait [#allocation14], 16  }
  0x1d   :  { %8143 = vsyncadd [#allocation14], 4294967280  ;;  %v5687_v0 = vld [vmem:[#allocation7 + $0x1c0] sm:$0xf]  ;;  %vm3676_vm1 = vcmask 1041408   ;;  %s8159_s4 = smov [#allocation15]  }
  0x1e   :  { %v7415_v1 = vld [vmem:[#allocation7 + $0x1dc] sm:$0xf0]  ;;  %s5419_s5 = sshll.u32 %s8159_s4, 4  ;;  %s5421_s7 = sshll.u32 %s9092_s6, 4  ;;  %s5420_s5 = int_to_ptr.vmem [resolvable:$true] %s5419_s5  ;;  %s5422_s7 = int_to_ptr.hbm [resolvable:$true] %s5421_s7 }
  0x1f   :  { %v5943_v2 = vld [vmem:[#allocation7 + $0x3c0] sm:$0xf]  ;;  %v5688_v3 = vor.u32 %v7415_v1, %v5687_v0  ;;  %s8160_s8 = smov 128   ;;  %s8161_s9 = smov 8  }
  0x20   :  { %v7479_v4 = vld [vmem:[#allocation7 + $0x3dc] sm:$0xf0] }
  0x21   :  { %v6199_v5 = vld [vmem:[#allocation7 + $0x5c0] sm:$0xf]  ;;  %v5944_v7 = vor.u32 %v7479_v4, %v5943_v2  ;;  %2473 = vmatpush.bf16.msra.mxu0 %v5688_v3 }
  0x22   :  { %v7543_v6 = vld [vmem:[#allocation7 + $0x5dc] sm:$0xf0] }
  0x23   :  { %v6200_v8 = vor.u32 %v7543_v6, %v6199_v5  ;;  %v6455_v9 = vld [vmem:[#allocation7 + $0x7c0] sm:$0xf]  ;;  %2487 = vmatpush.bf16.msra.mxu1 %v5944_v7 }
  0x24   :  { %v7607_v10 = vld [vmem:[#allocation7 + $0x7dc] sm:$0xf0] }
  0x25   :  { %v5655_v11 = vld [vmem:[#allocation7 + $0x180] sm:$0xf]  ;;  %v6456_v12 = vor.u32 %v7607_v10, %v6455_v9  ;;  %2501 = vmatpush.bf16.msra.mxu2 %v6200_v8 }
  0x26   :  { %v7407_v13 = vld [vmem:[#allocation7 + $0x19c] sm:$0xf0] }
  0x27   :  { %v5911_v14 = vld [vmem:[#allocation7 + $0x380] sm:$0xf]  ;;  %v5656_v16 = vor.u32 %v7407_v13, %v5655_v11  ;;  %2515 = vmatpush.bf16.msra.mxu3 %v6456_v12 }
  0x28   :  { %v7471_v15 = vld [vmem:[#allocation7 + $0x39c] sm:$0xf0] }
  0x29   :  { %v5912_v17 = vor.u32 %v7471_v15, %v5911_v14  ;;  %v6167_v18 = vld [vmem:[#allocation7 + $0x580] sm:$0xf]  ;;  %2474 = vmatpush.bf16.msra.mxu0 %v5656_v16 }
  0x2a   :  { %v7535_v19 = vld [vmem:[#allocation7 + $0x59c] sm:$0xf0] }
  0x2b   :  { %v6423_v20 = vld [vmem:[#allocation7 + $0x780] sm:$0xf]  ;;  %v6168_v21 = vor.u32 %v7535_v19, %v6167_v18  ;;  %2488 = vmatpush.bf16.msra.mxu1 %v5912_v17 }
  0x2c   :  { %v7599_v22 = vld [vmem:[#allocation7 + $0x79c] sm:$0xf0] }
  0x2d   :  { %v5623_v23 = vld [vmem:[#allocation7 + $0x140] sm:$0xf]  ;;  %v6424_v25 = vor.u32 %v7599_v22, %v6423_v20  ;;  %2502 = vmatpush.bf16.msra.mxu2 %v6168_v21 }
  0x2e   :  { %v7399_v24 = vld [vmem:[#allocation7 + $0x15c] sm:$0xf0] }
  0x2f   :  { %v5879_v26 = vld [vmem:[#allocation7 + $0x340] sm:$0xf]  ;;  %v5624_v29 = vor.u32 %v7399_v24, %v5623_v23  ;;  %2516 = vmatpush.bf16.msra.mxu3 %v6424_v25 }
  0x30   :  { %v7463_v27 = vld [vmem:[#allocation7 + $0x35c] sm:$0xf0] }
  0x31   :  { %v6135_v28 = vld [vmem:[#allocation7 + $0x540] sm:$0xf]  ;;  %v5880_v33 = vor.u32 %v7463_v27, %v5879_v26  ;;  %2475 = vmatpush.bf16.msra.mxu0 %v5624_v29 }
  0x32   :  { %v7527_v30 = vld [vmem:[#allocation7 + $0x55c] sm:$0xf0] }
  0x33   :  { %v6391_v31 = vld [vmem:[#allocation7 + $0x740] sm:$0xf]  ;;  %v6136_v34 = vor.u32 %v7527_v30, %v6135_v28  ;;  %2489 = vmatpush.bf16.msra.mxu1 %v5880_v33  ;;  %v7411_v33 = vld [vmem:[#allocation7 + $0x1c4] sm:$0xf] }
  0x34   :  { %v7591_v32 = vld [vmem:[#allocation7 + $0x75c] sm:$0xf0] }
  0x35   :  { %v5591_v35 = vld [vmem:[#allocation7 + $0x100] sm:$0xf]  ;;  %v6392_v38 = vor.u32 %v7591_v32, %v6391_v31  ;;  %2503 = vmatpush.bf16.msra.mxu2 %v6136_v34  ;;  %v5689_v34 = vld [vmem:[#allocation7 + $0x1e0] sm:$0xf0] }
  0x36   :  { %v7391_v36 = vld [vmem:[#allocation7 + $0x11c] sm:$0xf0] }
  0x37   :  { %v5847_v37 = vld [vmem:[#allocation7 + $0x300] sm:$0xf]  ;;  %v5592_v44 = vor.u32 %v7391_v36, %v5591_v35  ;;  %2517 = vmatpush.bf16.msra.mxu3 %v6392_v38  ;;  %v5945_v38 = vld [vmem:[#allocation7 + $0x3e0] sm:$0xf0] }
  0x38   :  { %v7455_v39 = vld [vmem:[#allocation7 + $0x31c] sm:$0xf0] }
  0x39   :  { %v6103_v40 = vld [vmem:[#allocation7 + $0x500] sm:$0xf]  ;;  %v5848_v45 = vor.u32 %v7455_v39, %v5847_v37  ;;  %2476 = vmatpush.bf16.msra.mxu0 %v5592_v44  ;;  %v7475_v37 = vld [vmem:[#allocation7 + $0x3c4] sm:$0xf]  ;;  %v5692_v44 = vor.u32 %v7411_v33, %v5689_v34 }
  0x3a   :  { %v7519_v41 = vld [vmem:[#allocation7 + $0x51c] sm:$0xf0]  ;;  %v5561_v33 = vld [vmem:[#allocation7 + $0xe0] sm:$0xf0] }
  0x3b   :  { %v6359_v42 = vld [vmem:[#allocation7 + $0x700] sm:$0xf]  ;;  %v6104_v46 = vor.u32 %v7519_v41, %v6103_v40  ;;  %2490 = vmatpush.bf16.msra.mxu1 %v5848_v45  ;;  %v7443_v34 = vld [vmem:[#allocation7 + $0x2c4] sm:$0xf] }
  0x3c   :  { %v7583_v43 = vld [vmem:[#allocation7 + $0x71c] sm:$0xf0] }
  0x3d   :  { %v5559_v47 = vld [vmem:[#allocation7 + $0xc0] sm:$0xf]  ;;  %v6360_v50 = vor.u32 %v7583_v43, %v6359_v42  ;;  %2504 = vmatpush.bf16.msra.mxu2 %v6104_v46 }
  0x3e   :  { %v7383_v48 = vld [vmem:[#allocation7 + $0xdc] sm:$0xf0] }
  0x3f   :  { %v5815_v49 = vld [vmem:[#allocation7 + $0x2c0] sm:$0xf]  ;;  %v5560_v56 = vor.u32 %v7383_v48, %v5559_v47  ;;  %2518 = vmatpush.bf16.msra.mxu3 %v6360_v50  ;;  %v7403_v47 = vld [vmem:[#allocation7 + $0x184] sm:$0xf]  ;;  %v5948_v48 = vor.u32 %v7475_v37, %v5945_v38 }
  0x40   :  { %v7447_v51 = vld [vmem:[#allocation7 + $0x2dc] sm:$0xf0]  ;;  %v7467_v50 = vld [vmem:[#allocation7 + $0x384] sm:$0xf] }
  0x41   :  { %v6071_v52 = vld [vmem:[#allocation7 + $0x4c0] sm:$0xf]  ;;  %v5816_v57 = vor.u32 %v7447_v51, %v5815_v49  ;;  %2477 = vmatpush.bf16.msra.mxu0 %v5560_v56  ;;  %v5657_v49 = vld [vmem:[#allocation7 + $0x1a0] sm:$0xf0] }
  0x42   :  { %v7511_v53 = vld [vmem:[#allocation7 + $0x4dc] sm:$0xf0]  ;;  %v5913_v51 = vld [vmem:[#allocation7 + $0x3a0] sm:$0xf0] }
  0x43   :  { %v6327_v54 = vld [vmem:[#allocation7 + $0x6c0] sm:$0xf]  ;;  %v6072_v58 = vor.u32 %v7511_v53, %v6071_v52  ;;  %2491 = vmatpush.bf16.msra.mxu1 %v5816_v57  ;;  %v5439_v53 = vld [vmem:[#allocation4] sm:$0xf] }
  0x44   :  { %v7575_v55 = vld [vmem:[#allocation7 + $0x6dc] sm:$0xf0] }
  0x45   :  { %v5527_v59 = vld [vmem:[#allocation7 + $0x80] sm:$0xf]  ;;  %v6328_v62 = vor.u32 %v7575_v55, %v6327_v54  ;;  %2505 = vmatpush.bf16.msra.mxu2 %v6072_v58  ;;  %v7352_v54 = vld [vmem:[#allocation4 + $0x14] sm:$0xf0] }
  0x46   :  { %v7375_v60 = vld [vmem:[#allocation7 + $0x9c] sm:$0xf0] }
  0x47   :  { %v5783_v61 = vld [vmem:[#allocation7 + $0x280] sm:$0xf]  ;;  %v5528_v4 = vor.u32 %v7375_v60, %v5527_v59  ;;  %2519 = vmatpush.bf16.msra.mxu3 %v6328_v62  ;;  %v8215_v59 = vor.u32 %v7352_v54, %v5439_v53  ;;  %v7395_v62 = vld [vmem:[#allocation7 + $0x144] sm:$0xf] }
  0x48   :  { %v7439_v63 = vld [vmem:[#allocation7 + $0x29c] sm:$0xf0] }
  0x49   :  { %v6039_v0 = vld [vmem:[#allocation7 + $0x480] sm:$0xf]  ;;  %v5784_v5 = vor.u32 %v7439_v63, %v5783_v61  ;;  %2478 = vmatpush.bf16.msra.mxu0 %v5528_v4  ;;  %v5660_v61 = vor.u32 %v7403_v47, %v5657_v49  ;;  %v5625_v63 = vld [vmem:[#allocation7 + $0x160] sm:$0xf0]  ;;  %v5441_v4 = vld [vmem:[#allocation4 + $0x18] sm:$0xf0] }
  0x4a   :  { %v7503_v1 = vld [vmem:[#allocation7 + $0x49c] sm:$0xf0]  ;;  %v5785_v47 = vld [vmem:[#allocation7 + $0x2a0] sm:$0xf0] }
  0x4b   :  { %v6295_v2 = vld [vmem:[#allocation7 + $0x680] sm:$0xf]  ;;  %v6040_v6 = vor.u32 %v7503_v1, %v6039_v0  ;;  %2492 = vmatpush.bf16.msra.mxu1 %v5784_v5  ;;  %v7459_v0 = vld [vmem:[#allocation7 + $0x344] sm:$0xf]  ;;  %v5916_v1 = vor.u32 %v7467_v50, %v5913_v51 }
  0x4c   :  { %v7567_v3 = vld [vmem:[#allocation7 + $0x69c] sm:$0xf0] }
  0x4d   :  { %v5495_v7 = vld [vmem:[#allocation7 + $0x40] sm:$0xf]  ;;  %v6296_v10 = vor.u32 %v7567_v3, %v6295_v2  ;;  %2506 = vmatpush.bf16.msra.mxu2 %v6040_v6  ;;  %v5881_v2 = vld [vmem:[#allocation7 + $0x360] sm:$0xf0]  ;;  %v7349_v3 = vld [vmem:[#allocation4 + $0x4] sm:$0xf] }
  0x4e   :  { %v7367_v8 = vld [vmem:[#allocation7 + $0x5c] sm:$0xf0]  ;;  %v8218_v5 = vor.u32 %v7349_v3, %v5441_v4  ;;  %v5447_v6 = vld [vmem:[#allocation4 + $0x8] sm:$0xf]  ;;  %v7355_v4 = vld [vmem:[#allocation7 + $0x4] sm:$0xf] }
  0x4f   :  { %v5751_v9 = vld [vmem:[#allocation7 + $0x240] sm:$0xf]  ;;  %v5496_v16 = vor.u32 %v7367_v8, %v5495_v7  ;;  %2520 = vmatpush.bf16.msra.mxu3 %v6296_v10  ;;  %v7353_v7 = vld [vmem:[#allocation4 + $0x1c] sm:$0xf0]  ;;  %v7350_v8 = vld [vmem:[#allocation4 + $0xc] sm:$0xf] }
  0x50   :  { %v7431_v11 = vld [vmem:[#allocation7 + $0x25c] sm:$0xf0]  ;;  %v8220_v10 = vor.u32 %v7353_v7, %v5447_v6  ;;  %v5465_v6 = vld [vmem:[#allocation7 + $0x20] sm:$0xf0] }
  0x51   :  { %v6007_v12 = vld [vmem:[#allocation7 + $0x440] sm:$0xf]  ;;  %v5752_v19 = vor.u32 %v7431_v11, %v5751_v9  ;;  %2479 = vmatpush.bf16.msra.mxu0 %v5496_v16  ;;  %v5449_v11 = vld [vmem:[#allocation4 + $0x20] sm:$0xf0] }
  0x52   :  { %v7495_v13 = vld [vmem:[#allocation7 + $0x45c] sm:$0xf0] }
  0x53   :  { %v6263_v14 = vld [vmem:[#allocation7 + $0x640] sm:$0xf]  ;;  %v6008_v20 = vor.u32 %v7495_v13, %v6007_v12  ;;  %2493 = vmatpush.bf16.msra.mxu1 %v5752_v19  ;;  %v5628_v13 = vor.u32 %v7395_v62, %v5625_v63 }
  0x54   :  { %v7559_v15 = vld [vmem:[#allocation7 + $0x65c] sm:$0xf0] }
  0x55   :  { %v5463_v17 = vld [vmem:[#allocation7] sm:$0xf]  ;;  %v6264_v24 = vor.u32 %v7559_v15, %v6263_v14  ;;  %2507 = vmatpush.bf16.msra.mxu2 %v6008_v20  ;;  %v7387_v20 = vld [vmem:[#allocation7 + $0x104] sm:$0xf] }
  0x56   :  { %v7359_v18 = vld [vmem:[#allocation7 + $0x1c] sm:$0xf0] }
  0x57   :  { %v5719_v21 = vld [vmem:[#allocation7 + $0x200] sm:$0xf]  ;;  %v5464_v31 = vor.u32 %v7359_v18, %v5463_v17  ;;  %2521 = vmatpush.bf16.msra.mxu3 %v6264_v24  ;;  %v8222_v17 = vor.u32 %v7350_v8, %v5449_v11  ;;  %v5884_v18 = vor.u32 %v7459_v0, %v5881_v2  ;;  %v7419_v8 = vld [vmem:[#allocation7 + $0x204] sm:$0xf] }
  0x58   :  { %v7423_v22 = vld [vmem:[#allocation7 + $0x21c] sm:$0xf0]  ;;  %v7539_v11 = vld [vmem:[#allocation7 + $0x5c4] sm:$0xf] }
  0x59   :  { %v5975_v23 = vld [vmem:[#allocation7 + $0x400] sm:$0xf]  ;;  %v5720_v35 = vor.u32 %v7423_v22, %v5719_v21  ;;  %2480 = vmatpush.bf16.msra.mxu0 %v5464_v31  ;;  %v5593_v21 = vld [vmem:[#allocation7 + $0x120] sm:$0xf0] }
  0x5a   :  { %v7487_v25 = vld [vmem:[#allocation7 + $0x41c] sm:$0xf0]  ;;  %v7451_v22 = vld [vmem:[#allocation7 + $0x304] sm:$0xf] }
  0x5b   :  { %v6231_v26 = vld [vmem:[#allocation7 + $0x600] sm:$0xf]  ;;  %v5976_v36 = vor.u32 %v7487_v25, %v5975_v23  ;;  %2494 = vmatpush.bf16.msra.mxu1 %v5720_v35  ;;  %v5849_v23 = vld [vmem:[#allocation7 + $0x320] sm:$0xf0] }
  0x5c   :  { %v7551_v27 = vld [vmem:[#allocation7 + $0x61c] sm:$0xf0]  ;;  %2481 = vmatmul.bf16.vlgmr.msra.gmra.mxu0 %v8215_v59  ;;  %v5817_v35 = vld [vmem:[#allocation7 + $0x2e0] sm:$0xf0] }
  0x5d   :  { %v6711_v28 = vld [vmem:[#allocation7 + $0x9c0] sm:$0xf]  ;;  %v6232_v39 = vor.u32 %v7551_v27, %v6231_v26  ;;  %2508 = vmatpush.bf16.msra.mxu2 %v5976_v36  ;;  %v5596_v26 = vor.u32 %v7387_v20, %v5593_v21  ;;  %v5468_v21 = vor.u32 %v7355_v4, %v5465_v6 }
  0x5e   :  { %v7671_v29 = vld [vmem:[#allocation7 + $0x9dc] sm:$0xf0]  ;;  %2495 = vmatmul.bf16.vlgmr.msra.gmra.mxu1 %v8218_v5 }
  0x5f   :  { %v6967_v30 = vld [vmem:[#allocation7 + $0xbc0] sm:$0xf]  ;;  %v6712_v40 = vor.u32 %v7671_v29, %v6711_v28  ;;  %2522 = vmatpush.bf16.msra.mxu3 %v6232_v39 }
  0x60   :  { %v7735_v32 = vld [vmem:[#allocation7 + $0xbdc] sm:$0xf0]  ;;  %2509 = vmatmul.bf16.vlgmr.msra.gmra.mxu2 %v8220_v10 }
  0x61   :  { %v6679_v41 = vld [vmem:[#allocation7 + $0x980] sm:$0xf]  ;;  %v6968_v43 = vor.u32 %v7735_v32, %v6967_v30  ;;  %2529 = vmatpush.bf16.msrb.mxu0 %v6712_v40  ;;  %2557 = vmatpush.bf16.msrb.mxu2 %v5692_v44  ;;  %v5852_v30 = vor.u32 %v7451_v22, %v5849_v23  ;;  %v7379_v32 = vld [vmem:[#allocation7 + $0xc4] sm:$0xf] }
  0x62   :  { %v7663_v42 = vld [vmem:[#allocation7 + $0x99c] sm:$0xf0]  ;;  %2523 = vmatmul.bf16.vlgmr.msra.gmra.mxu3 %v8222_v17  ;;  %v5564_v38 = vor.u32 %v7379_v32, %v5561_v33  ;;  %v7371_v44 = vld [vmem:[#allocation7 + $0x84] sm:$0xf] }
  0x63   :  { %v6935_v45 = vld [vmem:[#allocation7 + $0xb80] sm:$0xf]  ;;  %v6680_v55 = vor.u32 %v7663_v42, %v6679_v41  ;;  %2543 = vmatpush.bf16.msrb.mxu1 %v6968_v43  ;;  %2571 = vmatpush.bf16.msrb.mxu3 %v5948_v48  ;;  %v5820_v42 = vor.u32 %v7443_v34, %v5817_v35  ;;  %v6969_v22 = vld [vmem:[#allocation7 + $0xbe0] sm:$0xf0] }
  0x64   :  { %v7727_v46 = vld [vmem:[#allocation7 + $0xb9c] sm:$0xf0]  ;;  %v6169_v32 = vld [vmem:[#allocation7 + $0x5a0] sm:$0xf0] }
  0x65   :  { %v6647_v52 = vld [vmem:[#allocation7 + $0x940] sm:$0xf]  ;;  %v6936_v60 = vor.u32 %v7727_v46, %v6935_v45  ;;  %2530 = vmatpush.bf16.msrb.mxu0 %v6680_v55  ;;  %2558 = vmatpush.bf16.msrb.mxu2 %v5660_v61  ;;  %v5529_v45 = vld [vmem:[#allocation7 + $0xa0] sm:$0xf0] }
  0x66   :  { %v7655_v56 = vld [vmem:[#allocation7 + $0x95c] sm:$0xf0]  ;;  %v7435_v46 = vld [vmem:[#allocation7 + $0x284] sm:$0xf]  ;;  %v5532_v50 = vor.u32 %v7371_v44, %v5529_v45 }
  0x67   :  { %v6903_v57 = vld [vmem:[#allocation7 + $0xb40] sm:$0xf]  ;;  %v6648_v9 = vor.u32 %v7655_v56, %v6647_v52  ;;  %2544 = vmatpush.bf16.msrb.mxu1 %v6936_v60  ;;  %2572 = vmatpush.bf16.msrb.mxu3 %v5916_v1  ;;  %v5788_v54 = vor.u32 %v7435_v46, %v5785_v47  ;;  %v7363_v56 = vld [vmem:[#allocation7 + $0x44] sm:$0xf] }
  0x68   :  { %v7719_v58 = vld [vmem:[#allocation7 + $0xb5c] sm:$0xf0]  ;;  %v5753_v60 = vld [vmem:[#allocation7 + $0x260] sm:$0xf0] }
  0x69   :  { %v6904_v12 = vor.u32 %v7719_v58, %v6903_v57  ;;  %v6615_v14 = vld [vmem:[#allocation7 + $0x900] sm:$0xf]  ;;  %2531 = vmatpush.bf16.msrb.mxu0 %v6648_v9  ;;  %2559 = vmatpush.bf16.msrb.mxu2 %v5628_v13  ;;  %v5497_v57 = vld [vmem:[#allocation7 + $0x60] sm:$0xf0] }
  0x6a   :  { %v7647_v15 = vld [vmem:[#allocation7 + $0x91c] sm:$0xf0]  ;;  %v7427_v58 = vld [vmem:[#allocation7 + $0x244] sm:$0xf]  ;;  %v5500_v2 = vor.u32 %v7363_v56, %v5497_v57 }
  0x6b   :  { %v6871_v16 = vld [vmem:[#allocation7 + $0xb00] sm:$0xf]  ;;  %v6616_v24 = vor.u32 %v7647_v15, %v6615_v14  ;;  %2545 = vmatpush.bf16.msrb.mxu1 %v6904_v12  ;;  %2573 = vmatpush.bf16.msrb.mxu3 %v5884_v18  ;;  %v5756_v7 = vor.u32 %v7427_v58, %v5753_v60  ;;  %v5721_v9 = vld [vmem:[#allocation7 + $0x220] sm:$0xf0] }
  0x6c   :  { %v7711_v19 = vld [vmem:[#allocation7 + $0xb1c] sm:$0xf0]  ;;  %v6201_v12 = vld [vmem:[#allocation7 + $0x5e0] sm:$0xf0] }
  0x6d   :  { %v6872_v25 = vor.u32 %v7711_v19, %v6871_v16  ;;  %v6583_v27 = vld [vmem:[#allocation7 + $0x8c0] sm:$0xf]  ;;  %2532 = vmatpush.bf16.msrb.mxu0 %v6616_v24  ;;  %2560 = vmatpush.bf16.msrb.mxu2 %v5596_v26  ;;  %v7603_v13 = vld [vmem:[#allocation7 + $0x7c4] sm:$0xf]  ;;  %v7354_v24 = vld [vmem:[#allocation4 + $0x24] sm:$0xf0]  ;;  %v6204_v26 = vor.u32 %v7539_v11, %v6201_v12 }
  0x6e   :  { %v7639_v28 = vld [vmem:[#allocation7 + $0x8dc] sm:$0xf0]  ;;  %v6457_v14 = vld [vmem:[#allocation7 + $0x7e0] sm:$0xf0] }
  0x6f   :  { %v6839_v29 = vld [vmem:[#allocation7 + $0xac0] sm:$0xf]  ;;  %v6584_v36 = vor.u32 %v7639_v28, %v6583_v27  ;;  %2546 = vmatpush.bf16.msrb.mxu1 %v6872_v25  ;;  %2574 = vmatpush.bf16.msrb.mxu3 %v5852_v30  ;;  %v7667_v16 = vld [vmem:[#allocation7 + $0x9c4] sm:$0xf]  ;;  %v5724_v25 = vor.u32 %v7419_v8, %v5721_v9  ;;  %v5457_v28 = vld [vmem:[#allocation4 + $0x28] sm:$0xf0] }
  0x70   :  { %v7703_v31 = vld [vmem:[#allocation7 + $0xadc] sm:$0xf0]  ;;  %v6713_v18 = vld [vmem:[#allocation7 + $0x9e0] sm:$0xf0] }
  0x71   :  { %v6840_v37 = vor.u32 %v7703_v31, %v6839_v29  ;;  %v6551_v39 = vld [vmem:[#allocation7 + $0x880] sm:$0xf]  ;;  %2533 = vmatpush.bf16.msrb.mxu0 %v6584_v36  ;;  %2561 = vmatpush.bf16.msrb.mxu2 %v5564_v38  ;;  %v7731_v19 = vld [vmem:[#allocation7 + $0xbc4] sm:$0xf]  ;;  %v6460_v29 = vor.u32 %v7603_v13, %v6457_v14  ;;  %v6716_v30 = vor.u32 %v7667_v16, %v6713_v18 }
  0x72   :  { %v7631_v40 = vld [vmem:[#allocation7 + $0x89c] sm:$0xf0]  ;;  %v7351_v27 = vld [vmem:[#allocation4 + $0x14] sm:$0xf]  ;;  %v6972_v34 = vor.u32 %v7731_v19, %v6969_v22 }
  0x73   :  { %v6807_v41 = vld [vmem:[#allocation7 + $0xa80] sm:$0xf]  ;;  %v6552_v48 = vor.u32 %v7631_v40, %v6551_v39  ;;  %2547 = vmatpush.bf16.msrb.mxu1 %v6840_v37  ;;  %2575 = vmatpush.bf16.msrb.mxu3 %v5820_v42  ;;  %v7531_v31 = vld [vmem:[#allocation7 + $0x584] sm:$0xf]  ;;  %v8229_v39 = vor.u32 %v7351_v27, %v5457_v28 }
  0x74   :  { %v7695_v43 = vld [vmem:[#allocation7 + $0xa9c] sm:$0xf0]  ;;  %v7595_v33 = vld [vmem:[#allocation7 + $0x784] sm:$0xf]  ;;  %v6172_v42 = vor.u32 %v7531_v31, %v6169_v32 }
  0x75   :  { %v6808_v49 = vor.u32 %v7695_v43, %v6807_v41  ;;  %v6519_v51 = vld [vmem:[#allocation7 + $0x840] sm:$0xf]  ;;  %2534 = vmatpush.bf16.msrb.mxu0 %v6552_v48  ;;  %2562 = vmatpush.bf16.msrb.mxu2 %v5532_v50  ;;  %v6425_v36 = vld [vmem:[#allocation7 + $0x7a0] sm:$0xf0] }
  0x76   :  { %v7623_v52 = vld [vmem:[#allocation7 + $0x85c] sm:$0xf0]  ;;  %v7659_v37 = vld [vmem:[#allocation7 + $0x984] sm:$0xf]  ;;  %v6428_v43 = vor.u32 %v7595_v33, %v6425_v36 }
  0x77   :  { %v6775_v53 = vld [vmem:[#allocation7 + $0xa40] sm:$0xf]  ;;  %v6520_v61 = vor.u32 %v7623_v52, %v6519_v51  ;;  %2548 = vmatpush.bf16.msrb.mxu1 %v6808_v49  ;;  %2576 = vmatpush.bf16.msrb.mxu3 %v5788_v54  ;;  %v6681_v38 = vld [vmem:[#allocation7 + $0x9a0] sm:$0xf0] }
  0x78   :  { %v7687_v55 = vld [vmem:[#allocation7 + $0xa5c] sm:$0xf0]  ;;  %v7723_v40 = vld [vmem:[#allocation7 + $0xb84] sm:$0xf]  ;;  %v6684_v44 = vor.u32 %v7659_v37, %v6681_v38 }
  0x79   :  { %v6487_v62 = vld [vmem:[#allocation7 + $0x800] sm:$0xf]  ;;  %v6776_v1 = vor.u32 %v7687_v55, %v6775_v53  ;;  %2535 = vmatpush.bf16.msrb.mxu0 %v6520_v61  ;;  %2563 = vmatpush.bf16.msrb.mxu2 %v5500_v2  ;;  %v6937_v41 = vld [vmem:[#allocation7 + $0xba0] sm:$0xf0] }
  0x7a   :  { %v7615_v63 = vld [vmem:[#allocation7 + $0x81c] sm:$0xf0]  ;;  %v7523_v45 = vld [vmem:[#allocation7 + $0x544] sm:$0xf]  ;;  %v6940_v48 = vor.u32 %v7723_v40, %v6937_v41 }
  0x7b   :  { %v6743_v0 = vld [vmem:[#allocation7 + $0xa00] sm:$0xf]  ;;  %v6488_v15 = vor.u32 %v7615_v63, %v6487_v62  ;;  %2549 = vmatpush.bf16.msrb.mxu1 %v6776_v1  ;;  %2577 = vmatpush.bf16.msrb.mxu3 %v5756_v7  ;;  %v6137_v46 = vld [vmem:[#allocation7 + $0x560] sm:$0xf0] }
  0x7c   :  { %v7679_v3 = vld [vmem:[#allocation7 + $0xa1c] sm:$0xf0]  ;;  %v7587_v47 = vld [vmem:[#allocation7 + $0x744] sm:$0xf]  ;;  %v6140_v54 = vor.u32 %v7523_v45, %v6137_v46 }
  0x7d   :  { %v6744_v20 = vor.u32 %v7679_v3, %v6743_v0  ;;  %v5455_v23 = vld [vmem:[#allocation4 + $0x10] sm:$0xf]  ;;  %2536 = vmatpush.bf16.msrb.mxu0 %v6488_v15  ;;  %2564 = vmatpush.bf16.msrb.mxu2 %v5468_v21  ;;  %v6393_v49 = vld [vmem:[#allocation7 + $0x760] sm:$0xf0] }
  0x7e   :  { %v8227_v35 = vor.u32 %v7354_v24, %v5455_v23  ;;  %v7651_v50 = vld [vmem:[#allocation7 + $0x944] sm:$0xf]  ;;  %v6396_v55 = vor.u32 %v7587_v47, %v6393_v49 }
  0x7f   :  { %2550 = vmatpush.bf16.msrb.mxu1 %v6744_v20  ;;  %2578 = vmatpush.bf16.msrb.mxu3 %v5724_v25  ;;  %v6649_v51 = vld [vmem:[#allocation7 + $0x960] sm:$0xf0] }
  0x80   :  { %2537 = vmatmul.bf16.vlgmr.msrb.gmra.mxu0 %v8227_v35  ;;  %v7715_v52 = vld [vmem:[#allocation7 + $0xb44] sm:$0xf]  ;;  %2565 = vmatmul.bf16.vlgmr.msrb.gmra.mxu2 %v8215_v59  ;;  %v6652_v56 = vor.u32 %v7651_v50, %v6649_v51 }
  0x81   :  { %2585 = vmatpush.bf16.msra.mxu0 %v6204_v26  ;;  %2613 = vmatpush.bf16.msra.mxu2 %v6716_v30  ;;  %v6905_v53 = vld [vmem:[#allocation7 + $0xb60] sm:$0xf0] }
  0x82   :  { %2551 = vmatmul.bf16.vlgmr.msrb.gmra.mxu1 %v8229_v39  ;;  %2579 = vmatmul.bf16.vlgmr.msrb.gmra.mxu3 %v8218_v5  ;;  %v7515_v57 = vld [vmem:[#allocation7 + $0x504] sm:$0xf]  ;;  %v6908_v61 = vor.u32 %v7715_v52, %v6905_v53 }
  0x83   :  { %2599 = vmatpush.bf16.msra.mxu1 %v6460_v29  ;;  %2627 = vmatpush.bf16.msra.mxu3 %v6972_v34  ;;  %v6105_v58 = vld [vmem:[#allocation7 + $0x520] sm:$0xf0] }
  0x84   :  { %v7579_v60 = vld [vmem:[#allocation7 + $0x704] sm:$0xf]  ;;  %v6108_v3 = vor.u32 %v7515_v57, %v6105_v58  ;;  %v7416_v57 = vld [vmem:[#allocation7 + $0x1e4] sm:$0xf0] }
  0x85   :  { %2586 = vmatpush.bf16.msra.mxu0 %v6172_v42  ;;  %2614 = vmatpush.bf16.msra.mxu2 %v6684_v44  ;;  %v6361_v62 = vld [vmem:[#allocation7 + $0x720] sm:$0xf0]  ;;  %v5951_v58 = vld [vmem:[#allocation7 + $0x3c8] sm:$0xf] }
  0x86   :  { %v7643_v63 = vld [vmem:[#allocation7 + $0x904] sm:$0xf]  ;;  %v6364_v4 = vor.u32 %v7579_v60, %v6361_v62  ;;  %v6207_v62 = vld [vmem:[#allocation7 + $0x5c8] sm:$0xf] }
  0x87   :  { %2600 = vmatpush.bf16.msra.mxu1 %v6428_v43  ;;  %2628 = vmatpush.bf16.msra.mxu3 %v6940_v48  ;;  %v6617_v0 = vld [vmem:[#allocation7 + $0x920] sm:$0xf0] }
  0x88   :  { %v7707_v1 = vld [vmem:[#allocation7 + $0xb04] sm:$0xf]  ;;  %v6620_v6 = vor.u32 %v7643_v63, %v6617_v0  ;;  %v7544_v63 = vld [vmem:[#allocation7 + $0x5e4] sm:$0xf0] }
  0x89   :  { %v6873_v2 = vld [vmem:[#allocation7 + $0xb20] sm:$0xf0]  ;;  %2587 = vmatpush.bf16.msra.mxu0 %v6140_v54  ;;  %2615 = vmatpush.bf16.msra.mxu2 %v6652_v56  ;;  %v5695_v56 = vld [vmem:[#allocation7 + $0x1c8] sm:$0xf] }
  0x8a   :  { %v7507_v7 = vld [vmem:[#allocation7 + $0x4c4] sm:$0xf]  ;;  %v6876_v11 = vor.u32 %v7707_v1, %v6873_v2  ;;  %v6463_v2 = vld [vmem:[#allocation7 + $0x7c8] sm:$0xf] }
  0x8b   :  { %2601 = vmatpush.bf16.msra.mxu1 %v6396_v55  ;;  %v6073_v8 = vld [vmem:[#allocation7 + $0x4e0] sm:$0xf0]  ;;  %2629 = vmatpush.bf16.msra.mxu3 %v6908_v61  ;;  %v7480_v61 = vld [vmem:[#allocation7 + $0x3e4] sm:$0xf0] }
  0x8c   :  { %v7571_v9 = vld [vmem:[#allocation7 + $0x6c4] sm:$0xf]  ;;  %v6076_v18 = vor.u32 %v7507_v7, %v6073_v8  ;;  %v5952_v7 = vor.u32 %v7480_v61, %v5951_v58  ;;  %v6208_v8 = vor.u32 %v7544_v63, %v6207_v62  ;;  %v5535_v62 = vld [vmem:[#allocation7 + $0x88] sm:$0xf] }
  0x8d   :  { %v6329_v12 = vld [vmem:[#allocation7 + $0x6e0] sm:$0xf0]  ;;  %2588 = vmatpush.bf16.msra.mxu0 %v6108_v3  ;;  %2616 = vmatpush.bf16.msra.mxu2 %v6620_v6  ;;  %v7608_v3 = vld [vmem:[#allocation7 + $0x7e4] sm:$0xf0]  ;;  %v5696_v6 = vor.u32 %v7416_v57, %v5695_v56 }
  0x8e   :  { %v7635_v13 = vld [vmem:[#allocation7 + $0x8c4] sm:$0xf]  ;;  %v6332_v19 = vor.u32 %v7571_v9, %v6329_v12  ;;  %v5663_v9 = vld [vmem:[#allocation7 + $0x188] sm:$0xf] }
  0x8f   :  { %v6585_v14 = vld [vmem:[#allocation7 + $0x8e0] sm:$0xf0]  ;;  %2602 = vmatpush.bf16.msra.mxu1 %v6364_v4  ;;  %2630 = vmatpush.bf16.msra.mxu3 %v6876_v11  ;;  %v7408_v11 = vld [vmem:[#allocation7 + $0x1a4] sm:$0xf0] }
  0x90   :  { %v7699_v15 = vld [vmem:[#allocation7 + $0xac4] sm:$0xf]  ;;  %v6588_v20 = vor.u32 %v7635_v13, %v6585_v14  ;;  %v5919_v12 = vld [vmem:[#allocation7 + $0x388] sm:$0xf]  ;;  %v6464_v13 = vor.u32 %v7608_v3, %v6463_v2 }
  0x91   :  { %v6841_v16 = vld [vmem:[#allocation7 + $0xae0] sm:$0xf0]  ;;  %2589 = vmatpush.bf16.msra.mxu0 %v6076_v18  ;;  %v7472_v14 = vld [vmem:[#allocation7 + $0x3a4] sm:$0xf0] }
  0x92   :  { %v7499_v21 = vld [vmem:[#allocation7 + $0x484] sm:$0xf]  ;;  %v6844_v24 = vor.u32 %v7699_v15, %v6841_v16  ;;  %2617 = vmatpush.bf16.msra.mxu2 %v6588_v20  ;;  %v6175_v15 = vld [vmem:[#allocation7 + $0x588] sm:$0xf]  ;;  %v5664_v20 = vor.u32 %v7408_v11, %v5663_v9 }
  0x93   :  { %v6041_v22 = vld [vmem:[#allocation7 + $0x4a0] sm:$0xf0]  ;;  %2603 = vmatpush.bf16.msra.mxu1 %v6332_v19  ;;  %v7536_v16 = vld [vmem:[#allocation7 + $0x5a4] sm:$0xf0] }
  0x94   :  { %v7563_v23 = vld [vmem:[#allocation7 + $0x684] sm:$0xf]  ;;  %v6044_v30 = vor.u32 %v7499_v21, %v6041_v22  ;;  %2631 = vmatpush.bf16.msra.mxu3 %v6844_v24  ;;  %v6431_v18 = vld [vmem:[#allocation7 + $0x788] sm:$0xf]  ;;  %v5920_v21 = vor.u32 %v7472_v14, %v5919_v12  ;;  %v6176_v22 = vor.u32 %v7536_v16, %v6175_v15 }
  0x95   :  { %v6297_v25 = vld [vmem:[#allocation7 + $0x6a0] sm:$0xf0]  ;;  %v7600_v19 = vld [vmem:[#allocation7 + $0x7a4] sm:$0xf0] }
  0x96   :  { %v7627_v26 = vld [vmem:[#allocation7 + $0x884] sm:$0xf]  ;;  %v6300_v31 = vor.u32 %v7563_v23, %v6297_v25  ;;  %2590 = vmatpush.bf16.msra.mxu0 %v6044_v30  ;;  %v5631_v23 = vld [vmem:[#allocation7 + $0x148] sm:$0xf] }
  0x97   :  { %v6553_v27 = vld [vmem:[#allocation7 + $0x8a0] sm:$0xf0]  ;;  %v7400_v24 = vld [vmem:[#allocation7 + $0x164] sm:$0xf0] }
  0x98   :  { %v7691_v28 = vld [vmem:[#allocation7 + $0xa84] sm:$0xf]  ;;  %v6556_v32 = vor.u32 %v7627_v26, %v6553_v27  ;;  %2604 = vmatpush.bf16.msra.mxu1 %v6300_v31  ;;  %v5887_v25 = vld [vmem:[#allocation7 + $0x348] sm:$0xf]  ;;  %v6432_v26 = vor.u32 %v7600_v19, %v6431_v18 }
  0x99   :  { %v6809_v29 = vld [vmem:[#allocation7 + $0xaa0] sm:$0xf0]  ;;  %v7464_v27 = vld [vmem:[#allocation7 + $0x364] sm:$0xf0] }
  0x9a   :  { %v7491_v33 = vld [vmem:[#allocation7 + $0x444] sm:$0xf]  ;;  %v6812_v37 = vor.u32 %v7691_v28, %v6809_v29  ;;  %2618 = vmatpush.bf16.msra.mxu2 %v6556_v32  ;;  %v6143_v28 = vld [vmem:[#allocation7 + $0x548] sm:$0xf]  ;;  %v5632_v32 = vor.u32 %v7400_v24, %v5631_v23 }
  0x9b   :  { %v6009_v34 = vld [vmem:[#allocation7 + $0x460] sm:$0xf0]  ;;  %v7528_v29 = vld [vmem:[#allocation7 + $0x564] sm:$0xf0] }
  0x9c   :  { %v7555_v36 = vld [vmem:[#allocation7 + $0x644] sm:$0xf]  ;;  %v6012_v44 = vor.u32 %v7491_v33, %v6009_v34  ;;  %2632 = vmatpush.bf16.msra.mxu3 %v6812_v37  ;;  %v6399_v30 = vld [vmem:[#allocation7 + $0x748] sm:$0xf]  ;;  %v5888_v33 = vor.u32 %v7464_v27, %v5887_v25  ;;  %v6144_v34 = vor.u32 %v7528_v29, %v6143_v28 }
  0x9d   :  { %v6265_v38 = vld [vmem:[#allocation7 + $0x660] sm:$0xf0]  ;;  %v7592_v31 = vld [vmem:[#allocation7 + $0x764] sm:$0xf0] }
  0x9e   :  { %v7619_v40 = vld [vmem:[#allocation7 + $0x844] sm:$0xf]  ;;  %v6268_v48 = vor.u32 %v7555_v36, %v6265_v38  ;;  %2591 = vmatpush.bf16.msra.mxu0 %v6012_v44  ;;  %v5599_v36 = vld [vmem:[#allocation7 + $0x108] sm:$0xf] }
  0x9f   :  { %v6521_v41 = vld [vmem:[#allocation7 + $0x860] sm:$0xf0]  ;;  %v7392_v37 = vld [vmem:[#allocation7 + $0x124] sm:$0xf0] }
  0xa0   :  { %v7683_v42 = vld [vmem:[#allocation7 + $0xa44] sm:$0xf]  ;;  %v6524_v49 = vor.u32 %v7619_v40, %v6521_v41  ;;  %2605 = vmatpush.bf16.msra.mxu1 %v6268_v48  ;;  %v5855_v38 = vld [vmem:[#allocation7 + $0x308] sm:$0xf]  ;;  %v6400_v40 = vor.u32 %v7592_v31, %v6399_v30 }
  0xa1   :  { %v6777_v43 = vld [vmem:[#allocation7 + $0xa60] sm:$0xf0]  ;;  %v7456_v41 = vld [vmem:[#allocation7 + $0x324] sm:$0xf0] }
  0xa2   :  { %v7483_v45 = vld [vmem:[#allocation7 + $0x404] sm:$0xf]  ;;  %v6780_v53 = vor.u32 %v7683_v42, %v6777_v43  ;;  %2619 = vmatpush.bf16.msra.mxu2 %v6524_v49  ;;  %v6111_v42 = vld [vmem:[#allocation7 + $0x508] sm:$0xf] }
  0xa3   :  { %v5977_v46 = vld [vmem:[#allocation7 + $0x420] sm:$0xf0]  ;;  %v7520_v43 = vld [vmem:[#allocation7 + $0x524] sm:$0xf0] }
  0xa4   :  { %v7547_v47 = vld [vmem:[#allocation7 + $0x604] sm:$0xf]  ;;  %v5980_v60 = vor.u32 %v7483_v45, %v5977_v46  ;;  %2633 = vmatpush.bf16.msra.mxu3 %v6780_v53  ;;  %v6367_v44 = vld [vmem:[#allocation7 + $0x708] sm:$0xf]  ;;  %v5600_v46 = vor.u32 %v7392_v37, %v5599_v36  ;;  %v6112_v48 = vor.u32 %v7520_v43, %v6111_v42  ;;  %v5697_v42 = vld [vmem:[#allocation7 + $0x1e8] sm:$0xf0] }
  0xa5   :  { %v6233_v50 = vld [vmem:[#allocation7 + $0x620] sm:$0xf0]  ;;  %v7584_v45 = vld [vmem:[#allocation7 + $0x724] sm:$0xf0] }
  0xa6   :  { %v7611_v51 = vld [vmem:[#allocation7 + $0x804] sm:$0xf]  ;;  %v6236_v0 = vor.u32 %v7547_v47, %v6233_v50  ;;  %2592 = vmatpush.bf16.msra.mxu0 %v5980_v60  ;;  %v5856_v47 = vor.u32 %v7456_v41, %v5855_v38  ;;  %v5567_v49 = vld [vmem:[#allocation7 + $0xc8] sm:$0xf]  ;;  %v7412_v41 = vld [vmem:[#allocation7 + $0x1cc] sm:$0xf] }
  0xa7   :  { %v6489_v52 = vld [vmem:[#allocation7 + $0x820] sm:$0xf0]  ;;  %v7384_v50 = vld [vmem:[#allocation7 + $0xe4] sm:$0xf0] }
  0xa8   :  { %v7675_v54 = vld [vmem:[#allocation7 + $0xa04] sm:$0xf]  ;;  %v6492_v1 = vor.u32 %v7611_v51, %v6489_v52  ;;  %2606 = vmatpush.bf16.msra.mxu1 %v6236_v0  ;;  %v5823_v51 = vld [vmem:[#allocation7 + $0x2c8] sm:$0xf]  ;;  %v6368_v52 = vor.u32 %v7584_v45, %v6367_v44  ;;  %v5568_v58 = vor.u32 %v7384_v50, %v5567_v49  ;;  %v7476_v45 = vld [vmem:[#allocation7 + $0x3cc] sm:$0xf]  ;;  %v5700_v50 = vor.u32 %v7412_v41, %v5697_v42 }
  0xa9   :  { %v6745_v55 = vld [vmem:[#allocation7 + $0xa20] sm:$0xf0]  ;;  %2593 = vmatmul.bf16.vlgmr.msra.gmra.mxu0 %v8220_v10  ;;  %v7448_v53 = vld [vmem:[#allocation7 + $0x2e4] sm:$0xf0] }
  0xaa   :  { %v6748_v4 = vor.u32 %v7675_v54, %v6745_v55  ;;  %2620 = vmatpush.bf16.msra.mxu2 %v6492_v1  ;;  %2641 = vmatpush.bf16.msrb.mxu0 %v5696_v6  ;;  %v6079_v54 = vld [vmem:[#allocation7 + $0x4c8] sm:$0xf]  ;;  %v5824_v60 = vor.u32 %v7448_v53, %v5823_v51 }
  0xab   :  { %2607 = vmatmul.bf16.vlgmr.msra.gmra.mxu1 %v8222_v17  ;;  %v7512_v55 = vld [vmem:[#allocation7 + $0x4e4] sm:$0xf0] }
  0xac   :  { %2634 = vmatpush.bf16.msra.mxu3 %v6748_v4  ;;  %2655 = vmatpush.bf16.msrb.mxu1 %v5952_v7  ;;  %v6335_v56 = vld [vmem:[#allocation7 + $0x6c8] sm:$0xf]  ;;  %v6080_v61 = vor.u32 %v7512_v55, %v6079_v54 }
  0xad   :  { %2621 = vmatmul.bf16.vlgmr.msra.gmra.mxu2 %v8227_v35  ;;  %v7576_v57 = vld [vmem:[#allocation7 + $0x6e4] sm:$0xf0] }
  0xae   :  { %2669 = vmatpush.bf16.msrb.mxu2 %v6208_v8  ;;  %2642 = vmatpush.bf16.msrb.mxu0 %v5664_v20  ;;  %v7376_v63 = vld [vmem:[#allocation7 + $0xa4] sm:$0xf0]  ;;  %v6336_v1 = vor.u32 %v7576_v57, %v6335_v56  ;;  %v7404_v56 = vld [vmem:[#allocation7 + $0x18c] sm:$0xf] }
  0xaf   :  { %2635 = vmatmul.bf16.vlgmr.msra.gmra.mxu3 %v8229_v39  ;;  %v5791_v0 = vld [vmem:[#allocation7 + $0x288] sm:$0xf]  ;;  %v5536_v8 = vor.u32 %v7376_v63, %v5535_v62  ;;  %v5665_v57 = vld [vmem:[#allocation7 + $0x1a8] sm:$0xf0] }
  0xb0   :  { %2683 = vmatpush.bf16.msrb.mxu3 %v6464_v13  ;;  %2656 = vmatpush.bf16.msrb.mxu1 %v5920_v21  ;;  %v7440_v2 = vld [vmem:[#allocation7 + $0x2a4] sm:$0xf0]  ;;  %v5668_v63 = vor.u32 %v7404_v56, %v5665_v57 }
  0xb1   :  { %v6047_v3 = vld [vmem:[#allocation7 + $0x488] sm:$0xf]  ;;  %v5792_v9 = vor.u32 %v7440_v2, %v5791_v0 }
  0xb2   :  { %2670 = vmatpush.bf16.msrb.mxu2 %v6176_v22  ;;  %2643 = vmatpush.bf16.msrb.mxu0 %v5632_v32  ;;  %v7504_v4 = vld [vmem:[#allocation7 + $0x4a4] sm:$0xf0] }
  0xb3   :  { %v6303_v6 = vld [vmem:[#allocation7 + $0x688] sm:$0xf]  ;;  %v6048_v11 = vor.u32 %v7504_v4, %v6047_v3 }
  0xb4   :  { %2684 = vmatpush.bf16.msrb.mxu3 %v6432_v26  ;;  %2657 = vmatpush.bf16.msrb.mxu1 %v5888_v33  ;;  %v7568_v7 = vld [vmem:[#allocation7 + $0x6a4] sm:$0xf0] }
  0xb5   :  { %v5503_v12 = vld [vmem:[#allocation7 + $0x48] sm:$0xf]  ;;  %v6304_v15 = vor.u32 %v7568_v7, %v6303_v6  ;;  %v7396_v6 = vld [vmem:[#allocation7 + $0x14c] sm:$0xf] }
  0xb6   :  { %2671 = vmatpush.bf16.msrb.mxu2 %v6144_v34  ;;  %2644 = vmatpush.bf16.msrb.mxu0 %v5600_v46  ;;  %v7368_v13 = vld [vmem:[#allocation7 + $0x64] sm:$0xf0]  ;;  %v5953_v46 = vld [vmem:[#allocation7 + $0x3e8] sm:$0xf0] }
  0xb7   :  { %v5759_v14 = vld [vmem:[#allocation7 + $0x248] sm:$0xf]  ;;  %v5504_v22 = vor.u32 %v7368_v13, %v5503_v12  ;;  %v5956_v54 = vor.u32 %v7476_v45, %v5953_v46  ;;  %v5633_v7 = vld [vmem:[#allocation7 + $0x168] sm:$0xf0] }
  0xb8   :  { %2685 = vmatpush.bf16.msrb.mxu3 %v6400_v40  ;;  %2658 = vmatpush.bf16.msrb.mxu1 %v5856_v47  ;;  %v7432_v16 = vld [vmem:[#allocation7 + $0x264] sm:$0xf0]  ;;  %v5636_v13 = vor.u32 %v7396_v6, %v5633_v7  ;;  %v7372_v46 = vld [vmem:[#allocation7 + $0x8c] sm:$0xf] }
  0xb9   :  { %v6015_v18 = vld [vmem:[#allocation7 + $0x448] sm:$0xf]  ;;  %v5760_v25 = vor.u32 %v7432_v16, %v5759_v14  ;;  %v7356_v7 = vld [vmem:[#allocation7 + $0xc] sm:$0xf] }
  0xba   :  { %2672 = vmatpush.bf16.msrb.mxu2 %v6112_v48  ;;  %2645 = vmatpush.bf16.msrb.mxu0 %v5568_v58  ;;  %v7496_v19 = vld [vmem:[#allocation7 + $0x464] sm:$0xf0]  ;;  %v7468_v58 = vld [vmem:[#allocation7 + $0x38c] sm:$0xf] }
  0xbb   :  { %v6271_v20 = vld [vmem:[#allocation7 + $0x648] sm:$0xf]  ;;  %v6016_v26 = vor.u32 %v7496_v19, %v6015_v18 }
  0xbc   :  { %2686 = vmatpush.bf16.msrb.mxu3 %v6368_v52  ;;  %2659 = vmatpush.bf16.msrb.mxu1 %v5824_v60  ;;  %v7560_v21 = vld [vmem:[#allocation7 + $0x664] sm:$0xf0]  ;;  %v5921_v60 = vld [vmem:[#allocation7 + $0x3a8] sm:$0xf0] }
  0xbd   :  { %v5471_v23 = vld [vmem:[#allocation7 + $0x8] sm:$0xf]  ;;  %v6272_v30 = vor.u32 %v7560_v21, %v6271_v20  ;;  %v5924_v3 = vor.u32 %v7468_v58, %v5921_v60  ;;  %v7388_v20 = vld [vmem:[#allocation7 + $0x10c] sm:$0xf] }
  0xbe   :  { %2673 = vmatpush.bf16.msrb.mxu2 %v6080_v61  ;;  %2646 = vmatpush.bf16.msrb.mxu0 %v5536_v8  ;;  %v7360_v24 = vld [vmem:[#allocation7 + $0x24] sm:$0xf0]  ;;  %v7460_v8 = vld [vmem:[#allocation7 + $0x34c] sm:$0xf] }
  0xbf   :  { %v5727_v27 = vld [vmem:[#allocation7 + $0x208] sm:$0xf]  ;;  %v5472_v38 = vor.u32 %v7360_v24, %v5471_v23  ;;  %v5601_v21 = vld [vmem:[#allocation7 + $0x128] sm:$0xf0] }
  0xc0   :  { %2687 = vmatpush.bf16.msrb.mxu3 %v6336_v1  ;;  %2660 = vmatpush.bf16.msrb.mxu1 %v5792_v9  ;;  %v7424_v28 = vld [vmem:[#allocation7 + $0x224] sm:$0xf0]  ;;  %v5889_v9 = vld [vmem:[#allocation7 + $0x368] sm:$0xf0] }
  0xc1   :  { %v5983_v29 = vld [vmem:[#allocation7 + $0x408] sm:$0xf]  ;;  %v5728_v43 = vor.u32 %v7424_v28, %v5727_v27  ;;  %v5892_v18 = vor.u32 %v7460_v8, %v5889_v9  ;;  %v5857_v23 = vld [vmem:[#allocation7 + $0x328] sm:$0xf0] }
  0xc2   :  { %2674 = vmatpush.bf16.msrb.mxu2 %v6048_v11  ;;  %v7488_v31 = vld [vmem:[#allocation7 + $0x424] sm:$0xf0]  ;;  %2647 = vmatpush.bf16.msrb.mxu0 %v5504_v22  ;;  %v7452_v22 = vld [vmem:[#allocation7 + $0x30c] sm:$0xf] }
  0xc3   :  { %v6239_v32 = vld [vmem:[#allocation7 + $0x608] sm:$0xf]  ;;  %v5984_v44 = vor.u32 %v7488_v31, %v5983_v29  ;;  %v7364_v58 = vld [vmem:[#allocation7 + $0x4c] sm:$0xf] }
  0xc4   :  { %2688 = vmatpush.bf16.msrb.mxu3 %v6304_v15  ;;  %v7552_v33 = vld [vmem:[#allocation7 + $0x624] sm:$0xf0]  ;;  %2661 = vmatpush.bf16.msrb.mxu1 %v5760_v25  ;;  %v5505_v60 = vld [vmem:[#allocation7 + $0x68] sm:$0xf0] }
  0xc5   :  { %v6719_v34 = vld [vmem:[#allocation7 + $0x9c8] sm:$0xf]  ;;  %v6240_v47 = vor.u32 %v7552_v33, %v6239_v32  ;;  %v7380_v32 = vld [vmem:[#allocation7 + $0xcc] sm:$0xf] }
  0xc6   :  { %v7672_v36 = vld [vmem:[#allocation7 + $0x9e4] sm:$0xf0]  ;;  %2675 = vmatpush.bf16.msrb.mxu2 %v6016_v26  ;;  %2648 = vmatpush.bf16.msrb.mxu0 %v5472_v38  ;;  %v5604_v26 = vor.u32 %v7388_v20, %v5601_v21  ;;  %v5569_v33 = vld [vmem:[#allocation7 + $0xe8] sm:$0xf0] }
  0xc7   :  { %v6975_v37 = vld [vmem:[#allocation7 + $0xbc8] sm:$0xf]  ;;  %v6720_v48 = vor.u32 %v7672_v36, %v6719_v34  ;;  %v7444_v34 = vld [vmem:[#allocation7 + $0x2cc] sm:$0xf] }
  0xc8   :  { %v7736_v40 = vld [vmem:[#allocation7 + $0xbe4] sm:$0xf0]  ;;  %2689 = vmatpush.bf16.msrb.mxu3 %v6272_v30  ;;  %2662 = vmatpush.bf16.msrb.mxu1 %v5728_v43  ;;  %v5860_v30 = vor.u32 %v7452_v22, %v5857_v23  ;;  %v5825_v36 = vld [vmem:[#allocation7 + $0x2e8] sm:$0xf0] }
  0xc9   :  { %v6976_v49 = vor.u32 %v7736_v40, %v6975_v37  ;;  %v6687_v51 = vld [vmem:[#allocation7 + $0x988] sm:$0xf]  ;;  %2649 = vmatmul.bf16.vlgmr.msrb.gmra.mxu0 %v8215_v59  ;;  %v5572_v40 = vor.u32 %v7380_v32, %v5569_v33  ;;  %v5473_v9 = vld [vmem:[#allocation7 + $0x28] sm:$0xf0] }
  0xca   :  { %v7664_v52 = vld [vmem:[#allocation7 + $0x9a4] sm:$0xf0]  ;;  %2676 = vmatpush.bf16.msrb.mxu2 %v5984_v44  ;;  %2697 = vmatpush.bf16.msra.mxu0 %v6720_v48  ;;  %v5828_v44 = vor.u32 %v7444_v34, %v5825_v36  ;;  %v7436_v48 = vld [vmem:[#allocation7 + $0x28c] sm:$0xf]  ;;  %v5476_v22 = vor.u32 %v7356_v7, %v5473_v9 }
  0xcb   :  { %v6943_v53 = vld [vmem:[#allocation7 + $0xb88] sm:$0xf]  ;;  %v6688_v61 = vor.u32 %v7664_v52, %v6687_v51  ;;  %2663 = vmatmul.bf16.vlgmr.msrb.gmra.mxu1 %v8218_v5  ;;  %v6721_v20 = vld [vmem:[#allocation7 + $0x9e8] sm:$0xf0] }
  0xcc   :  { %v7728_v55 = vld [vmem:[#allocation7 + $0xba4] sm:$0xf0]  ;;  %2690 = vmatpush.bf16.msrb.mxu3 %v6240_v47  ;;  %2711 = vmatpush.bf16.msra.mxu1 %v6976_v49  ;;  %v5537_v47 = vld [vmem:[#allocation7 + $0xa8] sm:$0xf0] }
  0xcd   :  { %v6944_v62 = vor.u32 %v7728_v55, %v6943_v53  ;;  %v6655_v0 = vld [vmem:[#allocation7 + $0x948] sm:$0xf]  ;;  %2677 = vmatmul.bf16.vlgmr.msrb.gmra.mxu2 %v8220_v10  ;;  %v5793_v49 = vld [vmem:[#allocation7 + $0x2a8] sm:$0xf0]  ;;  %v5540_v52 = vor.u32 %v7372_v46, %v5537_v47 }
  0xce   :  { %2725 = vmatpush.bf16.msra.mxu2 %v5700_v50  ;;  %v7656_v1 = vld [vmem:[#allocation7 + $0x964] sm:$0xf0]  ;;  %2698 = vmatpush.bf16.msra.mxu0 %v6688_v61  ;;  %v5796_v56 = vor.u32 %v7436_v48, %v5793_v49  ;;  %v7428_v61 = vld [vmem:[#allocation7 + $0x24c] sm:$0xf] }
  0xcf   :  { %v6911_v2 = vld [vmem:[#allocation7 + $0xb48] sm:$0xf]  ;;  %v6656_v11 = vor.u32 %v7656_v1, %v6655_v0  ;;  %2691 = vmatmul.bf16.vlgmr.msrb.gmra.mxu3 %v8222_v17  ;;  %v7732_v23 = vld [vmem:[#allocation7 + $0xbcc] sm:$0xf] }
  0xd0   :  { %2739 = vmatpush.bf16.msra.mxu3 %v5956_v54  ;;  %v7720_v4 = vld [vmem:[#allocation7 + $0xb64] sm:$0xf0]  ;;  %2712 = vmatpush.bf16.msra.mxu1 %v6944_v62  ;;  %v5761_v62 = vld [vmem:[#allocation7 + $0x268] sm:$0xf0] }
  0xd1   :  { %v6912_v12 = vor.u32 %v7720_v4, %v6911_v2  ;;  %v6623_v14 = vld [vmem:[#allocation7 + $0x908] sm:$0xf]  ;;  %v5764_v8 = vor.u32 %v7428_v61, %v5761_v62  ;;  %v6433_v33 = vld [vmem:[#allocation7 + $0x7a8] sm:$0xf0] }
  0xd2   :  { %2726 = vmatpush.bf16.msra.mxu2 %v5668_v63  ;;  %v7648_v15 = vld [vmem:[#allocation7 + $0x924] sm:$0xf0]  ;;  %2699 = vmatpush.bf16.msra.mxu0 %v6656_v11  ;;  %v7420_v11 = vld [vmem:[#allocation7 + $0x20c] sm:$0xf] }
  0xd3   :  { %v6879_v16 = vld [vmem:[#allocation7 + $0xb08] sm:$0xf]  ;;  %v6624_v24 = vor.u32 %v7648_v15, %v6623_v14  ;;  %v6209_v14 = vld [vmem:[#allocation7 + $0x5e8] sm:$0xf0] }
  0xd4   :  { %2740 = vmatpush.bf16.msra.mxu3 %v5924_v3  ;;  %v7712_v19 = vld [vmem:[#allocation7 + $0xb24] sm:$0xf0]  ;;  %2713 = vmatpush.bf16.msra.mxu1 %v6912_v12  ;;  %v5508_v3 = vor.u32 %v7364_v58, %v5505_v60  ;;  %v5729_v12 = vld [vmem:[#allocation7 + $0x228] sm:$0xf0] }
  0xd5   :  { %v6880_v25 = vor.u32 %v7712_v19, %v6879_v16  ;;  %v6591_v27 = vld [vmem:[#allocation7 + $0x8c8] sm:$0xf]  ;;  %v7604_v15 = vld [vmem:[#allocation7 + $0x7cc] sm:$0xf] }
  0xd6   :  { %2727 = vmatpush.bf16.msra.mxu2 %v5636_v13  ;;  %v7640_v28 = vld [vmem:[#allocation7 + $0x8e4] sm:$0xf0]  ;;  %2700 = vmatpush.bf16.msra.mxu0 %v6624_v24  ;;  %v7540_v13 = vld [vmem:[#allocation7 + $0x5cc] sm:$0xf] }
  0xd7   :  { %v6847_v29 = vld [vmem:[#allocation7 + $0xac8] sm:$0xf]  ;;  %v6592_v37 = vor.u32 %v7640_v28, %v6591_v27  ;;  %v7668_v19 = vld [vmem:[#allocation7 + $0x9cc] sm:$0xf] }
  0xd8   :  { %2741 = vmatpush.bf16.msra.mxu3 %v5892_v18  ;;  %v7704_v31 = vld [vmem:[#allocation7 + $0xae4] sm:$0xf0]  ;;  %2714 = vmatpush.bf16.msra.mxu1 %v6880_v25  ;;  %v6465_v18 = vld [vmem:[#allocation7 + $0x7e8] sm:$0xf0]  ;;  %v5732_v25 = vor.u32 %v7420_v11, %v5729_v12  ;;  %v6724_v28 = vor.u32 %v7668_v19, %v6721_v20 }
  0xd9   :  { %v6848_v38 = vor.u32 %v7704_v31, %v6847_v29  ;;  %v6559_v41 = vld [vmem:[#allocation7 + $0x888] sm:$0xf]  ;;  %v6977_v24 = vld [vmem:[#allocation7 + $0xbe8] sm:$0xf0]  ;;  %v6468_v27 = vor.u32 %v7604_v15, %v6465_v18 }
  0xda   :  { %2728 = vmatpush.bf16.msra.mxu2 %v5604_v26  ;;  %v7632_v42 = vld [vmem:[#allocation7 + $0x8a4] sm:$0xf0]  ;;  %2701 = vmatpush.bf16.msra.mxu0 %v6592_v37  ;;  %v6212_v26 = vor.u32 %v7540_v13, %v6209_v14  ;;  %v7532_v29 = vld [vmem:[#allocation7 + $0x58c] sm:$0xf]  ;;  %v6980_v32 = vor.u32 %v7732_v23, %v6977_v24 }
  0xdb   :  { %v6815_v43 = vld [vmem:[#allocation7 + $0xa88] sm:$0xf]  ;;  %v6560_v50 = vor.u32 %v7632_v42, %v6559_v41  ;;  %v7596_v31 = vld [vmem:[#allocation7 + $0x78c] sm:$0xf] }
  0xdc   :  { %2742 = vmatpush.bf16.msra.mxu3 %v5860_v30  ;;  %v7696_v45 = vld [vmem:[#allocation7 + $0xaa4] sm:$0xf0]  ;;  %2715 = vmatpush.bf16.msra.mxu1 %v6848_v38  ;;  %v6177_v30 = vld [vmem:[#allocation7 + $0x5a8] sm:$0xf0]  ;;  %v6436_v41 = vor.u32 %v7596_v31, %v6433_v33 }
  0xdd   :  { %v6816_v51 = vor.u32 %v7696_v45, %v6815_v43  ;;  %v6527_v53 = vld [vmem:[#allocation7 + $0x848] sm:$0xf]  ;;  %v7660_v34 = vld [vmem:[#allocation7 + $0x98c] sm:$0xf] }
  0xde   :  { %2729 = vmatpush.bf16.msra.mxu2 %v5572_v40  ;;  %v7624_v54 = vld [vmem:[#allocation7 + $0x864] sm:$0xf0]  ;;  %2702 = vmatpush.bf16.msra.mxu0 %v6560_v50  ;;  %v6689_v36 = vld [vmem:[#allocation7 + $0x9a8] sm:$0xf0]  ;;  %v6180_v40 = vor.u32 %v7532_v29, %v6177_v30 }
  0xdf   :  { %v6783_v55 = vld [vmem:[#allocation7 + $0xa48] sm:$0xf]  ;;  %v6528_v63 = vor.u32 %v7624_v54, %v6527_v53  ;;  %v7724_v37 = vld [vmem:[#allocation7 + $0xb8c] sm:$0xf]  ;;  %v6692_v42 = vor.u32 %v7660_v34, %v6689_v36  ;;  %v2482_v34 = vpop.f32.mrf.mxu0 }
  0xe0   :  { %2743 = vmatpush.bf16.msra.mxu3 %v5828_v44  ;;  %v7688_v57 = vld [vmem:[#allocation7 + $0xa64] sm:$0xf0]  ;;  %2716 = vmatpush.bf16.msra.mxu1 %v6816_v51  ;;  %v6945_v38 = vld [vmem:[#allocation7 + $0xba8] sm:$0xf0] }
  0xe1   :  { %v6495_v0 = vld [vmem:[#allocation7 + $0x808] sm:$0xf]  ;;  %v6784_v2 = vor.u32 %v7688_v57, %v6783_v55  ;;  %v7524_v43 = vld [vmem:[#allocation7 + $0x54c] sm:$0xf]  ;;  %v6948_v46 = vor.u32 %v7724_v37, %v6945_v38 }
  0xe2   :  { %v7616_v1 = vld [vmem:[#allocation7 + $0x824] sm:$0xf0]  ;;  %2730 = vmatpush.bf16.msra.mxu2 %v5540_v52  ;;  %2703 = vmatpush.bf16.msra.mxu0 %v6528_v63  ;;  %v6145_v44 = vld [vmem:[#allocation7 + $0x568] sm:$0xf0] }
  0xe3   :  { %v6751_v4 = vld [vmem:[#allocation7 + $0xa08] sm:$0xf]  ;;  %v6496_v16 = vor.u32 %v7616_v1, %v6495_v0  ;;  %v7588_v45 = vld [vmem:[#allocation7 + $0x74c] sm:$0xf]  ;;  %v6148_v52 = vor.u32 %v7524_v43, %v6145_v44  ;;  %v2496_v43 = vpop.f32.mrf.mxu1 }
  0xe4   :  { %v7680_v6 = vld [vmem:[#allocation7 + $0xa24] sm:$0xf0]  ;;  %2744 = vmatpush.bf16.msra.mxu3 %v5796_v56  ;;  %2717 = vmatpush.bf16.msra.mxu1 %v6784_v2  ;;  %v6401_v47 = vld [vmem:[#allocation7 + $0x768] sm:$0xf0] }
  0xe5   :  { %v6752_v21 = vor.u32 %v7680_v6, %v6751_v4  ;;  %v7652_v48 = vld [vmem:[#allocation7 + $0x94c] sm:$0xf]  ;;  %v6404_v53 = vor.u32 %v7588_v45, %v6401_v47 }
  0xe6   :  { %2731 = vmatpush.bf16.msra.mxu2 %v5508_v3  ;;  %2704 = vmatpush.bf16.msra.mxu0 %v6496_v16  ;;  %v6657_v49 = vld [vmem:[#allocation7 + $0x968] sm:$0xf0] }
  0xe7   :  { %v7716_v50 = vld [vmem:[#allocation7 + $0xb4c] sm:$0xf]  ;;  %v6660_v54 = vor.u32 %v7652_v48, %v6657_v49 }
  0xe8   :  { %2745 = vmatpush.bf16.msra.mxu3 %v5764_v8  ;;  %2718 = vmatpush.bf16.msra.mxu1 %v6752_v21  ;;  %v6913_v51 = vld [vmem:[#allocation7 + $0xb68] sm:$0xf0] }
  0xe9   :  { %2705 = vmatmul.bf16.vlgmr.msra.gmra.mxu0 %v8227_v35  ;;  %v7516_v55 = vld [vmem:[#allocation7 + $0x50c] sm:$0xf]  ;;  %v6916_v58 = vor.u32 %v7716_v50, %v6913_v51 }
  0xea   :  { %2732 = vmatpush.bf16.msra.mxu2 %v5476_v22  ;;  %2753 = vmatpush.bf16.msrb.mxu0 %v6212_v26  ;;  %v6113_v56 = vld [vmem:[#allocation7 + $0x528] sm:$0xf0]  ;;  %v8247_v26 = vld [vmem:[#allocation10] sm:$0xff] }
  0xeb   :  { %2719 = vmatmul.bf16.vlgmr.msra.gmra.mxu1 %v8229_v39  ;;  %v7580_v57 = vld [vmem:[#allocation7 + $0x70c] sm:$0xf]  ;;  %v6116_v1 = vor.u32 %v7516_v55, %v6113_v56  ;;  %v507_v33 = vperm.slane %v8247_v26, 0 }
  0xec   :  { %2746 = vmatpush.bf16.msra.mxu3 %v5732_v25  ;;  %2767 = vmatpush.bf16.msrb.mxu1 %v6468_v27  ;;  %v6369_v60 = vld [vmem:[#allocation7 + $0x728] sm:$0xf0] }
  0xed   :  { %2733 = vmatmul.bf16.vlgmr.msra.gmra.mxu2 %v8215_v59  ;;  %v7644_v61 = vld [vmem:[#allocation7 + $0x90c] sm:$0xf]  ;;  %v6372_v2 = vor.u32 %v7580_v57, %v6369_v60  ;;  %v5703_v60 = vld [vmem:[#allocation7 + $0x1d0] sm:$0xf] }
  0xee   :  { %2781 = vmatpush.bf16.msrb.mxu2 %v6724_v28  ;;  %2754 = vmatpush.bf16.msrb.mxu0 %v6180_v40  ;;  %v6625_v62 = vld [vmem:[#allocation7 + $0x928] sm:$0xf0] }
  0xef   :  { %2747 = vmatmul.bf16.vlgmr.msra.gmra.mxu3 %v8218_v5  ;;  %v7708_v63 = vld [vmem:[#allocation7 + $0xb0c] sm:$0xf]  ;;  %v6628_v3 = vor.u32 %v7644_v61, %v6625_v62  ;;  %v7417_v61 = vld [vmem:[#allocation7 + $0x1ec] sm:$0xf0] }
  0xf0   :  { %2795 = vmatpush.bf16.msrb.mxu3 %v6980_v32  ;;  %2768 = vmatpush.bf16.msrb.mxu1 %v6436_v41  ;;  %v6881_v0 = vld [vmem:[#allocation7 + $0xb28] sm:$0xf0]  ;;  %v5959_v62 = vld [vmem:[#allocation7 + $0x3d0] sm:$0xf] }
  0xf1   :  { %v7508_v4 = vld [vmem:[#allocation7 + $0x4cc] sm:$0xf]  ;;  %v6884_v8 = vor.u32 %v7708_v63, %v6881_v0  ;;  %v7481_v0 = vld [vmem:[#allocation7 + $0x3ec] sm:$0xf0] }
  0xf2   :  { %2782 = vmatpush.bf16.msrb.mxu2 %v6692_v42  ;;  %2755 = vmatpush.bf16.msrb.mxu0 %v6148_v52  ;;  %v6081_v6 = vld [vmem:[#allocation7 + $0x4e8] sm:$0xf0] }
  0xf3   :  { %v7572_v7 = vld [vmem:[#allocation7 + $0x6cc] sm:$0xf]  ;;  %v6084_v15 = vor.u32 %v7508_v4, %v6081_v6  ;;  %v6471_v6 = vld [vmem:[#allocation7 + $0x7d0] sm:$0xf] }
  0xf4   :  { %2796 = vmatpush.bf16.msrb.mxu3 %v6948_v46  ;;  %2769 = vmatpush.bf16.msrb.mxu1 %v6404_v53  ;;  %v6337_v9 = vld [vmem:[#allocation7 + $0x6e8] sm:$0xf0] }
  0xf5   :  { %v7636_v11 = vld [vmem:[#allocation7 + $0x8cc] sm:$0xf]  ;;  %v6340_v18 = vor.u32 %v7572_v7, %v6337_v9  ;;  %v7609_v7 = vld [vmem:[#allocation7 + $0x7ec] sm:$0xf0] }
  0xf6   :  { %2783 = vmatpush.bf16.msrb.mxu2 %v6660_v54  ;;  %v6593_v12 = vld [vmem:[#allocation7 + $0x8e8] sm:$0xf0]  ;;  %2756 = vmatpush.bf16.msrb.mxu0 %v6116_v1  ;;  %v2483_v54 = vadd.f32 %v2482_v34, %v507_v33  ;;  %v6215_v1 = vld [vmem:[#allocation7 + $0x5d0] sm:$0xf] }
  0xf7   :  { %v7700_v13 = vld [vmem:[#allocation7 + $0xacc] sm:$0xf]  ;;  %v6596_v19 = vor.u32 %v7636_v11, %v6593_v12  ;;  %v5704_v11 = vor.u32 %v7417_v61, %v5703_v60  ;;  %v5960_v12 = vor.u32 %v7481_v0, %v5959_v62  ;;  %v5639_v34 = vld [vmem:[#allocation7 + $0x150] sm:$0xf] }
  0xf8   :  { %2797 = vmatpush.bf16.msrb.mxu3 %v6916_v58  ;;  %v6849_v14 = vld [vmem:[#allocation7 + $0xae8] sm:$0xf0]  ;;  %2770 = vmatpush.bf16.msrb.mxu1 %v6372_v2  ;;  %v7545_v2 = vld [vmem:[#allocation7 + $0x5ec] sm:$0xf0] }
  0xf9   :  { %v7500_v16 = vld [vmem:[#allocation7 + $0x48c] sm:$0xf]  ;;  %v6852_v23 = vor.u32 %v7700_v13, %v6849_v14  ;;  %v6216_v13 = vor.u32 %v7545_v2, %v6215_v1  ;;  %v2484_v14 = vpop.f32.mrf.mxu0  ;;  %v6375_v60 = vld [vmem:[#allocation7 + $0x710] sm:$0xf] }
  0xfa   :  { %2784 = vmatpush.bf16.msrb.mxu2 %v6628_v3  ;;  %v6049_v20 = vld [vmem:[#allocation7 + $0x4a8] sm:$0xf0]  ;;  %2757 = vmatpush.bf16.msrb.mxu0 %v6084_v15  ;;  %v2510_v15 = vpop.f32.mrf.mxu2  ;;  %v7585_v61 = vld [vmem:[#allocation7 + $0x72c] sm:$0xf0] }
  0xfb   :  { %v7564_v21 = vld [vmem:[#allocation7 + $0x68c] sm:$0xf]  ;;  %v6052_v29 = vor.u32 %v7500_v16, %v6049_v20  ;;  %v5671_v16 = vld [vmem:[#allocation7 + $0x190] sm:$0xf]  ;;  %v6472_v20 = vor.u32 %v7609_v7, %v6471_v6 }
  0xfc   :  { %v6305_v22 = vld [vmem:[#allocation7 + $0x6a8] sm:$0xf0]  ;;  %2798 = vmatpush.bf16.msrb.mxu3 %v6884_v8  ;;  %2771 = vmatpush.bf16.msrb.mxu1 %v6340_v18  ;;  %v2497_v8 = vadd.f32 %v2496_v43, %v2483_v54  ;;  %v7409_v18 = vld [vmem:[#allocation7 + $0x1ac] sm:$0xf0] }
  0xfd   :  { %v7628_v24 = vld [vmem:[#allocation7 + $0x88c] sm:$0xf]  ;;  %v6308_v31 = vor.u32 %v7564_v21, %v6305_v22  ;;  %v7473_v21 = vld [vmem:[#allocation7 + $0x3ac] sm:$0xf0] }
  0xfe   :  { %v6561_v25 = vld [vmem:[#allocation7 + $0x8a8] sm:$0xf0]  ;;  %2785 = vmatpush.bf16.msrb.mxu2 %v6596_v19  ;;  %2758 = vmatpush.bf16.msrb.mxu0 %v6052_v29  ;;  %v5927_v19 = vld [vmem:[#allocation7 + $0x390] sm:$0xf]  ;;  %v5672_v29 = vor.u32 %v7409_v18, %v5671_v16 }
  0xff   :  { %v7692_v27 = vld [vmem:[#allocation7 + $0xa8c] sm:$0xf]  ;;  %v6564_v32 = vor.u32 %v7628_v24, %v6561_v25  ;;  %v6183_v22 = vld [vmem:[#allocation7 + $0x590] sm:$0xf]  ;;  %v2498_v24 = vpop.f32.mrf.mxu1 }
 0x100   :  { %v6817_v28 = vld [vmem:[#allocation7 + $0xaa8] sm:$0xf0]  ;;  %2799 = vmatpush.bf16.msrb.mxu3 %v6852_v23  ;;  %2772 = vmatpush.bf16.msrb.mxu1 %v6308_v31  ;;  %v7537_v23 = vld [vmem:[#allocation7 + $0x5ac] sm:$0xf0] }
 0x101   :  { %v7492_v30 = vld [vmem:[#allocation7 + $0x44c] sm:$0xf]  ;;  %v6820_v38 = vor.u32 %v7692_v27, %v6817_v28  ;;  %v6439_v25 = vld [vmem:[#allocation7 + $0x790] sm:$0xf]  ;;  %v2511_v28 = vadd.f32 %v2510_v15, %v2497_v8  ;;  %v6184_v31 = vor.u32 %v7537_v23, %v6183_v22  ;;  %v6376_v8 = vor.u32 %v7585_v61, %v6375_v60 }
 0x102   :  { %v6017_v36 = vld [vmem:[#allocation7 + $0x468] sm:$0xf0]  ;;  %2786 = vmatpush.bf16.msrb.mxu2 %v6564_v32  ;;  %v7601_v27 = vld [vmem:[#allocation7 + $0x7ac] sm:$0xf0]  ;;  %v2524_v32 = vpop.f32.mrf.mxu3 }
 0x103   :  { %v7556_v37 = vld [vmem:[#allocation7 + $0x64c] sm:$0xf]  ;;  %v6020_v46 = vor.u32 %v7492_v30, %v6017_v36  ;;  %v5928_v30 = vor.u32 %v7473_v21, %v5927_v19  ;;  %v7401_v36 = vld [vmem:[#allocation7 + $0x16c] sm:$0xf0] }
 0x104   :  { %v6273_v40 = vld [vmem:[#allocation7 + $0x668] sm:$0xf0]  ;;  %2800 = vmatpush.bf16.msrb.mxu3 %v6820_v38  ;;  %v2485_v38 = vadd.f32 %v2484_v14, %v507_v33  ;;  %v7529_v43 = vld [vmem:[#allocation7 + $0x56c] sm:$0xf0] }
 0x105   :  { %v7620_v41 = vld [vmem:[#allocation7 + $0x84c] sm:$0xf]  ;;  %v6276_v49 = vor.u32 %v7556_v37, %v6273_v40  ;;  %2759 = vmatpush.bf16.msrb.mxu0 %v6020_v46  ;;  %v5895_v37 = vld [vmem:[#allocation7 + $0x350] sm:$0xf]  ;;  %v6440_v40 = vor.u32 %v7601_v27, %v6439_v25  ;;  %v2525_v46 = vadd.f32 %v2524_v32, %v2511_v28 }
 0x106   :  { %v6529_v42 = vld [vmem:[#allocation7 + $0x868] sm:$0xf0]  ;;  %v7457_v54 = vld [vmem:[#allocation7 + $0x32c] sm:$0xf0] }
 0x107   :  { %v7684_v44 = vld [vmem:[#allocation7 + $0xa4c] sm:$0xf]  ;;  %v6532_v50 = vor.u32 %v7620_v41, %v6529_v42  ;;  %2773 = vmatpush.bf16.msrb.mxu1 %v6276_v49  ;;  %v7465_v41 = vld [vmem:[#allocation7 + $0x36c] sm:$0xf0]  ;;  %v2552_v0 = vpop.f32.mrf.mxu1 }
 0x108   :  { %v6785_v45 = vld [vmem:[#allocation7 + $0xa68] sm:$0xf0]  ;;  %v6151_v42 = vld [vmem:[#allocation7 + $0x550] sm:$0xf]  ;;  %v5896_v33 = vor.u32 %v7465_v41, %v5895_v37 }
 0x109   :  { %v7484_v47 = vld [vmem:[#allocation7 + $0x40c] sm:$0xf]  ;;  %v6788_v55 = vor.u32 %v7684_v44, %v6785_v45  ;;  %2787 = vmatpush.bf16.msrb.mxu2 %v6532_v50  ;;  %v6407_v44 = vld [vmem:[#allocation7 + $0x750] sm:$0xf] }
 0x10a   :  { %v5985_v48 = vld [vmem:[#allocation7 + $0x428] sm:$0xf0]  ;;  %v7593_v45 = vld [vmem:[#allocation7 + $0x76c] sm:$0xf0]  ;;  %v2526_v14 = vpop.f32.mrf.mxu3 }
 0x10b   :  { %v7548_v51 = vld [vmem:[#allocation7 + $0x60c] sm:$0xf]  ;;  %v5988_v63 = vor.u32 %v7484_v47, %v5985_v48  ;;  %2801 = vmatpush.bf16.msrb.mxu3 %v6788_v55  ;;  %v5640_v47 = vor.u32 %v7401_v36, %v5639_v34  ;;  %v6152_v48 = vor.u32 %v7529_v43, %v6151_v42  ;;  %v5607_v49 = vld [vmem:[#allocation7 + $0x110] sm:$0xf] }
 0x10c   :  { %v6241_v52 = vld [vmem:[#allocation7 + $0x628] sm:$0xf0]  ;;  %v7393_v50 = vld [vmem:[#allocation7 + $0x12c] sm:$0xf0] }
 0x10d   :  { %v7612_v53 = vld [vmem:[#allocation7 + $0x80c] sm:$0xf]  ;;  %v6244_v3 = vor.u32 %v7548_v51, %v6241_v52  ;;  %2760 = vmatpush.bf16.msrb.mxu0 %v5988_v63  ;;  %v5863_v51 = vld [vmem:[#allocation7 + $0x310] sm:$0xf]  ;;  %v2499_v52 = vadd.f32 %v2498_v24, %v2485_v38  ;;  %v5608_v63 = vor.u32 %v7393_v50, %v5607_v49 }
 0x10e   :  { %v6497_v56 = vld [vmem:[#allocation7 + $0x828] sm:$0xf0]  ;;  %v6119_v55 = vld [vmem:[#allocation7 + $0x510] sm:$0xf]  ;;  %v5864_v1 = vor.u32 %v7457_v54, %v5863_v51 }
 0x10f   :  { %v7676_v57 = vld [vmem:[#allocation7 + $0xa0c] sm:$0xf]  ;;  %v6500_v4 = vor.u32 %v7612_v53, %v6497_v56  ;;  %2774 = vmatpush.bf16.msrb.mxu1 %v6244_v3  ;;  %v6408_v53 = vor.u32 %v7593_v45, %v6407_v44  ;;  %v7521_v56 = vld [vmem:[#allocation7 + $0x52c] sm:$0xf0]  ;;  %v2554_v37 = vpop.f32.mrf.mxu1 }
 0x110   :  { %v6753_v58 = vld [vmem:[#allocation7 + $0xa28] sm:$0xf0]  ;;  %2761 = vmatmul.bf16.vlgmr.msrb.gmra.mxu0 %v8220_v10  ;;  %v6120_v2 = vor.u32 %v7521_v56, %v6119_v55  ;;  %v5575_v3 = vld [vmem:[#allocation7 + $0xd0] sm:$0xf] }
 0x111   :  { %v6756_v9 = vor.u32 %v7676_v57, %v6753_v58  ;;  %2788 = vmatpush.bf16.msrb.mxu2 %v6500_v4  ;;  %2809 = vmatpush.bf16.msra.mxu0 %v5704_v11  ;;  %v2512_v57 = vpop.f32.mrf.mxu2  ;;  %v2538_v58 = vpop.f32.mrf.mxu0  ;;  %v7385_v4 = vld [vmem:[#allocation7 + $0xec] sm:$0xf0] }
 0x112   :  { %2775 = vmatmul.bf16.vlgmr.msrb.gmra.mxu1 %v8222_v17  ;;  %v2539_v62 = vadd.f32 %v2538_v58, %v2525_v46  ;;  %v5831_v6 = vld [vmem:[#allocation7 + $0x2d0] sm:$0xf]  ;;  %v2513_v7 = vadd.f32 %v2512_v57, %v2499_v52  ;;  %v5576_v18 = vor.u32 %v7385_v4, %v5575_v3 }
 0x113   :  { %2802 = vmatpush.bf16.msrb.mxu3 %v6756_v9  ;;  %2823 = vmatpush.bf16.msra.mxu1 %v5960_v12  ;;  %v7449_v11 = vld [vmem:[#allocation7 + $0x2ec] sm:$0xf0] }
 0x114   :  { %2789 = vmatmul.bf16.vlgmr.msrb.gmra.mxu2 %v8227_v35  ;;  %v2553_v9 = vadd.f32 %v2552_v0, %v2539_v62  ;;  %v6087_v12 = vld [vmem:[#allocation7 + $0x4d0] sm:$0xf]  ;;  %v5832_v19 = vor.u32 %v7449_v11, %v5831_v6  ;;  %v2527_v24 = vadd.f32 %v2526_v14, %v2513_v7  ;;  %v7413_v6 = vld [vmem:[#allocation7 + $0x1d4] sm:$0xf] }
 0x115   :  { %2837 = vmatpush.bf16.msra.mxu2 %v6216_v13  ;;  %2810 = vmatpush.bf16.msra.mxu0 %v5672_v29  ;;  %v7513_v13 = vld [vmem:[#allocation7 + $0x4ec] sm:$0xf0]  ;;  %v5705_v7 = vld [vmem:[#allocation7 + $0x1f0] sm:$0xf0] }
 0x116   :  { %2803 = vmatmul.bf16.vlgmr.msrb.gmra.mxu3 %v8229_v39  ;;  %v6343_v15 = vld [vmem:[#allocation7 + $0x6d0] sm:$0xf]  ;;  %3145 = vst [vmem:[#allocation2 + $0x30] sm:$0xff] %v2553_v9 }
 0x117   :  { %2851 = vmatpush.bf16.msra.mxu3 %v6472_v20  ;;  %2824 = vmatpush.bf16.msra.mxu1 %v5928_v30  ;;  %v7577_v16 = vld [vmem:[#allocation7 + $0x6ec] sm:$0xf0]  ;;  %v6088_v20 = vor.u32 %v7513_v13, %v6087_v12  ;;  %v7477_v12 = vld [vmem:[#allocation7 + $0x3d4] sm:$0xf] }
 0x118   :  { %v5543_v21 = vld [vmem:[#allocation7 + $0x90] sm:$0xf]  ;;  %v6344_v25 = vor.u32 %v7577_v16, %v6343_v15  ;;  %v5961_v13 = vld [vmem:[#allocation7 + $0x3f0] sm:$0xf0]  ;;  %v508_v16 = vperm.slane %v8247_v26, 1 }
 0x119   :  { %2838 = vmatpush.bf16.msra.mxu2 %v6184_v31  ;;  %2811 = vmatpush.bf16.msra.mxu0 %v5640_v47  ;;  %v7377_v22 = vld [vmem:[#allocation7 + $0xac] sm:$0xf0]  ;;  %v2540_v30 = vpop.f32.mrf.mxu0 }
 0x11a   :  { %v5799_v23 = vld [vmem:[#allocation7 + $0x290] sm:$0xf]  ;;  %v2541_v34 = vadd.f32 %v2540_v30, %v2527_v24  ;;  %v5544_v36 = vor.u32 %v7377_v22, %v5543_v21 }
 0x11b   :  { %2852 = vmatpush.bf16.msra.mxu3 %v6440_v40  ;;  %2825 = vmatpush.bf16.msra.mxu1 %v5896_v33  ;;  %v7441_v27 = vld [vmem:[#allocation7 + $0x2ac] sm:$0xf0] }
 0x11c   :  { %v6055_v28 = vld [vmem:[#allocation7 + $0x490] sm:$0xf]  ;;  %v5800_v38 = vor.u32 %v7441_v27, %v5799_v23  ;;  %v2555_v45 = vadd.f32 %v2554_v37, %v2541_v34  ;;  %v5964_v23 = vor.u32 %v7477_v12, %v5961_v13  ;;  %v5673_v27 = vld [vmem:[#allocation7 + $0x1b0] sm:$0xf0] }
 0x11d   :  { %2839 = vmatpush.bf16.msra.mxu2 %v6152_v48  ;;  %2812 = vmatpush.bf16.msra.mxu0 %v5608_v63  ;;  %v7505_v29 = vld [vmem:[#allocation7 + $0x4ac] sm:$0xf0]  ;;  %v5577_v12 = vld [vmem:[#allocation7 + $0xf0] sm:$0xf0] }
 0x11e   :  { %v6311_v31 = vld [vmem:[#allocation7 + $0x690] sm:$0xf]  ;;  %v6056_v40 = vor.u32 %v7505_v29, %v6055_v28  ;;  %3153 = vst [vmem:[#allocation2 + $0x40] sm:$0xff] %v2555_v45  ;;  %v7469_v28 = vld [vmem:[#allocation7 + $0x394] sm:$0xf] }
 0x11f   :  { %2853 = vmatpush.bf16.msra.mxu3 %v6408_v53  ;;  %2826 = vmatpush.bf16.msra.mxu1 %v5864_v1  ;;  %v7569_v32 = vld [vmem:[#allocation7 + $0x6ac] sm:$0xf0]  ;;  %v5929_v29 = vld [vmem:[#allocation7 + $0x3b0] sm:$0xf0] }
 0x120   :  { %v5511_v41 = vld [vmem:[#allocation7 + $0x50] sm:$0xf]  ;;  %v6312_v44 = vor.u32 %v7569_v32, %v6311_v31  ;;  %v5897_v45 = vld [vmem:[#allocation7 + $0x370] sm:$0xf0] }
 0x121   :  { %2840 = vmatpush.bf16.msra.mxu2 %v6120_v2  ;;  %2813 = vmatpush.bf16.msra.mxu0 %v5576_v18  ;;  %v7369_v42 = vld [vmem:[#allocation7 + $0x6c] sm:$0xf0]  ;;  %v2566_v2 = vpop.f32.mrf.mxu2 }
 0x122   :  { %v5767_v43 = vld [vmem:[#allocation7 + $0x250] sm:$0xf]  ;;  %v5512_v50 = vor.u32 %v7369_v42, %v5511_v41  ;;  %v2567_v31 = vadd.f32 %v2566_v2, %v508_v16  ;;  %v7397_v42 = vld [vmem:[#allocation7 + $0x154] sm:$0xf] }
 0x123   :  { %2854 = vmatpush.bf16.msra.mxu3 %v6376_v8  ;;  %2827 = vmatpush.bf16.msra.mxu1 %v5832_v19  ;;  %v7433_v46 = vld [vmem:[#allocation7 + $0x26c] sm:$0xf0]  ;;  %v2580_v8 = vpop.f32.mrf.mxu3  ;;  %v5708_v19 = vor.u32 %v7413_v6, %v5705_v7 }
 0x124   :  { %v6023_v47 = vld [vmem:[#allocation7 + $0x450] sm:$0xf]  ;;  %v5768_v53 = vor.u32 %v7433_v46, %v5767_v43  ;;  %v5641_v43 = vld [vmem:[#allocation7 + $0x170] sm:$0xf0] }
 0x125   :  { %2841 = vmatpush.bf16.msra.mxu2 %v6088_v20  ;;  %v7497_v33 = vld [vmem:[#allocation7 + $0x46c] sm:$0xf0]  ;;  %2814 = vmatpush.bf16.msra.mxu0 %v5544_v36 }
 0x126   :  { %v6279_v48 = vld [vmem:[#allocation7 + $0x650] sm:$0xf]  ;;  %v6024_v54 = vor.u32 %v7497_v33, %v6023_v47 }
 0x127   :  { %2855 = vmatpush.bf16.msra.mxu3 %v6344_v25  ;;  %v7561_v49 = vld [vmem:[#allocation7 + $0x66c] sm:$0xf0]  ;;  %2828 = vmatpush.bf16.msra.mxu1 %v5800_v38  ;;  %v7405_v25 = vld [vmem:[#allocation7 + $0x194] sm:$0xf] }
 0x128   :  { %v5479_v51 = vld [vmem:[#allocation7 + $0x10] sm:$0xf]  ;;  %v6280_v58 = vor.u32 %v7561_v49, %v6279_v48  ;;  %v5676_v34 = vor.u32 %v7405_v25, %v5673_v27  ;;  %v2581_v49 = vadd.f32 %v2580_v8, %v2567_v31  ;;  %v5545_v31 = vld [vmem:[#allocation7 + $0xb0] sm:$0xf0] }
 0x129   :  { %v7361_v52 = vld [vmem:[#allocation7 + $0x2c] sm:$0xf0]  ;;  %2842 = vmatpush.bf16.msra.mxu2 %v6056_v40  ;;  %2815 = vmatpush.bf16.msra.mxu0 %v5512_v50  ;;  %v5932_v40 = vor.u32 %v7469_v28, %v5929_v29  ;;  %v2568_v46 = vpop.f32.mrf.mxu2 }
 0x12a   :  { %v5735_v55 = vld [vmem:[#allocation7 + $0x210] sm:$0xf]  ;;  %v5480_v3 = vor.u32 %v7361_v52, %v5479_v51  ;;  %v5644_v51 = vor.u32 %v7397_v42, %v5641_v43 }
 0x12b   :  { %v7425_v56 = vld [vmem:[#allocation7 + $0x22c] sm:$0xf0]  ;;  %2856 = vmatpush.bf16.msra.mxu3 %v6312_v44  ;;  %2829 = vmatpush.bf16.msra.mxu1 %v5768_v53  ;;  %v7461_v44 = vld [vmem:[#allocation7 + $0x354] sm:$0xf]  ;;  %v2582_v33 = vpop.f32.mrf.mxu3 }
 0x12c   :  { %v5991_v57 = vld [vmem:[#allocation7 + $0x410] sm:$0xf]  ;;  %v5736_v9 = vor.u32 %v7425_v56, %v5735_v55  ;;  %v5900_v55 = vor.u32 %v7461_v44, %v5897_v45  ;;  %v7389_v56 = vld [vmem:[#allocation7 + $0x114] sm:$0xf] }
 0x12d   :  { %v7489_v60 = vld [vmem:[#allocation7 + $0x42c] sm:$0xf0]  ;;  %2843 = vmatpush.bf16.msra.mxu2 %v6024_v54  ;;  %2816 = vmatpush.bf16.msra.mxu0 %v5480_v3  ;;  %v2608_v3 = vpop.f32.mrf.mxu1 }
 0x12e   :  { %v6247_v61 = vld [vmem:[#allocation7 + $0x610] sm:$0xf]  ;;  %v5992_v11 = vor.u32 %v7489_v60, %v5991_v57  ;;  %v5609_v57 = vld [vmem:[#allocation7 + $0x130] sm:$0xf0] }
 0x12f   :  { %v7553_v62 = vld [vmem:[#allocation7 + $0x62c] sm:$0xf0]  ;;  %2857 = vmatpush.bf16.msra.mxu3 %v6280_v58  ;;  %2830 = vmatpush.bf16.msra.mxu1 %v5736_v9  ;;  %v7453_v58 = vld [vmem:[#allocation7 + $0x314] sm:$0xf] }
 0x130   :  { %v6727_v63 = vld [vmem:[#allocation7 + $0x9d0] sm:$0xf]  ;;  %v6248_v14 = vor.u32 %v7553_v62, %v6247_v61  ;;  %2817 = vmatmul.bf16.vlgmr.msra.gmra.mxu0 %v8215_v59  ;;  %v5865_v60 = vld [vmem:[#allocation7 + $0x330] sm:$0xf0] }
 0x131   :  { %v7673_v0 = vld [vmem:[#allocation7 + $0x9ec] sm:$0xf0]  ;;  %2844 = vmatpush.bf16.msra.mxu2 %v5992_v11  ;;  %v5868_v8 = vor.u32 %v7453_v58, %v5865_v60  ;;  %v7381_v11 = vld [vmem:[#allocation7 + $0xd4] sm:$0xf] }
 0x132   :  { %v6983_v1 = vld [vmem:[#allocation7 + $0xbd0] sm:$0xf]  ;;  %v6728_v15 = vor.u32 %v7673_v0, %v6727_v63  ;;  %2831 = vmatmul.bf16.vlgmr.msra.gmra.mxu1 %v8218_v5  ;;  %v2594_v63 = vpop.f32.mrf.mxu0  ;;  %v2569_v0 = vadd.f32 %v2568_v46, %v508_v16 }
 0x133   :  { %v7737_v4 = vld [vmem:[#allocation7 + $0xbec] sm:$0xf0]  ;;  %2858 = vmatpush.bf16.msra.mxu3 %v6248_v14  ;;  %v2595_v2 = vadd.f32 %v2594_v63, %v2581_v49  ;;  %v7445_v14 = vld [vmem:[#allocation7 + $0x2d4] sm:$0xf]  ;;  %v2636_v28 = vpop.f32.mrf.mxu3 }
 0x134   :  { %v6984_v18 = vor.u32 %v7737_v4, %v6983_v1  ;;  %v6695_v20 = vld [vmem:[#allocation7 + $0x990] sm:$0xf]  ;;  %2865 = vmatpush.bf16.msrb.mxu0 %v6728_v15  ;;  %2845 = vmatmul.bf16.vlgmr.msra.gmra.mxu2 %v8220_v10  ;;  %v5612_v1 = vor.u32 %v7389_v56, %v5609_v57  ;;  %v5833_v15 = vld [vmem:[#allocation7 + $0x2f0] sm:$0xf0] }
 0x135   :  { %v7665_v21 = vld [vmem:[#allocation7 + $0x9ac] sm:$0xf0]  ;;  %2893 = vmatpush.bf16.msrb.mxu2 %v5708_v19  ;;  %v2609_v13 = vadd.f32 %v2608_v3, %v2595_v2  ;;  %v2583_v19 = vadd.f32 %v2582_v33, %v2569_v0  ;;  %v5836_v25 = vor.u32 %v7445_v14, %v5833_v15  ;;  %v2610_v44 = vpop.f32.mrf.mxu1  ;;  %v5513_v49 = vld [vmem:[#allocation7 + $0x70] sm:$0xf0] }
 0x136   :  { %v6951_v22 = vld [vmem:[#allocation7 + $0xb90] sm:$0xf]  ;;  %v6696_v30 = vor.u32 %v7665_v21, %v6695_v20  ;;  %2879 = vmatpush.bf16.msrb.mxu1 %v6984_v18  ;;  %2859 = vmatmul.bf16.vlgmr.msra.gmra.mxu3 %v8222_v17  ;;  %v5580_v20 = vor.u32 %v7381_v11, %v5577_v12  ;;  %v2622_v21 = vpop.f32.mrf.mxu2  ;;  %v5481_v2 = vld [vmem:[#allocation7 + $0x30] sm:$0xf0] }
 0x137   :  { %v7729_v24 = vld [vmem:[#allocation7 + $0xbac] sm:$0xf0]  ;;  %2907 = vmatpush.bf16.msrb.mxu3 %v5964_v23  ;;  %v2623_v27 = vadd.f32 %v2622_v21, %v2609_v13  ;;  %v7421_v3 = vld [vmem:[#allocation7 + $0x214] sm:$0xf] }
 0x138   :  { %v6952_v32 = vor.u32 %v7729_v24, %v6951_v22  ;;  %v6663_v36 = vld [vmem:[#allocation7 + $0x950] sm:$0xf]  ;;  %2866 = vmatpush.bf16.msrb.mxu0 %v6696_v30  ;;  %v7373_v30 = vld [vmem:[#allocation7 + $0x94] sm:$0xf] }
 0x139   :  { %v7657_v37 = vld [vmem:[#allocation7 + $0x96c] sm:$0xf0]  ;;  %2894 = vmatpush.bf16.msrb.mxu2 %v5676_v34  ;;  %v5801_v34 = vld [vmem:[#allocation7 + $0x2b0] sm:$0xf0]  ;;  %v5548_v42 = vor.u32 %v7373_v30, %v5545_v31 }
 0x13a   :  { %v6919_v38 = vld [vmem:[#allocation7 + $0xb50] sm:$0xf]  ;;  %v6664_v47 = vor.u32 %v7657_v37, %v6663_v36  ;;  %2880 = vmatpush.bf16.msrb.mxu1 %v6952_v32  ;;  %v7437_v32 = vld [vmem:[#allocation7 + $0x294] sm:$0xf]  ;;  %v2637_v36 = vadd.f32 %v2636_v28, %v2623_v27 }
 0x13b   :  { %v7721_v41 = vld [vmem:[#allocation7 + $0xb6c] sm:$0xf0]  ;;  %2908 = vmatpush.bf16.msrb.mxu3 %v5932_v40  ;;  %v5804_v33 = vor.u32 %v7437_v32, %v5801_v34  ;;  %v6473_v12 = vld [vmem:[#allocation7 + $0x7f0] sm:$0xf0] }
 0x13c   :  { %v6631_v48 = vld [vmem:[#allocation7 + $0x910] sm:$0xf]  ;;  %v6920_v50 = vor.u32 %v7721_v41, %v6919_v38  ;;  %2867 = vmatpush.bf16.msrb.mxu0 %v6664_v47  ;;  %v2596_v38 = vpop.f32.mrf.mxu0  ;;  %3146 = vst [vmem:[#allocation2] sm:$0xff] %v2637_v36  ;;  %v7669_v13 = vld [vmem:[#allocation7 + $0x9d4] sm:$0xf] }
 0x13d   :  { %v7649_v52 = vld [vmem:[#allocation7 + $0x92c] sm:$0xf0]  ;;  %2895 = vmatpush.bf16.msrb.mxu2 %v5644_v51  ;;  %v2597_v43 = vadd.f32 %v2596_v38, %v2583_v19  ;;  %v7429_v51 = vld [vmem:[#allocation7 + $0x254] sm:$0xf] }
 0x13e   :  { %v6887_v53 = vld [vmem:[#allocation7 + $0xb10] sm:$0xf]  ;;  %v6632_v61 = vor.u32 %v7649_v52, %v6631_v48  ;;  %2881 = vmatpush.bf16.msrb.mxu1 %v6920_v50  ;;  %v7365_v48 = vld [vmem:[#allocation7 + $0x54] sm:$0xf]  ;;  %v2624_v58 = vpop.f32.mrf.mxu2 }
 0x13f   :  { %v7713_v54 = vld [vmem:[#allocation7 + $0xb2c] sm:$0xf0]  ;;  %2909 = vmatpush.bf16.msrb.mxu3 %v5900_v55  ;;  %v2611_v50 = vadd.f32 %v2610_v44, %v2597_v43  ;;  %v5769_v52 = vld [vmem:[#allocation7 + $0x270] sm:$0xf0]  ;;  %v5516_v57 = vor.u32 %v7365_v48, %v5513_v49 }
 0x140   :  { %v6888_v62 = vor.u32 %v7713_v54, %v6887_v53  ;;  %v6599_v4 = vld [vmem:[#allocation7 + $0x8d0] sm:$0xf]  ;;  %2868 = vmatpush.bf16.msrb.mxu0 %v6632_v61  ;;  %v5772_v63 = vor.u32 %v7429_v51, %v5769_v52  ;;  %v6729_v14 = vld [vmem:[#allocation7 + $0x9f0] sm:$0xf0] }
 0x141   :  { %v7641_v6 = vld [vmem:[#allocation7 + $0x8ec] sm:$0xf0]  ;;  %2896 = vmatpush.bf16.msrb.mxu2 %v5612_v1  ;;  %v2625_v0 = vadd.f32 %v2624_v58, %v2611_v50  ;;  %v2638_v1 = vpop.f32.mrf.mxu3  ;;  %v7733_v19 = vld [vmem:[#allocation7 + $0xbd4] sm:$0xf] }
 0x142   :  { %v6855_v7 = vld [vmem:[#allocation7 + $0xad0] sm:$0xf]  ;;  %v6600_v18 = vor.u32 %v7641_v6, %v6599_v4  ;;  %2882 = vmatpush.bf16.msrb.mxu1 %v6888_v62  ;;  %v7357_v62 = vld [vmem:[#allocation7 + $0x14] sm:$0xf] }
 0x143   :  { %v7705_v9 = vld [vmem:[#allocation7 + $0xaec] sm:$0xf0]  ;;  %2910 = vmatpush.bf16.msrb.mxu3 %v5868_v8  ;;  %v5737_v4 = vld [vmem:[#allocation7 + $0x230] sm:$0xf0] }
 0x144   :  { %v6856_v16 = vor.u32 %v7705_v9, %v6855_v7  ;;  %v6567_v22 = vld [vmem:[#allocation7 + $0x890] sm:$0xf]  ;;  %2869 = vmatpush.bf16.msrb.mxu0 %v6600_v18  ;;  %v7541_v6 = vld [vmem:[#allocation7 + $0x5d4] sm:$0xf]  ;;  %v2639_v9 = vadd.f32 %v2638_v1, %v2625_v0  ;;  %v5484_v18 = vor.u32 %v7357_v62, %v5481_v2 }
 0x145   :  { %v7633_v23 = vld [vmem:[#allocation7 + $0x8ac] sm:$0xf0]  ;;  %2897 = vmatpush.bf16.msrb.mxu2 %v5580_v20  ;;  %v6217_v7 = vld [vmem:[#allocation7 + $0x5f0] sm:$0xf0]  ;;  %v5740_v20 = vor.u32 %v7421_v3, %v5737_v4 }
 0x146   :  { %v6823_v24 = vld [vmem:[#allocation7 + $0xa90] sm:$0xf]  ;;  %v6568_v37 = vor.u32 %v7633_v23, %v6567_v22  ;;  %2883 = vmatpush.bf16.msrb.mxu1 %v6856_v16  ;;  %v7605_v8 = vld [vmem:[#allocation7 + $0x7d4] sm:$0xf]  ;;  %3154 = vst [vmem:[#allocation2 + $0x20] sm:$0xff] %v2639_v9  ;;  %v6220_v21 = vor.u32 %v7541_v6, %v6217_v7  ;;  %v6732_v23 = vor.u32 %v7669_v13, %v6729_v14 }
 0x147   :  { %v7697_v29 = vld [vmem:[#allocation7 + $0xaac] sm:$0xf0]  ;;  %2911 = vmatpush.bf16.msrb.mxu3 %v5836_v25  ;;  %v6985_v16 = vld [vmem:[#allocation7 + $0xbf0] sm:$0xf0]  ;;  %v6476_v22 = vor.u32 %v7605_v8, %v6473_v12 }
 0x148   :  { %v6535_v40 = vld [vmem:[#allocation7 + $0x850] sm:$0xf]  ;;  %v6824_v41 = vor.u32 %v7697_v29, %v6823_v24  ;;  %2870 = vmatpush.bf16.msrb.mxu0 %v6568_v37  ;;  %v7533_v24 = vld [vmem:[#allocation7 + $0x594] sm:$0xf]  ;;  %v6988_v28 = vor.u32 %v7733_v19, %v6985_v16 }
 0x149   :  { %v7625_v45 = vld [vmem:[#allocation7 + $0x86c] sm:$0xf0]  ;;  %2898 = vmatpush.bf16.msrb.mxu2 %v5548_v42  ;;  %v6185_v25 = vld [vmem:[#allocation7 + $0x5b0] sm:$0xf0] }
 0x14a   :  { %v6791_v46 = vld [vmem:[#allocation7 + $0xa50] sm:$0xf]  ;;  %v6536_v53 = vor.u32 %v7625_v45, %v6535_v40  ;;  %2884 = vmatpush.bf16.msrb.mxu1 %v6824_v41  ;;  %v7597_v27 = vld [vmem:[#allocation7 + $0x794] sm:$0xf]  ;;  %v6188_v36 = vor.u32 %v7533_v24, %v6185_v25  ;;  %v509_v25 = vperm.slane %v8247_v26, 2 }
 0x14b   :  { %v7689_v47 = vld [vmem:[#allocation7 + $0xa6c] sm:$0xf0]  ;;  %2912 = vmatpush.bf16.msrb.mxu3 %v5804_v33  ;;  %v6441_v29 = vld [vmem:[#allocation7 + $0x7b0] sm:$0xf0] }
 0x14c   :  { %v6503_v54 = vld [vmem:[#allocation7 + $0x810] sm:$0xf]  ;;  %v6792_v56 = vor.u32 %v7689_v47, %v6791_v46  ;;  %2871 = vmatpush.bf16.msrb.mxu0 %v6536_v53  ;;  %v7661_v30 = vld [vmem:[#allocation7 + $0x994] sm:$0xf]  ;;  %v6444_v37 = vor.u32 %v7597_v27, %v6441_v29  ;;  %v2650_v29 = vpop.f32.mrf.mxu0 }
 0x14d   :  { %v7617_v55 = vld [vmem:[#allocation7 + $0x82c] sm:$0xf0]  ;;  %2899 = vmatpush.bf16.msrb.mxu2 %v5516_v57  ;;  %v6697_v31 = vld [vmem:[#allocation7 + $0x9b0] sm:$0xf0] }
 0x14e   :  { %v6759_v60 = vld [vmem:[#allocation7 + $0xa10] sm:$0xf]  ;;  %v6504_v11 = vor.u32 %v7617_v55, %v6503_v54  ;;  %2885 = vmatpush.bf16.msrb.mxu1 %v6792_v56  ;;  %v7725_v32 = vld [vmem:[#allocation7 + $0xb94] sm:$0xf]  ;;  %v6700_v38 = vor.u32 %v7661_v30, %v6697_v31 }
 0x14f   :  { %v7681_v61 = vld [vmem:[#allocation7 + $0xa2c] sm:$0xf0]  ;;  %2913 = vmatpush.bf16.msrb.mxu3 %v5772_v63  ;;  %v6953_v34 = vld [vmem:[#allocation7 + $0xbb0] sm:$0xf0] }
 0x150   :  { %v6760_v15 = vor.u32 %v7681_v61, %v6759_v60  ;;  %2872 = vmatpush.bf16.msrb.mxu0 %v6504_v11  ;;  %v7525_v40 = vld [vmem:[#allocation7 + $0x554] sm:$0xf]  ;;  %v6956_v43 = vor.u32 %v7725_v32, %v6953_v34 }
 0x151   :  { %2900 = vmatpush.bf16.msrb.mxu2 %v5484_v18  ;;  %v6153_v41 = vld [vmem:[#allocation7 + $0x570] sm:$0xf0] }
 0x152   :  { %2886 = vmatpush.bf16.msrb.mxu1 %v6760_v15  ;;  %v7589_v42 = vld [vmem:[#allocation7 + $0x754] sm:$0xf]  ;;  %v6156_v48 = vor.u32 %v7525_v40, %v6153_v41  ;;  %v2664_v40 = vpop.f32.mrf.mxu1 }
 0x153   :  { %2914 = vmatpush.bf16.msrb.mxu3 %v5740_v20  ;;  %2873 = vmatmul.bf16.vlgmr.msrb.gmra.mxu0 %v8227_v35  ;;  %v6409_v44 = vld [vmem:[#allocation7 + $0x770] sm:$0xf0] }
 0x154   :  { %2921 = vmatpush.bf16.msra.mxu0 %v6220_v21  ;;  %v7653_v45 = vld [vmem:[#allocation7 + $0x954] sm:$0xf]  ;;  %2901 = vmatmul.bf16.vlgmr.msrb.gmra.mxu2 %v8215_v59  ;;  %v6412_v49 = vor.u32 %v7589_v42, %v6409_v44 }
 0x155   :  { %2949 = vmatpush.bf16.msra.mxu2 %v6732_v23  ;;  %v6665_v46 = vld [vmem:[#allocation7 + $0x970] sm:$0xf0]  ;;  %2887 = vmatmul.bf16.vlgmr.msrb.gmra.mxu1 %v8229_v39 }
 0x156   :  { %2935 = vmatpush.bf16.msra.mxu1 %v6476_v22  ;;  %v7717_v47 = vld [vmem:[#allocation7 + $0xb54] sm:$0xf]  ;;  %2915 = vmatmul.bf16.vlgmr.msrb.gmra.mxu3 %v8218_v5  ;;  %v6668_v50 = vor.u32 %v7653_v45, %v6665_v46 }
 0x157   :  { %2963 = vmatpush.bf16.msra.mxu3 %v6988_v28  ;;  %v6921_v33 = vld [vmem:[#allocation7 + $0xb70] sm:$0xf0] }
 0x158   :  { %2922 = vmatpush.bf16.msra.mxu0 %v6188_v36  ;;  %v7517_v51 = vld [vmem:[#allocation7 + $0x514] sm:$0xf]  ;;  %v6924_v54 = vor.u32 %v7717_v47, %v6921_v33 }
 0x159   :  { %2950 = vmatpush.bf16.msra.mxu2 %v6700_v38  ;;  %v6121_v52 = vld [vmem:[#allocation7 + $0x530] sm:$0xf0] }
 0x15a   :  { %2936 = vmatpush.bf16.msra.mxu1 %v6444_v37  ;;  %v7581_v53 = vld [vmem:[#allocation7 + $0x714] sm:$0xf]  ;;  %v6124_v61 = vor.u32 %v7517_v51, %v6121_v52 }
 0x15b   :  { %2964 = vmatpush.bf16.msra.mxu3 %v6956_v43  ;;  %v6377_v55 = vld [vmem:[#allocation7 + $0x730] sm:$0xf0] }
 0x15c   :  { %v7645_v56 = vld [vmem:[#allocation7 + $0x914] sm:$0xf]  ;;  %2923 = vmatpush.bf16.msra.mxu0 %v6156_v48  ;;  %v6380_v62 = vor.u32 %v7581_v53, %v6377_v55  ;;  %v5711_v55 = vld [vmem:[#allocation7 + $0x1d8] sm:$0xf] }
 0x15d   :  { %v6633_v57 = vld [vmem:[#allocation7 + $0x930] sm:$0xf0]  ;;  %2951 = vmatpush.bf16.msra.mxu2 %v6668_v50  ;;  %v2651_v50 = vadd.f32 %v2650_v29, %v509_v25  ;;  %v2692_v29 = vpop.f32.mrf.mxu3 }
 0x15e   :  { %v7709_v58 = vld [vmem:[#allocation7 + $0xb14] sm:$0xf]  ;;  %2937 = vmatpush.bf16.msra.mxu1 %v6412_v49  ;;  %v6636_v63 = vor.u32 %v7645_v56, %v6633_v57  ;;  %v7418_v56 = vld [vmem:[#allocation7 + $0x1f4] sm:$0xf0] }
 0x15f   :  { %v6889_v60 = vld [vmem:[#allocation7 + $0xb30] sm:$0xf0]  ;;  %2965 = vmatpush.bf16.msra.mxu3 %v6924_v54  ;;  %v5967_v57 = vld [vmem:[#allocation7 + $0x3d8] sm:$0xf] }
 0x160   :  { %v7509_v0 = vld [vmem:[#allocation7 + $0x4d4] sm:$0xf]  ;;  %v6892_v3 = vor.u32 %v7709_v58, %v6889_v60  ;;  %2924 = vmatpush.bf16.msra.mxu0 %v6124_v61  ;;  %v7482_v60 = vld [vmem:[#allocation7 + $0x3f4] sm:$0xf0] }
 0x161   :  { %v6089_v1 = vld [vmem:[#allocation7 + $0x4f0] sm:$0xf0]  ;;  %2952 = vmatpush.bf16.msra.mxu2 %v6636_v63  ;;  %v6223_v61 = vld [vmem:[#allocation7 + $0x5d8] sm:$0xf] }
 0x162   :  { %v7573_v2 = vld [vmem:[#allocation7 + $0x6d4] sm:$0xf]  ;;  %v6092_v11 = vor.u32 %v7509_v0, %v6089_v1  ;;  %2938 = vmatpush.bf16.msra.mxu1 %v6380_v62  ;;  %v7546_v62 = vld [vmem:[#allocation7 + $0x5f4] sm:$0xf0] }
 0x163   :  { %v6345_v4 = vld [vmem:[#allocation7 + $0x6f0] sm:$0xf0]  ;;  %2966 = vmatpush.bf16.msra.mxu3 %v6892_v3  ;;  %v6479_v1 = vld [vmem:[#allocation7 + $0x7d8] sm:$0xf]  ;;  %v2665_v3 = vadd.f32 %v2664_v40, %v2651_v50 }
 0x164   :  { %v7637_v6 = vld [vmem:[#allocation7 + $0x8d4] sm:$0xf]  ;;  %v6348_v12 = vor.u32 %v7573_v2, %v6345_v4  ;;  %2925 = vmatpush.bf16.msra.mxu0 %v6092_v11  ;;  %v7610_v2 = vld [vmem:[#allocation7 + $0x7f4] sm:$0xf0]  ;;  %v2678_v11 = vpop.f32.mrf.mxu2 }
 0x165   :  { %v6601_v7 = vld [vmem:[#allocation7 + $0x8f0] sm:$0xf0]  ;;  %v7530_v40 = vld [vmem:[#allocation7 + $0x574] sm:$0xf0] }
 0x166   :  { %v7701_v8 = vld [vmem:[#allocation7 + $0xad4] sm:$0xf]  ;;  %v6604_v13 = vor.u32 %v7637_v6, %v6601_v7  ;;  %2939 = vmatpush.bf16.msra.mxu1 %v6348_v12  ;;  %v5712_v6 = vor.u32 %v7418_v56, %v5711_v55  ;;  %v5968_v7 = vor.u32 %v7482_v60, %v5967_v57  ;;  %v5679_v12 = vld [vmem:[#allocation7 + $0x198] sm:$0xf] }
 0x167   :  { %v6857_v9 = vld [vmem:[#allocation7 + $0xaf0] sm:$0xf0]  ;;  %v6127_v50 = vld [vmem:[#allocation7 + $0x518] sm:$0xf] }
 0x168   :  { %v7501_v14 = vld [vmem:[#allocation7 + $0x494] sm:$0xf]  ;;  %v6860_v19 = vor.u32 %v7701_v8, %v6857_v9  ;;  %2953 = vmatpush.bf16.msra.mxu2 %v6604_v13  ;;  %v6224_v8 = vor.u32 %v7546_v62, %v6223_v61  ;;  %v2652_v9 = vpop.f32.mrf.mxu0  ;;  %v7410_v13 = vld [vmem:[#allocation7 + $0x1b4] sm:$0xf0] }
 0x169   :  { %v6057_v15 = vld [vmem:[#allocation7 + $0x4b0] sm:$0xf0]  ;;  %v7586_v55 = vld [vmem:[#allocation7 + $0x734] sm:$0xf0] }
 0x16a   :  { %v7565_v18 = vld [vmem:[#allocation7 + $0x694] sm:$0xf]  ;;  %v6060_v24 = vor.u32 %v7501_v14, %v6057_v15  ;;  %2967 = vmatpush.bf16.msra.mxu3 %v6860_v19  ;;  %v5935_v14 = vld [vmem:[#allocation7 + $0x398] sm:$0xf]  ;;  %v6480_v15 = vor.u32 %v7610_v2, %v6479_v1 }
 0x16b   :  { %v6313_v16 = vld [vmem:[#allocation7 + $0x6b0] sm:$0xf0]  ;;  %v6191_v19 = vld [vmem:[#allocation7 + $0x598] sm:$0xf] }
 0x16c   :  { %v7629_v20 = vld [vmem:[#allocation7 + $0x894] sm:$0xf]  ;;  %v6316_v27 = vor.u32 %v7565_v18, %v6313_v16  ;;  %2926 = vmatpush.bf16.msra.mxu0 %v6060_v24  ;;  %v7474_v18 = vld [vmem:[#allocation7 + $0x3b4] sm:$0xf0]  ;;  %v5680_v24 = vor.u32 %v7410_v13, %v5679_v12 }
 0x16d   :  { %v6569_v21 = vld [vmem:[#allocation7 + $0x8b0] sm:$0xf0]  ;;  %v7538_v16 = vld [vmem:[#allocation7 + $0x5b4] sm:$0xf0] }
 0x16e   :  { %v7693_v22 = vld [vmem:[#allocation7 + $0xa94] sm:$0xf]  ;;  %v6572_v28 = vor.u32 %v7629_v20, %v6569_v21  ;;  %2940 = vmatpush.bf16.msra.mxu1 %v6316_v27  ;;  %v2666_v20 = vpop.f32.mrf.mxu1  ;;  %v6447_v21 = vld [vmem:[#allocation7 + $0x798] sm:$0xf]  ;;  %v5936_v27 = vor.u32 %v7474_v18, %v5935_v14 }
 0x16f   :  { %v6825_v23 = vld [vmem:[#allocation7 + $0xab0] sm:$0xf0]  ;;  %v5583_v62 = vld [vmem:[#allocation7 + $0xd8] sm:$0xf] }
 0x170   :  { %v7493_v30 = vld [vmem:[#allocation7 + $0x454] sm:$0xf]  ;;  %v6828_v34 = vor.u32 %v7693_v22, %v6825_v23  ;;  %2954 = vmatpush.bf16.msra.mxu2 %v6572_v28  ;;  %v7602_v22 = vld [vmem:[#allocation7 + $0x7b4] sm:$0xf0]  ;;  %v2679_v23 = vadd.f32 %v2678_v11, %v2665_v3  ;;  %v6192_v28 = vor.u32 %v7538_v16, %v6191_v19 }
 0x171   :  { %v6025_v31 = vld [vmem:[#allocation7 + $0x470] sm:$0xf0]  ;;  %v7578_v11 = vld [vmem:[#allocation7 + $0x6f4] sm:$0xf0] }
 0x172   :  { %v7557_v32 = vld [vmem:[#allocation7 + $0x654] sm:$0xf]  ;;  %v6028_v43 = vor.u32 %v7493_v30, %v6025_v31  ;;  %2968 = vmatpush.bf16.msra.mxu3 %v6828_v34  ;;  %v5647_v30 = vld [vmem:[#allocation7 + $0x158] sm:$0xf]  ;;  %v2653_v34 = vadd.f32 %v2652_v9, %v509_v25 }
 0x173   :  { %v6281_v36 = vld [vmem:[#allocation7 + $0x670] sm:$0xf0]  ;;  %v7402_v31 = vld [vmem:[#allocation7 + $0x174] sm:$0xf0] }
 0x174   :  { %v7621_v37 = vld [vmem:[#allocation7 + $0x854] sm:$0xf]  ;;  %v6284_v46 = vor.u32 %v7557_v32, %v6281_v36  ;;  %2927 = vmatpush.bf16.msra.mxu0 %v6028_v43  ;;  %v5903_v32 = vld [vmem:[#allocation7 + $0x358] sm:$0xf]  ;;  %v6448_v36 = vor.u32 %v7602_v22, %v6447_v21  ;;  %v2693_v43 = vadd.f32 %v2692_v29, %v2679_v23 }
 0x175   :  { %v6537_v38 = vld [vmem:[#allocation7 + $0x870] sm:$0xf0]  ;;  %v5615_v25 = vld [vmem:[#allocation7 + $0x118] sm:$0xf] }
 0x176   :  { %v7685_v41 = vld [vmem:[#allocation7 + $0xa54] sm:$0xf]  ;;  %v6540_v47 = vor.u32 %v7621_v37, %v6537_v38  ;;  %2941 = vmatpush.bf16.msra.mxu1 %v6284_v46  ;;  %v7466_v37 = vld [vmem:[#allocation7 + $0x374] sm:$0xf0] }
 0x177   :  { %v6793_v42 = vld [vmem:[#allocation7 + $0xa70] sm:$0xf0]  ;;  %v6159_v38 = vld [vmem:[#allocation7 + $0x558] sm:$0xf] }
 0x178   :  { %v7485_v44 = vld [vmem:[#allocation7 + $0x414] sm:$0xf]  ;;  %v6796_v51 = vor.u32 %v7685_v41, %v6793_v42  ;;  %2955 = vmatpush.bf16.msra.mxu2 %v6540_v47  ;;  %v6415_v41 = vld [vmem:[#allocation7 + $0x758] sm:$0xf]  ;;  %v6160_v26 = vor.u32 %v7530_v40, %v6159_v38 }
 0x179   :  { %v5993_v45 = vld [vmem:[#allocation7 + $0x430] sm:$0xf0]  ;;  %v7594_v42 = vld [vmem:[#allocation7 + $0x774] sm:$0xf0] }
 0x17a   :  { %v7549_v33 = vld [vmem:[#allocation7 + $0x614] sm:$0xf]  ;;  %v5996_v58 = vor.u32 %v7485_v44, %v5993_v45  ;;  %2969 = vmatpush.bf16.msra.mxu3 %v6796_v51  ;;  %v5648_v44 = vor.u32 %v7402_v31, %v5647_v30  ;;  %v5904_v45 = vor.u32 %v7466_v37, %v5903_v32  ;;  %v7394_v46 = vld [vmem:[#allocation7 + $0x134] sm:$0xf0] }
 0x17b   :  { %v6249_v48 = vld [vmem:[#allocation7 + $0x630] sm:$0xf0]  ;;  %v5871_v47 = vld [vmem:[#allocation7 + $0x318] sm:$0xf]  ;;  %v5616_v57 = vor.u32 %v7394_v46, %v5615_v25 }
 0x17c   :  { %v7613_v49 = vld [vmem:[#allocation7 + $0x814] sm:$0xf]  ;;  %v6252_v63 = vor.u32 %v7549_v33, %v6249_v48  ;;  %2928 = vmatpush.bf16.msra.mxu0 %v5996_v58  ;;  %v2667_v33 = vadd.f32 %v2666_v20, %v2653_v34  ;;  %v6416_v48 = vor.u32 %v7594_v42, %v6415_v41  ;;  %v7522_v51 = vld [vmem:[#allocation7 + $0x534] sm:$0xf0]  ;;  %v2720_v58 = vpop.f32.mrf.mxu1 }
 0x17d   :  { %v6505_v52 = vld [vmem:[#allocation7 + $0x830] sm:$0xf0]  ;;  %v6128_v61 = vor.u32 %v7522_v51, %v6127_v50  ;;  %v6351_v9 = vld [vmem:[#allocation7 + $0x6d8] sm:$0xf] }
 0x17e   :  { %v7677_v53 = vld [vmem:[#allocation7 + $0xa14] sm:$0xf]  ;;  %v6508_v0 = vor.u32 %v7613_v49, %v6505_v52  ;;  %2942 = vmatpush.bf16.msra.mxu1 %v6252_v63  ;;  %v7458_v49 = vld [vmem:[#allocation7 + $0x334] sm:$0xf0]  ;;  %v2680_v52 = vpop.f32.mrf.mxu2  ;;  %v6352_v20 = vor.u32 %v7578_v11, %v6351_v9  ;;  %v8276_v9 = vld [vmem:[#allocation10] sm:$0xff] }
 0x17f   :  { %v6761_v54 = vld [vmem:[#allocation7 + $0xa30] sm:$0xf0]  ;;  %2929 = vmatmul.bf16.vlgmr.msra.gmra.mxu0 %v8220_v10  ;;  %v5872_v60 = vor.u32 %v7458_v49, %v5871_v47  ;;  %v7386_v63 = vld [vmem:[#allocation7 + $0xf4] sm:$0xf0]  ;;  %v2681_v1 = vadd.f32 %v2680_v52, %v2667_v33  ;;  %v510_v11 = vperm.slane %v8276_v9, 3 }
 0x180   :  { %v6764_v4 = vor.u32 %v7677_v53, %v6761_v54  ;;  %2956 = vmatpush.bf16.msra.mxu2 %v6508_v0  ;;  %2977 = vmatpush.bf16.msrb.mxu0 %v5712_v6  ;;  %v2706_v53 = vpop.f32.mrf.mxu0  ;;  %v6383_v54 = vld [vmem:[#allocation7 + $0x718] sm:$0xf]  ;;  %v5584_v12 = vor.u32 %v7386_v63, %v5583_v62  ;;  %v7414_v63 = vld [vmem:[#allocation7 + $0x1dc] sm:$0xf] }
 0x181   :  { %2943 = vmatmul.bf16.vlgmr.msra.gmra.mxu1 %v8222_v17  ;;  %v2707_v56 = vadd.f32 %v2706_v53, %v2693_v43  ;;  %v5839_v0 = vld [vmem:[#allocation7 + $0x2d8] sm:$0xf]  ;;  %v6384_v2 = vor.u32 %v7586_v55, %v6383_v54 }
 0x182   :  { %2970 = vmatpush.bf16.msra.mxu3 %v6764_v4  ;;  %2991 = vmatpush.bf16.msrb.mxu1 %v5968_v7  ;;  %v7450_v4 = vld [vmem:[#allocation7 + $0x2f4] sm:$0xf0] }
 0x183   :  { %2957 = vmatmul.bf16.vlgmr.msra.gmra.mxu2 %v8227_v35  ;;  %v2721_v3 = vadd.f32 %v2720_v58, %v2707_v56  ;;  %v6095_v6 = vld [vmem:[#allocation7 + $0x4d8] sm:$0xf]  ;;  %v5840_v13 = vor.u32 %v7450_v4, %v5839_v0  ;;  %v5713_v0 = vld [vmem:[#allocation7 + $0x1f8] sm:$0xf0] }
 0x184   :  { %3005 = vmatpush.bf16.msrb.mxu2 %v6224_v8  ;;  %2978 = vmatpush.bf16.msrb.mxu0 %v5680_v24  ;;  %v7514_v7 = vld [vmem:[#allocation7 + $0x4f4] sm:$0xf0]  ;;  %v2694_v8 = vpop.f32.mrf.mxu3  ;;  %v2722_v31 = vpop.f32.mrf.mxu1  ;;  %v7478_v4 = vld [vmem:[#allocation7 + $0x3dc] sm:$0xf] }
 0x185   :  { %2971 = vmatmul.bf16.vlgmr.msra.gmra.mxu3 %v8229_v39  ;;  %3147 = vst [vmem:[#allocation2 + $0x58] sm:$0xff] %v2721_v3  ;;  %v6096_v14 = vor.u32 %v7514_v7, %v6095_v6  ;;  %v7378_v18 = vld [vmem:[#allocation7 + $0xb4] sm:$0xf0]  ;;  %v2695_v16 = vadd.f32 %v2694_v8, %v2681_v1  ;;  %v5969_v6 = vld [vmem:[#allocation7 + $0x3f8] sm:$0xf0] }
 0x186   :  { %3019 = vmatpush.bf16.msrb.mxu3 %v6480_v15  ;;  %2992 = vmatpush.bf16.msrb.mxu1 %v5936_v27  ;;  %v5551_v15 = vld [vmem:[#allocation7 + $0x98] sm:$0xf] }
 0x187   :  { %v5807_v19 = vld [vmem:[#allocation7 + $0x298] sm:$0xf]  ;;  %v5552_v30 = vor.u32 %v7378_v18, %v5551_v15 }
 0x188   :  { %3006 = vmatpush.bf16.msrb.mxu2 %v6192_v28  ;;  %2979 = vmatpush.bf16.msrb.mxu0 %v5648_v44  ;;  %v7442_v21 = vld [vmem:[#allocation7 + $0x2b4] sm:$0xf0]  ;;  %v2708_v24 = vpop.f32.mrf.mxu0 }
 0x189   :  { %v6063_v22 = vld [vmem:[#allocation7 + $0x498] sm:$0xf]  ;;  %v2709_v29 = vadd.f32 %v2708_v24, %v2695_v16  ;;  %v5808_v32 = vor.u32 %v7442_v21, %v5807_v19  ;;  %v5972_v19 = vor.u32 %v7478_v4, %v5969_v6  ;;  %v5681_v21 = vld [vmem:[#allocation7 + $0x1b8] sm:$0xf0] }
 0x18a   :  { %3020 = vmatpush.bf16.msrb.mxu3 %v6448_v36  ;;  %2993 = vmatpush.bf16.msrb.mxu1 %v5904_v45  ;;  %v7506_v23 = vld [vmem:[#allocation7 + $0x4b4] sm:$0xf0]  ;;  %v5585_v4 = vld [vmem:[#allocation7 + $0xf8] sm:$0xf0] }
 0x18b   :  { %v6319_v27 = vld [vmem:[#allocation7 + $0x698] sm:$0xf]  ;;  %v6064_v34 = vor.u32 %v7506_v23, %v6063_v22  ;;  %v2723_v41 = vadd.f32 %v2722_v31, %v2709_v29  ;;  %v7470_v22 = vld [vmem:[#allocation7 + $0x39c] sm:$0xf] }
 0x18c   :  { %3007 = vmatpush.bf16.msrb.mxu2 %v6160_v26  ;;  %2980 = vmatpush.bf16.msrb.mxu0 %v5616_v57  ;;  %v7570_v28 = vld [vmem:[#allocation7 + $0x6b4] sm:$0xf0]  ;;  %v2748_v1 = vpop.f32.mrf.mxu3  ;;  %v5937_v23 = vld [vmem:[#allocation7 + $0x3b8] sm:$0xf0] }
 0x18d   :  { %v5519_v36 = vld [vmem:[#allocation7 + $0x58] sm:$0xf]  ;;  %v6320_v40 = vor.u32 %v7570_v28, %v6319_v27  ;;  %3155 = vst [vmem:[#allocation2 + $0x10] sm:$0xff] %v2723_v41  ;;  %v5905_v41 = vld [vmem:[#allocation7 + $0x378] sm:$0xf0] }
 0x18e   :  { %3021 = vmatpush.bf16.msrb.mxu3 %v6416_v48  ;;  %2994 = vmatpush.bf16.msrb.mxu1 %v5872_v60  ;;  %v7370_v37 = vld [vmem:[#allocation7 + $0x74] sm:$0xf0]  ;;  %v2734_v60 = vpop.f32.mrf.mxu2 }
 0x18f   :  { %v5775_v38 = vld [vmem:[#allocation7 + $0x258] sm:$0xf]  ;;  %v5520_v25 = vor.u32 %v7370_v37, %v5519_v36  ;;  %v2735_v27 = vadd.f32 %v2734_v60, %v510_v11  ;;  %v7398_v37 = vld [vmem:[#allocation7 + $0x15c] sm:$0xf] }
 0x190   :  { %3008 = vmatpush.bf16.msrb.mxu2 %v6128_v61  ;;  %2981 = vmatpush.bf16.msrb.mxu0 %v5584_v12  ;;  %v7434_v42 = vld [vmem:[#allocation7 + $0x274] sm:$0xf0] }
 0x191   :  { %v6031_v43 = vld [vmem:[#allocation7 + $0x458] sm:$0xf]  ;;  %v5776_v33 = vor.u32 %v7434_v42, %v5775_v38  ;;  %v5649_v38 = vld [vmem:[#allocation7 + $0x178] sm:$0xf0] }
 0x192   :  { %3022 = vmatpush.bf16.msrb.mxu3 %v6384_v2  ;;  %2995 = vmatpush.bf16.msrb.mxu1 %v5840_v13  ;;  %v7498_v44 = vld [vmem:[#allocation7 + $0x474] sm:$0xf0]  ;;  %v5716_v13 = vor.u32 %v7414_v63, %v5713_v0 }
 0x193   :  { %v6287_v45 = vld [vmem:[#allocation7 + $0x658] sm:$0xf]  ;;  %v6032_v48 = vor.u32 %v7498_v44, %v6031_v43 }
 0x194   :  { %3009 = vmatpush.bf16.msrb.mxu2 %v6096_v14  ;;  %v7562_v26 = vld [vmem:[#allocation7 + $0x674] sm:$0xf0]  ;;  %2982 = vmatpush.bf16.msrb.mxu0 %v5552_v30  ;;  %v2750_v44 = vpop.f32.mrf.mxu3 }
 0x195   :  { %v5487_v46 = vld [vmem:[#allocation7 + $0x18] sm:$0xf]  ;;  %v6288_v52 = vor.u32 %v7562_v26, %v6287_v45  ;;  %v2749_v26 = vadd.f32 %v2748_v1, %v2735_v27  ;;  %v5553_v27 = vld [vmem:[#allocation7 + $0xb8] sm:$0xf0] }
 0x196   :  { %3023 = vmatpush.bf16.msrb.mxu3 %v6352_v20  ;;  %v7362_v47 = vld [vmem:[#allocation7 + $0x34] sm:$0xf0]  ;;  %2996 = vmatpush.bf16.msrb.mxu1 %v5808_v32  ;;  %v7406_v20 = vld [vmem:[#allocation7 + $0x19c] sm:$0xf]  ;;  %v2736_v42 = vpop.f32.mrf.mxu2 }
 0x197   :  { %v5743_v49 = vld [vmem:[#allocation7 + $0x218] sm:$0xf]  ;;  %v5488_v61 = vor.u32 %v7362_v47, %v5487_v46  ;;  %v5684_v29 = vor.u32 %v7406_v20, %v5681_v21  ;;  %v5652_v46 = vor.u32 %v7398_v37, %v5649_v38 }
 0x198   :  { %3010 = vmatpush.bf16.msrb.mxu2 %v6064_v34  ;;  %v7426_v50 = vld [vmem:[#allocation7 + $0x234] sm:$0xf0]  ;;  %2983 = vmatpush.bf16.msrb.mxu0 %v5520_v25  ;;  %v5940_v34 = vor.u32 %v7470_v22, %v5937_v23 }
 0x199   :  { %v5999_v51 = vld [vmem:[#allocation7 + $0x418] sm:$0xf]  ;;  %v5744_v2 = vor.u32 %v7426_v50, %v5743_v49  ;;  %v7390_v50 = vld [vmem:[#allocation7 + $0x11c] sm:$0xf] }
 0x19a   :  { %3024 = vmatpush.bf16.msrb.mxu3 %v6320_v40  ;;  %v7490_v53 = vld [vmem:[#allocation7 + $0x434] sm:$0xf0]  ;;  %2997 = vmatpush.bf16.msrb.mxu1 %v5776_v33  ;;  %v7462_v40 = vld [vmem:[#allocation7 + $0x35c] sm:$0xf] }
 0x19b   :  { %v6255_v54 = vld [vmem:[#allocation7 + $0x618] sm:$0xf]  ;;  %v6000_v3 = vor.u32 %v7490_v53, %v5999_v51  ;;  %v5908_v49 = vor.u32 %v7462_v40, %v5905_v41  ;;  %v5617_v51 = vld [vmem:[#allocation7 + $0x138] sm:$0xf0] }
 0x19c   :  { %v7554_v55 = vld [vmem:[#allocation7 + $0x634] sm:$0xf0]  ;;  %3011 = vmatpush.bf16.msrb.mxu2 %v6032_v48  ;;  %2984 = vmatpush.bf16.msrb.mxu0 %v5488_v61  ;;  %v5873_v53 = vld [vmem:[#allocation7 + $0x338] sm:$0xf0]  ;;  %v2776_v61 = vpop.f32.mrf.mxu1  ;;  %v2804_v22 = vpop.f32.mrf.mxu3 }
 0x19d   :  { %v6735_v56 = vld [vmem:[#allocation7 + $0x9d8] sm:$0xf]  ;;  %v6256_v7 = vor.u32 %v7554_v55, %v6255_v54 }
 0x19e   :  { %v7674_v57 = vld [vmem:[#allocation7 + $0x9f4] sm:$0xf0]  ;;  %3025 = vmatpush.bf16.msrb.mxu3 %v6288_v52  ;;  %2998 = vmatpush.bf16.msrb.mxu1 %v5744_v2  ;;  %v7454_v52 = vld [vmem:[#allocation7 + $0x31c] sm:$0xf] }
 0x19f   :  { %v6991_v58 = vld [vmem:[#allocation7 + $0xbd8] sm:$0xf]  ;;  %v6736_v8 = vor.u32 %v7674_v57, %v6735_v56  ;;  %2985 = vmatmul.bf16.vlgmr.msrb.gmra.mxu0 %v8215_v59  ;;  %v2762_v56 = vpop.f32.mrf.mxu0  ;;  %v2737_v57 = vadd.f32 %v2736_v42, %v510_v11  ;;  %v5876_v1 = vor.u32 %v7454_v52, %v5873_v53 }
 0x1a0   :  { %v7738_v62 = vld [vmem:[#allocation7 + $0xbf4] sm:$0xf0]  ;;  %3012 = vmatpush.bf16.msrb.mxu2 %v6000_v3  ;;  %v2763_v60 = vadd.f32 %v2762_v56, %v2749_v26  ;;  %v7382_v3 = vld [vmem:[#allocation7 + $0xdc] sm:$0xf] }
 0x1a1   :  { %v6992_v12 = vor.u32 %v7738_v62, %v6991_v58  ;;  %v6703_v14 = vld [vmem:[#allocation7 + $0x998] sm:$0xf]  ;;  %3033 = vmatpush.bf16.msra.mxu0 %v6736_v8  ;;  %2999 = vmatmul.bf16.vlgmr.msrb.gmra.mxu1 %v8218_v5  ;;  %v5620_v58 = vor.u32 %v7390_v50, %v5617_v51  ;;  %v5841_v8 = vld [vmem:[#allocation7 + $0x2f8] sm:$0xf0] }
 0x1a2   :  { %v7666_v15 = vld [vmem:[#allocation7 + $0x9b4] sm:$0xf0]  ;;  %3026 = vmatpush.bf16.msrb.mxu3 %v6256_v7  ;;  %v2777_v6 = vadd.f32 %v2776_v61, %v2763_v60  ;;  %v7446_v7 = vld [vmem:[#allocation7 + $0x2dc] sm:$0xf] }
 0x1a3   :  { %v6959_v18 = vld [vmem:[#allocation7 + $0xb98] sm:$0xf]  ;;  %v6704_v24 = vor.u32 %v7666_v15, %v6703_v14  ;;  %3047 = vmatpush.bf16.msra.mxu1 %v6992_v12  ;;  %3013 = vmatmul.bf16.vlgmr.msrb.gmra.mxu2 %v8220_v10  ;;  %v5588_v14 = vor.u32 %v7382_v3, %v5585_v4  ;;  %v2790_v15 = vpop.f32.mrf.mxu2  ;;  %v5844_v20 = vor.u32 %v7446_v7, %v5841_v8  ;;  %v5521_v26 = vld [vmem:[#allocation7 + $0x78] sm:$0xf0] }
 0x1a4   :  { %v7730_v16 = vld [vmem:[#allocation7 + $0xbb4] sm:$0xf0]  ;;  %3061 = vmatpush.bf16.msra.mxu2 %v5716_v13  ;;  %v2751_v13 = vadd.f32 %v2750_v44, %v2737_v57  ;;  %v2791_v21 = vadd.f32 %v2790_v15, %v2777_v6  ;;  %v2778_v40 = vpop.f32.mrf.mxu1  ;;  %v5489_v60 = vld [vmem:[#allocation7 + $0x38] sm:$0xf0] }
 0x1a5   :  { %v6960_v28 = vor.u32 %v7730_v16, %v6959_v18  ;;  %v6671_v30 = vld [vmem:[#allocation7 + $0x958] sm:$0xf]  ;;  %3034 = vmatpush.bf16.msra.mxu0 %v6704_v24  ;;  %3027 = vmatmul.bf16.vlgmr.msrb.gmra.mxu3 %v8222_v17  ;;  %v7374_v24 = vld [vmem:[#allocation7 + $0x9c] sm:$0xf] }
 0x1a6   :  { %v7658_v31 = vld [vmem:[#allocation7 + $0x974] sm:$0xf0]  ;;  %3075 = vmatpush.bf16.msra.mxu3 %v5972_v19  ;;  %v5556_v37 = vor.u32 %v7374_v24, %v5553_v27  ;;  %v7422_v61 = vld [vmem:[#allocation7 + $0x21c] sm:$0xf] }
 0x1a7   :  { %v6927_v32 = vld [vmem:[#allocation7 + $0xb58] sm:$0xf]  ;;  %v6672_v43 = vor.u32 %v7658_v31, %v6671_v30  ;;  %3048 = vmatpush.bf16.msra.mxu1 %v6960_v28  ;;  %v7438_v28 = vld [vmem:[#allocation7 + $0x29c] sm:$0xf]  ;;  %v2805_v30 = vadd.f32 %v2804_v22, %v2791_v21 }
 0x1a8   :  { %v7722_v36 = vld [vmem:[#allocation7 + $0xb74] sm:$0xf0]  ;;  %3062 = vmatpush.bf16.msra.mxu2 %v5684_v29  ;;  %v5809_v29 = vld [vmem:[#allocation7 + $0x2b8] sm:$0xf0] }
 0x1a9   :  { %v6639_v45 = vld [vmem:[#allocation7 + $0x918] sm:$0xf]  ;;  %v6928_v25 = vor.u32 %v7722_v36, %v6927_v32  ;;  %3035 = vmatpush.bf16.msra.mxu0 %v6672_v43  ;;  %v2764_v32 = vpop.f32.mrf.mxu0  ;;  %3148 = vst [vmem:[#allocation2 + $0x18] sm:$0xff] %v2805_v30  ;;  %v5812_v44 = vor.u32 %v7438_v28, %v5809_v29  ;;  %v6481_v4 = vld [vmem:[#allocation7 + $0x7f8] sm:$0xf0] }
 0x1aa   :  { %v7650_v47 = vld [vmem:[#allocation7 + $0x934] sm:$0xf0]  ;;  %3076 = vmatpush.bf16.msra.mxu3 %v5940_v34  ;;  %v2765_v38 = vadd.f32 %v2764_v32, %v2751_v13  ;;  %v7670_v6 = vld [vmem:[#allocation7 + $0x9dc] sm:$0xf] }
 0x1ab   :  { %v6895_v33 = vld [vmem:[#allocation7 + $0xb18] sm:$0xf]  ;;  %v6640_v54 = vor.u32 %v7650_v47, %v6639_v45  ;;  %3049 = vmatpush.bf16.msra.mxu1 %v6928_v25  ;;  %v7366_v45 = vld [vmem:[#allocation7 + $0x5c] sm:$0xf]  ;;  %v2792_v52 = vpop.f32.mrf.mxu2 }
 0x1ac   :  { %v7714_v48 = vld [vmem:[#allocation7 + $0xb34] sm:$0xf0]  ;;  %3063 = vmatpush.bf16.msra.mxu2 %v5652_v46  ;;  %v2779_v25 = vadd.f32 %v2778_v40, %v2765_v38  ;;  %v7430_v46 = vld [vmem:[#allocation7 + $0x25c] sm:$0xf]  ;;  %v5524_v51 = vor.u32 %v7366_v45, %v5521_v26 }
 0x1ad   :  { %v6896_v55 = vor.u32 %v7714_v48, %v6895_v33  ;;  %v6607_v62 = vld [vmem:[#allocation7 + $0x8d8] sm:$0xf]  ;;  %3036 = vmatpush.bf16.msra.mxu0 %v6640_v54  ;;  %v5777_v47 = vld [vmem:[#allocation7 + $0x278] sm:$0xf0] }
 0x1ae   :  { %v7642_v63 = vld [vmem:[#allocation7 + $0x8f4] sm:$0xf0]  ;;  %3077 = vmatpush.bf16.msra.mxu3 %v5908_v49  ;;  %v5780_v56 = vor.u32 %v7430_v46, %v5777_v47  ;;  %v2793_v57 = vadd.f32 %v2792_v52, %v2779_v25  ;;  %v6737_v7 = vld [vmem:[#allocation7 + $0x9f8] sm:$0xf0] }
 0x1af   :  { %v6863_v0 = vld [vmem:[#allocation7 + $0xad8] sm:$0xf]  ;;  %v6608_v12 = vor.u32 %v7642_v63, %v6607_v62  ;;  %3050 = vmatpush.bf16.msra.mxu1 %v6896_v55  ;;  %v7358_v55 = vld [vmem:[#allocation7 + $0x1c] sm:$0xf] }
 0x1b0   :  { %v7706_v2 = vld [vmem:[#allocation7 + $0xaf4] sm:$0xf0]  ;;  %3064 = vmatpush.bf16.msra.mxu2 %v5620_v58  ;;  %v2806_v58 = vpop.f32.mrf.mxu3  ;;  %v5745_v62 = vld [vmem:[#allocation7 + $0x238] sm:$0xf0] }
 0x1b1   :  { %v6864_v11 = vor.u32 %v7706_v2, %v6863_v0  ;;  %v6575_v18 = vld [vmem:[#allocation7 + $0x898] sm:$0xf]  ;;  %3037 = vmatpush.bf16.msra.mxu0 %v6608_v12  ;;  %v7542_v63 = vld [vmem:[#allocation7 + $0x5dc] sm:$0xf]  ;;  %v2807_v2 = vadd.f32 %v2806_v58, %v2793_v57  ;;  %v5492_v12 = vor.u32 %v7358_v55, %v5489_v60 }
 0x1b2   :  { %v7634_v19 = vld [vmem:[#allocation7 + $0x8b4] sm:$0xf0]  ;;  %3078 = vmatpush.bf16.msra.mxu3 %v5876_v1  ;;  %v6225_v0 = vld [vmem:[#allocation7 + $0x5f8] sm:$0xf0] }
 0x1b3   :  { %v6831_v16 = vld [vmem:[#allocation7 + $0xa98] sm:$0xf]  ;;  %v6576_v31 = vor.u32 %v7634_v19, %v6575_v18  ;;  %3051 = vmatpush.bf16.msra.mxu1 %v6864_v11  ;;  %v7606_v1 = vld [vmem:[#allocation7 + $0x7dc] sm:$0xf]  ;;  %3156 = vst [vmem:[#allocation2 + $0x38] sm:$0xff] %v2807_v2  ;;  %v6228_v15 = vor.u32 %v7542_v63, %v6225_v0  ;;  %v6740_v19 = vor.u32 %v7670_v6, %v6737_v7 }
 0x1b4   :  { %v7698_v23 = vld [vmem:[#allocation7 + $0xab4] sm:$0xf0]  ;;  %3065 = vmatpush.bf16.msra.mxu2 %v5588_v14  ;;  %v7734_v13 = vld [vmem:[#allocation7 + $0xbdc] sm:$0xf]  ;;  %v5748_v14 = vor.u32 %v7422_v61, %v5745_v62  ;;  %v6484_v18 = vor.u32 %v7606_v1, %v6481_v4 }
 0x1b5   :  { %v6543_v34 = vld [vmem:[#allocation7 + $0x858] sm:$0xf]  ;;  %v6832_v36 = vor.u32 %v7698_v23, %v6831_v16  ;;  %3038 = vmatpush.bf16.msra.mxu0 %v6576_v31  ;;  %v6993_v11 = vld [vmem:[#allocation7 + $0xbf8] sm:$0xf0] }
 0x1b6   :  { %v7626_v41 = vld [vmem:[#allocation7 + $0x874] sm:$0xf0]  ;;  %3079 = vmatpush.bf16.msra.mxu3 %v5844_v20  ;;  %v7534_v16 = vld [vmem:[#allocation7 + $0x59c] sm:$0xf]  ;;  %v6996_v22 = vor.u32 %v7734_v13, %v6993_v11 }
 0x1b7   :  { %v6799_v42 = vld [vmem:[#allocation7 + $0xa58] sm:$0xf]  ;;  %v6544_v33 = vor.u32 %v7626_v41, %v6543_v34  ;;  %3052 = vmatpush.bf16.msra.mxu1 %v6832_v36  ;;  %v6193_v20 = vld [vmem:[#allocation7 + $0x5b8] sm:$0xf0] }
 0x1b8   :  { %v7690_v43 = vld [vmem:[#allocation7 + $0xa74] sm:$0xf0]  ;;  %3066 = vmatpush.bf16.msra.mxu2 %v5556_v37  ;;  %v7598_v21 = vld [vmem:[#allocation7 + $0x79c] sm:$0xf]  ;;  %v6196_v30 = vor.u32 %v7534_v16, %v6193_v20 }
 0x1b9   :  { %v6511_v48 = vld [vmem:[#allocation7 + $0x818] sm:$0xf]  ;;  %v6800_v50 = vor.u32 %v7690_v43, %v6799_v42  ;;  %3039 = vmatpush.bf16.msra.mxu0 %v6544_v33  ;;  %v6449_v23 = vld [vmem:[#allocation7 + $0x7b8] sm:$0xf0] }
 0x1ba   :  { %v7618_v49 = vld [vmem:[#allocation7 + $0x834] sm:$0xf0]  ;;  %3080 = vmatpush.bf16.msra.mxu3 %v5812_v44  ;;  %v7662_v24 = vld [vmem:[#allocation7 + $0x99c] sm:$0xf]  ;;  %v6452_v31 = vor.u32 %v7598_v21, %v6449_v23  ;;  %v2818_v21 = vpop.f32.mrf.mxu0 }
 0x1bb   :  { %v6767_v53 = vld [vmem:[#allocation7 + $0xa18] sm:$0xf]  ;;  %v6512_v3 = vor.u32 %v7618_v49, %v6511_v48  ;;  %3053 = vmatpush.bf16.msra.mxu1 %v6800_v50  ;;  %v6705_v27 = vld [vmem:[#allocation7 + $0x9b8] sm:$0xf0] }
 0x1bc   :  { %v7682_v54 = vld [vmem:[#allocation7 + $0xa34] sm:$0xf0]  ;;  %3067 = vmatpush.bf16.msra.mxu2 %v5524_v51  ;;  %v7726_v28 = vld [vmem:[#allocation7 + $0xb9c] sm:$0xf]  ;;  %v6708_v32 = vor.u32 %v7662_v24, %v6705_v27 }
 0x1bd   :  { %v6768_v8 = vor.u32 %v7682_v54, %v6767_v53  ;;  %3040 = vmatpush.bf16.msra.mxu0 %v6512_v3  ;;  %v6961_v29 = vld [vmem:[#allocation7 + $0xbb8] sm:$0xf0] }
 0x1be   :  { %3081 = vmatpush.bf16.msra.mxu3 %v5780_v56  ;;  %v7526_v34 = vld [vmem:[#allocation7 + $0x55c] sm:$0xf]  ;;  %v6964_v38 = vor.u32 %v7726_v28, %v6961_v29 }
 0x1bf   :  { %3054 = vmatpush.bf16.msra.mxu1 %v6768_v8  ;;  %v6161_v36 = vld [vmem:[#allocation7 + $0x578] sm:$0xf0] }
 0x1c0   :  { %3068 = vmatpush.bf16.msra.mxu2 %v5492_v12  ;;  %v7590_v37 = vld [vmem:[#allocation7 + $0x75c] sm:$0xf]  ;;  %3041 = vmatmul.bf16.vlgmr.msra.gmra.mxu0 %v8227_v35  ;;  %v6164_v45 = vor.u32 %v7526_v34, %v6161_v36 }
 0x1c1   :  { %3089 = vmatpush.bf16.msrb.mxu0 %v6228_v15  ;;  %v6417_v40 = vld [vmem:[#allocation7 + $0x778] sm:$0xf0] }
 0x1c2   :  { %3082 = vmatpush.bf16.msra.mxu3 %v5748_v14  ;;  %v7654_v41 = vld [vmem:[#allocation7 + $0x95c] sm:$0xf]  ;;  %3055 = vmatmul.bf16.vlgmr.msra.gmra.mxu1 %v8229_v39  ;;  %v6420_v26 = vor.u32 %v7590_v37, %v6417_v40 }
 0x1c3   :  { %3103 = vmatpush.bf16.msrb.mxu1 %v6484_v18  ;;  %v6673_v42 = vld [vmem:[#allocation7 + $0x978] sm:$0xf0]  ;;  %3069 = vmatmul.bf16.vlgmr.msra.gmra.mxu2 %v8215_v59 }
 0x1c4   :  { %3117 = vmatpush.bf16.msrb.mxu2 %v6740_v19  ;;  %v7718_v43 = vld [vmem:[#allocation7 + $0xb5c] sm:$0xf]  ;;  %v6676_v25 = vor.u32 %v7654_v41, %v6673_v42  ;;  %v511_v19 = vperm.slane %v8276_v9, 4 }
 0x1c5   :  { %v6929_v44 = vld [vmem:[#allocation7 + $0xb78] sm:$0xf0]  ;;  %3090 = vmatpush.bf16.msrb.mxu0 %v6196_v30  ;;  %3083 = vmatmul.bf16.vlgmr.msra.gmra.mxu3 %v8218_v5 }
 0x1c6   :  { %3131 = vmatpush.bf16.msrb.mxu3 %v6996_v22  ;;  %v7518_v46 = vld [vmem:[#allocation7 + $0x51c] sm:$0xf]  ;;  %v6932_v48 = vor.u32 %v7718_v43, %v6929_v44 }
 0x1c7   :  { %3104 = vmatpush.bf16.msrb.mxu1 %v6452_v31  ;;  %v6129_v47 = vld [vmem:[#allocation7 + $0x538] sm:$0xf0]  ;;  %v2832_v31 = vpop.f32.mrf.mxu1 }
 0x1c8   :  { %3118 = vmatpush.bf16.msrb.mxu2 %v6708_v32  ;;  %v7582_v33 = vld [vmem:[#allocation7 + $0x71c] sm:$0xf]  ;;  %v6132_v59 = vor.u32 %v7518_v46, %v6129_v47 }
 0x1c9   :  { %v6385_v49 = vld [vmem:[#allocation7 + $0x738] sm:$0xf0]  ;;  %3091 = vmatpush.bf16.msrb.mxu0 %v6164_v45  ;;  %v2819_v45 = vadd.f32 %v2818_v21, %v511_v19  ;;  %v7783_v21 = vld [vmem:[#allocation9 + $0x15c] sm:$0xf0] }
 0x1ca   :  { %3132 = vmatpush.bf16.msrb.mxu3 %v6964_v38  ;;  %v7646_v50 = vld [vmem:[#allocation7 + $0x91c] sm:$0xf]  ;;  %v6388_v54 = vor.u32 %v7582_v33, %v6385_v49  ;;  %v7223_v33 = vld [vmem:[#allocation9 + $0x1c0] sm:$0xf]  ;;  %v7795_v49 = vld [vmem:[#allocation9 + $0x1c4] sm:$0xf] }
 0x1cb   :  { %v6641_v51 = vld [vmem:[#allocation7 + $0x938] sm:$0xf0]  ;;  %3105 = vmatpush.bf16.msrb.mxu1 %v6420_v26 }
 0x1cc   :  { %v7710_v52 = vld [vmem:[#allocation7 + $0xb1c] sm:$0xf]  ;;  %3119 = vmatpush.bf16.msrb.mxu2 %v6676_v25  ;;  %v6644_v5 = vor.u32 %v7646_v50, %v6641_v51  ;;  %v7225_v51 = vld [vmem:[#allocation9 + $0x1e0] sm:$0xf0] }
 0x1cd   :  { %v6897_v53 = vld [vmem:[#allocation7 + $0xb38] sm:$0xf0]  ;;  %3092 = vmatpush.bf16.msrb.mxu0 %v6132_v59 }
 0x1ce   :  { %v7510_v55 = vld [vmem:[#allocation7 + $0x4dc] sm:$0xf]  ;;  %3133 = vmatpush.bf16.msrb.mxu3 %v6932_v48  ;;  %v6900_v58 = vor.u32 %v7710_v52, %v6897_v53  ;;  %v7799_v48 = vld [vmem:[#allocation9 + $0x1dc] sm:$0xf0]  ;;  %v7231_v52 = vld [vmem:[#allocation9 + $0x1c8] sm:$0xf] }
 0x1cf   :  { %v6097_v56 = vld [vmem:[#allocation7 + $0x4f8] sm:$0xf0]  ;;  %3106 = vmatpush.bf16.msrb.mxu1 %v6388_v54  ;;  %v7800_v53 = vld [vmem:[#allocation9 + $0x1e4] sm:$0xf0] }
 0x1d0   :  { %v7574_v57 = vld [vmem:[#allocation7 + $0x6dc] sm:$0xf]  ;;  %v6100_v1 = vor.u32 %v7510_v55, %v6097_v56  ;;  %3120 = vmatpush.bf16.msrb.mxu2 %v6644_v5  ;;  %v7796_v5 = vld [vmem:[#allocation9 + $0x1cc] sm:$0xf]  ;;  %v2833_v56 = vadd.f32 %v2832_v31, %v2819_v45 }
 0x1d1   :  { %v6353_v60 = vld [vmem:[#allocation7 + $0x6f8] sm:$0xf0]  ;;  %v7233_v55 = vld [vmem:[#allocation9 + $0x1e8] sm:$0xf0] }
 0x1d2   :  { %v7638_v61 = vld [vmem:[#allocation7 + $0x8dc] sm:$0xf]  ;;  %v6356_v2 = vor.u32 %v7574_v57, %v6353_v60  ;;  %3134 = vmatpush.bf16.msrb.mxu3 %v6900_v58  ;;  %3093 = vmatpush.bf16.msrb.mxu0 %v6100_v1  ;;  %v8290_v58 = vor.u32 %v7799_v48, %v7223_v33  ;;  %v8292_v60 = vor.u32 %v7795_v49, %v7225_v51  ;;  %v7791_v1 = vld [vmem:[#allocation9 + $0x19c] sm:$0xf0]  ;;  %v7169_v31 = vld [vmem:[#allocation9 + $0x168] sm:$0xf0] }
 0x1d3   :  { %v6609_v62 = vld [vmem:[#allocation7 + $0x8f8] sm:$0xf0]  ;;  %v7137_v45 = vld [vmem:[#allocation9 + $0x128] sm:$0xf0]  ;;  %v7095_v48 = vld [vmem:[#allocation9 + $0xc0] sm:$0xf] }
 0x1d4   :  { %v7702_v63 = vld [vmem:[#allocation7 + $0xadc] sm:$0xf]  ;;  %v6612_v3 = vor.u32 %v7638_v61, %v6609_v62  ;;  %3107 = vmatpush.bf16.msrb.mxu1 %v6356_v2  ;;  %v8294_v61 = vor.u32 %v7800_v53, %v7231_v52  ;;  %v2820_v62 = vpop.f32.mrf.mxu0  ;;  %v7787_v2 = vld [vmem:[#allocation9 + $0x184] sm:$0xf]  ;;  %v7767_v49 = vld [vmem:[#allocation9 + $0xdc] sm:$0xf0] }
 0x1d5   :  { %v6865_v0 = vld [vmem:[#allocation7 + $0xaf8] sm:$0xf0] }
 0x1d6   :  { %v7502_v4 = vld [vmem:[#allocation7 + $0x49c] sm:$0xf]  ;;  %v6868_v8 = vor.u32 %v7702_v63, %v6865_v0  ;;  %3121 = vmatpush.bf16.msrb.mxu2 %v6612_v3  ;;  %v2846_v63 = vpop.f32.mrf.mxu2  ;;  %v7191_v0 = vld [vmem:[#allocation9 + $0x180] sm:$0xf]  ;;  %v8296_v3 = vor.u32 %v7796_v5, %v7233_v55  ;;  %v7768_v5 = vld [vmem:[#allocation9 + $0xe4] sm:$0xf0] }
 0x1d7   :  { %v6065_v6 = vld [vmem:[#allocation7 + $0x4b8] sm:$0xf0] }
 0x1d8   :  { %v7566_v7 = vld [vmem:[#allocation7 + $0x69c] sm:$0xf]  ;;  %v6068_v18 = vor.u32 %v7502_v4, %v6065_v6  ;;  %3135 = vmatpush.bf16.msrb.mxu3 %v6868_v8  ;;  %v7193_v4 = vld [vmem:[#allocation9 + $0x1a0] sm:$0xf0]  ;;  %v7199_v6 = vld [vmem:[#allocation9 + $0x188] sm:$0xf]  ;;  %v2834_v8 = vpop.f32.mrf.mxu1 }
 0x1d9   :  { %v6321_v12 = vld [vmem:[#allocation7 + $0x6b8] sm:$0xf0] }
 0x1da   :  { %v7630_v13 = vld [vmem:[#allocation7 + $0x89c] sm:$0xf]  ;;  %v6324_v16 = vor.u32 %v7566_v7, %v6321_v12  ;;  %3094 = vmatpush.bf16.msrb.mxu0 %v6068_v18  ;;  %v7792_v7 = vld [vmem:[#allocation9 + $0x1a4] sm:$0xf0]  ;;  %v7788_v12 = vld [vmem:[#allocation9 + $0x18c] sm:$0xf] }
 0x1db   :  { %v6577_v11 = vld [vmem:[#allocation7 + $0x8b8] sm:$0xf0]  ;;  %v8305_v18 = vor.u32 %v7792_v7, %v7199_v6 }
 0x1dc   :  { %v7694_v14 = vld [vmem:[#allocation7 + $0xa9c] sm:$0xf]  ;;  %v6580_v20 = vor.u32 %v7630_v13, %v6577_v11  ;;  %3108 = vmatpush.bf16.msrb.mxu1 %v6324_v16  ;;  %v7201_v13 = vld [vmem:[#allocation9 + $0x1a8] sm:$0xf0]  ;;  %v2847_v11 = vadd.f32 %v2846_v63, %v2833_v56  ;;  %v2860_v16 = vpop.f32.mrf.mxu3 }
 0x1dd   :  { %v6833_v15 = vld [vmem:[#allocation7 + $0xab8] sm:$0xf0]  ;;  %v7764_v56 = vld [vmem:[#allocation9 + $0xcc] sm:$0xf] }
 0x1de   :  { %v7494_v22 = vld [vmem:[#allocation7 + $0x45c] sm:$0xf]  ;;  %v6836_v27 = vor.u32 %v7694_v14, %v6833_v15  ;;  %3122 = vmatpush.bf16.msrb.mxu2 %v6580_v20  ;;  %v8299_v14 = vor.u32 %v7791_v1, %v7191_v0  ;;  %v8303_v15 = vor.u32 %v7787_v2, %v7193_v4  ;;  %v7159_v20 = vld [vmem:[#allocation9 + $0x140] sm:$0xf]  ;;  %v7755_v4 = vld [vmem:[#allocation9 + $0x84] sm:$0xf] }
 0x1df   :  { %v6033_v23 = vld [vmem:[#allocation7 + $0x478] sm:$0xf0]  ;;  %v7063_v1 = vld [vmem:[#allocation9 + $0x80] sm:$0xf] }
 0x1e0   :  { %v7558_v24 = vld [vmem:[#allocation7 + $0x65c] sm:$0xf]  ;;  %v6036_v36 = vor.u32 %v7494_v22, %v6033_v23  ;;  %3136 = vmatpush.bf16.msrb.mxu3 %v6836_v27  ;;  %v7779_v22 = vld [vmem:[#allocation9 + $0x144] sm:$0xf]  ;;  %v2821_v23 = vadd.f32 %v2820_v62, %v511_v19  ;;  %v8341_v62 = vor.u32 %v7767_v49, %v7095_v48  ;;  %v7759_v2 = vld [vmem:[#allocation9 + $0x9c] sm:$0xf0] }
 0x1e1   :  { %v6289_v28 = vld [vmem:[#allocation7 + $0x678] sm:$0xf0]  ;;  %v7161_v27 = vld [vmem:[#allocation9 + $0x160] sm:$0xf0]  ;;  %v7007_v48 = vld [vmem:[#allocation9 + $0x8] sm:$0xf] }
 0x1e2   :  { %v7622_v29 = vld [vmem:[#allocation7 + $0x85c] sm:$0xf]  ;;  %v6292_v40 = vor.u32 %v7558_v24, %v6289_v28  ;;  %3095 = vmatpush.bf16.msrb.mxu0 %v6036_v36  ;;  %v8311_v24 = vor.u32 %v7788_v12, %v7201_v13  ;;  %v7167_v28 = vld [vmem:[#allocation9 + $0x148] sm:$0xf]  ;;  %v8321_v19 = vor.u32 %v7779_v22, %v7161_v27  ;;  %v7775_v36 = vld [vmem:[#allocation9 + $0x11c] sm:$0xf0]  ;;  %v8353_v22 = vor.u32 %v7759_v2, %v7063_v1 }
 0x1e3   :  { %v6545_v30 = vld [vmem:[#allocation7 + $0x878] sm:$0xf0]  ;;  %v7071_v12 = vld [vmem:[#allocation9 + $0x88] sm:$0xf]  ;;  %v7247_v1 = vld [vmem:[#allocation9 + $0x1d8] sm:$0xf] }
 0x1e4   :  { %v7686_v32 = vld [vmem:[#allocation7 + $0xa5c] sm:$0xf]  ;;  %v6548_v41 = vor.u32 %v7622_v29, %v6545_v30  ;;  %3109 = vmatpush.bf16.msrb.mxu1 %v6292_v40  ;;  %v7784_v29 = vld [vmem:[#allocation9 + $0x164] sm:$0xf0]  ;;  %v7780_v30 = vld [vmem:[#allocation9 + $0x14c] sm:$0xf]  ;;  %v2862_v55 = vpop.f32.mrf.mxu3 }
 0x1e5   :  { %v6801_v34 = vld [vmem:[#allocation7 + $0xa78] sm:$0xf0]  ;;  %v7129_v40 = vld [vmem:[#allocation9 + $0x120] sm:$0xf0]  ;;  %v7760_v13 = vld [vmem:[#allocation9 + $0xa4] sm:$0xf0] }
 0x1e6   :  { %v7486_v37 = vld [vmem:[#allocation7 + $0x41c] sm:$0xf]  ;;  %v6804_v26 = vor.u32 %v7686_v32, %v6801_v34  ;;  %3123 = vmatpush.bf16.msrb.mxu2 %v6548_v41  ;;  %v2861_v32 = vadd.f32 %v2860_v16, %v2847_v11  ;;  %v8323_v34 = vor.u32 %v7784_v29, %v7167_v28  ;;  %v7776_v41 = vld [vmem:[#allocation9 + $0x124] sm:$0xf0]  ;;  %v7756_v16 = vld [vmem:[#allocation9 + $0x8c] sm:$0xf]  ;;  %v8359_v28 = vor.u32 %v7760_v13, %v7071_v12 }
 0x1e7   :  { %v6001_v38 = vld [vmem:[#allocation7 + $0x438] sm:$0xf0]  ;;  %v7031_v29 = vld [vmem:[#allocation9 + $0x40] sm:$0xf]  ;;  %v7802_v2 = vld [vmem:[#allocation9 + $0x1f4] sm:$0xf0] }
 0x1e8   :  { %v7550_v42 = vld [vmem:[#allocation7 + $0x61c] sm:$0xf]  ;;  %v6004_v50 = vor.u32 %v7486_v37, %v6001_v38  ;;  %3137 = vmatpush.bf16.msrb.mxu3 %v6804_v26  ;;  %v2835_v37 = vadd.f32 %v2834_v8, %v2821_v23  ;;  %v8326_v38 = vor.u32 %v7780_v30, %v7169_v31  ;;  %v7065_v8 = vld [vmem:[#allocation9 + $0xa0] sm:$0xf0]  ;;  %v7751_v30 = vld [vmem:[#allocation9 + $0x5c] sm:$0xf0] }
 0x1e9   :  { %v6257_v43 = vld [vmem:[#allocation7 + $0x638] sm:$0xf0]  ;;  %v8357_v27 = vor.u32 %v7755_v4, %v7065_v8  ;;  %v7747_v31 = vld [vmem:[#allocation9 + $0x44] sm:$0xf] }
 0x1ea   :  { %v7614_v44 = vld [vmem:[#allocation7 + $0x81c] sm:$0xf]  ;;  %v6260_v59 = vor.u32 %v7550_v42, %v6257_v43  ;;  %3096 = vmatpush.bf16.msrb.mxu0 %v6004_v50  ;;  %v2848_v42 = vpop.f32.mrf.mxu2  ;;  %v2874_v43 = vpop.f32.mrf.mxu0  ;;  %v7763_v50 = vld [vmem:[#allocation9 + $0xc4] sm:$0xf] }
 0x1eb   :  { %v6513_v25 = vld [vmem:[#allocation7 + $0x838] sm:$0xf0]  ;;  %v2875_v26 = vadd.f32 %v2874_v43, %v2861_v32  ;;  %v2849_v51 = vadd.f32 %v2848_v42, %v2835_v37  ;;  %v7752_v37 = vld [vmem:[#allocation9 + $0x64] sm:$0xf0]  ;;  %v6999_v42 = vld [vmem:[#allocation9] sm:$0xf] }
 0x1ec   :  { %v7678_v46 = vld [vmem:[#allocation7 + $0xa1c] sm:$0xf]  ;;  %v6516_v54 = vor.u32 %v7614_v44, %v6513_v25  ;;  %3110 = vmatpush.bf16.msrb.mxu1 %v6260_v59  ;;  %v7772_v44 = vld [vmem:[#allocation9 + $0x10c] sm:$0xf]  ;;  %v7097_v59 = vld [vmem:[#allocation9 + $0xe0] sm:$0xf0]  ;;  %v2916_v4 = vpop.f32.mrf.mxu3 }
 0x1ed   :  { %v6769_v47 = vld [vmem:[#allocation7 + $0xa38] sm:$0xf0]  ;;  %3097 = vmatmul.bf16.vlgmr.msrb.gmra.mxu0 %v8220_v10  ;;  %v7127_v10 = vld [vmem:[#allocation9 + $0x100] sm:$0xf]  ;;  %v8338_v52 = vor.u32 %v7772_v44, %v7137_v45  ;;  %v8345_v63 = vor.u32 %v7763_v50, %v7097_v59  ;;  %v2863_v6 = vadd.f32 %v2862_v55, %v2849_v51  ;;  %v7744_v50 = vld [vmem:[#allocation9 + $0x24] sm:$0xf0] }
 0x1ee   :  { %v6772_v57 = vor.u32 %v7678_v46, %v6769_v47  ;;  %3124 = vmatpush.bf16.msrb.mxu2 %v6516_v54  ;;  %3548 = vmatpush.bf16.msra.mxu0 %v8290_v58  ;;  %v8329_v25 = vor.u32 %v7775_v36, %v7127_v10  ;;  %v2888_v46 = vpop.f32.mrf.mxu1  ;;  %v7103_v54 = vld [vmem:[#allocation9 + $0xc8] sm:$0xf]  ;;  %v7033_v36 = vld [vmem:[#allocation9 + $0x60] sm:$0xf0]  ;;  %v7743_v43 = vld [vmem:[#allocation9 + $0x1c] sm:$0xf0]  ;;  %v8383_v8 = vor.u32 %v7744_v50, %v7007_v48 }
 0x1ef   :  { %3111 = vmatmul.bf16.vlgmr.msrb.gmra.mxu1 %v8222_v17  ;;  %v7135_v17 = vld [vmem:[#allocation9 + $0x108] sm:$0xf]  ;;  %v2889_v53 = vadd.f32 %v2888_v46, %v2875_v26  ;;  %v8347_v0 = vor.u32 %v7768_v5, %v7103_v54  ;;  %v8369_v44 = vor.u32 %v7747_v31, %v7033_v36  ;;  %v7739_v26 = vld [vmem:[#allocation9 + $0x4] sm:$0xf]  ;;  %v7740_v51 = vld [vmem:[#allocation9 + $0xc] sm:$0xf] }
 0x1f0   :  { %3138 = vmatpush.bf16.msrb.mxu3 %v6772_v57  ;;  %3561 = vmatpush.bf16.msra.mxu1 %v8292_v60  ;;  %v8335_v33 = vor.u32 %v7776_v41, %v7135_v17  ;;  %v7105_v57 = vld [vmem:[#allocation9 + $0xe8] sm:$0xf0]  ;;  %v8365_v41 = vor.u32 %v7751_v30, %v7031_v29  ;;  %v7001_v46 = vld [vmem:[#allocation9 + $0x20] sm:$0xf0]  ;;  %v7239_v59 = vld [vmem:[#allocation9 + $0x1d0] sm:$0xf] }
 0x1f1   :  { %3125 = vmatmul.bf16.vlgmr.msrb.gmra.mxu2 %v8227_v35  ;;  %v8317_v35 = vor.u32 %v7783_v21, %v7159_v20  ;;  %3149 = vst [vmem:[#allocation2 + $0x50] sm:$0xff] %v2889_v53  ;;  %v8350_v7 = vor.u32 %v7764_v56, %v7105_v57  ;;  %v7073_v20 = vld [vmem:[#allocation9 + $0xa8] sm:$0xf0]  ;;  %v7801_v54 = vld [vmem:[#allocation9 + $0x1ec] sm:$0xf0]  ;;  %v8377_v56 = vor.u32 %v7743_v43, %v6999_v42 }
 0x1f2   :  { %3574 = vmatpush.bf16.msra.mxu2 %v8294_v61  ;;  %3549 = vmatpush.bf16.msra.mxu0 %v8299_v14  ;;  %v2876_v11 = vpop.f32.mrf.mxu0  ;;  %v8362_v32 = vor.u32 %v7756_v16, %v7073_v20  ;;  %v7041_v17 = vld [vmem:[#allocation9 + $0x68] sm:$0xf0]  ;;  %v7797_v5 = vld [vmem:[#allocation9 + $0x1d4] sm:$0xf]  ;;  %v2902_v55 = vpop.f32.mrf.mxu2  ;;  %v7798_v12 = vld [vmem:[#allocation9 + $0x1dc] sm:$0xf]  ;;  %v8388_v16 = vor.u32 %v7801_v54, %v7239_v59 }
 0x1f3   :  { %3139 = vmatmul.bf16.vlgmr.msrb.gmra.mxu3 %v8229_v39  ;;  %v7771_v39 = vld [vmem:[#allocation9 + $0x104] sm:$0xf]  ;;  %v2877_v21 = vadd.f32 %v2876_v11, %v2863_v6  ;;  %v7009_v53 = vld [vmem:[#allocation9 + $0x28] sm:$0xf0]  ;;  %v7241_v57 = vld [vmem:[#allocation9 + $0x1f0] sm:$0xf0]  ;;  %v8381_v6 = vor.u32 %v7739_v26, %v7001_v46 }
 0x1f4   :  { %3587 = vmatpush.bf16.msra.mxu3 %v8296_v3  ;;  %3562 = vmatpush.bf16.msra.mxu1 %v8303_v15  ;;  %v8333_v47 = vor.u32 %v7771_v39, %v7129_v40  ;;  %v7039_v39 = vld [vmem:[#allocation9 + $0x48] sm:$0xf]  ;;  %v7748_v40 = vld [vmem:[#allocation9 + $0x4c] sm:$0xf]  ;;  %v7249_v13 = vld [vmem:[#allocation9 + $0x1f8] sm:$0xf0]  ;;  %v8386_v11 = vor.u32 %v7740_v51, %v7009_v53 }
 0x1f5   :  { %v8371_v45 = vor.u32 %v7752_v37, %v7039_v39  ;;  %v8374_v49 = vor.u32 %v7748_v40, %v7041_v17  ;;  %9173 = vst [vmem:[#allocation22_spill] sm:$0xff] %v8388_v16  ;;  %v9093_v20 = vperm.slane %v8276_v9, 5  ;;  %v7207_v29 = vld [vmem:[#allocation9 + $0x190] sm:$0xf]  ;;  %v7789_v31 = vld [vmem:[#allocation9 + $0x194] sm:$0xf] }
 0x1f6   :  { %3575 = vmatpush.bf16.msra.mxu2 %v8305_v18  ;;  %3550 = vmatpush.bf16.msra.mxu0 %v8317_v35  ;;  %v2890_v23 = vpop.f32.mrf.mxu1  ;;  %9172 = vst [vmem:[#allocation21_spill] sm:$0xff] %v8386_v11  ;;  %v7793_v30 = vld [vmem:[#allocation9 + $0x1ac] sm:$0xf0]  ;;  %v7209_v36 = vld [vmem:[#allocation9 + $0x1b0] sm:$0xf0]  ;;  %v9094_v59 = vmov 0  }
 0x1f7   :  { %v2891_v10 = vadd.f32 %v2890_v23, %v2877_v21  ;;  %v8391_v21 = vor.u32 %v7797_v5, %v7241_v57  ;;  %v8393_v23 = vor.u32 %v7802_v2, %v7247_v1  ;;  %v7215_v39 = vld [vmem:[#allocation9 + $0x198] sm:$0xf]  ;;  %v7790_v40 = vld [vmem:[#allocation9 + $0x19c] sm:$0xf]  ;;  %v8402_v42 = vor.u32 %v7793_v30, %v7207_v29  ;;  %v7175_v48 = vld [vmem:[#allocation9 + $0x150] sm:$0xf] }
 0x1f8   :  { %3588 = vmatpush.bf16.msra.mxu3 %v8311_v24  ;;  %3563 = vmatpush.bf16.msra.mxu1 %v8321_v19  ;;  %v7794_v37 = vld [vmem:[#allocation9 + $0x1b4] sm:$0xf0]  ;;  %v7217_v17 = vld [vmem:[#allocation9 + $0x1b8] sm:$0xf0]  ;;  %v2903_v43 = vadd.f32 %v2902_v55, %v9093_v20  ;;  %v8408_v26 = vor.u32 %v7789_v31, %v7209_v36  ;;  %v7785_v50 = vld [vmem:[#allocation9 + $0x16c] sm:$0xf0] }
 0x1f9   :  { %3157 = vst [vmem:[#allocation2 + $0x60] sm:$0xff] %v2891_v10  ;;  %v8396_v10 = vor.u32 %v7798_v12, %v7249_v13  ;;  %v8410_v46 = vor.u32 %v7794_v37, %v7215_v39  ;;  %v7781_v51 = vld [vmem:[#allocation9 + $0x154] sm:$0xf]  ;;  %v8413_v53 = vor.u32 %v7790_v40, %v7217_v17  ;;  %v7183_v5 = vld [vmem:[#allocation9 + $0x158] sm:$0xf]  ;;  %v8419_v12 = vor.u32 %v7785_v50, %v7175_v48  ;;  %v2918_v13 = vpop.f32.mrf.mxu3 }
 0x1fa   :  { %3576 = vmatpush.bf16.msra.mxu2 %v8323_v34  ;;  %3551 = vmatpush.bf16.msra.mxu0 %v8329_v25  ;;  %9174 = vst [vmem:[#allocation23_spill] sm:$0xff] %v8391_v21  ;;  %v7177_v54 = vld [vmem:[#allocation9 + $0x170] sm:$0xf0]  ;;  %v7786_v57 = vld [vmem:[#allocation9 + $0x174] sm:$0xf0]  ;;  %v2904_v2 = vpop.f32.mrf.mxu2  ;;  %v2917_v30 = vadd.f32 %v2916_v4, %v2903_v43 }
 0x1fb   :  { %9175 = vst [vmem:[#allocation24_spill] sm:$0xff] %v8393_v23  ;;  %v7782_v55 = vld [vmem:[#allocation9 + $0x15c] sm:$0xf]  ;;  %v7143_v29 = vld [vmem:[#allocation9 + $0x110] sm:$0xf]  ;;  %v8424_v31 = vor.u32 %v7781_v51, %v7177_v54  ;;  %v8426_v36 = vor.u32 %v7786_v57, %v7183_v5  ;;  %v9186_v54 = vperm.slane %v8276_v9, 5 }
 0x1fc   :  { %3589 = vmatpush.bf16.msra.mxu3 %v8326_v38  ;;  %3564 = vmatpush.bf16.msra.mxu1 %v8333_v47  ;;  %9176 = vst [vmem:[#allocation25_spill] sm:$0xff] %v8396_v10  ;;  %v7185_v1 = vld [vmem:[#allocation9 + $0x178] sm:$0xf0]  ;;  %v7777_v39 = vld [vmem:[#allocation9 + $0x12c] sm:$0xf0]  ;;  %v2930_v51 = vpop.f32.mrf.mxu0 }
 0x1fd   :  { %9177 = vst [vmem:[#allocation26_spill] sm:$0xff] %v8408_v26  ;;  %v7773_v37 = vld [vmem:[#allocation9 + $0x114] sm:$0xf]  ;;  %v8429_v17 = vor.u32 %v7782_v55, %v7185_v1  ;;  %v7151_v48 = vld [vmem:[#allocation9 + $0x118] sm:$0xf]  ;;  %v8432_v4 = vor.u32 %v7777_v39, %v7143_v29  ;;  %v2905_v5 = vadd.f32 %v2904_v2, %v9186_v54  ;;  %v2931_v55 = vadd.f32 %v2930_v51, %v2917_v30 }
 0x1fe   :  { %3577 = vmatpush.bf16.msra.mxu2 %v8335_v33  ;;  %3552 = vmatpush.bf16.msra.mxu0 %v8341_v62  ;;  %9178 = vst [vmem:[#allocation27_spill] sm:$0xff] %v8410_v46  ;;  %v7145_v40 = vld [vmem:[#allocation9 + $0x130] sm:$0xf0]  ;;  %v7778_v50 = vld [vmem:[#allocation9 + $0x134] sm:$0xf0]  ;;  %v2944_v1 = vpop.f32.mrf.mxu1 }
 0x1ff   :  { %9179 = vst [vmem:[#allocation28_spill] sm:$0xff] %v8413_v53  ;;  %v7774_v20 = vld [vmem:[#allocation9 + $0x11c] sm:$0xf]  ;;  %v8434_v43 = vor.u32 %v7773_v37, %v7145_v40  ;;  %v8440_v57 = vor.u32 %v7778_v50, %v7151_v48  ;;  %v7113_v39 = vld [vmem:[#allocation9 + $0xf0] sm:$0xf0]  ;;  %v2919_v2 = vadd.f32 %v2918_v13, %v2905_v5 }
 0x200   :  { %3590 = vmatpush.bf16.msra.mxu3 %v8338_v52  ;;  %3565 = vmatpush.bf16.msra.mxu1 %v8345_v63  ;;  %9180 = vst [vmem:[#allocation29_spill] sm:$0xff] %v8419_v12  ;;  %v7119_v37 = vld [vmem:[#allocation9 + $0xd8] sm:$0xf]  ;;  %v7761_v50 = vld [vmem:[#allocation9 + $0xac] sm:$0xf0] }
 0x201   :  { %9181 = vst [vmem:[#allocation30_spill] sm:$0xff] %v8424_v31  ;;  %v7770_v40 = vld [vmem:[#allocation9 + $0xf4] sm:$0xf0]  ;;  %v7757_v51 = vld [vmem:[#allocation9 + $0x94] sm:$0xf] }
 0x202   :  { %3578 = vmatpush.bf16.msra.mxu2 %v8347_v0  ;;  %3553 = vmatpush.bf16.msra.mxu0 %v8353_v22  ;;  %9182 = vst [vmem:[#allocation31_spill] sm:$0xff] %v8426_v36  ;;  %v8452_v48 = vor.u32 %v7770_v40, %v7119_v37  ;;  %v7087_v13 = vld [vmem:[#allocation9 + $0x98] sm:$0xf]  ;;  %v7047_v40 = vld [vmem:[#allocation9 + $0x50] sm:$0xf] }
 0x203   :  { %9183 = vst [vmem:[#allocation32_spill] sm:$0xff] %v8429_v17  ;;  %v7762_v5 = vld [vmem:[#allocation9 + $0xb4] sm:$0xf0] }
 0x204   :  { %3591 = vmatpush.bf16.msra.mxu3 %v8350_v7  ;;  %3566 = vmatpush.bf16.msra.mxu1 %v8357_v27  ;;  %9184 = vst [vmem:[#allocation33_spill] sm:$0xff] %v8432_v4  ;;  %v2932_v37 = vpop.f32.mrf.mxu0 }
 0x205   :  { %9185 = vst [vmem:[#allocation34_spill] sm:$0xff] %v8434_v43 }
 0x206   :  { %3579 = vmatpush.bf16.msra.mxu2 %v8359_v28  ;;  %3554 = vmatpush.bf16.msra.mxu0 %v8365_v41  ;;  %9187 = vst [vmem:[#allocation35_spill] sm:$0xff] %v8440_v57 }
 0x207   :  { %9191 = vst [vmem:[#allocation39_spill] sm:$0xff] %v8452_v48 }
 0x208   :  { %3592 = vmatpush.bf16.msra.mxu3 %v8362_v32  ;;  %3567 = vmatpush.bf16.msra.mxu1 %v8369_v44 }
 0x20a   :  { %3580 = vmatpush.bf16.msra.mxu2 %v8371_v45  ;;  %3555 = vmatpush.bf16.msra.mxu0 %v8377_v56 }
 0x20c   :  { %3593 = vmatpush.bf16.msra.mxu3 %v8374_v49  ;;  %3568 = vmatpush.bf16.msra.mxu1 %v8381_v6 }
 0x20d   :  { %3556 = vmatmul.bf16.vlgmr.msra.gmra.mxu0 %v9094_v59 }
 0x20e   :  { %3581 = vmatpush.bf16.msra.mxu2 %v8383_v8  ;;  %3600 = vmatpush.bf16.msrb.mxu0 %v8388_v16 }
 0x20f   :  { %3569 = vmatmul.bf16.vlgmr.msra.gmra.mxu1 %v9094_v59 }
 0x210   :  { %3594 = vmatpush.bf16.msra.mxu3 %v8386_v11  ;;  %3613 = vmatpush.bf16.msrb.mxu1 %v8391_v21 }
 0x211   :  { %3582 = vmatmul.bf16.vlgmr.msra.gmra.mxu2 %v9094_v59 }
 0x212   :  { %3626 = vmatpush.bf16.msrb.mxu2 %v8393_v23  ;;  %3601 = vmatpush.bf16.msrb.mxu0 %v8402_v42 }
 0x213   :  { %3595 = vmatmul.bf16.vlgmr.msra.gmra.mxu3 %v9094_v59  ;;  %v7153_v59 = vld [vmem:[#allocation9 + $0x138] sm:$0xf0] }
 0x214   :  { %3639 = vmatpush.bf16.msrb.mxu3 %v8396_v10  ;;  %3614 = vmatpush.bf16.msrb.mxu1 %v8408_v26  ;;  %v7765_v26 = vld [vmem:[#allocation9 + $0xd4] sm:$0xf]  ;;  %v8443_v29 = vor.u32 %v7774_v20, %v7153_v59  ;;  %v2958_v20 = vpop.f32.mrf.mxu2  ;;  %v7079_v59 = vld [vmem:[#allocation9 + $0x90] sm:$0xf] }
 0x215   :  { %v8450_v30 = vor.u32 %v7765_v26, %v7113_v39  ;;  %v8458_v39 = vor.u32 %v7761_v50, %v7079_v59  ;;  %v7055_v50 = vld [vmem:[#allocation9 + $0x58] sm:$0xf] }
 0x216   :  { %3627 = vmatpush.bf16.msrb.mxu2 %v8410_v46  ;;  %3602 = vmatpush.bf16.msrb.mxu0 %v8419_v12  ;;  %v7769_v46 = vld [vmem:[#allocation9 + $0xec] sm:$0xf0]  ;;  %9188 = vst [vmem:[#allocation36_spill] sm:$0xff] %v8443_v29  ;;  %v7766_v12 = vld [vmem:[#allocation9 + $0xdc] sm:$0xf] }
 0x217   :  { %9190 = vst [vmem:[#allocation38_spill] sm:$0xff] %v8450_v30 }
 0x218   :  { %3640 = vmatpush.bf16.msrb.mxu3 %v8413_v53  ;;  %3615 = vmatpush.bf16.msrb.mxu1 %v8424_v31  ;;  %v7111_v53 = vld [vmem:[#allocation9 + $0xd0] sm:$0xf]  ;;  %v2945_v31 = vadd.f32 %v2944_v1, %v2931_v55  ;;  %v7758_v1 = vld [vmem:[#allocation9 + $0x9c] sm:$0xf]  ;;  %9193 = vst [vmem:[#allocation41_spill] sm:$0xff] %v8458_v39 }
 0x219   :  { %v8446_v9 = vor.u32 %v7769_v46, %v7111_v53  ;;  %v2972_v46 = vpop.f32.mrf.mxu3  ;;  %v7081_v53 = vld [vmem:[#allocation9 + $0xb0] sm:$0xf0] }
 0x21a   :  { %3628 = vmatpush.bf16.msrb.mxu2 %v8426_v36  ;;  %v7121_v36 = vld [vmem:[#allocation9 + $0xf8] sm:$0xf0]  ;;  %3603 = vmatpush.bf16.msrb.mxu0 %v8432_v4  ;;  %v2959_v55 = vadd.f32 %v2958_v20, %v2945_v31  ;;  %v8464_v31 = vor.u32 %v7762_v5, %v7087_v13  ;;  %v2946_v20 = vpop.f32.mrf.mxu1  ;;  %v7049_v4 = vld [vmem:[#allocation9 + $0x70] sm:$0xf0]  ;;  %v7745_v5 = vld [vmem:[#allocation9 + $0x2c] sm:$0xf0] }
 0x21b   :  { %9189 = vst [vmem:[#allocation37_spill] sm:$0xff] %v8446_v9  ;;  %v8455_v54 = vor.u32 %v7766_v12, %v7121_v36  ;;  %v8462_v12 = vor.u32 %v7757_v51, %v7081_v53  ;;  %v2933_v36 = vadd.f32 %v2932_v37, %v2919_v2 }
 0x21c   :  { %3641 = vmatpush.bf16.msrb.mxu3 %v8429_v17  ;;  %3616 = vmatpush.bf16.msrb.mxu1 %v8434_v43  ;;  %v7089_v43 = vld [vmem:[#allocation9 + $0xb8] sm:$0xf0]  ;;  %v2973_v26 = vadd.f32 %v2972_v46, %v2959_v55  ;;  %9195 = vst [vmem:[#allocation43_spill] sm:$0xff] %v8464_v31  ;;  %v7754_v55 = vld [vmem:[#allocation9 + $0x74] sm:$0xf0]  ;;  %v2960_v13 = vpop.f32.mrf.mxu2 }
 0x21d   :  { %9192 = vst [vmem:[#allocation40_spill] sm:$0xff] %v8455_v54  ;;  %v8467_v59 = vor.u32 %v7758_v1, %v7089_v43  ;;  %v2947_v46 = vadd.f32 %v2946_v20, %v2933_v36  ;;  %v8476_v53 = vor.u32 %v7754_v55, %v7055_v50  ;;  %v7015_v43 = vld [vmem:[#allocation9 + $0x10] sm:$0xf]  ;;  %v7741_v1 = vld [vmem:[#allocation9 + $0x14] sm:$0xf]  ;;  %v9205_v55 = vmov 0  }
 0x21e   :  { %3629 = vmatpush.bf16.msrb.mxu2 %v8440_v57  ;;  %3604 = vmatpush.bf16.msrb.mxu0 %v8446_v9  ;;  %9194 = vst [vmem:[#allocation42_spill] sm:$0xff] %v8462_v12  ;;  %v7749_v57 = vld [vmem:[#allocation9 + $0x54] sm:$0xf]  ;;  %v7057_v9 = vld [vmem:[#allocation9 + $0x78] sm:$0xf0] }
 0x21f   :  { %3150 = vst [vmem:[#allocation2 + $0x68] sm:$0xff] %v2973_v26  ;;  %v8474_v2 = vor.u32 %v7749_v57, %v7049_v4  ;;  %v2961_v37 = vadd.f32 %v2960_v13, %v2947_v46  ;;  %v7746_v20 = vld [vmem:[#allocation9 + $0x34] sm:$0xf0]  ;;  %v8482_v57 = vor.u32 %v7745_v5, %v7015_v43 }
 0x220   :  { %3642 = vmatpush.bf16.msrb.mxu3 %v8443_v29  ;;  %3617 = vmatpush.bf16.msrb.mxu1 %v8450_v30  ;;  %v7753_v29 = vld [vmem:[#allocation9 + $0x6c] sm:$0xf0]  ;;  %9196 = vst [vmem:[#allocation44_spill] sm:$0xff] %v8467_v59  ;;  %v7750_v30 = vld [vmem:[#allocation9 + $0x5c] sm:$0xf] }
 0x221   :  { %v8470_v51 = vor.u32 %v7753_v29, %v7047_v40  ;;  %9198 = vst [vmem:[#allocation46_spill] sm:$0xff] %v8474_v2  ;;  %v8479_v26 = vor.u32 %v7750_v30, %v7057_v9  ;;  %v2974_v36 = vpop.f32.mrf.mxu3  ;;  %v7017_v29 = vld [vmem:[#allocation9 + $0x30] sm:$0xf0]  ;;  %v7023_v40 = vld [vmem:[#allocation9 + $0x18] sm:$0xf] }
 0x222   :  { %3630 = vmatpush.bf16.msrb.mxu2 %v8452_v48  ;;  %3605 = vmatpush.bf16.msrb.mxu0 %v8458_v39  ;;  %9199 = vst [vmem:[#allocation47_spill] sm:$0xff] %v8476_v53  ;;  %v7025_v39 = vld [vmem:[#allocation9 + $0x38] sm:$0xf0]  ;;  %v2975_v4 = vadd.f32 %v2974_v36, %v2961_v37  ;;  %v8486_v50 = vor.u32 %v7741_v1, %v7017_v29  ;;  %v3000_v13 = vpop.f32.mrf.mxu1 }
 0x223   :  { %9197 = vst [vmem:[#allocation45_spill] sm:$0xff] %v8470_v51  ;;  %v8488_v9 = vor.u32 %v7746_v20, %v7023_v40 }
 0x224   :  { %3643 = vmatpush.bf16.msrb.mxu3 %v8455_v54  ;;  %3618 = vmatpush.bf16.msrb.mxu1 %v8462_v12  ;;  %9200 = vst [vmem:[#allocation48_spill] sm:$0xff] %v8479_v26  ;;  %v7742_v12 = vld [vmem:[#allocation9 + $0x1c] sm:$0xf] }
 0x225   :  { %9201 = vst [vmem:[#allocation49_spill] sm:$0xff] %v8482_v57  ;;  %v8491_v30 = vor.u32 %v7742_v12, %v7025_v39  ;;  %v2986_v39 = vpop.f32.mrf.mxu0  ;;  %v8519_v12 = vld [vmem:[#allocation10] sm:$0xff] }
 0x226   :  { %3631 = vmatpush.bf16.msrb.mxu2 %v8464_v31  ;;  %3606 = vmatpush.bf16.msrb.mxu0 %v8470_v51  ;;  %9202 = vst [vmem:[#allocation50_spill] sm:$0xff] %v8486_v50  ;;  %v513_v46 = vperm.slane %v8519_v12, 6  ;;  %v3014_v37 = vpop.f32.mrf.mxu2 }
 0x227   :  { %9203 = vst [vmem:[#allocation51_spill] sm:$0xff] %v8488_v9 }
 0x228   :  { %3644 = vmatpush.bf16.msrb.mxu3 %v8467_v59  ;;  %3619 = vmatpush.bf16.msrb.mxu1 %v8474_v2  ;;  %3158 = vst [vmem:[#allocation2 + $0x70] sm:$0xff] %v2975_v4  ;;  %v2987_v43 = vadd.f32 %v2986_v39, %v513_v46 }
 0x229   :  { %9204 = vst [vmem:[#allocation52_spill] sm:$0xff] %v8491_v30  ;;  %v3028_v40 = vpop.f32.mrf.mxu3 }
 0x22a   :  { %3632 = vmatpush.bf16.msrb.mxu2 %v8476_v53  ;;  %3607 = vmatpush.bf16.msrb.mxu0 %v8482_v57  ;;  %v3001_v5 = vadd.f32 %v3000_v13, %v2987_v43  ;;  %v3002_v36 = vpop.f32.mrf.mxu1  ;;  %v9207_v13 = vld [vmem:[#allocation27_spill] sm:$0xff] }
 0x22c   :  { %3645 = vmatpush.bf16.msrb.mxu3 %v8479_v26  ;;  %3620 = vmatpush.bf16.msrb.mxu1 %v8486_v50  ;;  %v3015_v29 = vadd.f32 %v3014_v37, %v3001_v5  ;;  %v9208_v37 = vld [vmem:[#allocation28_spill] sm:$0xff] }
 0x22d   :  { %3608 = vmatmul.bf16.vlgmr.msrb.gmra.mxu0 %v9205_v55  ;;  %v2988_v1 = vpop.f32.mrf.mxu0 }
 0x22e   :  { %3633 = vmatpush.bf16.msrb.mxu2 %v8488_v9  ;;  %3754 = vmatpush.bf16.msra.mxu0 %v8290_v58  ;;  %v2989_v20 = vadd.f32 %v2988_v1, %v513_v46  ;;  %v3029_v4 = vadd.f32 %v3028_v40, %v3015_v29  ;;  %v3016_v43 = vpop.f32.mrf.mxu2  ;;  %v9213_v40 = vld [vmem:[#allocation34_spill] sm:$0xff] }
 0x22f   :  { %3621 = vmatmul.bf16.vlgmr.msrb.gmra.mxu1 %v9205_v55 }
 0x230   :  { %3646 = vmatpush.bf16.msrb.mxu3 %v8491_v30  ;;  %3767 = vmatpush.bf16.msra.mxu1 %v8292_v60  ;;  %v3003_v39 = vadd.f32 %v3002_v36, %v2989_v20  ;;  %v9212_v36 = vld [vmem:[#allocation33_spill] sm:$0xff] }
 0x231   :  { %3634 = vmatmul.bf16.vlgmr.msrb.gmra.mxu2 %v9205_v55  ;;  %v3030_v29 = vpop.f32.mrf.mxu3 }
 0x232   :  { %3780 = vmatpush.bf16.msra.mxu2 %v8294_v61  ;;  %3755 = vmatpush.bf16.msra.mxu0 %v8299_v14 }
 0x233   :  { %3647 = vmatmul.bf16.vlgmr.msrb.gmra.mxu3 %v9205_v55  ;;  %v9206_v55 = vld [vmem:[#allocation26_spill] sm:$0xff] }
 0x234   :  { %3793 = vmatpush.bf16.msra.mxu3 %v8296_v3  ;;  %3768 = vmatpush.bf16.msra.mxu1 %v8303_v15 }
 0x236   :  { %3781 = vmatpush.bf16.msra.mxu2 %v8305_v18  ;;  %3756 = vmatpush.bf16.msra.mxu0 %v8317_v35 }
 0x238   :  { %3794 = vmatpush.bf16.msra.mxu3 %v8311_v24  ;;  %3769 = vmatpush.bf16.msra.mxu1 %v8321_v19 }
 0x23a   :  { %3782 = vmatpush.bf16.msra.mxu2 %v8323_v34  ;;  %3757 = vmatpush.bf16.msra.mxu0 %v8329_v25 }
 0x23c   :  { %3795 = vmatpush.bf16.msra.mxu3 %v8326_v38  ;;  %3770 = vmatpush.bf16.msra.mxu1 %v8333_v47 }
 0x23d   :  { %v3042_v5 = vpop.f32.mrf.mxu0 }
 0x23e   :  { %3783 = vmatpush.bf16.msra.mxu2 %v8335_v33  ;;  %3758 = vmatpush.bf16.msra.mxu0 %v8341_v62  ;;  %v3043_v46 = vadd.f32 %v3042_v5, %v3029_v4  ;;  %v9215_v4 = vld [vmem:[#allocation36_spill] sm:$0xff]  ;;  %v9216_v5 = vld [vmem:[#allocation37_spill] sm:$0xff] }
 0x23f   :  { %v3056_v1 = vpop.f32.mrf.mxu1 }
 0x240   :  { %3796 = vmatpush.bf16.msra.mxu3 %v8338_v52  ;;  %3771 = vmatpush.bf16.msra.mxu1 %v8345_v63 }
 0x242   :  { %3784 = vmatpush.bf16.msra.mxu2 %v8347_v0  ;;  %3759 = vmatpush.bf16.msra.mxu0 %v8353_v22 }
 0x244   :  { %3797 = vmatpush.bf16.msra.mxu3 %v8350_v7  ;;  %3772 = vmatpush.bf16.msra.mxu1 %v8357_v27 }
 0x246   :  { %3785 = vmatpush.bf16.msra.mxu2 %v8359_v28  ;;  %3760 = vmatpush.bf16.msra.mxu0 %v8365_v41 }
 0x248   :  { %3798 = vmatpush.bf16.msra.mxu3 %v8362_v32  ;;  %3773 = vmatpush.bf16.msra.mxu1 %v8369_v44 }
 0x24a   :  { %3786 = vmatpush.bf16.msra.mxu2 %v8371_v45  ;;  %3761 = vmatpush.bf16.msra.mxu0 %v8377_v56 }
 0x24c   :  { %3799 = vmatpush.bf16.msra.mxu3 %v8374_v49  ;;  %3774 = vmatpush.bf16.msra.mxu1 %v8381_v6 }
 0x24e   :  { %3806 = vmatpush.bf16.msrb.mxu0 %v8388_v16  ;;  %3787 = vmatpush.bf16.msra.mxu2 %v8383_v8  ;;  %v9210_v16 = vld [vmem:[#allocation30_spill] sm:$0xff] }
 0x250   :  { %3819 = vmatpush.bf16.msrb.mxu1 %v8391_v21  ;;  %3800 = vmatpush.bf16.msra.mxu3 %v8386_v11  ;;  %v9209_v21 = vld [vmem:[#allocation29_spill] sm:$0xff]  ;;  %v9211_v11 = vld [vmem:[#allocation31_spill] sm:$0xff] }
 0x252   :  { %3832 = vmatpush.bf16.msrb.mxu2 %v8393_v23  ;;  %3807 = vmatpush.bf16.msrb.mxu0 %v8402_v42  ;;  %v3017_v23 = vadd.f32 %v3016_v43, %v3003_v39  ;;  %v3058_v43 = vpop.f32.mrf.mxu1 }
 0x254   :  { %3845 = vmatpush.bf16.msrb.mxu3 %v8396_v10  ;;  %3820 = vmatpush.bf16.msrb.mxu1 %v9206_v55  ;;  %v3057_v10 = vadd.f32 %v3056_v1, %v3043_v46  ;;  %v3031_v20 = vadd.f32 %v3030_v29, %v3017_v23  ;;  %v9217_v46 = vld [vmem:[#allocation38_spill] sm:$0xff]  ;;  %v3070_v29 = vpop.f32.mrf.mxu2 }
 0x255   :  { %v9219_v23 = vld [vmem:[#allocation42_spill] sm:$0xff] }
 0x256   :  { %3833 = vmatpush.bf16.msrb.mxu2 %v9207_v13  ;;  %3808 = vmatpush.bf16.msrb.mxu0 %v9209_v21  ;;  %3151 = vst [vmem:[#allocation2 + $0x8] sm:$0xff] %v3057_v10  ;;  %v3044_v21 = vpop.f32.mrf.mxu0  ;;  %v9218_v10 = vld [vmem:[#allocation41_spill] sm:$0xff] }
 0x257   :  { %v3045_v39 = vadd.f32 %v3044_v21, %v3031_v20  ;;  %v3084_v21 = vpop.f32.mrf.mxu3  ;;  %v514_v20 = vperm.slane %v8519_v12, 7 }
 0x258   :  { %3846 = vmatpush.bf16.msrb.mxu3 %v9208_v37  ;;  %3821 = vmatpush.bf16.msrb.mxu1 %v9210_v16  ;;  %v9214_v37 = vld [vmem:[#allocation35_spill] sm:$0xff] }
 0x259   :  { %v3059_v1 = vadd.f32 %v3058_v43, %v3045_v39  ;;  %v3071_v39 = vadd.f32 %v3070_v29, %v514_v20 }
 0x25a   :  { %3834 = vmatpush.bf16.msrb.mxu2 %v9211_v11  ;;  %3809 = vmatpush.bf16.msrb.mxu0 %v9212_v36 }
 0x25b   :  { %3159 = vst [vmem:[#allocation2 + $0x78] sm:$0xff] %v3059_v1 }
 0x25c   :  { %3847 = vmatpush.bf16.msrb.mxu3 %v8429_v17  ;;  %3822 = vmatpush.bf16.msrb.mxu1 %v9213_v40  ;;  %v3072_v43 = vpop.f32.mrf.mxu2 }
 0x25e   :  { %3835 = vmatpush.bf16.msrb.mxu2 %v9214_v37  ;;  %3810 = vmatpush.bf16.msrb.mxu0 %v9216_v5 }
 0x25f   :  { %v3086_v1 = vpop.f32.mrf.mxu3 }
 0x260   :  { %3848 = vmatpush.bf16.msrb.mxu3 %v9215_v4  ;;  %3823 = vmatpush.bf16.msrb.mxu1 %v9217_v46 }
 0x262   :  { %3836 = vmatpush.bf16.msrb.mxu2 %v8452_v48  ;;  %3811 = vmatpush.bf16.msrb.mxu0 %v9218_v10 }
 0x264   :  { %3849 = vmatpush.bf16.msrb.mxu3 %v8455_v54  ;;  %3824 = vmatpush.bf16.msrb.mxu1 %v9219_v23 }
 0x266   :  { %3837 = vmatpush.bf16.msrb.mxu2 %v8464_v31  ;;  %3812 = vmatpush.bf16.msrb.mxu0 %v8470_v51  ;;  %v3085_v51 = vadd.f32 %v3084_v21, %v3071_v39  ;;  %v3657_v39 = vld [vmem:[#allocation2] sm:$0x3] }
 0x268   :  { %3850 = vmatpush.bf16.msrb.mxu3 %v8467_v59  ;;  %3825 = vmatpush.bf16.msrb.mxu1 %v8474_v2  ;;  %v3073_v2 = vadd.f32 %v3072_v43, %v514_v20 }
 0x26a   :  { %3838 = vmatpush.bf16.msrb.mxu2 %v8476_v53  ;;  %3813 = vmatpush.bf16.msrb.mxu0 %v8482_v57  ;;  %v3098_v59 = vpop.f32.mrf.mxu0  ;;  %v3087_v12 = vadd.f32 %v3086_v1, %v3073_v2 }
 0x26b   :  { %v3099_v31 = vadd.f32 %v3098_v59, %v3085_v51 }
 0x26c   :  { %3851 = vmatpush.bf16.msrb.mxu3 %v8479_v26  ;;  %3826 = vmatpush.bf16.msrb.mxu1 %v8486_v50  ;;  %v3112_v53 = vpop.f32.mrf.mxu1 }
 0x26d   :  { %v3113_v23 = vadd.f32 %v3112_v53, %v3099_v31 }
 0x26e   :  { %3839 = vmatpush.bf16.msrb.mxu2 %v8488_v9 }
 0x270   :  { %3852 = vmatpush.bf16.msrb.mxu3 %v8491_v30 }
 0x272   :  { %v3100_v48 = vpop.f32.mrf.mxu0 }
 0x273   :  { %v3101_v50 = vadd.f32 %v3100_v48, %v3087_v12  ;;  %v3660_v48 = vld [vmem:[#allocation2 + $0x60] sm:$0xc0] }
 0x274   :  { %v3126_v10 = vpop.f32.mrf.mxu2  ;;  %v3114_v46 = vpop.f32.mrf.mxu1 }
 0x275   :  { %v3127_v26 = vadd.f32 %v3126_v10, %v3113_v23  ;;  %v3115_v29 = vadd.f32 %v3114_v46, %v3101_v50  ;;  %v3225_v23 = vlaneseq }
 0x276   :  { %v3140_v54 = vpop.f32.mrf.mxu3 }
 0x277   :  { %v3141_v57 = vadd.f32 %v3140_v54, %v3127_v26  ;;  %v8569_v54 = vshrl.u32 %v3225_v23, 7  ;;  %v3661_v26 = vld [vmem:[#allocation2 + $0x70] sm:$0xc0] }
 0x278   :  { %v3669_v50 = vrot.slane %v3661_v26, 4 }
 0x279   :  { %3152 = vst [vmem:[#allocation2 + $0x48] sm:$0xff] %v3141_v57  ;;  %v3668_v57 = vrot.slane %v3660_v48, 4  ;;  %vm3227_vm0 = vcmp.lt.s32.totalorder %v8569_v54, 2 }
 0x27a   :  { %9220 = vst [vmem:[#allocation26_spill] sm:$0xff] %v8569_v54  ;;  %v3678_v12 = vsel %vm3676_vm1, %v3657_v39, %v3669_v50  ;;  %v3662_v39 = vld [vmem:[#allocation2 + $0x78] sm:$0xc0] }
 0x27c   :  { %v3128_v9 = vpop.f32.mrf.mxu2 }
 0x27d   :  { %v3129_v30 = vadd.f32 %v3128_v9, %v3115_v29 }
 0x27e   :  { %v3142_v5 = vpop.f32.mrf.mxu3 }
 0x27f   :  { %v3143_v4 = vadd.f32 %v3142_v5, %v3129_v30  ;;  %v3656_v30 = vld [vmem:[#allocation2 + $0x30] sm:$0x3] }
 0x280   :  { %v3677_v5 = vsel %vm3676_vm1, %v3656_v30, %v3668_v57 }
 0x281   :  { %3160 = vst [vmem:[#allocation2 + $0x28] sm:$0xff] %v3143_v4 }
 0x288   :  { %v3663_v29 = vld [vmem:[#allocation2 + $0x28] sm:$0xc0] }
 0x28a   :  { %v3557_v21 = vpop.f32.mrf.mxu0 }
 0x28c   :  { %v3570_v20 = vpop.f32.mrf.mxu1 }
 0x292   :  { %v3559_v51 = vpop.f32.mrf.mxu0 }
 0x294   :  { %v3583_v31 = vpop.f32.mrf.mxu2  ;;  %v3572_v2 = vpop.f32.mrf.mxu1 }
 0x296   :  { %v3596_v59 = vpop.f32.mrf.mxu3 }
 0x29c   :  { %v3585_v10 = vpop.f32.mrf.mxu2 }
 0x29d   :  { %v3671_v10 = vrot.slane %v3663_v29, 4 }
 0x29e   :  { %v3598_v53 = vpop.f32.mrf.mxu3 }
 0x2aa   :  { %v3609_v9 = vpop.f32.mrf.mxu0 }
 0x2ab   :  { %v3652_v4 = vsel %vm3227_vm0, %v3557_v21, %v3609_v9  ;;  %v3659_v21 = vld [vmem:[#allocation2 + $0x18] sm:$0x3] }
 0x2ac   :  { %v3622_v46 = vpop.f32.mrf.mxu1  ;;  %v3681_v43 = vadd.f32 %v3677_v5, %v3652_v4  ;;  %v3680_v9 = vsel %vm3676_vm1, %v3659_v21, %v3671_v10 }
 0x2ad   :  { %v3653_v1 = vsel %vm3227_vm0, %v3570_v20, %v3622_v46 }
 0x2ae   :  { %v3682_v51 = vadd.f32 %v3678_v12, %v3653_v1  ;;  %v7253_v2 = vmul.f32 -1.442695, %v3681_v43  ;;  %v3670_v12 = vrot.slane %v3662_v39, 4 }
 0x2b0   :  { %v7254_v53 = vmul.f32 -1.442695, %v3682_v51  ;;  %7838 = vpow2.f32 %v7253_v2 }
 0x2b2   :  { %7840 = vpow2.f32 %v7254_v53  ;;  %v3611_v26 = vpop.f32.mrf.mxu0 }
 0x2b4   :  { %v3635_v23 = vpop.f32.mrf.mxu2  ;;  %v3624_v30 = vpop.f32.mrf.mxu1 }
 0x2b5   :  { %v3654_v51 = vsel %vm3227_vm0, %v3583_v31, %v3635_v23 }
 0x2b6   :  { %v3648_v48 = vpop.f32.mrf.mxu3  ;;  %v7839_v4 = vpop.eup %7838 }
 0x2b7   :  { %v3655_v57 = vsel %vm3227_vm0, %v3596_v59, %v3648_v48  ;;  %v3688_v46 = vadd.f32 1.0, %v7839_v4  ;;  %v3658_v59 = vld [vmem:[#allocation2 + $0x58] sm:$0x3] }
 0x2b8   :  { %v3684_v20 = vadd.f32 %v3680_v9, %v3655_v57  ;;  %v7841_v5 = vpop.eup %7840  ;;  %v3679_v53 = vsel %vm3676_vm1, %v3658_v59, %v3670_v12 }
 0x2b9   :  { %v3707_v43 = vadd.f32 1.0, %v7841_v5  ;;  %v3683_v48 = vadd.f32 %v3679_v53, %v3654_v51  ;;  %v3700_v4 = vand.u32 2147483648, %v3688_v46  ;;  %v3698_v39 = vand.u32 2147483647, %v3688_v46 }
 0x2ba   :  { %v7255_v50 = vmul.f32 -1.442695, %v3684_v20  ;;  %vm3694_vm4 = vweird.f32 %v3688_v46 }
 0x2bb   :  { %v3717_v23 = vand.u32 2147483647, %v3707_v43  ;;  %vm3713_vm5 = vweird.f32 %v3707_v43  ;;  %vm3699_vm7 = vcmp.eq.f32.partialorder %v3698_v39, 8.507059e+37 }
 0x2bc   :  { %7842 = vpow2.f32 %v7255_v50  ;;  %v3637_v1 = vpop.f32.mrf.mxu2  ;;  %v3719_v50 = vand.u32 2147483648, %v3707_v43 }
 0x2bd   :  { %7844 = vrcp.f32 %v3688_v46  ;;  %vm3718_vm9 = vcmp.eq.f32.partialorder %v3717_v23, 8.507059e+37 }
 0x2be   :  { %7846 = vrcp.f32 %v3707_v43  ;;  %v3650_v29 = vpop.f32.mrf.mxu3  ;;  %v3720_v59 = vor.u32 1.1754944e-38, %v3719_v50 }
 0x2bf   :  { %v3701_v29 = vor.u32 1.1754944e-38, %v3700_v4 }
 0x2c2   :  { %v7843_v2 = vpop.eup %7842 }
 0x2c3   :  { %v7845_v10 = vpop.eup %7844  ;;  %v3727_v21 = vadd.f32 1.0, %v7843_v2 }
 0x2c4   :  { %v7847_v26 = vpop.eup %7846  ;;  %v3690_v57 = vmul.f32 %v7845_v10, %v3688_v46  ;;  %vm3695_vm2 = vweird.f32 %v7845_v10 }
 0x2c5   :  { %v3709_v9 = vmul.f32 %v7847_v26, %v3707_v43  ;;  %7848 = vrcp.f32 %v3727_v21  ;;  %vm3714_vm3 = vweird.f32 %v7847_v26  ;;  %vm3696_vm6 = vmor %vm3694_vm4, %vm3695_vm2  ;;  %v3739_v4 = vand.u32 2147483648, %v3727_v21 }
 0x2c6   :  { %v3691_v30 = vsub.f32 1.0, %v3690_v57  ;;  %7850 = vtanh.f32 %v3683_v48  ;;  %vm3715_vm8 = vmor %vm3713_vm5, %vm3714_vm3  ;;  %vm3733_vm11 = vweird.f32 %v3727_v21 }
 0x2c7   :  { %v3710_v20 = vsub.f32 1.0, %v3709_v9  ;;  %v3740_v39 = vor.u32 1.1754944e-38, %v3739_v4  ;;  %v9236_v4 = vld [vmem:[#allocation43_spill] sm:$0xff] }
 0x2c8   :  { %v3692_v5 = vmul.f32 %v7845_v10, %v3691_v30 }
 0x2c9   :  { %v3711_v31 = vmul.f32 %v7847_v26, %v3710_v20 }
 0x2ca   :  { %v3693_v1 = vadd.f32 %v7845_v10, %v3692_v5 }
 0x2cb   :  { %v7849_v12 = vpop.eup %7848  ;;  %v3712_v51 = vadd.f32 %v7847_v26, %v3711_v31 }
 0x2cc   :  { %v3697_v2 = vsel %vm3696_vm6, %v7845_v10, %v3693_v1  ;;  %v3729_v53 = vmul.f32 %v7849_v12, %v3727_v21  ;;  %v7851_v48 = vpop.eup %7850  ;;  %vm3734_vm10 = vweird.f32 %v7849_v12  ;;  %v3737_v10 = vand.u32 2147483647, %v3727_v21  ;;  %v9222_v21 = vld [vmem:[#allocation22_spill] sm:$0xff] }
 0x2cd   :  { %v3702_v57 = vsel %vm3699_vm7, %v3701_v29, %v3697_v2  ;;  %v3716_v9 = vsel %vm3715_vm8, %v7847_v26, %v3712_v51  ;;  %vm3735_vm12 = vmor %vm3733_vm11, %vm3734_vm10  ;;  %v9224_v29 = vld [vmem:[#allocation24_spill] sm:$0xff]  ;;  %v9225_v51 = vld [vmem:[#allocation25_spill] sm:$0xff] }
 0x2ce   :  { %v3721_v30 = vsel %vm3718_vm9, %v3720_v59, %v3716_v9  ;;  %v3744_v20 = vmul.f32 %v7851_v48, %v3702_v57  ;;  %v3730_v54 = vsub.f32 1.0, %v3729_v53  ;;  %vm3738_vm13 = vcmp.eq.f32.partialorder %v3737_v10, 8.507059e+37  ;;  %v9226_v59 = vld [vmem:[#allocation28_spill] sm:$0xff]  ;;  %v9227_v2 = vld [vmem:[#allocation29_spill] sm:$0xff]  ;;  %v9228_v53 = vld [vmem:[#allocation35_spill] sm:$0xff] }
 0x2cf   :  { %v3743_v37 = vmul.f32 0.0, %v3721_v30  ;;  %v9229_v48 = vld [vmem:[#allocation36_spill] sm:$0xff]  ;;  %v9230_v57 = vld [vmem:[#allocation37_spill] sm:$0xff]  ;;  %v9231_v9 = vld [vmem:[#allocation38_spill] sm:$0xff] }
 0x2d0   :  { %v3731_v5 = vmul.f32 %v7849_v12, %v3730_v54  ;;  %v9221_v54 = vld [vmem:[#allocation21_spill] sm:$0xff]  ;;  %v9232_v30 = vld [vmem:[#allocation39_spill] sm:$0xff]  ;;  %v9237_v10 = vld [vmem:[#allocation44_spill] sm:$0xff] }
 0x2d1   :  { %v8584_v46 = vadd.f32 %v3744_v20, %v3743_v37  ;;  %v9233_v20 = vld [vmem:[#allocation40_spill] sm:$0xff] }
 0x2d2   :  { %v3732_v43 = vadd.f32 %v7849_v12, %v3731_v5  ;;  %v9234_v5 = vld [vmem:[#allocation41_spill] sm:$0xff] }
 0x2d3   :  { %7852 = vtanh.f32 %v8584_v46 }
 0x2d4   :  { %v3736_v50 = vsel %vm3735_vm12, %v7849_v12, %v3732_v43  ;;  %v9223_v12 = vld [vmem:[#allocation23_spill] sm:$0xff]  ;;  %v9235_v43 = vld [vmem:[#allocation42_spill] sm:$0xff] }
 0x2d5   :  { %v3741_v31 = vsel %vm3738_vm13, %v3740_v39, %v3736_v50  ;;  %v9238_v50 = vld [vmem:[#allocation45_spill] sm:$0xff]  ;;  %v9239_v39 = vld [vmem:[#allocation46_spill] sm:$0xff] }
 0x2d9   :  { %v7853_v26 = vpop.eup %7852 }
 0x2da   :  { %v3747_v23 = vmul.f32 %v7853_v26, %v3741_v31  ;;  %v9240_v26 = vld [vmem:[#allocation47_spill] sm:$0xff]  ;;  %v9241_v31 = vld [vmem:[#allocation48_spill] sm:$0xff] }
 0x2dc   :  { %v3748_v1 = vpack.c.bf16 %v3747_v23, %v3747_v23  ;;  %v9242_v23 = vld [vmem:[#allocation49_spill] sm:$0xff] }
 0x2de   :  { %3749 = vst [vmem:[#allocation3] sm:$0x1] %v3748_v1  ;;  %3762 = vmatmul.bf16.vlgmr.msra.gmra.mxu0 %v3748_v1  ;;  %3775 = vmatmul.bf16.vlgmr.msra.gmra.mxu1 %v3748_v1  ;;  %v3751_v37 = vrot.slane %v3748_v1, 6 }
 0x2df   :  { %3788 = vmatmul.bf16.vlgmr.msra.gmra.mxu2 %v3748_v1  ;;  %3801 = vmatmul.bf16.vlgmr.msra.gmra.mxu3 %v3748_v1 }
 0x2e0   :  { %3971 = vmatpush.bf16.msra.mxu0 %v8290_v58  ;;  %3984 = vmatpush.bf16.msra.mxu1 %v8292_v60  ;;  %3753 = vst [vmem:[#allocation3 + $0xc] sm:$0x8] %v3751_v37  ;;  %v9244_v37 = vld [vmem:[#allocation51_spill] sm:$0xff] }
 0x2e1   :  { %3997 = vmatpush.bf16.msra.mxu2 %v8294_v61  ;;  %4010 = vmatpush.bf16.msra.mxu3 %v8296_v3 }
 0x2e4   :  { %3972 = vmatpush.bf16.msra.mxu0 %v8299_v14  ;;  %3985 = vmatpush.bf16.msra.mxu1 %v8303_v15 }
 0x2e5   :  { %3998 = vmatpush.bf16.msra.mxu2 %v8305_v18  ;;  %4011 = vmatpush.bf16.msra.mxu3 %v8311_v24 }
 0x2e8   :  { %3973 = vmatpush.bf16.msra.mxu0 %v8317_v35  ;;  %3986 = vmatpush.bf16.msra.mxu1 %v8321_v19 }
 0x2e9   :  { %3999 = vmatpush.bf16.msra.mxu2 %v8323_v34  ;;  %4012 = vmatpush.bf16.msra.mxu3 %v8326_v38 }
 0x2ec   :  { %3974 = vmatpush.bf16.msra.mxu0 %v8329_v25  ;;  %3987 = vmatpush.bf16.msra.mxu1 %v8333_v47 }
 0x2ed   :  { %4000 = vmatpush.bf16.msra.mxu2 %v8335_v33  ;;  %4013 = vmatpush.bf16.msra.mxu3 %v8338_v52 }
 0x2ee   :  { %3814 = vmatmul.bf16.vlgmr.msrb.gmra.mxu0 %v3748_v1  ;;  %3827 = vmatmul.bf16.vlgmr.msrb.gmra.mxu1 %v3748_v1 }
 0x2ef   :  { %3840 = vmatmul.bf16.vlgmr.msrb.gmra.mxu2 %v3748_v1  ;;  %3853 = vmatmul.bf16.vlgmr.msrb.gmra.mxu3 %v3748_v1  ;;  %v9243_v1 = vld [vmem:[#allocation50_spill] sm:$0xff] }
 0x2f0   :  { %3975 = vmatpush.bf16.msra.mxu0 %v8341_v62  ;;  %3988 = vmatpush.bf16.msra.mxu1 %v8345_v63 }
 0x2f1   :  { %4001 = vmatpush.bf16.msra.mxu2 %v8347_v0  ;;  %4014 = vmatpush.bf16.msra.mxu3 %v8350_v7 }
 0x2f4   :  { %3976 = vmatpush.bf16.msra.mxu0 %v8353_v22  ;;  %3989 = vmatpush.bf16.msra.mxu1 %v8357_v27 }
 0x2f5   :  { %4002 = vmatpush.bf16.msra.mxu2 %v8359_v28  ;;  %4015 = vmatpush.bf16.msra.mxu3 %v8362_v32 }
 0x2f8   :  { %3977 = vmatpush.bf16.msra.mxu0 %v8365_v41  ;;  %3990 = vmatpush.bf16.msra.mxu1 %v8369_v44 }
 0x2f9   :  { %4003 = vmatpush.bf16.msra.mxu2 %v8371_v45  ;;  %4016 = vmatpush.bf16.msra.mxu3 %v8374_v49 }
 0x2fc   :  { %3978 = vmatpush.bf16.msra.mxu0 %v8377_v56  ;;  %3991 = vmatpush.bf16.msra.mxu1 %v8381_v6 }
 0x2fd   :  { %4004 = vmatpush.bf16.msra.mxu2 %v8383_v8  ;;  %4017 = vmatpush.bf16.msra.mxu3 %v9221_v54 }
 0x300   :  { %4023 = vmatpush.bf16.msrb.mxu0 %v9222_v21  ;;  %4036 = vmatpush.bf16.msrb.mxu1 %v9223_v12 }
 0x301   :  { %4049 = vmatpush.bf16.msrb.mxu2 %v9224_v29  ;;  %4062 = vmatpush.bf16.msrb.mxu3 %v9225_v51 }
 0x304   :  { %4024 = vmatpush.bf16.msrb.mxu0 %v8402_v42  ;;  %4037 = vmatpush.bf16.msrb.mxu1 %v9206_v55 }
 0x305   :  { %4050 = vmatpush.bf16.msrb.mxu2 %v9207_v13  ;;  %4063 = vmatpush.bf16.msrb.mxu3 %v9226_v59 }
 0x308   :  { %4025 = vmatpush.bf16.msrb.mxu0 %v9227_v2  ;;  %4038 = vmatpush.bf16.msrb.mxu1 %v9210_v16  ;;  %v3869_v16 = vld [vmem:[#allocation2 + $0x28] sm:$0x30] }
 0x309   :  { %4051 = vmatpush.bf16.msrb.mxu2 %v9211_v11  ;;  %4064 = vmatpush.bf16.msrb.mxu3 %v8429_v17 }
 0x30c   :  { %4026 = vmatpush.bf16.msrb.mxu0 %v9212_v36  ;;  %4039 = vmatpush.bf16.msrb.mxu1 %v9213_v40 }
 0x30d   :  { %4052 = vmatpush.bf16.msrb.mxu2 %v9228_v53  ;;  %4065 = vmatpush.bf16.msrb.mxu3 %v9229_v48 }
 0x310   :  { %4027 = vmatpush.bf16.msrb.mxu0 %v9230_v57  ;;  %4040 = vmatpush.bf16.msrb.mxu1 %v9231_v9  ;;  %v3866_v9 = vld [vmem:[#allocation2 + $0x60] sm:$0x30]  ;;  %v3862_v57 = vld [vmem:[#allocation2 + $0x30] sm:$0xc] }
 0x311   :  { %4053 = vmatpush.bf16.msrb.mxu2 %v9232_v30  ;;  %4066 = vmatpush.bf16.msrb.mxu3 %v9233_v20  ;;  %v3886_v48 = vrot.slane %v3866_v9, 2  ;;  %v3874_v40 = vrot.slane %v3862_v57, 2  ;;  %v3889_v57 = vrot.slane %v3869_v16, 2 }
 0x313   :  { %v3894_v11 = vsel %vm3676_vm1, %v3874_v40, %v3886_v48 }
 0x314   :  { %4028 = vmatpush.bf16.msrb.mxu0 %v9234_v5  ;;  %4041 = vmatpush.bf16.msrb.mxu1 %v9235_v43  ;;  %v9245_v5 = vld [vmem:[#allocation52_spill] sm:$0xff] }
 0x315   :  { %4054 = vmatpush.bf16.msrb.mxu2 %v9236_v4  ;;  %4067 = vmatpush.bf16.msrb.mxu3 %v9237_v10 }
 0x318   :  { %4029 = vmatpush.bf16.msrb.mxu0 %v9238_v50  ;;  %4042 = vmatpush.bf16.msrb.mxu1 %v9239_v39  ;;  %v3867_v39 = vld [vmem:[#allocation2 + $0x70] sm:$0x30] }
 0x319   :  { %4055 = vmatpush.bf16.msrb.mxu2 %v9240_v26  ;;  %4068 = vmatpush.bf16.msrb.mxu3 %v9241_v31  ;;  %v3863_v26 = vld [vmem:[#allocation2] sm:$0xc]  ;;  %v3887_v31 = vrot.slane %v3867_v39, 2  ;;  %v3865_v39 = vld [vmem:[#allocation2 + $0x18] sm:$0xc] }
 0x31c   :  { %4030 = vmatpush.bf16.msrb.mxu0 %v9242_v23  ;;  %4043 = vmatpush.bf16.msrb.mxu1 %v9243_v1  ;;  %v3875_v1 = vrot.slane %v3863_v26, 2  ;;  %v3877_v26 = vrot.slane %v3865_v39, 2 }
 0x31d   :  { %4056 = vmatpush.bf16.msrb.mxu2 %v9244_v37  ;;  %4069 = vmatpush.bf16.msrb.mxu3 %v9245_v5 }
 0x31e   :  { %v3897_v40 = vsel %vm3676_vm1, %v3877_v26, %v3889_v57 }
 0x35b   :  { %v3763_v43 = vpop.f32.mrf.mxu0  ;;  %v3776_v4 = vpop.f32.mrf.mxu1 }
 0x362   :  { %v3789_v20 = vpop.f32.mrf.mxu2  ;;  %v3802_v10 = vpop.f32.mrf.mxu3 }
 0x363   :  { %v3765_v30 = vpop.f32.mrf.mxu0  ;;  %v3778_v50 = vpop.f32.mrf.mxu1 }
 0x364   :  { %v3895_v50 = vsel %vm3676_vm1, %v3875_v1, %v3887_v31 }
 0x36a   :  { %v3791_v53 = vpop.f32.mrf.mxu2  ;;  %v3804_v23 = vpop.f32.mrf.mxu3 }
 0x36b   :  { %v3815_v36 = vpop.f32.mrf.mxu0  ;;  %v3828_v37 = vpop.f32.mrf.mxu1 }
 0x36c   :  { %v3858_v5 = vsel %vm3227_vm0, %v3763_v43, %v3815_v36  ;;  %v3859_v30 = vsel %vm3227_vm0, %v3776_v4, %v3828_v37  ;;  %v3864_v37 = vld [vmem:[#allocation2 + $0x58] sm:$0xc] }
 0x36d   :  { %v3898_v2 = vadd.f32 %v3894_v11, %v3858_v5  ;;  %v3899_v9 = vadd.f32 %v3895_v50, %v3859_v30 }
 0x36f   :  { %v7256_v53 = vmul.f32 -1.442695, %v3898_v2  ;;  %v7257_v23 = vmul.f32 -1.442695, %v3899_v9  ;;  %v3868_v2 = vld [vmem:[#allocation2 + $0x78] sm:$0x30] }
 0x370   :  { %v3888_v9 = vrot.slane %v3868_v2, 2 }
 0x371   :  { %7854 = vpow2.f32 %v7256_v53 }
 0x372   :  { %7856 = vpow2.f32 %v7257_v23  ;;  %v3841_v59 = vpop.f32.mrf.mxu2  ;;  %v3854_v13 = vpop.f32.mrf.mxu3 }
 0x373   :  { %v3861_v36 = vsel %vm3227_vm0, %v3802_v10, %v3854_v13  ;;  %v3817_v48 = vpop.f32.mrf.mxu0  ;;  %v3830_v43 = vpop.f32.mrf.mxu1  ;;  %v3860_v13 = vsel %vm3227_vm0, %v3789_v20, %v3841_v59  ;;  %v3876_v10 = vrot.slane %v3864_v37, 2 }
 0x374   :  { %v3901_v4 = vadd.f32 %v3897_v40, %v3861_v36 }
 0x375   :  { %v3896_v53 = vsel %vm3676_vm1, %v3876_v10, %v3888_v9 }
 0x376   :  { %v7258_v31 = vmul.f32 -1.442695, %v3901_v4  ;;  %v3900_v26 = vadd.f32 %v3896_v53, %v3860_v13 }
 0x377   :  { %v7855_v11 = vpop.eup %7854 }
 0x378   :  { %v7857_v5 = vpop.eup %7856  ;;  %v3905_v1 = vadd.f32 1.0, %v7855_v11  ;;  %7858 = vpow2.f32 %v7258_v31 }
 0x379   :  { %v3924_v16 = vadd.f32 1.0, %v7857_v5 }
 0x37a   :  { %7860 = vrcp.f32 %v3905_v1  ;;  %v3843_v30 = vpop.f32.mrf.mxu2  ;;  %v3856_v50 = vpop.f32.mrf.mxu3  ;;  %v3917_v31 = vand.u32 2147483648, %v3905_v1  ;;  %v3915_v2 = vand.u32 2147483647, %v3905_v1  ;;  %vm3911_vm2 = vweird.f32 %v3905_v1 }
 0x37b   :  { %7862 = vrcp.f32 %v3924_v16  ;;  %v3936_v11 = vand.u32 2147483648, %v3924_v16  ;;  %v3934_v20 = vand.u32 2147483647, %v3924_v16  ;;  %vm3930_vm3 = vweird.f32 %v3924_v16 }
 0x37c   :  { %v3918_v50 = vor.u32 1.1754944e-38, %v3917_v31  ;;  %vm3916_vm6 = vcmp.eq.f32.partialorder %v3915_v2, 8.507059e+37 }
 0x37d   :  { %v3937_v10 = vor.u32 1.1754944e-38, %v3936_v11  ;;  %vm3935_vm7 = vcmp.eq.f32.partialorder %v3934_v20, 8.507059e+37 }
 0x37e   :  { %v7859_v39 = vpop.eup %7858 }
 0x37f   :  { %v3944_v23 = vadd.f32 1.0, %v7859_v39 }
 0x380   :  { %v7861_v57 = vpop.eup %7860 }
 0x381   :  { %v7863_v36 = vpop.eup %7862  ;;  %v3907_v40 = vmul.f32 %v7861_v57, %v3905_v1  ;;  %7864 = vrcp.f32 %v3944_v23  ;;  %vm3912_vm14 = vweird.f32 %v7861_v57  ;;  %v3956_v31 = vand.u32 2147483648, %v3944_v23 }
 0x382   :  { %v3926_v48 = vmul.f32 %v7863_v36, %v3924_v16  ;;  %7866 = vtanh.f32 %v3900_v26  ;;  %vm3931_vm15 = vweird.f32 %v7863_v36  ;;  %vm3913_vm4 = vmor %vm3911_vm2, %vm3912_vm14  ;;  %vm3950_vm9 = vweird.f32 %v3944_v23 }
 0x383   :  { %v3908_v43 = vsub.f32 1.0, %v3907_v40  ;;  %vm3932_vm5 = vmor %vm3930_vm3, %vm3931_vm15  ;;  %v3957_v2 = vor.u32 1.1754944e-38, %v3956_v31  ;;  %v9263_v31 = vld [vmem:[#allocation43_spill] sm:$0xff] }
 0x384   :  { %v3927_v4 = vsub.f32 1.0, %v3926_v48 }
 0x385   :  { %v3909_v5 = vmul.f32 %v7861_v57, %v3908_v43 }
 0x386   :  { %v3928_v59 = vmul.f32 %v7863_v36, %v3927_v4 }
 0x387   :  { %v7865_v37 = vpop.eup %7864  ;;  %v3910_v30 = vadd.f32 %v7861_v57, %v3909_v5 }
 0x388   :  { %v3929_v9 = vadd.f32 %v7863_v36, %v3928_v59  ;;  %v3946_v13 = vmul.f32 %v7865_v37, %v3944_v23  ;;  %v7867_v53 = vpop.eup %7866  ;;  %vm3951_vm8 = vweird.f32 %v7865_v37 }
 0x389   :  { %v3914_v39 = vsel %vm3913_vm4, %v7861_v57, %v3910_v30  ;;  %v3954_v57 = vand.u32 2147483647, %v3944_v23  ;;  %vm3952_vm10 = vmor %vm3950_vm9, %vm3951_vm8  ;;  %v9248_v23 = vld [vmem:[#allocation28_spill] sm:$0xff] }
 0x38a   :  { %v3919_v26 = vsel %vm3916_vm6, %v3918_v50, %v3914_v39  ;;  %v3933_v40 = vsel %vm3932_vm5, %v7863_v36, %v3929_v9  ;;  %v3947_v48 = vsub.f32 1.0, %v3946_v13  ;;  %v9250_v50 = vld [vmem:[#allocation30_spill] sm:$0xff]  ;;  %v9251_v9 = vld [vmem:[#allocation31_spill] sm:$0xff]  ;;  %v9252_v13 = vld [vmem:[#allocation32_spill] sm:$0xff] }
 0x38b   :  { %v3938_v43 = vsel %vm3935_vm7, %v3937_v10, %v3933_v40  ;;  %v3961_v4 = vmul.f32 %v7867_v53, %v3919_v26  ;;  %vm3955_vm11 = vcmp.eq.f32.partialorder %v3954_v57, 8.507059e+37  ;;  %v9253_v10 = vld [vmem:[#allocation33_spill] sm:$0xff]  ;;  %v9254_v39 = vld [vmem:[#allocation34_spill] sm:$0xff]  ;;  %v9255_v53 = vld [vmem:[#allocation35_spill] sm:$0xff] }
 0x38c   :  { %v3960_v17 = vmul.f32 %v3938_v43, %v8584_v46  ;;  %v3948_v5 = vmul.f32 %v7865_v37, %v3947_v48  ;;  %v9256_v26 = vld [vmem:[#allocation36_spill] sm:$0xff]  ;;  %v9257_v40 = vld [vmem:[#allocation37_spill] sm:$0xff]  ;;  %v9258_v48 = vld [vmem:[#allocation38_spill] sm:$0xff] }
 0x38d   :  { %v9259_v43 = vld [vmem:[#allocation39_spill] sm:$0xff]  ;;  %v9264_v57 = vld [vmem:[#allocation44_spill] sm:$0xff] }
 0x38e   :  { %v8664_v1 = vadd.f32 %v3961_v4, %v3960_v17  ;;  %v3949_v16 = vadd.f32 %v7865_v37, %v3948_v5  ;;  %v9247_v17 = vld [vmem:[#allocation27_spill] sm:$0xff]  ;;  %v9260_v4 = vld [vmem:[#allocation40_spill] sm:$0xff]  ;;  %v9261_v5 = vld [vmem:[#allocation41_spill] sm:$0xff] }
 0x390   :  { %7868 = vtanh.f32 %v8664_v1  ;;  %v3953_v11 = vsel %vm3952_vm10, %v7865_v37, %v3949_v16  ;;  %v9249_v37 = vld [vmem:[#allocation29_spill] sm:$0xff]  ;;  %v9262_v16 = vld [vmem:[#allocation42_spill] sm:$0xff] }
 0x391   :  { %v3958_v59 = vsel %vm3955_vm11, %v3957_v2, %v3953_v11  ;;  %v9265_v11 = vld [vmem:[#allocation45_spill] sm:$0xff]  ;;  %v9266_v2 = vld [vmem:[#allocation46_spill] sm:$0xff] }
 0x396   :  { %v7869_v36 = vpop.eup %7868 }
 0x397   :  { %v3964_v20 = vmul.f32 %v7869_v36, %v3958_v59  ;;  %v9267_v36 = vld [vmem:[#allocation47_spill] sm:$0xff]  ;;  %v9268_v59 = vld [vmem:[#allocation48_spill] sm:$0xff] }
 0x399   :  { %v3965_v30 = vpack.c.bf16 %v3964_v20, %v3964_v20  ;;  %v9269_v20 = vld [vmem:[#allocation49_spill] sm:$0xff] }
 0x39b   :  { %3979 = vmatmul.bf16.vlgmr.msra.gmra.mxu0 %v3965_v30  ;;  %3992 = vmatmul.bf16.vlgmr.msra.gmra.mxu1 %v3965_v30  ;;  %v3967_v46 = vrot.slane %v3965_v30, 7 }
 0x39c   :  { %4005 = vmatmul.bf16.vlgmr.msra.gmra.mxu2 %v3965_v30  ;;  %4018 = vmatmul.bf16.vlgmr.msra.gmra.mxu3 %v3965_v30 }
 0x39d   :  { %4176 = vmatpush.bf16.msra.mxu0 %v8290_v58  ;;  %4189 = vmatpush.bf16.msra.mxu1 %v8292_v60  ;;  %3969 = vst [vmem:[#allocation3] sm:$0x2] %v3967_v46 }
 0x39e   :  { %4202 = vmatpush.bf16.msra.mxu2 %v8294_v61  ;;  %4215 = vmatpush.bf16.msra.mxu3 %v8296_v3  ;;  %3970 = vst [vmem:[#allocation3 + $0xc] sm:$0x4] %v3967_v46  ;;  %v9271_v46 = vld [vmem:[#allocation51_spill] sm:$0xff] }
 0x3a1   :  { %4177 = vmatpush.bf16.msra.mxu0 %v8299_v14  ;;  %4190 = vmatpush.bf16.msra.mxu1 %v8303_v15 }
 0x3a2   :  { %4203 = vmatpush.bf16.msra.mxu2 %v8305_v18  ;;  %4216 = vmatpush.bf16.msra.mxu3 %v8311_v24 }
 0x3a5   :  { %4178 = vmatpush.bf16.msra.mxu0 %v8317_v35  ;;  %4191 = vmatpush.bf16.msra.mxu1 %v8321_v19 }
 0x3a6   :  { %4204 = vmatpush.bf16.msra.mxu2 %v8323_v34  ;;  %4217 = vmatpush.bf16.msra.mxu3 %v8326_v38 }
 0x3a9   :  { %4179 = vmatpush.bf16.msra.mxu0 %v8329_v25  ;;  %4192 = vmatpush.bf16.msra.mxu1 %v8333_v47 }
 0x3aa   :  { %4205 = vmatpush.bf16.msra.mxu2 %v8335_v33  ;;  %4218 = vmatpush.bf16.msra.mxu3 %v8338_v52 }
 0x3ab   :  { %4031 = vmatmul.bf16.vlgmr.msrb.gmra.mxu0 %v3965_v30  ;;  %4044 = vmatmul.bf16.vlgmr.msrb.gmra.mxu1 %v3965_v30 }
 0x3ac   :  { %4057 = vmatmul.bf16.vlgmr.msrb.gmra.mxu2 %v3965_v30  ;;  %4070 = vmatmul.bf16.vlgmr.msrb.gmra.mxu3 %v3965_v30  ;;  %v9270_v30 = vld [vmem:[#allocation50_spill] sm:$0xff] }
 0x3ad   :  { %4180 = vmatpush.bf16.msra.mxu0 %v8341_v62  ;;  %4193 = vmatpush.bf16.msra.mxu1 %v8345_v63 }
 0x3ae   :  { %4206 = vmatpush.bf16.msra.mxu2 %v8347_v0  ;;  %4219 = vmatpush.bf16.msra.mxu3 %v8350_v7 }
 0x3b1   :  { %4181 = vmatpush.bf16.msra.mxu0 %v8353_v22  ;;  %4194 = vmatpush.bf16.msra.mxu1 %v8357_v27 }
 0x3b2   :  { %4207 = vmatpush.bf16.msra.mxu2 %v8359_v28  ;;  %4220 = vmatpush.bf16.msra.mxu3 %v8362_v32 }
 0x3b5   :  { %4182 = vmatpush.bf16.msra.mxu0 %v8365_v41  ;;  %4195 = vmatpush.bf16.msra.mxu1 %v8369_v44 }
 0x3b6   :  { %4208 = vmatpush.bf16.msra.mxu2 %v8371_v45  ;;  %4221 = vmatpush.bf16.msra.mxu3 %v8374_v49 }
 0x3b9   :  { %4183 = vmatpush.bf16.msra.mxu0 %v8377_v56  ;;  %4196 = vmatpush.bf16.msra.mxu1 %v8381_v6 }
 0x3ba   :  { %4209 = vmatpush.bf16.msra.mxu2 %v8383_v8  ;;  %4222 = vmatpush.bf16.msra.mxu3 %v9221_v54 }
 0x3bd   :  { %4228 = vmatpush.bf16.msrb.mxu0 %v9222_v21  ;;  %4241 = vmatpush.bf16.msrb.mxu1 %v9223_v12 }
 0x3be   :  { %4254 = vmatpush.bf16.msrb.mxu2 %v9224_v29  ;;  %4267 = vmatpush.bf16.msrb.mxu3 %v9225_v51 }
 0x3c1   :  { %4229 = vmatpush.bf16.msrb.mxu0 %v8402_v42  ;;  %4242 = vmatpush.bf16.msrb.mxu1 %v9206_v55 }
 0x3c2   :  { %4255 = vmatpush.bf16.msrb.mxu2 %v9247_v17  ;;  %4268 = vmatpush.bf16.msrb.mxu3 %v9248_v23 }
 0x3c5   :  { %4230 = vmatpush.bf16.msrb.mxu0 %v9249_v37  ;;  %4243 = vmatpush.bf16.msrb.mxu1 %v9250_v50  ;;  %v4082_v50 = vld [vmem:[#allocation2 + $0x18] sm:$0x30] }
 0x3c6   :  { %4256 = vmatpush.bf16.msrb.mxu2 %v9251_v9  ;;  %4269 = vmatpush.bf16.msrb.mxu3 %v9252_v13 }
 0x3c9   :  { %4231 = vmatpush.bf16.msrb.mxu0 %v9253_v10  ;;  %4244 = vmatpush.bf16.msrb.mxu1 %v9254_v39 }
 0x3ca   :  { %4257 = vmatpush.bf16.msrb.mxu2 %v9255_v53  ;;  %4270 = vmatpush.bf16.msrb.mxu3 %v9256_v26 }
 0x3cd   :  { %4232 = vmatpush.bf16.msrb.mxu0 %v9257_v40  ;;  %4245 = vmatpush.bf16.msrb.mxu1 %v9258_v48  ;;  %v4079_v48 = vld [vmem:[#allocation2 + $0x30] sm:$0x30]  ;;  %v4083_v40 = vld [vmem:[#allocation2 + $0x60] sm:$0xc] }
 0x3ce   :  { %4258 = vmatpush.bf16.msrb.mxu2 %v9259_v43  ;;  %4271 = vmatpush.bf16.msrb.mxu3 %v9260_v4  ;;  %v4091_v53 = vrot.slane %v4079_v48, 4  ;;  %v4094_v48 = vrot.slane %v4082_v50, 4 }
 0x3d1   :  { %4233 = vmatpush.bf16.msrb.mxu0 %v9261_v5  ;;  %4246 = vmatpush.bf16.msrb.mxu1 %v9262_v16  ;;  %v9272_v5 = vld [vmem:[#allocation52_spill] sm:$0xff] }
 0x3d2   :  { %4259 = vmatpush.bf16.msrb.mxu2 %v9263_v31  ;;  %4272 = vmatpush.bf16.msrb.mxu3 %v9264_v57 }
 0x3d5   :  { %4234 = vmatpush.bf16.msrb.mxu0 %v9265_v11  ;;  %4247 = vmatpush.bf16.msrb.mxu1 %v9266_v2  ;;  %v4080_v2 = vld [vmem:[#allocation2] sm:$0x30] }
 0x3d6   :  { %4260 = vmatpush.bf16.msrb.mxu2 %v9267_v36  ;;  %4273 = vmatpush.bf16.msrb.mxu3 %v9268_v59  ;;  %v4084_v36 = vld [vmem:[#allocation2 + $0x70] sm:$0xc] }
 0x3d9   :  { %4235 = vmatpush.bf16.msrb.mxu0 %v9269_v20  ;;  %4248 = vmatpush.bf16.msrb.mxu1 %v9270_v30  ;;  %v4092_v20 = vrot.slane %v4080_v2, 4 }
 0x3da   :  { %4261 = vmatpush.bf16.msrb.mxu2 %v9271_v46  ;;  %4274 = vmatpush.bf16.msrb.mxu3 %v9272_v5  ;;  %v4099_v5 = vsel %vm3676_vm1, %v4091_v53, %v4083_v40 }
 0x418   :  { %v3980_v16 = vpop.f32.mrf.mxu0  ;;  %v3993_v31 = vpop.f32.mrf.mxu1 }
 0x41f   :  { %v4006_v4 = vpop.f32.mrf.mxu2  ;;  %v4019_v57 = vpop.f32.mrf.mxu3 }
 0x420   :  { %v3982_v43 = vpop.f32.mrf.mxu0  ;;  %v3995_v11 = vpop.f32.mrf.mxu1 }
 0x421   :  { %v4100_v43 = vsel %vm3676_vm1, %v4092_v20, %v4084_v36 }
 0x427   :  { %v4008_v26 = vpop.f32.mrf.mxu2  ;;  %v4021_v59 = vpop.f32.mrf.mxu3 }
 0x428   :  { %v4032_v39 = vpop.f32.mrf.mxu0  ;;  %v4045_v30 = vpop.f32.mrf.mxu1  ;;  %v4086_v59 = vld [vmem:[#allocation2 + $0x28] sm:$0xc] }
 0x429   :  { %v4075_v46 = vsel %vm3227_vm0, %v3980_v16, %v4032_v39  ;;  %v4076_v13 = vsel %vm3227_vm0, %v3993_v31, %v4045_v30  ;;  %v4102_v53 = vsel %vm3676_vm1, %v4094_v48, %v4086_v59 }
 0x42a   :  { %v4103_v11 = vadd.f32 %v4099_v5, %v4075_v46  ;;  %v4104_v9 = vadd.f32 %v4100_v43, %v4076_v13  ;;  %v4085_v46 = vld [vmem:[#allocation2 + $0x78] sm:$0xc] }
 0x42c   :  { %v7259_v37 = vmul.f32 -1.442695, %v4103_v11  ;;  %v7260_v26 = vmul.f32 -1.442695, %v4104_v9 }
 0x42e   :  { %7870 = vpow2.f32 %v7259_v37  ;;  %v4081_v37 = vld [vmem:[#allocation2 + $0x58] sm:$0x30] }
 0x42f   :  { %7872 = vpow2.f32 %v7260_v26  ;;  %v4058_v2 = vpop.f32.mrf.mxu2  ;;  %v4071_v23 = vpop.f32.mrf.mxu3 }
 0x430   :  { %v4078_v39 = vsel %vm3227_vm0, %v4019_v57, %v4071_v23  ;;  %v4034_v40 = vpop.f32.mrf.mxu0  ;;  %v4047_v16 = vpop.f32.mrf.mxu1  ;;  %v4077_v23 = vsel %vm3227_vm0, %v4006_v4, %v4058_v2  ;;  %v4093_v57 = vrot.slane %v4081_v37, 4 }
 0x431   :  { %v4106_v31 = vadd.f32 %v4102_v53, %v4078_v39 }
 0x432   :  { %v4101_v11 = vsel %vm3676_vm1, %v4093_v57, %v4085_v46 }
 0x433   :  { %v7261_v36 = vmul.f32 -1.442695, %v4106_v31  ;;  %v4105_v48 = vadd.f32 %v4101_v11, %v4077_v23 }
 0x434   :  { %v7871_v5 = vpop.eup %7870 }
 0x435   :  { %v7873_v13 = vpop.eup %7872  ;;  %v4110_v20 = vadd.f32 1.0, %v7871_v5  ;;  %7874 = vpow2.f32 %v7261_v36 }
 0x436   :  { %v4129_v9 = vadd.f32 1.0, %v7873_v13 }
 0x437   :  { %7876 = vrcp.f32 %v4110_v20  ;;  %v4060_v50 = vpop.f32.mrf.mxu2  ;;  %v4073_v30 = vpop.f32.mrf.mxu3  ;;  %v4122_v36 = vand.u32 2147483648, %v4110_v20  ;;  %vm4116_vm14 = vweird.f32 %v4110_v20 }
 0x438   :  { %7878 = vrcp.f32 %v4129_v9  ;;  %v4141_v5 = vand.u32 2147483648, %v4129_v9  ;;  %v4120_v50 = vand.u32 2147483647, %v4110_v20  ;;  %v4139_v2 = vand.u32 2147483647, %v4129_v9 }
 0x439   :  { %vm4135_vm15 = vweird.f32 %v4129_v9  ;;  %v4123_v46 = vor.u32 1.1754944e-38, %v4122_v36 }
 0x43a   :  { %vm4121_vm4 = vcmp.eq.f32.partialorder %v4120_v50, 8.507059e+37  ;;  %vm4140_vm5 = vcmp.eq.f32.partialorder %v4139_v2, 8.507059e+37 }
 0x43b   :  { %v7875_v43 = vpop.eup %7874 }
 0x43c   :  { %v4149_v26 = vadd.f32 1.0, %v7875_v43  ;;  %v4142_v43 = vor.u32 1.1754944e-38, %v4141_v5 }
 0x43d   :  { %v7877_v59 = vpop.eup %7876 }
 0x43e   :  { %v7879_v39 = vpop.eup %7878  ;;  %v4112_v53 = vmul.f32 %v7877_v59, %v4110_v20  ;;  %7880 = vrcp.f32 %v4149_v26  ;;  %vm4117_vm12 = vweird.f32 %v7877_v59  ;;  %v4161_v36 = vand.u32 2147483648, %v4149_v26 }
 0x43f   :  { %v4131_v40 = vmul.f32 %v7879_v39, %v4129_v9  ;;  %7882 = vtanh.f32 %v4105_v48  ;;  %vm4136_vm13 = vweird.f32 %v7879_v39  ;;  %vm4118_vm2 = vmor %vm4116_vm14, %vm4117_vm12  ;;  %vm4155_vm7 = vweird.f32 %v4149_v26 }
 0x440   :  { %v4113_v16 = vsub.f32 1.0, %v4112_v53  ;;  %vm4137_vm3 = vmor %vm4135_vm15, %vm4136_vm13  ;;  %v4162_v50 = vor.u32 1.1754944e-38, %v4161_v36  ;;  %v9290_v36 = vld [vmem:[#allocation43_spill] sm:$0xff] }
 0x441   :  { %v4132_v31 = vsub.f32 1.0, %v4131_v40 }
 0x442   :  { %v4114_v13 = vmul.f32 %v7877_v59, %v4113_v16 }
 0x443   :  { %v4133_v4 = vmul.f32 %v7879_v39, %v4132_v31 }
 0x444   :  { %v7881_v37 = vpop.eup %7880  ;;  %v4115_v30 = vadd.f32 %v7877_v59, %v4114_v13 }
 0x445   :  { %v4134_v23 = vadd.f32 %v7879_v39, %v4133_v4  ;;  %v4151_v57 = vmul.f32 %v7881_v37, %v4149_v26  ;;  %v7883_v48 = vpop.eup %7882  ;;  %vm4156_vm6 = vweird.f32 %v7881_v37 }
 0x446   :  { %v4119_v11 = vsel %vm4118_vm2, %v7877_v59, %v4115_v30  ;;  %v4159_v59 = vand.u32 2147483647, %v4149_v26  ;;  %vm4157_vm8 = vmor %vm4155_vm7, %vm4156_vm6  ;;  %v9276_v26 = vld [vmem:[#allocation29_spill] sm:$0xff] }
 0x447   :  { %v4124_v53 = vsel %vm4121_vm4, %v4123_v46, %v4119_v11  ;;  %v4138_v40 = vsel %vm4137_vm3, %v7879_v39, %v4134_v23  ;;  %v4152_v16 = vsub.f32 1.0, %v4151_v57  ;;  %v9278_v46 = vld [vmem:[#allocation31_spill] sm:$0xff]  ;;  %v9279_v23 = vld [vmem:[#allocation32_spill] sm:$0xff]  ;;  %v9280_v57 = vld [vmem:[#allocation33_spill] sm:$0xff] }
 0x448   :  { %v4143_v31 = vsel %vm4140_vm5, %v4142_v43, %v4138_v40  ;;  %v4166_v10 = vmul.f32 %v7883_v48, %v4124_v53  ;;  %vm4160_vm9 = vcmp.eq.f32.partialorder %v4159_v59, 8.507059e+37  ;;  %v9281_v43 = vld [vmem:[#allocation34_spill] sm:$0xff]  ;;  %v9282_v11 = vld [vmem:[#allocation35_spill] sm:$0xff]  ;;  %v9283_v48 = vld [vmem:[#allocation36_spill] sm:$0xff] }
 0x449   :  { %v4165_v17 = vmul.f32 %v4143_v31, %v8664_v1  ;;  %v4153_v13 = vmul.f32 %v7881_v37, %v4152_v16  ;;  %v9284_v53 = vld [vmem:[#allocation37_spill] sm:$0xff]  ;;  %v9285_v40 = vld [vmem:[#allocation38_spill] sm:$0xff]  ;;  %v9286_v16 = vld [vmem:[#allocation39_spill] sm:$0xff] }
 0x44a   :  { %v9287_v31 = vld [vmem:[#allocation40_spill] sm:$0xff] }
 0x44b   :  { %v8744_v20 = vadd.f32 %v4166_v10, %v4165_v17  ;;  %v4154_v9 = vadd.f32 %v7881_v37, %v4153_v13  ;;  %v9274_v17 = vld [vmem:[#allocation27_spill] sm:$0xff]  ;;  %v9275_v10 = vld [vmem:[#allocation28_spill] sm:$0xff]  ;;  %v9288_v13 = vld [vmem:[#allocation41_spill] sm:$0xff] }
 0x44c   :  { %v9291_v59 = vld [vmem:[#allocation44_spill] sm:$0xff] }
 0x44d   :  { %7884 = vtanh.f32 %v8744_v20  ;;  %v4158_v5 = vsel %vm4157_vm8, %v7881_v37, %v4154_v9  ;;  %v9277_v37 = vld [vmem:[#allocation30_spill] sm:$0xff] }
 0x44e   :  { %v4163_v4 = vsel %vm4160_vm9, %v4162_v50, %v4158_v5  ;;  %v9289_v9 = vld [vmem:[#allocation42_spill] sm:$0xff]  ;;  %v9292_v5 = vld [vmem:[#allocation45_spill] sm:$0xff] }
 0x44f   :  { %v9293_v50 = vld [vmem:[#allocation46_spill] sm:$0xff] }
 0x453   :  { %v7885_v39 = vpop.eup %7884 }
 0x454   :  { %v4169_v2 = vmul.f32 %v7885_v39, %v4163_v4  ;;  %v9294_v39 = vld [vmem:[#allocation47_spill] sm:$0xff]  ;;  %v9295_v4 = vld [vmem:[#allocation48_spill] sm:$0xff] }
 0x456   :  { %v4170_v30 = vpack.c.bf16 %v4169_v2, %v4169_v2  ;;  %v9296_v2 = vld [vmem:[#allocation49_spill] sm:$0xff] }
 0x458   :  { %4175 = vst [vmem:[#allocation3 + $0xc] sm:$0x2] %v4170_v30  ;;  %4184 = vmatmul.bf16.vlgmr.msra.gmra.mxu0 %v4170_v30  ;;  %4197 = vmatmul.bf16.vlgmr.msra.gmra.mxu1 %v4170_v30  ;;  %v4172_v1 = vrot.slane %v4170_v30, 6 }
 0x459   :  { %4210 = vmatmul.bf16.vlgmr.msra.gmra.mxu2 %v4170_v30  ;;  %4223 = vmatmul.bf16.vlgmr.msra.gmra.mxu3 %v4170_v30 }
 0x45a   :  { %4395 = vmatpush.bf16.msra.mxu0 %v8290_v58  ;;  %4408 = vmatpush.bf16.msra.mxu1 %v8292_v60  ;;  %4174 = vst [vmem:[#allocation3] sm:$0x4] %v4172_v1  ;;  %v9298_v1 = vld [vmem:[#allocation51_spill] sm:$0xff] }
 0x45b   :  { %4421 = vmatpush.bf16.msra.mxu2 %v8294_v61  ;;  %4434 = vmatpush.bf16.msra.mxu3 %v8296_v3 }
 0x45e   :  { %4396 = vmatpush.bf16.msra.mxu0 %v8299_v14  ;;  %4409 = vmatpush.bf16.msra.mxu1 %v8303_v15 }
 0x45f   :  { %4422 = vmatpush.bf16.msra.mxu2 %v8305_v18  ;;  %4435 = vmatpush.bf16.msra.mxu3 %v8311_v24 }
 0x462   :  { %4397 = vmatpush.bf16.msra.mxu0 %v8317_v35  ;;  %4410 = vmatpush.bf16.msra.mxu1 %v8321_v19 }
 0x463   :  { %4423 = vmatpush.bf16.msra.mxu2 %v8323_v34  ;;  %4436 = vmatpush.bf16.msra.mxu3 %v8326_v38 }
 0x466   :  { %4398 = vmatpush.bf16.msra.mxu0 %v8329_v25  ;;  %4411 = vmatpush.bf16.msra.mxu1 %v8333_v47 }
 0x467   :  { %4424 = vmatpush.bf16.msra.mxu2 %v8335_v33  ;;  %4437 = vmatpush.bf16.msra.mxu3 %v8338_v52 }
 0x468   :  { %4236 = vmatmul.bf16.vlgmr.msrb.gmra.mxu0 %v4170_v30  ;;  %4249 = vmatmul.bf16.vlgmr.msrb.gmra.mxu1 %v4170_v30 }
 0x469   :  { %4262 = vmatmul.bf16.vlgmr.msrb.gmra.mxu2 %v4170_v30  ;;  %4275 = vmatmul.bf16.vlgmr.msrb.gmra.mxu3 %v4170_v30  ;;  %v9297_v30 = vld [vmem:[#allocation50_spill] sm:$0xff] }
 0x46a   :  { %4399 = vmatpush.bf16.msra.mxu0 %v8341_v62  ;;  %4412 = vmatpush.bf16.msra.mxu1 %v8345_v63 }
 0x46b   :  { %4425 = vmatpush.bf16.msra.mxu2 %v8347_v0  ;;  %4438 = vmatpush.bf16.msra.mxu3 %v8350_v7 }
 0x46e   :  { %4400 = vmatpush.bf16.msra.mxu0 %v8353_v22  ;;  %4413 = vmatpush.bf16.msra.mxu1 %v8357_v27 }
 0x46f   :  { %4426 = vmatpush.bf16.msra.mxu2 %v8359_v28  ;;  %4439 = vmatpush.bf16.msra.mxu3 %v8362_v32 }
 0x472   :  { %4401 = vmatpush.bf16.msra.mxu0 %v8365_v41  ;;  %4414 = vmatpush.bf16.msra.mxu1 %v8369_v44 }
 0x473   :  { %4427 = vmatpush.bf16.msra.mxu2 %v8371_v45  ;;  %4440 = vmatpush.bf16.msra.mxu3 %v8374_v49 }
 0x476   :  { %4402 = vmatpush.bf16.msra.mxu0 %v8377_v56  ;;  %4415 = vmatpush.bf16.msra.mxu1 %v8381_v6 }
 0x477   :  { %4428 = vmatpush.bf16.msra.mxu2 %v8383_v8  ;;  %4441 = vmatpush.bf16.msra.mxu3 %v9221_v54 }
 0x47a   :  { %4447 = vmatpush.bf16.msrb.mxu0 %v9222_v21  ;;  %4460 = vmatpush.bf16.msrb.mxu1 %v9223_v12 }
 0x47b   :  { %4473 = vmatpush.bf16.msrb.mxu2 %v9224_v29  ;;  %4486 = vmatpush.bf16.msrb.mxu3 %v9225_v51 }
 0x47e   :  { %4448 = vmatpush.bf16.msrb.mxu0 %v8402_v42  ;;  %4461 = vmatpush.bf16.msrb.mxu1 %v9206_v55 }
 0x47f   :  { %4474 = vmatpush.bf16.msrb.mxu2 %v9274_v17  ;;  %4487 = vmatpush.bf16.msrb.mxu3 %v9275_v10 }
 0x482   :  { %4449 = vmatpush.bf16.msrb.mxu0 %v9276_v26  ;;  %4462 = vmatpush.bf16.msrb.mxu1 %v9277_v37  ;;  %v4291_v37 = vld [vmem:[#allocation2 + $0x28] sm:$0x3] }
 0x483   :  { %4475 = vmatpush.bf16.msrb.mxu2 %v9278_v46  ;;  %4488 = vmatpush.bf16.msrb.mxu3 %v9279_v23 }
 0x486   :  { %4450 = vmatpush.bf16.msrb.mxu0 %v9280_v57  ;;  %4463 = vmatpush.bf16.msrb.mxu1 %v9281_v43 }
 0x487   :  { %4476 = vmatpush.bf16.msrb.mxu2 %v9282_v11  ;;  %4489 = vmatpush.bf16.msrb.mxu3 %v9283_v48 }
 0x48a   :  { %4451 = vmatpush.bf16.msrb.mxu0 %v9284_v53  ;;  %4464 = vmatpush.bf16.msrb.mxu1 %v9285_v40  ;;  %v4288_v40 = vld [vmem:[#allocation2 + $0x60] sm:$0x3]  ;;  %v4284_v53 = vld [vmem:[#allocation2 + $0x30] sm:$0xc0] }
 0x48b   :  { %4477 = vmatpush.bf16.msrb.mxu2 %v9286_v16  ;;  %4490 = vmatpush.bf16.msrb.mxu3 %v9287_v31  ;;  %v4308_v48 = vrot.slane %v4288_v40, 6  ;;  %v4296_v43 = vrot.slane %v4284_v53, 6  ;;  %v4311_v53 = vrot.slane %v4291_v37, 6 }
 0x48d   :  { %v4316_v46 = vsel %vm3676_vm1, %v4296_v43, %v4308_v48 }
 0x48e   :  { %4452 = vmatpush.bf16.msrb.mxu0 %v9288_v13  ;;  %4465 = vmatpush.bf16.msrb.mxu1 %v9289_v9  ;;  %v9299_v13 = vld [vmem:[#allocation52_spill] sm:$0xff] }
 0x48f   :  { %4478 = vmatpush.bf16.msrb.mxu2 %v9290_v36  ;;  %4491 = vmatpush.bf16.msrb.mxu3 %v9291_v59 }
 0x492   :  { %4453 = vmatpush.bf16.msrb.mxu0 %v9292_v5  ;;  %4466 = vmatpush.bf16.msrb.mxu1 %v9293_v50  ;;  %v4289_v50 = vld [vmem:[#allocation2 + $0x70] sm:$0x3] }
 0x493   :  { %4479 = vmatpush.bf16.msrb.mxu2 %v9294_v39  ;;  %4492 = vmatpush.bf16.msrb.mxu3 %v9295_v4  ;;  %v4285_v39 = vld [vmem:[#allocation2] sm:$0xc0]  ;;  %v4309_v4 = vrot.slane %v4289_v50, 6  ;;  %v4287_v50 = vld [vmem:[#allocation2 + $0x18] sm:$0xc0] }
 0x496   :  { %4454 = vmatpush.bf16.msrb.mxu0 %v9296_v2  ;;  %4467 = vmatpush.bf16.msrb.mxu1 %v9297_v30  ;;  %v4297_v30 = vrot.slane %v4285_v39, 6  ;;  %v4299_v39 = vrot.slane %v4287_v50, 6 }
 0x497   :  { %4480 = vmatpush.bf16.msrb.mxu2 %v9298_v1  ;;  %4493 = vmatpush.bf16.msrb.mxu3 %v9299_v13 }
 0x498   :  { %v4319_v43 = vsel %vm3676_vm1, %v4299_v39, %v4311_v53 }
 0x4d5   :  { %v4185_v9 = vpop.f32.mrf.mxu0  ;;  %v4198_v36 = vpop.f32.mrf.mxu1 }
 0x4dc   :  { %v4211_v31 = vpop.f32.mrf.mxu2  ;;  %v4224_v59 = vpop.f32.mrf.mxu3 }
 0x4dd   :  { %v4187_v16 = vpop.f32.mrf.mxu0  ;;  %v4200_v5 = vpop.f32.mrf.mxu1 }
 0x4de   :  { %v4317_v5 = vsel %vm3676_vm1, %v4297_v30, %v4309_v4 }
 0x4e4   :  { %v4213_v11 = vpop.f32.mrf.mxu2  ;;  %v4226_v2 = vpop.f32.mrf.mxu3 }
 0x4e5   :  { %v4237_v57 = vpop.f32.mrf.mxu0  ;;  %v4250_v1 = vpop.f32.mrf.mxu1 }
 0x4e6   :  { %v4280_v13 = vsel %vm3227_vm0, %v4185_v9, %v4237_v57  ;;  %v4281_v16 = vsel %vm3227_vm0, %v4198_v36, %v4250_v1  ;;  %v4286_v1 = vld [vmem:[#allocation2 + $0x58] sm:$0xc0] }
 0x4e7   :  { %v4320_v26 = vadd.f32 %v4316_v46, %v4280_v13  ;;  %v4321_v40 = vadd.f32 %v4317_v5, %v4281_v16 }
 0x4e9   :  { %v7262_v11 = vmul.f32 -1.442695, %v4320_v26  ;;  %v7263_v2 = vmul.f32 -1.442695, %v4321_v40  ;;  %v4290_v26 = vld [vmem:[#allocation2 + $0x78] sm:$0x3] }
 0x4ea   :  { %v4310_v40 = vrot.slane %v4290_v26, 6 }
 0x4eb   :  { %7886 = vpow2.f32 %v7262_v11 }
 0x4ec   :  { %7888 = vpow2.f32 %v7263_v2  ;;  %v4263_v10 = vpop.f32.mrf.mxu2  ;;  %v4276_v17 = vpop.f32.mrf.mxu3 }
 0x4ed   :  { %v4283_v57 = vsel %vm3227_vm0, %v4224_v59, %v4276_v17  ;;  %v4239_v48 = vpop.f32.mrf.mxu0  ;;  %v4252_v9 = vpop.f32.mrf.mxu1  ;;  %v4282_v17 = vsel %vm3227_vm0, %v4211_v31, %v4263_v10  ;;  %v4298_v59 = vrot.slane %v4286_v1, 6 }
 0x4ee   :  { %v4323_v36 = vadd.f32 %v4319_v43, %v4283_v57 }
 0x4ef   :  { %v4318_v11 = vsel %vm3676_vm1, %v4298_v59, %v4310_v40 }
 0x4f0   :  { %v7264_v4 = vmul.f32 -1.442695, %v4323_v36  ;;  %v4322_v39 = vadd.f32 %v4318_v11, %v4282_v17 }
 0x4f1   :  { %v7887_v46 = vpop.eup %7886 }
 0x4f2   :  { %v7889_v13 = vpop.eup %7888  ;;  %v4327_v30 = vadd.f32 1.0, %v7887_v46  ;;  %7890 = vpow2.f32 %v7264_v4 }
 0x4f3   :  { %v4346_v37 = vadd.f32 1.0, %v7889_v13 }
 0x4f4   :  { %7892 = vrcp.f32 %v4327_v30  ;;  %v4265_v16 = vpop.f32.mrf.mxu2  ;;  %v4278_v5 = vpop.f32.mrf.mxu3  ;;  %v4339_v4 = vand.u32 2147483648, %v4327_v30  ;;  %v4337_v26 = vand.u32 2147483647, %v4327_v30  ;;  %vm4333_vm12 = vweird.f32 %v4327_v30 }
 0x4f5   :  { %7894 = vrcp.f32 %v4346_v37  ;;  %v4358_v46 = vand.u32 2147483648, %v4346_v37  ;;  %v4356_v31 = vand.u32 2147483647, %v4346_v37  ;;  %vm4352_vm13 = vweird.f32 %v4346_v37 }
 0x4f6   :  { %v4340_v5 = vor.u32 1.1754944e-38, %v4339_v4  ;;  %vm4338_vm2 = vcmp.eq.f32.partialorder %v4337_v26, 8.507059e+37 }
 0x4f7   :  { %v4359_v59 = vor.u32 1.1754944e-38, %v4358_v46  ;;  %vm4357_vm3 = vcmp.eq.f32.partialorder %v4356_v31, 8.507059e+37 }
 0x4f8   :  { %v7891_v50 = vpop.eup %7890 }
 0x4f9   :  { %v4366_v2 = vadd.f32 1.0, %v7891_v50 }
 0x4fa   :  { %v7893_v53 = vpop.eup %7892 }
 0x4fb   :  { %v7895_v57 = vpop.eup %7894  ;;  %v4329_v43 = vmul.f32 %v7893_v53, %v4327_v30  ;;  %7896 = vrcp.f32 %v4366_v2  ;;  %vm4334_vm10 = vweird.f32 %v7893_v53  ;;  %v4378_v4 = vand.u32 2147483648, %v4366_v2 }
 0x4fc   :  { %v4348_v48 = vmul.f32 %v7895_v57, %v4346_v37  ;;  %7898 = vtanh.f32 %v4322_v39  ;;  %vm4353_vm11 = vweird.f32 %v7895_v57  ;;  %vm4335_vm14 = vmor %vm4333_vm12, %vm4334_vm10  ;;  %vm4372_vm5 = vweird.f32 %v4366_v2 }
 0x4fd   :  { %v4330_v9 = vsub.f32 1.0, %v4329_v43  ;;  %vm4354_vm15 = vmor %vm4352_vm13, %vm4353_vm11  ;;  %v4379_v26 = vor.u32 1.1754944e-38, %v4378_v4  ;;  %v9316_v4 = vld [vmem:[#allocation42_spill] sm:$0xff] }
 0x4fe   :  { %v4349_v36 = vsub.f32 1.0, %v4348_v48 }
 0x4ff   :  { %v4331_v13 = vmul.f32 %v7893_v53, %v4330_v9 }
 0x500   :  { %v4350_v10 = vmul.f32 %v7895_v57, %v4349_v36 }
 0x501   :  { %v7897_v1 = vpop.eup %7896  ;;  %v4332_v16 = vadd.f32 %v7893_v53, %v4331_v13 }
 0x502   :  { %v4351_v40 = vadd.f32 %v7895_v57, %v4350_v10  ;;  %v4368_v17 = vmul.f32 %v7897_v1, %v4366_v2  ;;  %v7899_v11 = vpop.eup %7898  ;;  %vm4373_vm4 = vweird.f32 %v7897_v1 }
 0x503   :  { %v4336_v50 = vsel %vm4335_vm14, %v7893_v53, %v4332_v16  ;;  %v4376_v53 = vand.u32 2147483647, %v4366_v2  ;;  %vm4374_vm6 = vmor %vm4372_vm5, %vm4373_vm4  ;;  %v9301_v2 = vld [vmem:[#allocation27_spill] sm:$0xff] }
 0x504   :  { %v4341_v39 = vsel %vm4338_vm2, %v4340_v5, %v4336_v50  ;;  %v4355_v43 = vsel %vm4354_vm15, %v7895_v57, %v4351_v40  ;;  %v4369_v48 = vsub.f32 1.0, %v4368_v17  ;;  %v9303_v5 = vld [vmem:[#allocation29_spill] sm:$0xff]  ;;  %v9304_v40 = vld [vmem:[#allocation30_spill] sm:$0xff]  ;;  %v9305_v17 = vld [vmem:[#allocation31_spill] sm:$0xff] }
 0x505   :  { %v4360_v9 = vsel %vm4357_vm3, %v4359_v59, %v4355_v43  ;;  %v4383_v36 = vmul.f32 %v7899_v11, %v4341_v39  ;;  %vm4377_vm7 = vcmp.eq.f32.partialorder %v4376_v53, 8.507059e+37  ;;  %v9306_v59 = vld [vmem:[#allocation32_spill] sm:$0xff]  ;;  %v9307_v50 = vld [vmem:[#allocation33_spill] sm:$0xff]  ;;  %v9308_v11 = vld [vmem:[#allocation34_spill] sm:$0xff] }
 0x506   :  { %v4382_v23 = vmul.f32 %v4360_v9, %v8744_v20  ;;  %v4370_v13 = vmul.f32 %v7897_v1, %v4369_v48  ;;  %v9309_v39 = vld [vmem:[#allocation35_spill] sm:$0xff]  ;;  %v9310_v43 = vld [vmem:[#allocation36_spill] sm:$0xff]  ;;  %v9311_v48 = vld [vmem:[#allocation37_spill] sm:$0xff] }
 0x507   :  { %v9312_v9 = vld [vmem:[#allocation38_spill] sm:$0xff]  ;;  %v9317_v53 = vld [vmem:[#allocation43_spill] sm:$0xff] }
 0x508   :  { %v8824_v30 = vadd.f32 %v4383_v36, %v4382_v23  ;;  %v4371_v37 = vadd.f32 %v7897_v1, %v4370_v13  ;;  %v9313_v36 = vld [vmem:[#allocation39_spill] sm:$0xff]  ;;  %v9314_v13 = vld [vmem:[#allocation40_spill] sm:$0xff] }
 0x50a   :  { %7900 = vtanh.f32 %v8824_v30  ;;  %v4375_v46 = vsel %vm4374_vm6, %v7897_v1, %v4371_v37  ;;  %v9302_v1 = vld [vmem:[#allocation28_spill] sm:$0xff]  ;;  %v9315_v37 = vld [vmem:[#allocation41_spill] sm:$0xff] }
 0x50b   :  { %v4380_v10 = vsel %vm4377_vm7, %v4379_v26, %v4375_v46  ;;  %v9318_v46 = vld [vmem:[#allocation44_spill] sm:$0xff]  ;;  %v9319_v26 = vld [vmem:[#allocation45_spill] sm:$0xff] }
 0x510   :  { %v7901_v57 = vpop.eup %7900 }
 0x511   :  { %v4386_v31 = vmul.f32 %v7901_v57, %v4380_v10  ;;  %v9320_v57 = vld [vmem:[#allocation46_spill] sm:$0xff]  ;;  %v9321_v10 = vld [vmem:[#allocation47_spill] sm:$0xff] }
 0x513   :  { %v4387_v16 = vpack.c.bf16 %v4386_v31, %v4386_v31  ;;  %v9322_v31 = vld [vmem:[#allocation48_spill] sm:$0xff] }
 0x515   :  { %4403 = vmatmul.bf16.vlgmr.msra.gmra.mxu0 %v4387_v16  ;;  %4416 = vmatmul.bf16.vlgmr.msra.gmra.mxu1 %v4387_v16  ;;  %v4389_v20 = vrot.slane %v4387_v16, 5 }
 0x516   :  { %4429 = vmatmul.bf16.vlgmr.msra.gmra.mxu2 %v4387_v16  ;;  %4442 = vmatmul.bf16.vlgmr.msra.gmra.mxu3 %v4387_v16 }
 0x517   :  { %4600 = vmatpush.bf16.msra.mxu0 %v8290_v58  ;;  %4613 = vmatpush.bf16.msra.mxu1 %v8292_v60  ;;  %4391 = vst [vmem:[#allocation3] sm:$0x8] %v4389_v20  ;;  %v4392_v23 = vrot.slane %v4389_v20, 4  ;;  %v9324_v20 = vld [vmem:[#allocation50_spill] sm:$0xff] }
 0x518   :  { %4626 = vmatpush.bf16.msra.mxu2 %v8294_v61  ;;  %4639 = vmatpush.bf16.msra.mxu3 %v8296_v3 }
 0x519   :  { %4394 = vst [vmem:[#allocation3 + $0xc] sm:$0x1] %v4392_v23  ;;  %v9325_v23 = vld [vmem:[#allocation51_spill] sm:$0xff] }
 0x51b   :  { %4601 = vmatpush.bf16.msra.mxu0 %v8299_v14  ;;  %4614 = vmatpush.bf16.msra.mxu1 %v8303_v15 }
 0x51c   :  { %4627 = vmatpush.bf16.msra.mxu2 %v8305_v18  ;;  %4640 = vmatpush.bf16.msra.mxu3 %v8311_v24 }
 0x51f   :  { %4602 = vmatpush.bf16.msra.mxu0 %v8317_v35  ;;  %4615 = vmatpush.bf16.msra.mxu1 %v8321_v19 }
 0x520   :  { %4628 = vmatpush.bf16.msra.mxu2 %v8323_v34  ;;  %4641 = vmatpush.bf16.msra.mxu3 %v8326_v38 }
 0x523   :  { %4603 = vmatpush.bf16.msra.mxu0 %v8329_v25  ;;  %4616 = vmatpush.bf16.msra.mxu1 %v8333_v47 }
 0x524   :  { %4629 = vmatpush.bf16.msra.mxu2 %v8335_v33  ;;  %4642 = vmatpush.bf16.msra.mxu3 %v8338_v52 }
 0x525   :  { %4455 = vmatmul.bf16.vlgmr.msrb.gmra.mxu0 %v4387_v16  ;;  %4468 = vmatmul.bf16.vlgmr.msrb.gmra.mxu1 %v4387_v16 }
 0x526   :  { %4481 = vmatmul.bf16.vlgmr.msrb.gmra.mxu2 %v4387_v16  ;;  %4494 = vmatmul.bf16.vlgmr.msrb.gmra.mxu3 %v4387_v16  ;;  %v9323_v16 = vld [vmem:[#allocation49_spill] sm:$0xff] }
 0x527   :  { %4604 = vmatpush.bf16.msra.mxu0 %v8341_v62  ;;  %4617 = vmatpush.bf16.msra.mxu1 %v8345_v63 }
 0x528   :  { %4630 = vmatpush.bf16.msra.mxu2 %v8347_v0  ;;  %4643 = vmatpush.bf16.msra.mxu3 %v8350_v7 }
 0x52b   :  { %4605 = vmatpush.bf16.msra.mxu0 %v8353_v22  ;;  %4618 = vmatpush.bf16.msra.mxu1 %v8357_v27 }
 0x52c   :  { %4631 = vmatpush.bf16.msra.mxu2 %v8359_v28  ;;  %4644 = vmatpush.bf16.msra.mxu3 %v8362_v32 }
 0x52f   :  { %4606 = vmatpush.bf16.msra.mxu0 %v8365_v41  ;;  %4619 = vmatpush.bf16.msra.mxu1 %v8369_v44 }
 0x530   :  { %4632 = vmatpush.bf16.msra.mxu2 %v8371_v45  ;;  %4645 = vmatpush.bf16.msra.mxu3 %v8374_v49 }
 0x533   :  { %4607 = vmatpush.bf16.msra.mxu0 %v8377_v56  ;;  %4620 = vmatpush.bf16.msra.mxu1 %v8381_v6 }
 0x534   :  { %4633 = vmatpush.bf16.msra.mxu2 %v8383_v8  ;;  %4646 = vmatpush.bf16.msra.mxu3 %v9221_v54 }
 0x537   :  { %4652 = vmatpush.bf16.msrb.mxu0 %v9222_v21  ;;  %4665 = vmatpush.bf16.msrb.mxu1 %v9223_v12 }
 0x538   :  { %4678 = vmatpush.bf16.msrb.mxu2 %v9224_v29  ;;  %4691 = vmatpush.bf16.msrb.mxu3 %v9225_v51 }
 0x53b   :  { %4653 = vmatpush.bf16.msrb.mxu0 %v8402_v42  ;;  %4666 = vmatpush.bf16.msrb.mxu1 %v9206_v55 }
 0x53c   :  { %4679 = vmatpush.bf16.msrb.mxu2 %v9301_v2  ;;  %4692 = vmatpush.bf16.msrb.mxu3 %v9302_v1  ;;  %v4506_v1 = vld [vmem:[#allocation2 + $0x38] sm:$0x3] }
 0x53f   :  { %4654 = vmatpush.bf16.msrb.mxu0 %v9303_v5  ;;  %4667 = vmatpush.bf16.msrb.mxu1 %v9304_v40 }
 0x540   :  { %4680 = vmatpush.bf16.msrb.mxu2 %v9305_v17  ;;  %4693 = vmatpush.bf16.msrb.mxu3 %v9306_v59 }
 0x543   :  { %4655 = vmatpush.bf16.msrb.mxu0 %v9307_v50  ;;  %4668 = vmatpush.bf16.msrb.mxu1 %v9308_v11 }
 0x544   :  { %4681 = vmatpush.bf16.msrb.mxu2 %v9309_v39  ;;  %4694 = vmatpush.bf16.msrb.mxu3 %v9310_v43 }
 0x547   :  { %4656 = vmatpush.bf16.msrb.mxu0 %v9311_v48  ;;  %4669 = vmatpush.bf16.msrb.mxu1 %v9312_v9  ;;  %v4507_v9 = vld [vmem:[#allocation2 + $0x50] sm:$0xc0] }
 0x548   :  { %4682 = vmatpush.bf16.msrb.mxu2 %v9313_v36  ;;  %4695 = vmatpush.bf16.msrb.mxu3 %v9314_v13  ;;  %v4515_v48 = vrot.slane %v4507_v9, 4 }
 0x54b   :  { %4657 = vmatpush.bf16.msrb.mxu0 %v9315_v37  ;;  %4670 = vmatpush.bf16.msrb.mxu1 %v9316_v4  ;;  %v9326_v37 = vld [vmem:[#allocation52_spill] sm:$0xff] }
 0x54c   :  { %4683 = vmatpush.bf16.msrb.mxu2 %v9317_v53  ;;  %4696 = vmatpush.bf16.msrb.mxu3 %v9318_v46 }
 0x54f   :  { %4658 = vmatpush.bf16.msrb.mxu0 %v9319_v26  ;;  %4671 = vmatpush.bf16.msrb.mxu1 %v9320_v57  ;;  %v4508_v57 = vld [vmem:[#allocation2 + $0x68] sm:$0xc0] }
 0x550   :  { %4684 = vmatpush.bf16.msrb.mxu2 %v9321_v10  ;;  %4697 = vmatpush.bf16.msrb.mxu3 %v9322_v31  ;;  %v4516_v10 = vrot.slane %v4508_v57, 4 }
 0x553   :  { %4659 = vmatpush.bf16.msrb.mxu0 %v9323_v16  ;;  %4672 = vmatpush.bf16.msrb.mxu1 %v9324_v20  ;;  %v4503_v16 = vld [vmem:[#allocation2 + $0x40] sm:$0x3] }
 0x554   :  { %4685 = vmatpush.bf16.msrb.mxu2 %v9325_v23  ;;  %4698 = vmatpush.bf16.msrb.mxu3 %v9326_v37  ;;  %v4504_v20 = vld [vmem:[#allocation2 + $0x20] sm:$0x3]  ;;  %v4523_v37 = vsel %vm3676_vm1, %v4503_v16, %v4515_v48 }
 0x592   :  { %v4404_v4 = vpop.f32.mrf.mxu0  ;;  %v4417_v53 = vpop.f32.mrf.mxu1 }
 0x599   :  { %v4430_v13 = vpop.f32.mrf.mxu2  ;;  %v4443_v46 = vpop.f32.mrf.mxu3 }
 0x59a   :  { %v4406_v36 = vpop.f32.mrf.mxu0  ;;  %v4419_v26 = vpop.f32.mrf.mxu1 }
 0x59b   :  { %v4524_v36 = vsel %vm3676_vm1, %v4504_v20, %v4516_v10  ;;  %v4510_v26 = vld [vmem:[#allocation2 + $0x48] sm:$0xc0] }
 0x5a1   :  { %v4432_v43 = vpop.f32.mrf.mxu2  ;;  %v4445_v31 = vpop.f32.mrf.mxu3 }
 0x5a2   :  { %v4456_v39 = vpop.f32.mrf.mxu0  ;;  %v4469_v11 = vpop.f32.mrf.mxu1  ;;  %v4518_v31 = vrot.slane %v4510_v26, 4 }
 0x5a3   :  { %v4499_v23 = vsel %vm3227_vm0, %v4404_v4, %v4456_v39  ;;  %v4500_v59 = vsel %vm3227_vm0, %v4417_v53, %v4469_v11 }
 0x5a4   :  { %v4527_v17 = vadd.f32 %v4523_v37, %v4499_v23  ;;  %v4528_v9 = vadd.f32 %v4524_v36, %v4500_v59  ;;  %v4526_v48 = vsel %vm3676_vm1, %v4506_v1, %v4518_v31  ;;  %v4505_v1 = vld [vmem:[#allocation2 + $0x10] sm:$0x3] }
 0x5a6   :  { %v7265_v57 = vmul.f32 -1.442695, %v4527_v17  ;;  %v7266_v43 = vmul.f32 -1.442695, %v4528_v9  ;;  %v4509_v17 = vld [vmem:[#allocation2 + $0x8] sm:$0xc0] }
 0x5a7   :  { %v4517_v26 = vrot.slane %v4509_v17, 4 }
 0x5a8   :  { %7902 = vpow2.f32 %v7265_v57 }
 0x5a9   :  { %7904 = vpow2.f32 %v7266_v43  ;;  %v4482_v40 = vpop.f32.mrf.mxu2  ;;  %v4495_v5 = vpop.f32.mrf.mxu3  ;;  %v4525_v9 = vsel %vm3676_vm1, %v4505_v1, %v4517_v26 }
 0x5aa   :  { %v4502_v39 = vsel %vm3227_vm0, %v4443_v46, %v4495_v5  ;;  %v4458_v4 = vpop.f32.mrf.mxu0  ;;  %v4471_v11 = vpop.f32.mrf.mxu1  ;;  %v4501_v5 = vsel %vm3227_vm0, %v4430_v13, %v4482_v40 }
 0x5ab   :  { %v4530_v53 = vadd.f32 %v4526_v48, %v4502_v39  ;;  %v4529_v31 = vadd.f32 %v4525_v9, %v4501_v5 }
 0x5ad   :  { %v7267_v10 = vmul.f32 -1.442695, %v4530_v53 }
 0x5ae   :  { %v7903_v16 = vpop.eup %7902 }
 0x5af   :  { %v7905_v37 = vpop.eup %7904  ;;  %v4534_v59 = vadd.f32 1.0, %v7903_v16  ;;  %7906 = vpow2.f32 %v7267_v10 }
 0x5b0   :  { %v4553_v20 = vadd.f32 1.0, %v7905_v37 }
 0x5b1   :  { %7908 = vrcp.f32 %v4534_v59  ;;  %v4484_v23 = vpop.f32.mrf.mxu2  ;;  %v4497_v36 = vpop.f32.mrf.mxu3  ;;  %v4546_v10 = vand.u32 2147483648, %v4534_v59  ;;  %v4544_v17 = vand.u32 2147483647, %v4534_v59  ;;  %vm4540_vm10 = vweird.f32 %v4534_v59 }
 0x5b2   :  { %7910 = vrcp.f32 %v4553_v20  ;;  %v4565_v16 = vand.u32 2147483648, %v4553_v20  ;;  %v4563_v13 = vand.u32 2147483647, %v4553_v20  ;;  %vm4559_vm11 = vweird.f32 %v4553_v20 }
 0x5b3   :  { %v4547_v26 = vor.u32 1.1754944e-38, %v4546_v10  ;;  %vm4545_vm14 = vcmp.eq.f32.partialorder %v4544_v17, 8.507059e+37 }
 0x5b4   :  { %v4566_v1 = vor.u32 1.1754944e-38, %v4565_v16  ;;  %vm4564_vm15 = vcmp.eq.f32.partialorder %v4563_v13, 8.507059e+37 }
 0x5b5   :  { %v7907_v46 = vpop.eup %7906 }
 0x5b6   :  { %v4573_v57 = vadd.f32 1.0, %v7907_v46 }
 0x5b7   :  { %v7909_v43 = vpop.eup %7908 }
 0x5b8   :  { %v7911_v39 = vpop.eup %7910  ;;  %v4536_v48 = vmul.f32 %v7909_v43, %v4534_v59  ;;  %7912 = vrcp.f32 %v4573_v57  ;;  %vm4541_vm8 = vweird.f32 %v7909_v43  ;;  %v4585_v10 = vand.u32 2147483648, %v4573_v57 }
 0x5b9   :  { %v4555_v4 = vmul.f32 %v7911_v39, %v4553_v20  ;;  %7914 = vtanh.f32 %v4529_v31  ;;  %vm4560_vm9 = vweird.f32 %v7911_v39  ;;  %vm4542_vm12 = vmor %vm4540_vm10, %vm4541_vm8  ;;  %vm4579_vm3 = vweird.f32 %v4573_v57 }
 0x5ba   :  { %v4537_v11 = vsub.f32 1.0, %v4536_v48  ;;  %vm4561_vm13 = vmor %vm4559_vm11, %vm4560_vm9  ;;  %v4586_v17 = vor.u32 1.1754944e-38, %v4585_v10  ;;  %v9344_v10 = vld [vmem:[#allocation43_spill] sm:$0xff] }
 0x5bb   :  { %v4556_v53 = vsub.f32 1.0, %v4555_v4 }
 0x5bc   :  { %v4538_v37 = vmul.f32 %v7909_v43, %v4537_v11 }
 0x5bd   :  { %v4557_v40 = vmul.f32 %v7911_v39, %v4556_v53 }
 0x5be   :  { %v7913_v23 = vpop.eup %7912  ;;  %v4539_v36 = vadd.f32 %v7909_v43, %v4538_v37 }
 0x5bf   :  { %v4558_v5 = vadd.f32 %v7911_v39, %v4557_v40  ;;  %v4575_v46 = vmul.f32 %v7913_v23, %v4573_v57  ;;  %v7915_v31 = vpop.eup %7914  ;;  %vm4580_vm2 = vweird.f32 %v7913_v23 }
 0x5c0   :  { %v4543_v9 = vsel %vm4542_vm12, %v7909_v43, %v4539_v36  ;;  %v4583_v43 = vand.u32 2147483647, %v4573_v57  ;;  %vm4581_vm4 = vmor %vm4579_vm3, %vm4580_vm2  ;;  %v9330_v57 = vld [vmem:[#allocation29_spill] sm:$0xff] }
 0x5c1   :  { %v4548_v48 = vsel %vm4545_vm14, %v4547_v26, %v4543_v9  ;;  %v4562_v4 = vsel %vm4561_vm13, %v7911_v39, %v4558_v5  ;;  %v4576_v11 = vsub.f32 1.0, %v4575_v46  ;;  %v9332_v26 = vld [vmem:[#allocation31_spill] sm:$0xff]  ;;  %v9333_v5 = vld [vmem:[#allocation32_spill] sm:$0xff]  ;;  %v9334_v46 = vld [vmem:[#allocation33_spill] sm:$0xff] }
 0x5c2   :  { %v4567_v53 = vsel %vm4564_vm15, %v4566_v1, %v4562_v4  ;;  %v4590_v50 = vmul.f32 %v7915_v31, %v4548_v48  ;;  %vm4584_vm5 = vcmp.eq.f32.partialorder %v4583_v43, 8.507059e+37  ;;  %v9335_v1 = vld [vmem:[#allocation34_spill] sm:$0xff]  ;;  %v9336_v9 = vld [vmem:[#allocation35_spill] sm:$0xff]  ;;  %v9337_v31 = vld [vmem:[#allocation36_spill] sm:$0xff] }
 0x5c3   :  { %v4589_v2 = vmul.f32 %v4567_v53, %v8824_v30  ;;  %v4577_v37 = vmul.f32 %v7913_v23, %v4576_v11  ;;  %v9338_v48 = vld [vmem:[#allocation37_spill] sm:$0xff]  ;;  %v9339_v4 = vld [vmem:[#allocation38_spill] sm:$0xff]  ;;  %v9340_v11 = vld [vmem:[#allocation39_spill] sm:$0xff] }
 0x5c4   :  { %v9341_v53 = vld [vmem:[#allocation40_spill] sm:$0xff] }
 0x5c5   :  { %v8904_v59 = vadd.f32 %v4590_v50, %v4589_v2  ;;  %v4578_v20 = vadd.f32 %v7913_v23, %v4577_v37  ;;  %v9328_v2 = vld [vmem:[#allocation27_spill] sm:$0xff]  ;;  %v9329_v50 = vld [vmem:[#allocation28_spill] sm:$0xff]  ;;  %v9342_v37 = vld [vmem:[#allocation41_spill] sm:$0xff] }
 0x5c6   :  { %v9345_v43 = vld [vmem:[#allocation44_spill] sm:$0xff] }
 0x5c7   :  { %7916 = vtanh.f32 %v8904_v59  ;;  %v4582_v16 = vsel %vm4581_vm4, %v7913_v23, %v4578_v20  ;;  %v9331_v23 = vld [vmem:[#allocation30_spill] sm:$0xff] }
 0x5c8   :  { %v4587_v40 = vsel %vm4584_vm5, %v4586_v17, %v4582_v16  ;;  %v9343_v20 = vld [vmem:[#allocation42_spill] sm:$0xff]  ;;  %v9346_v16 = vld [vmem:[#allocation45_spill] sm:$0xff] }
 0x5c9   :  { %v9347_v17 = vld [vmem:[#allocation46_spill] sm:$0xff] }
 0x5cd   :  { %v7917_v39 = vpop.eup %7916 }
 0x5ce   :  { %v4593_v13 = vmul.f32 %v7917_v39, %v4587_v40  ;;  %v9348_v39 = vld [vmem:[#allocation47_spill] sm:$0xff]  ;;  %v9349_v40 = vld [vmem:[#allocation48_spill] sm:$0xff] }
 0x5d0   :  { %v4594_v36 = vpack.c.bf16 %v4593_v13, %v4593_v13  ;;  %v9350_v13 = vld [vmem:[#allocation49_spill] sm:$0xff] }
 0x5d2   :  { %4595 = vst [vmem:[#allocation3 + $0x8] sm:$0x1] %v4594_v36  ;;  %4608 = vmatmul.bf16.vlgmr.msra.gmra.mxu0 %v4594_v36  ;;  %4621 = vmatmul.bf16.vlgmr.msra.gmra.mxu1 %v4594_v36  ;;  %v4597_v30 = vrot.slane %v4594_v36, 6 }
 0x5d3   :  { %4634 = vmatmul.bf16.vlgmr.msra.gmra.mxu2 %v4594_v36  ;;  %4647 = vmatmul.bf16.vlgmr.msra.gmra.mxu3 %v4594_v36 }
 0x5d4   :  { %4817 = vmatpush.bf16.msra.mxu0 %v8290_v58  ;;  %4830 = vmatpush.bf16.msra.mxu1 %v8292_v60  ;;  %4599 = vst [vmem:[#allocation3 + $0x4] sm:$0x8] %v4597_v30  ;;  %v9352_v30 = vld [vmem:[#allocation51_spill] sm:$0xff] }
 0x5d5   :  { %4843 = vmatpush.bf16.msra.mxu2 %v8294_v61  ;;  %4856 = vmatpush.bf16.msra.mxu3 %v8296_v3 }
 0x5d8   :  { %4818 = vmatpush.bf16.msra.mxu0 %v8299_v14  ;;  %4831 = vmatpush.bf16.msra.mxu1 %v8303_v15 }
 0x5d9   :  { %4844 = vmatpush.bf16.msra.mxu2 %v8305_v18  ;;  %4857 = vmatpush.bf16.msra.mxu3 %v8311_v24 }
 0x5dc   :  { %4819 = vmatpush.bf16.msra.mxu0 %v8317_v35  ;;  %4832 = vmatpush.bf16.msra.mxu1 %v8321_v19 }
 0x5dd   :  { %4845 = vmatpush.bf16.msra.mxu2 %v8323_v34  ;;  %4858 = vmatpush.bf16.msra.mxu3 %v8326_v38 }
 0x5e0   :  { %4820 = vmatpush.bf16.msra.mxu0 %v8329_v25  ;;  %4833 = vmatpush.bf16.msra.mxu1 %v8333_v47 }
 0x5e1   :  { %4846 = vmatpush.bf16.msra.mxu2 %v8335_v33  ;;  %4859 = vmatpush.bf16.msra.mxu3 %v8338_v52 }
 0x5e2   :  { %4660 = vmatmul.bf16.vlgmr.msrb.gmra.mxu0 %v4594_v36  ;;  %4673 = vmatmul.bf16.vlgmr.msrb.gmra.mxu1 %v4594_v36 }
 0x5e3   :  { %4686 = vmatmul.bf16.vlgmr.msrb.gmra.mxu2 %v4594_v36  ;;  %4699 = vmatmul.bf16.vlgmr.msrb.gmra.mxu3 %v4594_v36  ;;  %v9351_v36 = vld [vmem:[#allocation50_spill] sm:$0xff] }
 0x5e4   :  { %4821 = vmatpush.bf16.msra.mxu0 %v8341_v62  ;;  %4834 = vmatpush.bf16.msra.mxu1 %v8345_v63 }
 0x5e5   :  { %4847 = vmatpush.bf16.msra.mxu2 %v8347_v0  ;;  %4860 = vmatpush.bf16.msra.mxu3 %v8350_v7 }
 0x5e8   :  { %4822 = vmatpush.bf16.msra.mxu0 %v8353_v22  ;;  %4835 = vmatpush.bf16.msra.mxu1 %v8357_v27 }
 0x5e9   :  { %4848 = vmatpush.bf16.msra.mxu2 %v8359_v28  ;;  %4861 = vmatpush.bf16.msra.mxu3 %v8362_v32 }
 0x5ec   :  { %4823 = vmatpush.bf16.msra.mxu0 %v8365_v41  ;;  %4836 = vmatpush.bf16.msra.mxu1 %v8369_v44 }
 0x5ed   :  { %4849 = vmatpush.bf16.msra.mxu2 %v8371_v45  ;;  %4862 = vmatpush.bf16.msra.mxu3 %v8374_v49 }
 0x5f0   :  { %4824 = vmatpush.bf16.msra.mxu0 %v8377_v56  ;;  %4837 = vmatpush.bf16.msra.mxu1 %v8381_v6 }
 0x5f1   :  { %4850 = vmatpush.bf16.msra.mxu2 %v8383_v8  ;;  %4863 = vmatpush.bf16.msra.mxu3 %v9221_v54 }
 0x5f4   :  { %4869 = vmatpush.bf16.msrb.mxu0 %v9222_v21  ;;  %4882 = vmatpush.bf16.msrb.mxu1 %v9223_v12 }
 0x5f5   :  { %4895 = vmatpush.bf16.msrb.mxu2 %v9224_v29  ;;  %4908 = vmatpush.bf16.msrb.mxu3 %v9225_v51 }
 0x5f8   :  { %4870 = vmatpush.bf16.msrb.mxu0 %v8402_v42  ;;  %4883 = vmatpush.bf16.msrb.mxu1 %v9206_v55 }
 0x5f9   :  { %4896 = vmatpush.bf16.msrb.mxu2 %v9328_v2  ;;  %4909 = vmatpush.bf16.msrb.mxu3 %v9329_v50 }
 0x5fc   :  { %4871 = vmatpush.bf16.msrb.mxu0 %v9330_v57  ;;  %4884 = vmatpush.bf16.msrb.mxu1 %v9331_v23  ;;  %v4715_v23 = vld [vmem:[#allocation2 + $0x48] sm:$0x30] }
 0x5fd   :  { %4897 = vmatpush.bf16.msrb.mxu2 %v9332_v26  ;;  %4910 = vmatpush.bf16.msrb.mxu3 %v9333_v5 }
 0x600   :  { %4872 = vmatpush.bf16.msrb.mxu0 %v9334_v46  ;;  %4885 = vmatpush.bf16.msrb.mxu1 %v9335_v1 }
 0x601   :  { %4898 = vmatpush.bf16.msrb.mxu2 %v9336_v9  ;;  %4911 = vmatpush.bf16.msrb.mxu3 %v9337_v31 }
 0x604   :  { %4873 = vmatpush.bf16.msrb.mxu0 %v9338_v48  ;;  %4886 = vmatpush.bf16.msrb.mxu1 %v9339_v4  ;;  %v4712_v4 = vld [vmem:[#allocation2 + $0x50] sm:$0x30]  ;;  %v4708_v48 = vld [vmem:[#allocation2 + $0x40] sm:$0xc] }
 0x605   :  { %4899 = vmatpush.bf16.msrb.mxu2 %v9340_v11  ;;  %4912 = vmatpush.bf16.msrb.mxu3 %v9341_v53  ;;  %v4732_v31 = vrot.slane %v4712_v4, 2  ;;  %v4720_v1 = vrot.slane %v4708_v48, 2  ;;  %v4735_v48 = vrot.slane %v4715_v23, 2 }
 0x607   :  { %v4740_v26 = vsel %vm3676_vm1, %v4720_v1, %v4732_v31 }
 0x608   :  { %4874 = vmatpush.bf16.msrb.mxu0 %v9342_v37  ;;  %4887 = vmatpush.bf16.msrb.mxu1 %v9343_v20  ;;  %v9353_v37 = vld [vmem:[#allocation52_spill] sm:$0xff] }
 0x609   :  { %4900 = vmatpush.bf16.msrb.mxu2 %v9344_v10  ;;  %4913 = vmatpush.bf16.msrb.mxu3 %v9345_v43 }
 0x60c   :  { %4875 = vmatpush.bf16.msrb.mxu0 %v9346_v16  ;;  %4888 = vmatpush.bf16.msrb.mxu1 %v9347_v17  ;;  %v4713_v17 = vld [vmem:[#allocation2 + $0x68] sm:$0x30] }
 0x60d   :  { %4901 = vmatpush.bf16.msrb.mxu2 %v9348_v39  ;;  %4914 = vmatpush.bf16.msrb.mxu3 %v9349_v40  ;;  %v4709_v39 = vld [vmem:[#allocation2 + $0x20] sm:$0xc]  ;;  %v4733_v40 = vrot.slane %v4713_v17, 2  ;;  %v4711_v17 = vld [vmem:[#allocation2 + $0x38] sm:$0xc] }
 0x610   :  { %4876 = vmatpush.bf16.msrb.mxu0 %v9350_v13  ;;  %4889 = vmatpush.bf16.msrb.mxu1 %v9351_v36  ;;  %v4721_v36 = vrot.slane %v4709_v39, 2  ;;  %v4723_v39 = vrot.slane %v4711_v17, 2 }
 0x611   :  { %4902 = vmatpush.bf16.msrb.mxu2 %v9352_v30  ;;  %4915 = vmatpush.bf16.msrb.mxu3 %v9353_v37 }
 0x612   :  { %v4743_v1 = vsel %vm3676_vm1, %v4723_v39, %v4735_v48 }
 0x64f   :  { %v4609_v20 = vpop.f32.mrf.mxu0  ;;  %v4622_v10 = vpop.f32.mrf.mxu1 }
 0x656   :  { %v4635_v53 = vpop.f32.mrf.mxu2  ;;  %v4648_v43 = vpop.f32.mrf.mxu3 }
 0x657   :  { %v4611_v11 = vpop.f32.mrf.mxu0  ;;  %v4624_v16 = vpop.f32.mrf.mxu1 }
 0x658   :  { %v4741_v16 = vsel %vm3676_vm1, %v4721_v36, %v4733_v40 }
 0x65e   :  { %v4637_v9 = vpop.f32.mrf.mxu2  ;;  %v4650_v13 = vpop.f32.mrf.mxu3 }
 0x65f   :  { %v4661_v46 = vpop.f32.mrf.mxu0  ;;  %v4674_v30 = vpop.f32.mrf.mxu1 }
 0x660   :  { %v4704_v37 = vsel %vm3227_vm0, %v4609_v20, %v4661_v46  ;;  %v4705_v11 = vsel %vm3227_vm0, %v4622_v10, %v4674_v30  ;;  %v4710_v30 = vld [vmem:[#allocation2 + $0x10] sm:$0xc] }
 0x661   :  { %v4744_v57 = vadd.f32 %v4740_v26, %v4704_v37  ;;  %v4745_v4 = vadd.f32 %v4741_v16, %v4705_v11 }
 0x663   :  { %v7268_v9 = vmul.f32 -1.442695, %v4744_v57  ;;  %v7269_v13 = vmul.f32 -1.442695, %v4745_v4  ;;  %v4714_v57 = vld [vmem:[#allocation2 + $0x8] sm:$0x30] }
 0x664   :  { %v4734_v4 = vrot.slane %v4714_v57, 2 }
 0x665   :  { %7918 = vpow2.f32 %v7268_v9 }
 0x666   :  { %7920 = vpow2.f32 %v7269_v13  ;;  %v4687_v50 = vpop.f32.mrf.mxu2  ;;  %v4700_v2 = vpop.f32.mrf.mxu3 }
 0x667   :  { %v4707_v46 = vsel %vm3227_vm0, %v4648_v43, %v4700_v2  ;;  %v4663_v31 = vpop.f32.mrf.mxu0  ;;  %v4676_v20 = vpop.f32.mrf.mxu1  ;;  %v4706_v2 = vsel %vm3227_vm0, %v4635_v53, %v4687_v50  ;;  %v4722_v43 = vrot.slane %v4710_v30, 2 }
 0x668   :  { %v4747_v10 = vadd.f32 %v4743_v1, %v4707_v46 }
 0x669   :  { %v4742_v9 = vsel %vm3676_vm1, %v4722_v43, %v4734_v4 }
 0x66a   :  { %v7270_v40 = vmul.f32 -1.442695, %v4747_v10  ;;  %v4746_v39 = vadd.f32 %v4742_v9, %v4706_v2 }
 0x66b   :  { %v7919_v26 = vpop.eup %7918 }
 0x66c   :  { %v7921_v37 = vpop.eup %7920  ;;  %v4751_v36 = vadd.f32 1.0, %v7919_v26  ;;  %7922 = vpow2.f32 %v7270_v40 }
 0x66d   :  { %v4770_v23 = vadd.f32 1.0, %v7921_v37 }
 0x66e   :  { %7924 = vrcp.f32 %v4751_v36  ;;  %v4689_v11 = vpop.f32.mrf.mxu2  ;;  %v4702_v16 = vpop.f32.mrf.mxu3  ;;  %v4763_v40 = vand.u32 2147483648, %v4751_v36  ;;  %v4761_v57 = vand.u32 2147483647, %v4751_v36  ;;  %vm4757_vm8 = vweird.f32 %v4751_v36 }
 0x66f   :  { %7926 = vrcp.f32 %v4770_v23  ;;  %v4782_v26 = vand.u32 2147483648, %v4770_v23  ;;  %v4780_v53 = vand.u32 2147483647, %v4770_v23  ;;  %vm4776_vm9 = vweird.f32 %v4770_v23 }
 0x670   :  { %v4764_v16 = vor.u32 1.1754944e-38, %v4763_v40  ;;  %vm4762_vm12 = vcmp.eq.f32.partialorder %v4761_v57, 8.507059e+37 }
 0x671   :  { %v4783_v43 = vor.u32 1.1754944e-38, %v4782_v26  ;;  %vm4781_vm13 = vcmp.eq.f32.partialorder %v4780_v53, 8.507059e+37 }
 0x672   :  { %v7923_v17 = vpop.eup %7922 }
 0x673   :  { %v4790_v13 = vadd.f32 1.0, %v7923_v17 }
 0x674   :  { %v7925_v48 = vpop.eup %7924 }
 0x675   :  { %v7927_v46 = vpop.eup %7926  ;;  %v4753_v1 = vmul.f32 %v7925_v48, %v4751_v36  ;;  %7928 = vrcp.f32 %v4790_v13  ;;  %vm4758_vm6 = vweird.f32 %v7925_v48  ;;  %v4802_v40 = vand.u32 2147483648, %v4790_v13 }
 0x676   :  { %v4772_v31 = vmul.f32 %v7927_v46, %v4770_v23  ;;  %7930 = vtanh.f32 %v4746_v39  ;;  %vm4777_vm7 = vweird.f32 %v7927_v46  ;;  %vm4759_vm10 = vmor %vm4757_vm8, %vm4758_vm6  ;;  %vm4796_vm15 = vweird.f32 %v4790_v13 }
 0x677   :  { %v4754_v20 = vsub.f32 1.0, %v4753_v1  ;;  %vm4778_vm11 = vmor %vm4776_vm9, %vm4777_vm7  ;;  %v4803_v57 = vor.u32 1.1754944e-38, %v4802_v40 }
 0x678   :  { %v4773_v10 = vsub.f32 1.0, %v4772_v31 }
 0x679   :  { %v4755_v37 = vmul.f32 %v7925_v48, %v4754_v20 }
 0x67a   :  { %v4774_v50 = vmul.f32 %v7927_v46, %v4773_v10 }
 0x67b   :  { %v7929_v30 = vpop.eup %7928  ;;  %v4756_v11 = vadd.f32 %v7925_v48, %v4755_v37 }
 0x67c   :  { %v4775_v4 = vadd.f32 %v7927_v46, %v4774_v50  ;;  %v4792_v2 = vmul.f32 %v7929_v30, %v4790_v13  ;;  %v7931_v9 = vpop.eup %7930  ;;  %vm4797_vm14 = vweird.f32 %v7929_v30 }
 0x67d   :  { %v4760_v17 = vsel %vm4759_vm10, %v7925_v48, %v4756_v11  ;;  %v4800_v48 = vand.u32 2147483647, %v4790_v13  ;;  %vm4798_vm2 = vmor %vm4796_vm15, %vm4797_vm14 }
 0x67e   :  { %v4765_v39 = vsel %vm4762_vm12, %v4764_v16, %v4760_v17  ;;  %v4779_v1 = vsel %vm4778_vm11, %v7927_v46, %v4775_v4  ;;  %v4793_v31 = vsub.f32 1.0, %v4792_v2 }
 0x67f   :  { %v4784_v20 = vsel %vm4781_vm13, %v4783_v43, %v4779_v1  ;;  %v4807_v10 = vmul.f32 %v7931_v9, %v4765_v39  ;;  %vm4801_vm3 = vcmp.eq.f32.partialorder %v4800_v48, 8.507059e+37 }
 0x680   :  { %v4806_v5 = vmul.f32 %v4784_v20, %v8904_v59  ;;  %v4794_v37 = vmul.f32 %v7929_v30, %v4793_v31  ;;  %v4928_v31 = vld [vmem:[#allocation2 + $0x38] sm:$0x30] }
 0x682   :  { %v8984_v36 = vadd.f32 %v4807_v10, %v4806_v5  ;;  %v4795_v23 = vadd.f32 %v7929_v30, %v4794_v37  ;;  %v4932_v37 = vld [vmem:[#allocation2 + $0x48] sm:$0xc] }
 0x684   :  { %7932 = vtanh.f32 %v8984_v36  ;;  %v4799_v26 = vsel %vm4798_vm2, %v7929_v30, %v4795_v23  ;;  %v4940_v23 = vrot.slane %v4928_v31, 4 }
 0x685   :  { %v4804_v50 = vsel %vm4801_vm3, %v4803_v57, %v4799_v26 }
 0x686   :  { %v4948_v57 = vsel %vm3676_vm1, %v4940_v23, %v4932_v37 }
 0x68a   :  { %v7933_v46 = vpop.eup %7932 }
 0x68b   :  { %v4810_v53 = vmul.f32 %v7933_v46, %v4804_v50 }
 0x68d   :  { %v4811_v11 = vpack.c.bf16 %v4810_v53, %v4810_v53 }
 0x68f   :  { %4825 = vmatmul.bf16.vlgmr.msra.gmra.mxu0 %v4811_v11  ;;  %4838 = vmatmul.bf16.vlgmr.msra.gmra.mxu1 %v4811_v11  ;;  %v4813_v59 = vrot.slane %v4811_v11, 7 }
 0x690   :  { %4851 = vmatmul.bf16.vlgmr.msra.gmra.mxu2 %v4811_v11  ;;  %4864 = vmatmul.bf16.vlgmr.msra.gmra.mxu3 %v4811_v11 }
 0x691   :  { %5022 = vmatpush.bf16.msra.mxu0 %v8290_v58  ;;  %5035 = vmatpush.bf16.msra.mxu1 %v8292_v60  ;;  %4815 = vst [vmem:[#allocation3 + $0x8] sm:$0x2] %v4813_v59  ;;  %v9355_v58 = vld [vmem:[#allocation27_spill] sm:$0xff]  ;;  %v9356_v60 = vld [vmem:[#allocation28_spill] sm:$0xff] }
 0x692   :  { %5048 = vmatpush.bf16.msra.mxu2 %v8294_v61  ;;  %5061 = vmatpush.bf16.msra.mxu3 %v8296_v3  ;;  %4816 = vst [vmem:[#allocation3 + $0x4] sm:$0x4] %v4813_v59  ;;  %v9357_v61 = vld [vmem:[#allocation29_spill] sm:$0xff]  ;;  %v9358_v3 = vld [vmem:[#allocation30_spill] sm:$0xff] }
 0x695   :  { %5023 = vmatpush.bf16.msra.mxu0 %v8299_v14  ;;  %5036 = vmatpush.bf16.msra.mxu1 %v8303_v15  ;;  %v9359_v14 = vld [vmem:[#allocation31_spill] sm:$0xff]  ;;  %v9360_v15 = vld [vmem:[#allocation32_spill] sm:$0xff] }
 0x696   :  { %5049 = vmatpush.bf16.msra.mxu2 %v8305_v18  ;;  %5062 = vmatpush.bf16.msra.mxu3 %v8311_v24  ;;  %v9361_v18 = vld [vmem:[#allocation33_spill] sm:$0xff]  ;;  %v9362_v24 = vld [vmem:[#allocation34_spill] sm:$0xff] }
 0x699   :  { %5024 = vmatpush.bf16.msra.mxu0 %v8317_v35  ;;  %5037 = vmatpush.bf16.msra.mxu1 %v8321_v19  ;;  %v9363_v35 = vld [vmem:[#allocation35_spill] sm:$0xff]  ;;  %v9364_v19 = vld [vmem:[#allocation36_spill] sm:$0xff] }
 0x69a   :  { %5050 = vmatpush.bf16.msra.mxu2 %v8323_v34  ;;  %5063 = vmatpush.bf16.msra.mxu3 %v8326_v38  ;;  %v9365_v34 = vld [vmem:[#allocation37_spill] sm:$0xff]  ;;  %v9366_v38 = vld [vmem:[#allocation38_spill] sm:$0xff] }
 0x69d   :  { %5025 = vmatpush.bf16.msra.mxu0 %v8329_v25  ;;  %5038 = vmatpush.bf16.msra.mxu1 %v8333_v47  ;;  %v9367_v25 = vld [vmem:[#allocation39_spill] sm:$0xff]  ;;  %v9368_v47 = vld [vmem:[#allocation40_spill] sm:$0xff] }
 0x69e   :  { %5051 = vmatpush.bf16.msra.mxu2 %v8335_v33  ;;  %5064 = vmatpush.bf16.msra.mxu3 %v8338_v52  ;;  %v9369_v33 = vld [vmem:[#allocation41_spill] sm:$0xff]  ;;  %v9370_v52 = vld [vmem:[#allocation42_spill] sm:$0xff] }
 0x69f   :  { %4877 = vmatmul.bf16.vlgmr.msrb.gmra.mxu0 %v4811_v11  ;;  %4890 = vmatmul.bf16.vlgmr.msrb.gmra.mxu1 %v4811_v11 }
 0x6a0   :  { %4903 = vmatmul.bf16.vlgmr.msrb.gmra.mxu2 %v4811_v11  ;;  %4916 = vmatmul.bf16.vlgmr.msrb.gmra.mxu3 %v4811_v11 }
 0x6a1   :  { %5026 = vmatpush.bf16.msra.mxu0 %v8341_v62  ;;  %5039 = vmatpush.bf16.msra.mxu1 %v8345_v63  ;;  %v9371_v62 = vld [vmem:[#allocation43_spill] sm:$0xff]  ;;  %v9372_v63 = vld [vmem:[#allocation44_spill] sm:$0xff] }
 0x6a2   :  { %5052 = vmatpush.bf16.msra.mxu2 %v8347_v0  ;;  %5065 = vmatpush.bf16.msra.mxu3 %v8350_v7  ;;  %v9373_v0 = vld [vmem:[#allocation45_spill] sm:$0xff]  ;;  %v9374_v7 = vld [vmem:[#allocation46_spill] sm:$0xff] }
 0x6a5   :  { %5027 = vmatpush.bf16.msra.mxu0 %v8353_v22  ;;  %5040 = vmatpush.bf16.msra.mxu1 %v8357_v27  ;;  %v9375_v22 = vld [vmem:[#allocation47_spill] sm:$0xff]  ;;  %v9376_v27 = vld [vmem:[#allocation48_spill] sm:$0xff] }
 0x6a6   :  { %5053 = vmatpush.bf16.msra.mxu2 %v8359_v28  ;;  %5066 = vmatpush.bf16.msra.mxu3 %v8362_v32  ;;  %v9377_v28 = vld [vmem:[#allocation49_spill] sm:$0xff]  ;;  %v9378_v32 = vld [vmem:[#allocation50_spill] sm:$0xff] }
 0x6a9   :  { %5028 = vmatpush.bf16.msra.mxu0 %v8365_v41  ;;  %5041 = vmatpush.bf16.msra.mxu1 %v8369_v44  ;;  %v9379_v41 = vld [vmem:[#allocation51_spill] sm:$0xff]  ;;  %v9380_v44 = vld [vmem:[#allocation52_spill] sm:$0xff] }
 0x6aa   :  { %5054 = vmatpush.bf16.msra.mxu2 %v8371_v45  ;;  %5067 = vmatpush.bf16.msra.mxu3 %v8374_v49 }
 0x6ad   :  { %5029 = vmatpush.bf16.msra.mxu0 %v8377_v56  ;;  %5042 = vmatpush.bf16.msra.mxu1 %v8381_v6 }
 0x6ae   :  { %5055 = vmatpush.bf16.msra.mxu2 %v8383_v8  ;;  %5068 = vmatpush.bf16.msra.mxu3 %v9221_v54  ;;  %v4926_v54 = vld [vmem:[#allocation2 + $0x20] sm:$0x30] }
 0x6af   :  { %v4938_v13 = vrot.slane %v4926_v54, 4 }
 0x6b1   :  { %5074 = vmatpush.bf16.msrb.mxu0 %v9222_v21  ;;  %5087 = vmatpush.bf16.msrb.mxu1 %v9223_v12  ;;  %v4929_v21 = vld [vmem:[#allocation2 + $0x50] sm:$0xc]  ;;  %v4930_v12 = vld [vmem:[#allocation2 + $0x68] sm:$0xc] }
 0x6b2   :  { %5100 = vmatpush.bf16.msrb.mxu2 %v9224_v29  ;;  %5113 = vmatpush.bf16.msrb.mxu3 %v9225_v51  ;;  %v4946_v9 = vsel %vm3676_vm1, %v4938_v13, %v4930_v12 }
 0x6b5   :  { %5075 = vmatpush.bf16.msrb.mxu0 %v8402_v42  ;;  %5088 = vmatpush.bf16.msrb.mxu1 %v9206_v55  ;;  %v4925_v55 = vld [vmem:[#allocation2 + $0x40] sm:$0x30] }
 0x6b6   :  { %5101 = vmatpush.bf16.msrb.mxu2 %v9355_v58  ;;  %5114 = vmatpush.bf16.msrb.mxu3 %v9356_v60  ;;  %v4937_v5 = vrot.slane %v4925_v55, 4 }
 0x6b8   :  { %v4945_v43 = vsel %vm3676_vm1, %v4937_v5, %v4929_v21 }
 0x6b9   :  { %5076 = vmatpush.bf16.msrb.mxu0 %v9357_v61  ;;  %5089 = vmatpush.bf16.msrb.mxu1 %v9358_v3  ;;  %v4927_v3 = vld [vmem:[#allocation2 + $0x10] sm:$0x30] }
 0x6ba   :  { %5102 = vmatpush.bf16.msrb.mxu2 %v9359_v14  ;;  %5115 = vmatpush.bf16.msrb.mxu3 %v9360_v15 }
 0x6bd   :  { %5077 = vmatpush.bf16.msrb.mxu0 %v9361_v18  ;;  %5090 = vmatpush.bf16.msrb.mxu1 %v9362_v24  ;;  %v4931_v18 = vld [vmem:[#allocation2 + $0x8] sm:$0xc] }
 0x6be   :  { %5103 = vmatpush.bf16.msrb.mxu2 %v9363_v35  ;;  %5116 = vmatpush.bf16.msrb.mxu3 %v9364_v19  ;;  %v4939_v35 = vrot.slane %v4927_v3, 4 }
 0x6c1   :  { %5078 = vmatpush.bf16.msrb.mxu0 %v9365_v34  ;;  %5091 = vmatpush.bf16.msrb.mxu1 %v9366_v38  ;;  %v4947_v34 = vsel %vm3676_vm1, %v4939_v35, %v4931_v18  ;;  %v7811_v35 = vld [vmem:[#allocation12 + $0x30] sm:$0xff] }
 0x6c2   :  { %5104 = vmatpush.bf16.msrb.mxu2 %v9367_v25  ;;  %5117 = vmatpush.bf16.msrb.mxu3 %v9368_v47 }
 0x6c5   :  { %5079 = vmatpush.bf16.msrb.mxu0 %v9369_v33  ;;  %5092 = vmatpush.bf16.msrb.mxu1 %v9370_v52 }
 0x6c6   :  { %5105 = vmatpush.bf16.msrb.mxu2 %v9371_v62  ;;  %5118 = vmatpush.bf16.msrb.mxu3 %v9372_v63 }
 0x6c9   :  { %5080 = vmatpush.bf16.msrb.mxu0 %v9373_v0  ;;  %5093 = vmatpush.bf16.msrb.mxu1 %v9374_v7 }
 0x6ca   :  { %5106 = vmatpush.bf16.msrb.mxu2 %v9375_v22  ;;  %5119 = vmatpush.bf16.msrb.mxu3 %v9376_v27 }
 0x6cd   :  { %5081 = vmatpush.bf16.msrb.mxu0 %v9377_v28  ;;  %5094 = vmatpush.bf16.msrb.mxu1 %v9378_v32 }
 0x6ce   :  { %5107 = vmatpush.bf16.msrb.mxu2 %v9379_v41  ;;  %5120 = vmatpush.bf16.msrb.mxu3 %v9380_v44 }
 0x70c   :  { %v4826_v45 = vpop.f32.mrf.mxu0  ;;  %v4839_v49 = vpop.f32.mrf.mxu1 }
 0x713   :  { %v4852_v56 = vpop.f32.mrf.mxu2  ;;  %v4865_v6 = vpop.f32.mrf.mxu3 }
 0x714   :  { %v4828_v8 = vpop.f32.mrf.mxu0  ;;  %v4841_v42 = vpop.f32.mrf.mxu1 }
 0x71b   :  { %v4854_v29 = vpop.f32.mrf.mxu2  ;;  %v4867_v51 = vpop.f32.mrf.mxu3 }
 0x71c   :  { %v4878_v30 = vpop.f32.mrf.mxu0  ;;  %v4891_v16 = vpop.f32.mrf.mxu1 }
 0x71d   :  { %v4921_v2 = vsel %vm3227_vm0, %v4826_v45, %v4878_v30  ;;  %v4922_v17 = vsel %vm3227_vm0, %v4839_v49, %v4891_v16 }
 0x71e   :  { %v4949_v39 = vadd.f32 %v4945_v43, %v4921_v2  ;;  %v4950_v1 = vadd.f32 %v4946_v9, %v4922_v17 }
 0x720   :  { %v7271_v20 = vmul.f32 -1.442695, %v4949_v39  ;;  %v7272_v10 = vmul.f32 -1.442695, %v4950_v1 }
 0x722   :  { %7934 = vpow2.f32 %v7271_v20 }
 0x723   :  { %7936 = vpow2.f32 %v7272_v10  ;;  %v4904_v40 = vpop.f32.mrf.mxu2  ;;  %v4917_v48 = vpop.f32.mrf.mxu3 }
 0x724   :  { %v4924_v26 = vsel %vm3227_vm0, %v4865_v6, %v4917_v48  ;;  %v4880_v46 = vpop.f32.mrf.mxu0  ;;  %v4893_v50 = vpop.f32.mrf.mxu1  ;;  %v4923_v24 = vsel %vm3227_vm0, %v4852_v56, %v4904_v40 }
 0x725   :  { %v4952_v53 = vadd.f32 %v4948_v57, %v4924_v26  ;;  %v4951_v47 = vadd.f32 %v4947_v34, %v4923_v24  ;;  %v5134_v57 = vld [vmem:[#allocation2 + $0x50] sm:$0x3]  ;;  %v5135_v46 = vld [vmem:[#allocation2 + $0x68] sm:$0x3]  ;;  %v5130_v50 = vld [vmem:[#allocation2 + $0x40] sm:$0xc0] }
 0x727   :  { %v7273_v11 = vmul.f32 -1.442695, %v4952_v53  ;;  %v5131_v53 = vld [vmem:[#allocation2 + $0x20] sm:$0xc0] }
 0x728   :  { %v7935_v59 = vpop.eup %7934 }
 0x729   :  { %v7937_v58 = vpop.eup %7936  ;;  %v4956_v60 = vadd.f32 1.0, %v7935_v59  ;;  %7938 = vpow2.f32 %v7273_v11  ;;  %v7812_v11 = vld [vmem:[#allocation12 + $0x38] sm:$0xff]  ;;  %v5154_v59 = vrot.slane %v5134_v57, 6 }
 0x72a   :  { %v4975_v61 = vadd.f32 1.0, %v7937_v58  ;;  %v5155_v58 = vrot.slane %v5135_v46, 6 }
 0x72b   :  { %7940 = vrcp.f32 %v4956_v60  ;;  %v4906_v14 = vpop.f32.mrf.mxu2  ;;  %v4919_v15 = vpop.f32.mrf.mxu3  ;;  %v4968_v7 = vand.u32 2147483648, %v4956_v60  ;;  %v4966_v28 = vand.u32 2147483647, %v4956_v60  ;;  %vm4962_vm6 = vweird.f32 %v4956_v60 }
 0x72c   :  { %7942 = vrcp.f32 %v4975_v61  ;;  %v4987_v22 = vand.u32 2147483648, %v4975_v61  ;;  %v4985_v41 = vand.u32 2147483647, %v4975_v61  ;;  %vm4981_vm7 = vweird.f32 %v4975_v61 }
 0x72d   :  { %v4969_v49 = vor.u32 1.1754944e-38, %v4968_v7  ;;  %vm4967_vm10 = vcmp.eq.f32.partialorder %v4966_v28, 8.507059e+37  ;;  %v5142_v14 = vrot.slane %v5130_v50, 6  ;;  %v5143_v15 = vrot.slane %v5131_v53, 6  ;;  %v7805_v53 = vld [vmem:[#allocation12] sm:$0xff] }
 0x72e   :  { %v4988_v8 = vor.u32 1.1754944e-38, %v4987_v22  ;;  %vm4986_vm11 = vcmp.eq.f32.partialorder %v4985_v41, 8.507059e+37 }
 0x72f   :  { %v7939_v19 = vpop.eup %7938  ;;  %v5162_v34 = vsel %vm3676_vm1, %v5142_v14, %v5154_v59 }
 0x730   :  { %v4995_v38 = vadd.f32 1.0, %v7939_v19 }
 0x731   :  { %v7941_v25 = vpop.eup %7940 }
 0x732   :  { %v7943_v33 = vpop.eup %7942  ;;  %v4958_v52 = vmul.f32 %v7941_v25, %v4956_v60  ;;  %7944 = vrcp.f32 %v4995_v38  ;;  %vm4963_vm4 = vweird.f32 %v7941_v25  ;;  %v5007_v2 = vand.u32 2147483648, %v4995_v38  ;;  %v7820_v60 = vld [vmem:[#allocation12 + $0x78] sm:$0xff] }
 0x733   :  { %v4977_v62 = vmul.f32 %v7943_v33, %v4975_v61  ;;  %7946 = vtanh.f32 %v4951_v47  ;;  %vm4982_vm5 = vweird.f32 %v7943_v33  ;;  %vm4964_vm8 = vmor %vm4962_vm6, %vm4963_vm4  ;;  %vm5001_vm13 = vweird.f32 %v4995_v38  ;;  %v5137_v47 = vld [vmem:[#allocation2 + $0x48] sm:$0x3] }
 0x734   :  { %v4959_v63 = vsub.f32 1.0, %v4958_v52  ;;  %vm4983_vm9 = vmor %vm4981_vm7, %vm4982_vm5  ;;  %v5005_v43 = vand.u32 2147483647, %v4995_v38  ;;  %v5008_v9 = vor.u32 1.1754944e-38, %v5007_v2  ;;  %v5157_v22 = vrot.slane %v5137_v47, 6 }
 0x735   :  { %v4978_v0 = vsub.f32 1.0, %v4977_v62  ;;  %v7819_v62 = vld [vmem:[#allocation12 + $0x70] sm:$0xff]  ;;  %v5132_v2 = vld [vmem:[#allocation2 + $0x10] sm:$0xc0] }
 0x736   :  { %v4960_v27 = vmul.f32 %v7941_v25, %v4959_v63  ;;  %vm5006_vm15 = vcmp.eq.f32.partialorder %v5005_v43, 8.507059e+37  ;;  %v5133_v63 = vld [vmem:[#allocation2 + $0x38] sm:$0xc0] }
 0x737   :  { %v4979_v32 = vmul.f32 %v7943_v33, %v4978_v0  ;;  %v5145_v28 = vrot.slane %v5133_v63, 6 }
 0x738   :  { %v7945_v44 = vpop.eup %7944  ;;  %v4961_v45 = vadd.f32 %v7941_v25, %v4960_v27  ;;  %v7810_v27 = vld [vmem:[#allocation12 + $0x28] sm:$0xff] }
 0x739   :  { %v4980_v56 = vadd.f32 %v7943_v33, %v4979_v32  ;;  %v4997_v6 = vmul.f32 %v7945_v44, %v4995_v38  ;;  %v7947_v55 = vpop.eup %7946  ;;  %vm5002_vm12 = vweird.f32 %v7945_v44  ;;  %v7818_v32 = vld [vmem:[#allocation12 + $0x68] sm:$0xff] }
 0x73a   :  { %v4965_v42 = vsel %vm4964_vm8, %v7941_v25, %v4961_v45  ;;  %vm5003_vm14 = vmor %vm5001_vm13, %vm5002_vm12  ;;  %v5163_v25 = vsel %vm3676_vm1, %v5143_v15, %v5155_v58 }
 0x73b   :  { %v4970_v54 = vsel %vm4967_vm10, %v4969_v49, %v4965_v42  ;;  %v4984_v21 = vsel %vm4983_vm9, %v7943_v33, %v4980_v56  ;;  %v4998_v12 = vsub.f32 1.0, %v4997_v6  ;;  %v5165_v49 = vsel %vm3676_vm1, %v5145_v28, %v5157_v22 }
 0x73c   :  { %v4989_v29 = vsel %vm4986_vm11, %v4988_v8, %v4984_v21  ;;  %v5012_v51 = vmul.f32 %v7947_v55, %v4970_v54  ;;  %v7809_v8 = vld [vmem:[#allocation12 + $0x20] sm:$0xff] }
 0x73d   :  { %v5011_v5 = vmul.f32 %v4989_v29, %v8984_v36  ;;  %v4999_v13 = vmul.f32 %v7945_v44, %v4998_v12  ;;  %v7817_v55 = vld [vmem:[#allocation12 + $0x60] sm:$0xff]  ;;  %v7808_v12 = vld [vmem:[#allocation12 + $0x18] sm:$0xff] }
 0x73f   :  { %v9064_v30 = vadd.f32 %v5012_v51, %v5011_v5  ;;  %v5000_v16 = vadd.f32 %v7945_v44, %v4999_v13  ;;  %v5136_v5 = vld [vmem:[#allocation2 + $0x8] sm:$0x3] }
 0x741   :  { %7948 = vtanh.f32 %v9064_v30  ;;  %v5004_v17 = vsel %vm5003_vm14, %v7945_v44, %v5000_v16  ;;  %v7816_v16 = vld [vmem:[#allocation12 + $0x58] sm:$0xff] }
 0x742   :  { %v5009_v1 = vsel %vm5006_vm15, %v5008_v9, %v5004_v17  ;;  %v5156_v9 = vrot.slane %v5136_v5, 6  ;;  %v7837_v5 = vld [vmem:[#allocation13] ss:$0 sm:$0xff] }
 0x747   :  { %v7949_v39 = vpop.eup %7948 }
 0x748   :  { %v5015_v31 = vmul.f32 %v7949_v39, %v5009_v1  ;;  %v7807_v39 = vld [vmem:[#allocation12 + $0x10] sm:$0xff] }
 0x74a   :  { %v5016_v20 = vpack.c.bf16 %v5015_v31, %v5015_v31  ;;  %v5144_v31 = vrot.slane %v5132_v2, 6 }
 0x74c   :  { %5021 = vst [vmem:[#allocation3 + $0x4] sm:$0x2] %v5016_v20  ;;  %5030 = vmatmul.bf16.vlgmr.msra.gmra.mxu0 %v5016_v20  ;;  %5043 = vmatmul.bf16.vlgmr.msra.gmra.mxu1 %v5016_v20  ;;  %v5018_v36 = vrot.slane %v5016_v20, 6 }
 0x74d   :  { %5056 = vmatmul.bf16.vlgmr.msra.gmra.mxu2 %v5016_v20  ;;  %5069 = vmatmul.bf16.vlgmr.msra.gmra.mxu3 %v5016_v20 }
 0x74e   :  { %5020 = vst [vmem:[#allocation3 + $0x8] sm:$0x4] %v5018_v36  ;;  %5385 = vmatpush.bf16.msra.mxu0 %v7812_v11  ;;  %5399 = vmatpush.bf16.msra.mxu1 %v7820_v60 }
 0x752   :  { %5386 = vmatpush.bf16.msra.mxu0 %v7811_v35  ;;  %5400 = vmatpush.bf16.msra.mxu1 %v7819_v62 }
 0x756   :  { %5387 = vmatpush.bf16.msra.mxu0 %v7810_v27  ;;  %5401 = vmatpush.bf16.msra.mxu1 %v7818_v32 }
 0x75a   :  { %5388 = vmatpush.bf16.msra.mxu0 %v7809_v8  ;;  %5402 = vmatpush.bf16.msra.mxu1 %v7817_v55 }
 0x75c   :  { %5082 = vmatmul.bf16.vlgmr.msrb.gmra.mxu0 %v5016_v20  ;;  %5095 = vmatmul.bf16.vlgmr.msrb.gmra.mxu1 %v5016_v20 }
 0x75d   :  { %5108 = vmatmul.bf16.vlgmr.msrb.gmra.mxu2 %v5016_v20  ;;  %5121 = vmatmul.bf16.vlgmr.msrb.gmra.mxu3 %v5016_v20  ;;  %v7815_v20 = vld [vmem:[#allocation12 + $0x50] sm:$0xff] }
 0x75e   :  { %5389 = vmatpush.bf16.msra.mxu0 %v7808_v12  ;;  %5403 = vmatpush.bf16.msra.mxu1 %v7816_v16 }
 0x762   :  { %5390 = vmatpush.bf16.msra.mxu0 %v7807_v39  ;;  %5404 = vmatpush.bf16.msra.mxu1 %v7815_v20 }
 0x7c9   :  { %v5031_v10 = vpop.f32.mrf.mxu0  ;;  %v5044_v37 = vpop.f32.mrf.mxu1 }
 0x7d0   :  { %v9067_v23 = vpop.f32.mrf.mxu2  ;;  %v5070_v40 = vpop.f32.mrf.mxu3 }
 0x7d1   :  { %v5033_v48 = vpop.f32.mrf.mxu0  ;;  %v5046_v26 = vpop.f32.mrf.mxu1 }
 0x7d2   :  { %v7814_v48 = vld [vmem:[#allocation12 + $0x48] sm:$0xff] }
 0x7d3   :  { %5405 = vmatpush.bf16.msra.mxu1 %v7814_v48 }
 0x7d8   :  { %v5059_v61 = vpop.f32.mrf.mxu2  ;;  %v5072_v3 = vpop.f32.mrf.mxu3 }
 0x7d9   :  { %v5083_v18 = vpop.f32.mrf.mxu0  ;;  %v5096_v24 = vpop.f32.mrf.mxu1 }
 0x7da   :  { %v5126_v19 = vsel %vm3227_vm0, %v5031_v10, %v5083_v18  ;;  %v5127_v38 = vsel %vm3227_vm0, %v5044_v37, %v5096_v24  ;;  %v5164_v10 = vsel %vm3676_vm1, %v5144_v31, %v5156_v9 }
 0x7db   :  { %v5166_v33 = vadd.f32 %v5162_v34, %v5126_v19  ;;  %v5167_v52 = vadd.f32 %v5163_v25, %v5127_v38 }
 0x7dd   :  { %v7274_v0 = vmul.f32 -1.442695, %v5166_v33  ;;  %v7275_v7 = vmul.f32 -1.442695, %v5167_v52 }
 0x7df   :  { %7950 = vpow2.f32 %v7274_v0 }
 0x7e0   :  { %7952 = vpow2.f32 %v7275_v7  ;;  %v5109_v41 = vpop.f32.mrf.mxu2  ;;  %v5122_v44 = vpop.f32.mrf.mxu3 }
 0x7e1   :  { %v5129_v45 = vsel %vm3227_vm0, %v5070_v40, %v5122_v44  ;;  %v5085_v56 = vpop.f32.mrf.mxu0  ;;  %v5098_v6 = vpop.f32.mrf.mxu1  ;;  %v5128_v1 = vsel %vm3227_vm0, %v9067_v23, %v5109_v41  ;;  %v7806_v40 = vld [vmem:[#allocation12 + $0x8] sm:$0xff]  ;;  %v7813_v23 = vld [vmem:[#allocation12 + $0x40] sm:$0xff] }
 0x7e2   :  { %v5169_v42 = vadd.f32 %v5165_v49, %v5129_v45  ;;  %v5168_v57 = vadd.f32 %v5164_v10, %v5128_v1  ;;  %5391 = vmatpush.bf16.msra.mxu0 %v7806_v40  ;;  %5406 = vmatpush.bf16.msra.mxu1 %v7813_v23 }
 0x7e4   :  { %v7276_v54 = vmul.f32 -1.442695, %v5169_v42 }
 0x7e5   :  { %v7951_v21 = vpop.eup %7950 }
 0x7e6   :  { %v7953_v29 = vpop.eup %7952  ;;  %v5173_v51 = vadd.f32 1.0, %v7951_v21  ;;  %7954 = vpow2.f32 %v7276_v54  ;;  %5392 = vmatpush.bf16.msra.mxu0 %v7805_v53 }
 0x7e7   :  { %v5192_v13 = vadd.f32 1.0, %v7953_v29  ;;  %v7281_v29 = vld [vmem:[#allocation3 + $0x8] sm:$0xf0] }
 0x7e8   :  { %7956 = vrcp.f32 %v5173_v51  ;;  %v5111_v43 = vpop.f32.mrf.mxu2  ;;  %v5124_v17 = vpop.f32.mrf.mxu3  ;;  %v5185_v58 = vand.u32 2147483648, %v5173_v51  ;;  %v5183_v3 = vand.u32 2147483647, %v5173_v51  ;;  %vm5179_vm2 = vweird.f32 %v5173_v51 }
 0x7e9   :  { %7958 = vrcp.f32 %v5192_v13  ;;  %v5204_v60 = vand.u32 2147483648, %v5192_v13  ;;  %v5202_v15 = vand.u32 2147483647, %v5192_v13  ;;  %vm5198_vm3 = vweird.f32 %v5192_v13 }
 0x7ea   :  { %v5186_v35 = vor.u32 1.1754944e-38, %v5185_v58  ;;  %vm5184_vm6 = vcmp.eq.f32.partialorder %v5183_v3, 8.507059e+37 }
 0x7eb   :  { %v5205_v38 = vor.u32 1.1754944e-38, %v5204_v60  ;;  %vm5203_vm7 = vcmp.eq.f32.partialorder %v5202_v15, 8.507059e+37 }
 0x7ec   :  { %v7955_v36 = vpop.eup %7954 }
 0x7ed   :  { %v5212_v37 = vadd.f32 1.0, %v7955_v36 }
 0x7ee   :  { %v7957_v26 = vpop.eup %7956 }
 0x7ef   :  { %v7959_v46 = vpop.eup %7958  ;;  %v5175_v50 = vmul.f32 %v7957_v26, %v5173_v51  ;;  %7960 = vrcp.f32 %v5212_v37  ;;  %vm5180_vm0 = vweird.f32 %v7957_v26  ;;  %v5224_v32 = vand.u32 2147483648, %v5212_v37 }
 0x7f0   :  { %v5194_v11 = vmul.f32 %v7959_v46, %v5192_v13  ;;  %7962 = vtanh.f32 %v5168_v57  ;;  %vm5199_vm1 = vweird.f32 %v7959_v46  ;;  %vm5181_vm4 = vmor %vm5179_vm2, %vm5180_vm0  ;;  %vm5218_vm9 = vweird.f32 %v5212_v37 }
 0x7f1   :  { %v5176_v4 = vsub.f32 1.0, %v5175_v50  ;;  %vm5200_vm5 = vmor %vm5198_vm3, %vm5199_vm1  ;;  %v5222_v41 = vand.u32 2147483647, %v5212_v37  ;;  %v5225_v45 = vor.u32 1.1754944e-38, %v5224_v32 }
 0x7f2   :  { %v5195_v59 = vsub.f32 1.0, %v5194_v11 }
 0x7f3   :  { %v5177_v61 = vmul.f32 %v7957_v26, %v5176_v4  ;;  %vm5223_vm11 = vcmp.eq.f32.partialorder %v5222_v41, 8.507059e+37 }
 0x7f4   :  { %v5196_v14 = vmul.f32 %v7959_v46, %v5195_v59 }
 0x7f5   :  { %v7961_v18 = vpop.eup %7960  ;;  %v5178_v24 = vadd.f32 %v7957_v26, %v5177_v61 }
 0x7f6   :  { %v5197_v19 = vadd.f32 %v7959_v46, %v5196_v14  ;;  %v5214_v34 = vmul.f32 %v7961_v18, %v5212_v37  ;;  %v7963_v47 = vpop.eup %7962  ;;  %vm5219_vm8 = vweird.f32 %v7961_v18 }
 0x7f7   :  { %v5182_v25 = vsel %vm5181_vm4, %v7957_v26, %v5178_v24  ;;  %vm5220_vm10 = vmor %vm5218_vm9, %vm5219_vm8 }
 0x7f8   :  { %v5187_v33 = vsel %vm5184_vm6, %v5186_v35, %v5182_v25  ;;  %v5201_v52 = vsel %vm5200_vm5, %v7959_v46, %v5197_v19  ;;  %v5215_v62 = vsub.f32 1.0, %v5214_v34 }
 0x7f9   :  { %v5206_v63 = vsel %vm5203_vm7, %v5205_v38, %v5201_v52  ;;  %v5229_v0 = vmul.f32 %v7963_v47, %v5187_v33 }
 0x7fa   :  { %v5228_v7 = vmul.f32 %v5206_v63, %v9064_v30  ;;  %v5216_v22 = vmul.f32 %v7961_v18, %v5215_v62  ;;  %v7279_v30 = vld [vmem:[#allocation3] sm:$0xf] }
 0x7fc   :  { %v5230_v27 = vadd.f32 %v5229_v0, %v5228_v7  ;;  %v5217_v28 = vadd.f32 %v7961_v18, %v5216_v22 }
 0x7fe   :  { %7964 = vtanh.f32 %v5230_v27  ;;  %v5221_v44 = vsel %vm5220_vm10, %v7961_v18, %v5217_v28 }
 0x7ff   :  { %v5226_v56 = vsel %vm5223_vm11, %v5225_v45, %v5221_v44 }
 0x804   :  { %v7965_v49 = vpop.eup %7964 }
 0x805   :  { %v5232_v6 = vmul.f32 %v7965_v49, %v5226_v56 }
 0x807   :  { %v5233_v8 = vpack.c.bf16 %v5232_v6, %v5232_v6 }
 0x809   :  { %v5235_v42 = vrot.slane %v5233_v8, 5 }
 0x80b   :  { %5237 = vst [vmem:[#allocation3 + $0x8] sm:$0x8] %v5235_v42  ;;  %v5238_v55 = vrot.slane %v5235_v42, 4 }
 0x80d   :  { %5240 = vst [vmem:[#allocation3 + $0x4] sm:$0x1] %v5238_v55 }
 0x812   :  { %v7804_v54 = vld [vmem:[#allocation3 + $0x4] sm:$0xf0] }
 0x813   :  { %v7280_v21 = vor.u32 %v7804_v54, %v7279_v30 }
 0x814   :  { %v7803_v12 = vld [vmem:[#allocation3 + $0x4] sm:$0xf] }
 0x815   :  { %5393 = vmatmul.bf16.vlgmr.msra.gmra.mxu0 %v7280_v21  ;;  %v7284_v51 = vor.u32 %v7803_v12, %v7281_v29 }
 0x817   :  { %5407 = vmatmul.bf16.vlgmr.msra.gmra.mxu1 %v7284_v51 }
 0x892   :  { %v5394_v13 = vpop.f32.mrf.mxu0 }
 0x893   :  { %v5395_v16 = vadd.f32 %v7837_v5, %v5394_v13 }
 0x894   :  { %v5408_v2 = vpop.f32.mrf.mxu1 }
 0x895   :  { %v5409_v43 = vadd.f32 %v5408_v2, %v5395_v16 }
 0x897   :  { %5413 = vst [vmem:[#allocation15] sm:$0xff] %v5409_v43 }
 0x89a   :  { %v5396_v17 = vpop.f32.mrf.mxu0 }
 0x89b   :  { %v5397_v9 = vadd.f32 %v7837_v5, %v5396_v17 }
 0x89c   :  { %v5410_v39 = vpop.f32.mrf.mxu1 }
 0x89d   :  { %v5411_v1 = vadd.f32 %v5410_v39, %v5397_v9 }
 0x89f   :  { %5414 = vst [vmem:[#allocation15 + $0x8] sm:$0xff] %v5411_v1 }
 0x8a0   :  { %5427 = dma.vmem_to_hbm [thread:$0]  %s5420_s5, 256, %s5422_s7, [#allocation6], %s8160_s8, %s8160_s8, %s8161_s9  }
 0x8a1   :  { %8144 = dma.done.wait [#allocation6], 256  }
 0x8a2   :  { %8145 = vsyncadd [#allocation6], 4294967040 }
 0x8a3   :  { %5432 = vsyncpa [#allocation5], 1 }
 0x8a4   :  { %5433 = vsyncpa [#allocation8], 1 }
 0x8a5   :  { %5434 = vsyncpa [#allocation11], 1 }
 0x8a6   :  { %5435 = vsyncpa [#allocation14], 1 }
 0x8a7   :  { %5436 = vsyncpa [#allocation6], 1 }

</bundles_post_ra>
